<compile_context>
chip_gen: v7x
topology: tpu7x:2x2x1
jax: 0.10.0
libtpu: 0.0.40
codegen_flags: <defaults>
</compile_context>

<pallas_src>
import jax
import jax.numpy as jnp
from jax.experimental import pallas as pl
from jax.experimental.pallas import tpu as pltpu

_NEG_SLOPE = 0.01            # nn.LeakyReLU default negative_slope
_MXU_DTYPE = jnp.bfloat16    # matmul / DMA dtype (accumulation stays f32)


# ---------------------------------------------------------------------------
# In-kernel helper: 3x3 conv (zero pad=1) + LeakyReLU on column-phase-separated data.
# Both column phases are evaluated with a SINGLE MXU matmul (patches stacked on M),
# and the im2col patches buffer is built in bf16.
# ---------------------------------------------------------------------------
def _conv3x3_phase(in_e, in_o, wf_ref, bias, *, leaky=True):
    """in_e/in_o: (P, W, Ci) = even/odd columns of a (P, 2W, Ci) image.
    wf_ref: (9*Ci, Co) weights flattened row-major over (kh, kw, ci).
    Returns f32 (out_e, out_o), the even/odd columns of the (P, 2W, Co) conv output."""
    P, Wd, Ci = in_e.shape
    in_e = in_e.astype(_MXU_DTYPE)
    in_o = in_o.astype(_MXU_DTYPE)
    # zero row pad (top / bottom) along the untiled H axis
    zrow = jnp.zeros((1, Wd, Ci), _MXU_DTYPE)
    pe = jnp.concatenate([zrow, in_e, zrow], axis=0)            # (P+2, W, Ci)
    po = jnp.concatenate([zrow, in_o, zrow], axis=0)
    # neighbour columns (3x3 conv uses ZERO padding on the left/right edges)
    zcol = jnp.zeros((P + 2, 1, Ci), _MXU_DTYPE)
    o_left = jnp.concatenate([zcol, po[:, :-1, :]], axis=1)     # odd col  j-1 (zero at col -1)
    e_right = jnp.concatenate([pe[:, 1:, :], zcol], axis=1)     # even col j+1 (zero at col 2W)
    # kernel-column (dc=0,1,2) -> input stream, per output column parity:
    streams = (
        (o_left, pe, po),     # even output cols 2j   use input cols 2j-1, 2j, 2j+1
        (pe, po, e_right),    # odd  output cols 2j+1 use input cols 2j, 2j+1, 2j+2
    )
    patches = []
    for cols in streams:
        taps = [cols[dc][dr:dr + P] for dr in range(3) for dc in range(3)]
        patches.append(jnp.concatenate(taps, axis=-1))          # (P, W, 9*Ci) bf16
    # ONE matmul for both column phases (stacked along the M dimension).
    pboth = jnp.concatenate(patches, axis=0).reshape(2 * P * Wd, 9 * Ci)
    acc = jnp.dot(pboth, wf_ref[...], preferred_element_type=jnp.float32) + bias
    if leaky:
        acc = jnp.where(acc >= 0.0, acc, _NEG_SLOPE * acc)
    acc = acc.reshape(2, P, Wd, -1)
    return acc[0], acc[1]


# ---------------------------------------------------------------------------
# Fused UpLayer kernel (one grid step = one batch element)
# ---------------------------------------------------------------------------
def _up_layer_kernel(x_ref, sk_ref, wup_ref, bt_ref,
                     w1_ref, b1_ref, w2_ref, b2_ref, o_ref):
    _, H, W, Cin = x_ref.shape
    Cout = bt_ref.shape[-1]
    Csk = sk_ref.shape[-1] // 2

    # ---- 1) ConvTranspose2d(k=2, s=2) as ONE MXU matmul over all 4 output phases:
    #         y[2i+a, 2j+b, :] = x[i, j, :] @ wt[:, :, a, b]
    xm = x_ref[0].reshape(H * W, Cin)                           # already bf16
    y_all = jnp.dot(xm, wup_ref[...],
                    preferred_element_type=jnp.float32).reshape(H, W, 4 * Cout)
    ph = [[y_all[:, :, (2 * a + b) * Cout:(2 * a + b + 1) * Cout]
           for b in range(2)] for a in range(2)]

    # ---- 2) vertical blur ([1,3,3,1]/8, reflect pad (1,2)) + row interleave
    def vblur(p0, p1):
        # p0 = y rows 2i, p1 = y rows 2i+1 (one column phase)
        p1_up = jnp.concatenate([p1[0:1], p1[:-1]], axis=0)     # y[2i-1]; top reflect -> y[1]
        p0_dn = jnp.concatenate([p0[1:], p0[-1:]], axis=0)      # y[2i+2]; bottom reflect -> y[2H-2]
        p1_dn = jnp.concatenate([p1[1:], p1[-2:-1]], axis=0)    # y[2i+3]; bottom reflect -> y[2H-3]
        t_even = (p1_up + 3.0 * p0 + 3.0 * p1 + p0_dn) * 0.125  # output rows 2i
        t_odd = (p0 + 3.0 * p1 + 3.0 * p0_dn + p1_dn) * 0.125   # output rows 2i+1
        return jnp.stack([t_even, t_odd], axis=1).reshape(2 * H, W, Cout)

    t0 = vblur(ph[0][0], ph[1][0])    # vertically blurred, even columns 2j
    t1 = vblur(ph[0][1], ph[1][1])    # vertically blurred, odd columns 2j+1

    # ---- 3) horizontal blur (same filter, reflect pad (1,2)); shifts on the sublane
    #         axis via pltpu.roll (XLU) + one-column boundary fix (reflection).
    col = jax.lax.broadcasted_iota(jnp.int32, (1, W, 1), 1)
    t1_l = jnp.where(col == 0, t1, pltpu.roll(t1, 1, 1))            # col 2j-1; reflect -> col 1
    t0_r = jnp.where(col == W - 1, t0, pltpu.roll(t0, W - 1, 1))    # col 2j+2; reflect -> col 2W-2
    t1_r = jnp.where(col == W - 1, t1_l, pltpu.roll(t1, W - 1, 1))  # col 2j+3; reflect -> col 2W-3
    # NOTE: the ConvTranspose bias is added AFTER the blur. This is exactly equivalent
    # to adding it before only because the blur filter is normalized (coefficients sum
    # to 1) and reflection padding preserves constants. Revisit if the filter changes.
    bt = bt_ref[...]
    z_e = (t1_l + 3.0 * t0 + 3.0 * t1 + t0_r) * 0.125 + bt      # blur_upsample output, even cols
    z_o = (t0 + 3.0 * t1 + 3.0 * t0_r + t1_r) * 0.125 + bt      # blur_upsample output, odd cols

    # ---- 4) concat with skip (lane slices of the single skip block),
    #         conv1 + LeakyReLU, conv2 + LeakyReLU
    sk = sk_ref[0]                                              # (2H, W, 2*Csk) bf16 [even|odd]
    in_e = jnp.concatenate([z_e.astype(_MXU_DTYPE), sk[:, :, :Csk]], axis=-1)
    in_o = jnp.concatenate([z_o.astype(_MXU_DTYPE), sk[:, :, Csk:]], axis=-1)
    h_e, h_o = _conv3x3_phase(in_e, in_o, w1_ref, b1_ref[...], leaky=True)
    y_e, y_o = _conv3x3_phase(h_e, h_o, w2_ref, b2_ref[...], leaky=True)

    # Lane-dense store: even/odd output columns concatenated on the lane axis, bf16.
    o_ref[0] = jnp.concatenate([y_e, y_o], axis=-1).astype(o_ref.dtype)


# ---------------------------------------------------------------------------
# Wrapper: PyTorch-style NCHW in / NCHW out, PyTorch weight layouts
# ---------------------------------------------------------------------------
@jax.jit
def up_layer_forward(params, x_nchw, skip_nchw):
    N, Cin, H, W = x_nchw.shape
    Cout = params["bt"].shape[0]
    Csk = skip_nchw.shape[1]

    # NCHW -> NHWC and cast activations to bf16 (halves DMA bytes + VMEM blocks).
    x = jnp.transpose(x_nchw, (0, 2, 3, 1)).astype(_MXU_DTYPE)          # (N, H, W, Cin)
    skip = jnp.transpose(skip_nchw, (0, 2, 3, 1)).astype(_MXU_DTYPE)    # (N, 2H, 2W, Csk)
    # Free reshape: pack even/odd columns on the lane axis -> single DMA of skip.
    skip2 = skip.reshape(N, 2 * H, W, 2 * Csk)

    # ConvTranspose2d weight (Cin, Cout, 2, 2) -> (Cin, a, b, Cout) -> (Cin, 4*Cout)
    w_up = jnp.transpose(params["wt"], (0, 2, 3, 1)).reshape(Cin, 4 * Cout).astype(_MXU_DTYPE)
    # Conv2d OIHW -> (kh, kw, Ci, Co) -> flattened (9*Ci, Co) for im2col matmuls.
    w1f = jnp.transpose(params["w1"], (2, 3, 1, 0)).reshape(9 * Cin, Cout).astype(_MXU_DTYPE)
    w2f = jnp.transpose(params["w2"], (2, 3, 1, 0)).reshape(9 * Cout, Cout).astype(_MXU_DTYPE)
    bt = params["bt"].reshape(1, Cout).astype(jnp.float32)
    b1 = params["b1"].reshape(1, Cout).astype(jnp.float32)
    b2 = params["b2"].reshape(1, Cout).astype(jnp.float32)

    out = pl.pallas_call(
        _up_layer_kernel,
        grid=(N,),
        in_specs=[
            pl.BlockSpec((1, H, W, Cin), lambda n: (n, 0, 0, 0)),
            pl.BlockSpec((1, 2 * H, W, 2 * Csk), lambda n: (n, 0, 0, 0)),
            pl.BlockSpec((Cin, 4 * Cout), lambda n: (0, 0)),
            pl.BlockSpec((1, Cout), lambda n: (0, 0)),
            pl.BlockSpec((9 * Cin, Cout), lambda n: (0, 0)),
            pl.BlockSpec((1, Cout), lambda n: (0, 0)),
            pl.BlockSpec((9 * Cout, Cout), lambda n: (0, 0)),
            pl.BlockSpec((1, Cout), lambda n: (0, 0)),
        ],
        out_specs=pl.BlockSpec((1, 2 * H, W, 2 * Cout), lambda n: (n, 0, 0, 0)),
        out_shape=jax.ShapeDtypeStruct((N, 2 * H, W, 2 * Cout), _MXU_DTYPE),
        compiler_params=pltpu.CompilerParams(
            dimension_semantics=("parallel",),
            # 48 MiB fits every generation incl. v7x (64 MiB physical); raise to
            # ~96 MiB on v5e/v6e for large H/W tiles.
            vmem_limit_bytes=48 * 1024 * 1024,
        ),
    )(x, skip2, w_up, bt, w1f, b1, w2f, b2)

    # Free reshape un-interleaves the lane-packed even/odd columns, then the single
    # unavoidable NHWC -> NCHW boundary transpose (f32 cast fuses into it).
    out = out.reshape(N, 2 * H, 2 * W, Cout)
    return jnp.transpose(out, (0, 3, 1, 2)).astype(jnp.float32)


# ---------------------------------------------------------------------------
# Pure-JAX reference (mirrors the PyTorch module op-by-op) for self-checking
# ---------------------------------------------------------------------------
def _leaky(v):
    return jnp.where(v >= 0.0, v, _NEG_SLOPE * v)


def reference_forward(params, x, skip):
    N, Cin, H, W = x.shape
    Cout = params["bt"].shape[0]
    # ConvTranspose2d(k=2, s=2, p=0)
    y = jnp.einsum("nchw,cdab->ndhawb", x, params["wt"]).reshape(N, Cout, 2 * H, 2 * W)
    y = y + params["bt"][None, :, None, None]
    # BlurPool(filt_size=4, stride=1): ReflectionPad2d((1,2,1,2)) + depthwise [1,3,3,1]^2/64
    f1 = jnp.array([1.0, 3.0, 3.0, 1.0])
    f2 = jnp.outer(f1, f1) / 64.0
    ypad = jnp.pad(y, ((0, 0), (0, 0), (1, 2), (1, 2)), mode="reflect")
    z = jnp.zeros_like(y)
    for u in range(4):
        for v in range(4):
            z = z + f2[u, v] * ypad[:, :, u:u + 2 * H, v:v + 2 * W]
    cat = jnp.concatenate([z, skip], axis=1)

    def conv3(inp, w, b):
        P, Q = inp.shape[2], inp.shape[3]
        ip = jnp.pad(inp, ((0, 0), (0, 0), (1, 1), (1, 1)))
        o = jnp.zeros((inp.shape[0], w.shape[0], P, Q), jnp.float32)
        for dr in range(3):
            for dc in range(3):
                o = o + jnp.einsum("nipq,oi->nopq",
                                   ip[:, :, dr:dr + P, dc:dc + Q], w[:, :, dr, dc])
        return o + b[None, :, None, None]

    h = _leaky(conv3(cat, params["w1"], params["b1"]))
    h = _leaky(conv3(h, params["w2"], params["b2"]))
    return h


# ---------------------------------------------------------------------------
# Parameter init (PyTorch layouts: ConvTranspose2d (Ci,Co,kh,kw), Conv2d OIHW)
# ---------------------------------------------------------------------------
def init_params(key, in_channels, out_channels):
    ks = jax.random.split(key, 6)
    s = 0.1
    return {
        "wt": s * jax.random.normal(ks[0], (in_channels, out_channels, 2, 2), jnp.float32),
        "bt": s * jax.random.normal(ks[1], (out_channels,), jnp.float32),
        "w1": s * jax.random.normal(ks[2], (out_channels, in_channels, 3, 3), jnp.float32),
        "b1": s * jax.random.normal(ks[3], (out_channels,), jnp.float32),
        "w2": s * jax.random.normal(ks[4], (out_channels, out_channels, 3, 3), jnp.float32),
        "b2": s * jax.random.normal(ks[5], (out_channels,), jnp.float32),
    }


if __name__ == "__main__":
    in_channels, out_channels = 8, 4
    N, H, W = 2, 8, 8                    # low-res input -> 16x16 output

    key = jax.random.PRNGKey(0)
    k_p, k_x, k_s = jax.random.split(key, 3)
    params = init_params(k_p, in_channels, out_channels)

    x = jax.random.normal(k_x, (N, in_channels, H, W), jnp.float32)
    # skip channels chosen so cat channels == in_channels (standard U-Net wiring)
    skip = jax.random.normal(k_s, (N, in_channels - out_channels, 2 * H, 2 * W), jnp.float32)

    out = up_layer_forward(params, x, skip)
    out = jax.block_until_ready(out)
    assert out.shape == (N, out_channels, 2 * H, 2 * W), out.shape

    ref = reference_forward(params, x, skip)
    err = float(jnp.max(jnp.abs(out - ref)))
    assert err < 5e-2, f"kernel vs reference mismatch: max abs err = {err}"

    print("KERNEL_OK")
</pallas_src>

<mosaic_0001>
module attributes {stable_mosaic.version = 11 : i64} {
  func.func @_up_layer_kernel(%arg0: i32, %arg1: memref<1x8x8x8xbf16, #tpu.memory_space<vmem>>, %arg2: memref<1x16x8x8xbf16, #tpu.memory_space<vmem>>, %arg3: memref<8x16xbf16, #tpu.memory_space<vmem>>, %arg4: memref<1x4xf32, #tpu.memory_space<vmem>>, %arg5: memref<72x4xbf16, #tpu.memory_space<vmem>>, %arg6: memref<1x4xf32, #tpu.memory_space<vmem>>, %arg7: memref<36x4xbf16, #tpu.memory_space<vmem>>, %arg8: memref<1x4xf32, #tpu.memory_space<vmem>>, %arg9: memref<1x16x8x8xbf16, #tpu.memory_space<vmem>>) attributes {dimension_semantics = [#tpu.dimension_semantics<parallel>], iteration_bounds = array<i64: 2>, scalar_prefetch = 0 : i64, scratch_operands = 0 : i64, tpu.core_type = #tpu.core_type<tc>, window_params = [{transform_indices = @transform_0, window_bounds = array<i64: 1, 8, 8, 8>}, {transform_indices = @transform_1, window_bounds = array<i64: 1, 16, 8, 8>}, {pipeline_mode = #tpu.pipeline_mode<synchronous>, transform_indices = @transform_2, window_bounds = array<i64: 8, 16>}, {pipeline_mode = #tpu.pipeline_mode<synchronous>, transform_indices = @transform_3, window_bounds = array<i64: 1, 4>}, {pipeline_mode = #tpu.pipeline_mode<synchronous>, transform_indices = @transform_4, window_bounds = array<i64: 72, 4>}, {pipeline_mode = #tpu.pipeline_mode<synchronous>, transform_indices = @transform_5, window_bounds = array<i64: 1, 4>}, {pipeline_mode = #tpu.pipeline_mode<synchronous>, transform_indices = @transform_6, window_bounds = array<i64: 36, 4>}, {pipeline_mode = #tpu.pipeline_mode<synchronous>, transform_indices = @transform_7, window_bounds = array<i64: 1, 4>}, {transform_indices = @transform_8, window_bounds = array<i64: 1, 16, 8, 8>}]} {
    %c0 = arith.constant 0 : index
    %c0_0 = arith.constant 0 : index
    %c0_1 = arith.constant 0 : index
    %c0_2 = arith.constant 0 : index
    %0 = vector.load %arg1[%c0, %c0_0, %c0_1, %c0_2] : memref<1x8x8x8xbf16, #tpu.memory_space<vmem>>, vector<1x8x8x8xbf16>
    %1 = vector.shape_cast %0 : vector<1x8x8x8xbf16> to vector<8x8x8xbf16>
    %2 = vector.shape_cast %1 : vector<8x8x8xbf16> to vector<64x8xbf16>
    %c0_3 = arith.constant 0 : index
    %c0_4 = arith.constant 0 : index
    %3 = vector.load %arg3[%c0_3, %c0_4] : memref<8x16xbf16, #tpu.memory_space<vmem>>, vector<8x16xbf16>
    %cst = arith.constant dense<0.000000e+00> : vector<64x16xf32>
    %4 = tpu.matmul %2, %3, %cst {dimension_numbers = #tpu.dot_dimension_numbers<[1], [0], [0], [1], [0, 0, 1, 1], [], []>} : vector<64x8xbf16>, vector<8x16xbf16>, vector<64x16xf32> -> vector<64x16xf32>
    %5 = vector.shape_cast %4 : vector<64x16xf32> to vector<8x8x16xf32>
    %6 = vector.extract_strided_slice %5 {offsets = [0, 0, 0], sizes = [8, 8, 4], strides = [1, 1, 1]} : vector<8x8x16xf32> to vector<8x8x4xf32>
    %7 = vector.extract_strided_slice %5 {offsets = [0, 0, 4], sizes = [8, 8, 4], strides = [1, 1, 1]} : vector<8x8x16xf32> to vector<8x8x4xf32>
    %8 = vector.extract_strided_slice %5 {offsets = [0, 0, 8], sizes = [8, 8, 4], strides = [1, 1, 1]} : vector<8x8x16xf32> to vector<8x8x4xf32>
    %9 = vector.extract_strided_slice %5 {offsets = [0, 0, 12], sizes = [8, 8, 4], strides = [1, 1, 1]} : vector<8x8x16xf32> to vector<8x8x4xf32>
    %10 = vector.extract_strided_slice %8 {offsets = [0, 0, 0], sizes = [1, 8, 4], strides = [1, 1, 1]} : vector<8x8x4xf32> to vector<1x8x4xf32>
    %11 = vector.extract_strided_slice %8 {offsets = [0, 0, 0], sizes = [7, 8, 4], strides = [1, 1, 1]} : vector<8x8x4xf32> to vector<7x8x4xf32>
    %12 = tpu.concatenate %10, %11 in 0 : vector<1x8x4xf32>, vector<7x8x4xf32> -> vector<8x8x4xf32>
    %13 = vector.extract_strided_slice %6 {offsets = [1, 0, 0], sizes = [7, 8, 4], strides = [1, 1, 1]} : vector<8x8x4xf32> to vector<7x8x4xf32>
    %14 = vector.extract_strided_slice %6 {offsets = [7, 0, 0], sizes = [1, 8, 4], strides = [1, 1, 1]} : vector<8x8x4xf32> to vector<1x8x4xf32>
    %15 = tpu.concatenate %13, %14 in 0 : vector<7x8x4xf32>, vector<1x8x4xf32> -> vector<8x8x4xf32>
    %16 = vector.extract_strided_slice %8 {offsets = [1, 0, 0], sizes = [7, 8, 4], strides = [1, 1, 1]} : vector<8x8x4xf32> to vector<7x8x4xf32>
    %17 = vector.extract_strided_slice %8 {offsets = [6, 0, 0], sizes = [1, 8, 4], strides = [1, 1, 1]} : vector<8x8x4xf32> to vector<1x8x4xf32>
    %18 = tpu.concatenate %16, %17 in 0 : vector<7x8x4xf32>, vector<1x8x4xf32> -> vector<8x8x4xf32>
    %cst_5 = arith.constant 3.000000e+00 : f32
    %19 = vector.broadcast %cst_5 : f32 to vector<8x8x4xf32>
    %20 = arith.mulf %19, %6 : vector<8x8x4xf32>
    %21 = arith.addf %12, %20 : vector<8x8x4xf32>
    %cst_6 = arith.constant 3.000000e+00 : f32
    %22 = vector.broadcast %cst_6 : f32 to vector<8x8x4xf32>
    %23 = arith.mulf %22, %8 : vector<8x8x4xf32>
    %24 = arith.addf %21, %23 : vector<8x8x4xf32>
    %25 = arith.addf %24, %15 : vector<8x8x4xf32>
    %cst_7 = arith.constant 1.250000e-01 : f32
    %26 = vector.broadcast %cst_7 : f32 to vector<8x8x4xf32>
    %27 = arith.mulf %25, %26 : vector<8x8x4xf32>
    %cst_8 = arith.constant 3.000000e+00 : f32
    %28 = vector.broadcast %cst_8 : f32 to vector<8x8x4xf32>
    %29 = arith.mulf %28, %8 : vector<8x8x4xf32>
    %30 = arith.addf %6, %29 : vector<8x8x4xf32>
    %cst_9 = arith.constant 3.000000e+00 : f32
    %31 = vector.broadcast %cst_9 : f32 to vector<8x8x4xf32>
    %32 = arith.mulf %31, %15 : vector<8x8x4xf32>
    %33 = arith.addf %30, %32 : vector<8x8x4xf32>
    %34 = arith.addf %33, %18 : vector<8x8x4xf32>
    %cst_10 = arith.constant 1.250000e-01 : f32
    %35 = vector.broadcast %cst_10 : f32 to vector<8x8x4xf32>
    %36 = arith.mulf %34, %35 : vector<8x8x4xf32>
    %37 = vector.shape_cast %27 : vector<8x8x4xf32> to vector<8x1x8x4xf32>
    %38 = vector.shape_cast %36 : vector<8x8x4xf32> to vector<8x1x8x4xf32>
    %39 = tpu.concatenate %37, %38 in 1 : vector<8x1x8x4xf32>, vector<8x1x8x4xf32> -> vector<8x2x8x4xf32>
    %40 = vector.shape_cast %39 : vector<8x2x8x4xf32> to vector<16x8x4xf32>
    %41 = vector.extract_strided_slice %9 {offsets = [0, 0, 0], sizes = [1, 8, 4], strides = [1, 1, 1]} : vector<8x8x4xf32> to vector<1x8x4xf32>
    %42 = vector.extract_strided_slice %9 {offsets = [0, 0, 0], sizes = [7, 8, 4], strides = [1, 1, 1]} : vector<8x8x4xf32> to vector<7x8x4xf32>
    %43 = tpu.concatenate %41, %42 in 0 : vector<1x8x4xf32>, vector<7x8x4xf32> -> vector<8x8x4xf32>
    %44 = vector.extract_strided_slice %7 {offsets = [1, 0, 0], sizes = [7, 8, 4], strides = [1, 1, 1]} : vector<8x8x4xf32> to vector<7x8x4xf32>
    %45 = vector.extract_strided_slice %7 {offsets = [7, 0, 0], sizes = [1, 8, 4], strides = [1, 1, 1]} : vector<8x8x4xf32> to vector<1x8x4xf32>
    %46 = tpu.concatenate %44, %45 in 0 : vector<7x8x4xf32>, vector<1x8x4xf32> -> vector<8x8x4xf32>
    %47 = vector.extract_strided_slice %9 {offsets = [1, 0, 0], sizes = [7, 8, 4], strides = [1, 1, 1]} : vector<8x8x4xf32> to vector<7x8x4xf32>
    %48 = vector.extract_strided_slice %9 {offsets = [6, 0, 0], sizes = [1, 8, 4], strides = [1, 1, 1]} : vector<8x8x4xf32> to vector<1x8x4xf32>
    %49 = tpu.concatenate %47, %48 in 0 : vector<7x8x4xf32>, vector<1x8x4xf32> -> vector<8x8x4xf32>
    %cst_11 = arith.constant 3.000000e+00 : f32
    %50 = vector.broadcast %cst_11 : f32 to vector<8x8x4xf32>
    %51 = arith.mulf %50, %7 : vector<8x8x4xf32>
    %52 = arith.addf %43, %51 : vector<8x8x4xf32>
    %cst_12 = arith.constant 3.000000e+00 : f32
    %53 = vector.broadcast %cst_12 : f32 to vector<8x8x4xf32>
    %54 = arith.mulf %53, %9 : vector<8x8x4xf32>
    %55 = arith.addf %52, %54 : vector<8x8x4xf32>
    %56 = arith.addf %55, %46 : vector<8x8x4xf32>
    %cst_13 = arith.constant 1.250000e-01 : f32
    %57 = vector.broadcast %cst_13 : f32 to vector<8x8x4xf32>
    %58 = arith.mulf %56, %57 : vector<8x8x4xf32>
    %cst_14 = arith.constant 3.000000e+00 : f32
    %59 = vector.broadcast %cst_14 : f32 to vector<8x8x4xf32>
    %60 = arith.mulf %59, %9 : vector<8x8x4xf32>
    %61 = arith.addf %7, %60 : vector<8x8x4xf32>
    %cst_15 = arith.constant 3.000000e+00 : f32
    %62 = vector.broadcast %cst_15 : f32 to vector<8x8x4xf32>
    %63 = arith.mulf %62, %46 : vector<8x8x4xf32>
    %64 = arith.addf %61, %63 : vector<8x8x4xf32>
    %65 = arith.addf %64, %49 : vector<8x8x4xf32>
    %cst_16 = arith.constant 1.250000e-01 : f32
    %66 = vector.broadcast %cst_16 : f32 to vector<8x8x4xf32>
    %67 = arith.mulf %65, %66 : vector<8x8x4xf32>
    %68 = vector.shape_cast %58 : vector<8x8x4xf32> to vector<8x1x8x4xf32>
    %69 = vector.shape_cast %67 : vector<8x8x4xf32> to vector<8x1x8x4xf32>
    %70 = tpu.concatenate %68, %69 in 1 : vector<8x1x8x4xf32>, vector<8x1x8x4xf32> -> vector<8x2x8x4xf32>
    %71 = vector.shape_cast %70 : vector<8x2x8x4xf32> to vector<16x8x4xf32>
    %72 = tpu.iota {dimensions = array<i32: 1>} : vector<1x8x1xi32>
    %c0_i32 = arith.constant 0 : i32
    %73 = vector.broadcast %c0_i32 : i32 to vector<1x8x1xi32>
    %74 = arith.cmpi eq, %72, %73 : vector<1x8x1xi32>
    %c1_i32 = arith.constant 1 : i32
    %75 = tpu.dynamic_rotate %71 by %c1_i32 dim 1 : vector<16x8x4xf32>, i32 -> vector<16x8x4xf32>
    %76 = vector.shape_cast %74 : vector<1x8x1xi1> to vector<1x8x1xi1>
    %77 = vector.broadcast %76 : vector<1x8x1xi1> to vector<16x8x4xi1>
    %78 = arith.select %77, %71, %75 : vector<16x8x4xi1>, vector<16x8x4xf32>
    %c7_i32 = arith.constant 7 : i32
    %79 = vector.broadcast %c7_i32 : i32 to vector<1x8x1xi32>
    %80 = arith.cmpi eq, %72, %79 : vector<1x8x1xi32>
    %c7_i32_17 = arith.constant 7 : i32
    %81 = tpu.dynamic_rotate %40 by %c7_i32_17 dim 1 : vector<16x8x4xf32>, i32 -> vector<16x8x4xf32>
    %82 = vector.shape_cast %80 : vector<1x8x1xi1> to vector<1x8x1xi1>
    %83 = vector.broadcast %82 : vector<1x8x1xi1> to vector<16x8x4xi1>
    %84 = arith.select %83, %40, %81 : vector<16x8x4xi1>, vector<16x8x4xf32>
    %c7_i32_18 = arith.constant 7 : i32
    %85 = vector.broadcast %c7_i32_18 : i32 to vector<1x8x1xi32>
    %86 = arith.cmpi eq, %72, %85 : vector<1x8x1xi32>
    %c7_i32_19 = arith.constant 7 : i32
    %87 = tpu.dynamic_rotate %71 by %c7_i32_19 dim 1 : vector<16x8x4xf32>, i32 -> vector<16x8x4xf32>
    %88 = vector.shape_cast %86 : vector<1x8x1xi1> to vector<1x8x1xi1>
    %89 = vector.broadcast %88 : vector<1x8x1xi1> to vector<16x8x4xi1>
    %90 = arith.select %89, %78, %87 : vector<16x8x4xi1>, vector<16x8x4xf32>
    %c0_20 = arith.constant 0 : index
    %c0_21 = arith.constant 0 : index
    %91 = vector.load %arg4[%c0_20, %c0_21] : memref<1x4xf32, #tpu.memory_space<vmem>>, vector<1x4xf32>
    %cst_22 = arith.constant 3.000000e+00 : f32
    %92 = vector.broadcast %cst_22 : f32 to vector<16x8x4xf32>
    %93 = arith.mulf %92, %40 : vector<16x8x4xf32>
    %94 = arith.addf %78, %93 : vector<16x8x4xf32>
    %cst_23 = arith.constant 3.000000e+00 : f32
    %95 = vector.broadcast %cst_23 : f32 to vector<16x8x4xf32>
    %96 = arith.mulf %95, %71 : vector<16x8x4xf32>
    %97 = arith.addf %94, %96 : vector<16x8x4xf32>
    %98 = arith.addf %97, %84 : vector<16x8x4xf32>
    %cst_24 = arith.constant 1.250000e-01 : f32
    %99 = vector.broadcast %cst_24 : f32 to vector<16x8x4xf32>
    %100 = arith.mulf %98, %99 : vector<16x8x4xf32>
    %101 = vector.shape_cast %91 : vector<1x4xf32> to vector<1x1x4xf32>
    %102 = vector.broadcast %101 : vector<1x1x4xf32> to vector<16x8x4xf32>
    %103 = arith.addf %100, %102 : vector<16x8x4xf32>
    %cst_25 = arith.constant 3.000000e+00 : f32
    %104 = vector.broadcast %cst_25 : f32 to vector<16x8x4xf32>
    %105 = arith.mulf %104, %71 : vector<16x8x4xf32>
    %106 = arith.addf %40, %105 : vector<16x8x4xf32>
    %cst_26 = arith.constant 3.000000e+00 : f32
    %107 = vector.broadcast %cst_26 : f32 to vector<16x8x4xf32>
    %108 = arith.mulf %107, %84 : vector<16x8x4xf32>
    %109 = arith.addf %106, %108 : vector<16x8x4xf32>
    %110 = arith.addf %109, %90 : vector<16x8x4xf32>
    %cst_27 = arith.constant 1.250000e-01 : f32
    %111 = vector.broadcast %cst_27 : f32 to vector<16x8x4xf32>
    %112 = arith.mulf %110, %111 : vector<16x8x4xf32>
    %113 = vector.shape_cast %91 : vector<1x4xf32> to vector<1x1x4xf32>
    %114 = vector.broadcast %113 : vector<1x1x4xf32> to vector<16x8x4xf32>
    %115 = arith.addf %112, %114 : vector<16x8x4xf32>
    %c0_28 = arith.constant 0 : index
    %c0_29 = arith.constant 0 : index
    %c0_30 = arith.constant 0 : index
    %c0_31 = arith.constant 0 : index
    %116 = vector.load %arg2[%c0_28, %c0_29, %c0_30, %c0_31] : memref<1x16x8x8xbf16, #tpu.memory_space<vmem>>, vector<1x16x8x8xbf16>
    %117 = vector.shape_cast %116 : vector<1x16x8x8xbf16> to vector<16x8x8xbf16>
    %118 = arith.truncf %103 : vector<16x8x4xf32> to vector<16x8x4xbf16>
    %119 = vector.extract_strided_slice %117 {offsets = [0, 0, 0], sizes = [16, 8, 4], strides = [1, 1, 1]} : vector<16x8x8xbf16> to vector<16x8x4xbf16>
    %120 = tpu.concatenate %118, %119 in 2 : vector<16x8x4xbf16>, vector<16x8x4xbf16> -> vector<16x8x8xbf16>
    %121 = arith.truncf %115 : vector<16x8x4xf32> to vector<16x8x4xbf16>
    %122 = vector.extract_strided_slice %117 {offsets = [0, 0, 4], sizes = [16, 8, 4], strides = [1, 1, 1]} : vector<16x8x8xbf16> to vector<16x8x4xbf16>
    %123 = tpu.concatenate %121, %122 in 2 : vector<16x8x4xbf16>, vector<16x8x4xbf16> -> vector<16x8x8xbf16>
    %c0_32 = arith.constant 0 : index
    %c0_33 = arith.constant 0 : index
    %124 = vector.load %arg6[%c0_32, %c0_33] : memref<1x4xf32, #tpu.memory_space<vmem>>, vector<1x4xf32>
    %cst_34 = arith.constant 0.000000e+00 : bf16
    %125 = vector.broadcast %cst_34 : bf16 to vector<1x8x8xbf16>
    %126 = tpu.concatenate %125, %120, %125 in 0 : vector<1x8x8xbf16>, vector<16x8x8xbf16>, vector<1x8x8xbf16> -> vector<18x8x8xbf16>
    %127 = tpu.concatenate %125, %123, %125 in 0 : vector<1x8x8xbf16>, vector<16x8x8xbf16>, vector<1x8x8xbf16> -> vector<18x8x8xbf16>
    %cst_35 = arith.constant 0.000000e+00 : bf16
    %128 = vector.broadcast %cst_35 : bf16 to vector<18x1x8xbf16>
    %129 = vector.extract_strided_slice %127 {offsets = [0, 0, 0], sizes = [18, 7, 8], strides = [1, 1, 1]} : vector<18x8x8xbf16> to vector<18x7x8xbf16>
    %130 = tpu.concatenate %128, %129 in 1 : vector<18x1x8xbf16>, vector<18x7x8xbf16> -> vector<18x8x8xbf16>
    %131 = vector.extract_strided_slice %126 {offsets = [0, 1, 0], sizes = [18, 7, 8], strides = [1, 1, 1]} : vector<18x8x8xbf16> to vector<18x7x8xbf16>
    %132 = tpu.concatenate %131, %128 in 1 : vector<18x7x8xbf16>, vector<18x1x8xbf16> -> vector<18x8x8xbf16>
    %133 = vector.extract_strided_slice %130 {offsets = [0, 0, 0], sizes = [16, 8, 8], strides = [1, 1, 1]} : vector<18x8x8xbf16> to vector<16x8x8xbf16>
    %134 = vector.extract_strided_slice %126 {offsets = [0, 0, 0], sizes = [16, 8, 8], strides = [1, 1, 1]} : vector<18x8x8xbf16> to vector<16x8x8xbf16>
    %135 = vector.extract_strided_slice %127 {offsets = [0, 0, 0], sizes = [16, 8, 8], strides = [1, 1, 1]} : vector<18x8x8xbf16> to vector<16x8x8xbf16>
    %136 = vector.extract_strided_slice %130 {offsets = [1, 0, 0], sizes = [16, 8, 8], strides = [1, 1, 1]} : vector<18x8x8xbf16> to vector<16x8x8xbf16>
    %137 = vector.extract_strided_slice %126 {offsets = [1, 0, 0], sizes = [16, 8, 8], strides = [1, 1, 1]} : vector<18x8x8xbf16> to vector<16x8x8xbf16>
    %138 = vector.extract_strided_slice %127 {offsets = [1, 0, 0], sizes = [16, 8, 8], strides = [1, 1, 1]} : vector<18x8x8xbf16> to vector<16x8x8xbf16>
    %139 = vector.extract_strided_slice %130 {offsets = [2, 0, 0], sizes = [16, 8, 8], strides = [1, 1, 1]} : vector<18x8x8xbf16> to vector<16x8x8xbf16>
    %140 = vector.extract_strided_slice %126 {offsets = [2, 0, 0], sizes = [16, 8, 8], strides = [1, 1, 1]} : vector<18x8x8xbf16> to vector<16x8x8xbf16>
    %141 = vector.extract_strided_slice %127 {offsets = [2, 0, 0], sizes = [16, 8, 8], strides = [1, 1, 1]} : vector<18x8x8xbf16> to vector<16x8x8xbf16>
    %142 = tpu.concatenate %133, %134, %135, %136, %137, %138, %139, %140, %141 in 2 : vector<16x8x8xbf16>, vector<16x8x8xbf16>, vector<16x8x8xbf16>, vector<16x8x8xbf16>, vector<16x8x8xbf16>, vector<16x8x8xbf16>, vector<16x8x8xbf16>, vector<16x8x8xbf16>, vector<16x8x8xbf16> -> vector<16x8x72xbf16>
    %143 = vector.extract_strided_slice %126 {offsets = [0, 0, 0], sizes = [16, 8, 8], strides = [1, 1, 1]} : vector<18x8x8xbf16> to vector<16x8x8xbf16>
    %144 = vector.extract_strided_slice %127 {offsets = [0, 0, 0], sizes = [16, 8, 8], strides = [1, 1, 1]} : vector<18x8x8xbf16> to vector<16x8x8xbf16>
    %145 = vector.extract_strided_slice %132 {offsets = [0, 0, 0], sizes = [16, 8, 8], strides = [1, 1, 1]} : vector<18x8x8xbf16> to vector<16x8x8xbf16>
    %146 = vector.extract_strided_slice %126 {offsets = [1, 0, 0], sizes = [16, 8, 8], strides = [1, 1, 1]} : vector<18x8x8xbf16> to vector<16x8x8xbf16>
    %147 = vector.extract_strided_slice %127 {offsets = [1, 0, 0], sizes = [16, 8, 8], strides = [1, 1, 1]} : vector<18x8x8xbf16> to vector<16x8x8xbf16>
    %148 = vector.extract_strided_slice %132 {offsets = [1, 0, 0], sizes = [16, 8, 8], strides = [1, 1, 1]} : vector<18x8x8xbf16> to vector<16x8x8xbf16>
    %149 = vector.extract_strided_slice %126 {offsets = [2, 0, 0], sizes = [16, 8, 8], strides = [1, 1, 1]} : vector<18x8x8xbf16> to vector<16x8x8xbf16>
    %150 = vector.extract_strided_slice %127 {offsets = [2, 0, 0], sizes = [16, 8, 8], strides = [1, 1, 1]} : vector<18x8x8xbf16> to vector<16x8x8xbf16>
    %151 = vector.extract_strided_slice %132 {offsets = [2, 0, 0], sizes = [16, 8, 8], strides = [1, 1, 1]} : vector<18x8x8xbf16> to vector<16x8x8xbf16>
    %152 = tpu.concatenate %143, %144, %145, %146, %147, %148, %149, %150, %151 in 2 : vector<16x8x8xbf16>, vector<16x8x8xbf16>, vector<16x8x8xbf16>, vector<16x8x8xbf16>, vector<16x8x8xbf16>, vector<16x8x8xbf16>, vector<16x8x8xbf16>, vector<16x8x8xbf16>, vector<16x8x8xbf16> -> vector<16x8x72xbf16>
    %153 = tpu.concatenate %142, %152 in 0 : vector<16x8x72xbf16>, vector<16x8x72xbf16> -> vector<32x8x72xbf16>
    %154 = vector.shape_cast %153 : vector<32x8x72xbf16> to vector<256x72xbf16>
    %c0_36 = arith.constant 0 : index
    %c0_37 = arith.constant 0 : index
    %155 = vector.load %arg5[%c0_36, %c0_37] : memref<72x4xbf16, #tpu.memory_space<vmem>>, vector<72x4xbf16>
    %cst_38 = arith.constant dense<0.000000e+00> : vector<256x4xf32>
    %156 = tpu.matmul %154, %155, %cst_38 {dimension_numbers = #tpu.dot_dimension_numbers<[1], [0], [0], [1], [0, 0, 1, 1], [], []>} : vector<256x72xbf16>, vector<72x4xbf16>, vector<256x4xf32> -> vector<256x4xf32>
    %157 = vector.broadcast %124 : vector<1x4xf32> to vector<256x4xf32>
    %158 = arith.addf %156, %157 : vector<256x4xf32>
    %cst_39 = arith.constant 0.000000e+00 : f32
    %159 = vector.broadcast %cst_39 : f32 to vector<256x4xf32>
    %160 = arith.cmpf oge, %158, %159 : vector<256x4xf32>
    %cst_40 = arith.constant 0.00999999977 : f32
    %161 = vector.broadcast %cst_40 : f32 to vector<256x4xf32>
    %162 = arith.mulf %161, %158 : vector<256x4xf32>
    %163 = arith.select %160, %158, %162 : vector<256x4xi1>, vector<256x4xf32>
    %164 = vector.shape_cast %163 : vector<256x4xf32> to vector<2x16x8x4xf32>
    %165 = vector.extract_strided_slice %164 {offsets = [0, 0, 0, 0], sizes = [1, 16, 8, 4], strides = [1, 1, 1, 1]} : vector<2x16x8x4xf32> to vector<1x16x8x4xf32>
    %166 = vector.shape_cast %165 : vector<1x16x8x4xf32> to vector<16x8x4xf32>
    %167 = vector.extract_strided_slice %164 {offsets = [1, 0, 0, 0], sizes = [1, 16, 8, 4], strides = [1, 1, 1, 1]} : vector<2x16x8x4xf32> to vector<1x16x8x4xf32>
    %168 = vector.shape_cast %167 : vector<1x16x8x4xf32> to vector<16x8x4xf32>
    %c0_41 = arith.constant 0 : index
    %c0_42 = arith.constant 0 : index
    %169 = vector.load %arg8[%c0_41, %c0_42] : memref<1x4xf32, #tpu.memory_space<vmem>>, vector<1x4xf32>
    %170 = arith.truncf %166 : vector<16x8x4xf32> to vector<16x8x4xbf16>
    %171 = arith.truncf %168 : vector<16x8x4xf32> to vector<16x8x4xbf16>
    %cst_43 = arith.constant 0.000000e+00 : bf16
    %172 = vector.broadcast %cst_43 : bf16 to vector<1x8x4xbf16>
    %173 = tpu.concatenate %172, %170, %172 in 0 : vector<1x8x4xbf16>, vector<16x8x4xbf16>, vector<1x8x4xbf16> -> vector<18x8x4xbf16>
    %174 = tpu.concatenate %172, %171, %172 in 0 : vector<1x8x4xbf16>, vector<16x8x4xbf16>, vector<1x8x4xbf16> -> vector<18x8x4xbf16>
    %cst_44 = arith.constant 0.000000e+00 : bf16
    %175 = vector.broadcast %cst_44 : bf16 to vector<18x1x4xbf16>
    %176 = vector.extract_strided_slice %174 {offsets = [0, 0, 0], sizes = [18, 7, 4], strides = [1, 1, 1]} : vector<18x8x4xbf16> to vector<18x7x4xbf16>
    %177 = tpu.concatenate %175, %176 in 1 : vector<18x1x4xbf16>, vector<18x7x4xbf16> -> vector<18x8x4xbf16>
    %178 = vector.extract_strided_slice %173 {offsets = [0, 1, 0], sizes = [18, 7, 4], strides = [1, 1, 1]} : vector<18x8x4xbf16> to vector<18x7x4xbf16>
    %179 = tpu.concatenate %178, %175 in 1 : vector<18x7x4xbf16>, vector<18x1x4xbf16> -> vector<18x8x4xbf16>
    %180 = vector.extract_strided_slice %177 {offsets = [0, 0, 0], sizes = [16, 8, 4], strides = [1, 1, 1]} : vector<18x8x4xbf16> to vector<16x8x4xbf16>
    %181 = vector.extract_strided_slice %173 {offsets = [0, 0, 0], sizes = [16, 8, 4], strides = [1, 1, 1]} : vector<18x8x4xbf16> to vector<16x8x4xbf16>
    %182 = vector.extract_strided_slice %174 {offsets = [0, 0, 0], sizes = [16, 8, 4], strides = [1, 1, 1]} : vector<18x8x4xbf16> to vector<16x8x4xbf16>
    %183 = vector.extract_strided_slice %177 {offsets = [1, 0, 0], sizes = [16, 8, 4], strides = [1, 1, 1]} : vector<18x8x4xbf16> to vector<16x8x4xbf16>
    %184 = vector.extract_strided_slice %173 {offsets = [1, 0, 0], sizes = [16, 8, 4], strides = [1, 1, 1]} : vector<18x8x4xbf16> to vector<16x8x4xbf16>
    %185 = vector.extract_strided_slice %174 {offsets = [1, 0, 0], sizes = [16, 8, 4], strides = [1, 1, 1]} : vector<18x8x4xbf16> to vector<16x8x4xbf16>
    %186 = vector.extract_strided_slice %177 {offsets = [2, 0, 0], sizes = [16, 8, 4], strides = [1, 1, 1]} : vector<18x8x4xbf16> to vector<16x8x4xbf16>
    %187 = vector.extract_strided_slice %173 {offsets = [2, 0, 0], sizes = [16, 8, 4], strides = [1, 1, 1]} : vector<18x8x4xbf16> to vector<16x8x4xbf16>
    %188 = vector.extract_strided_slice %174 {offsets = [2, 0, 0], sizes = [16, 8, 4], strides = [1, 1, 1]} : vector<18x8x4xbf16> to vector<16x8x4xbf16>
    %189 = tpu.concatenate %180, %181, %182, %183, %184, %185, %186, %187, %188 in 2 : vector<16x8x4xbf16>, vector<16x8x4xbf16>, vector<16x8x4xbf16>, vector<16x8x4xbf16>, vector<16x8x4xbf16>, vector<16x8x4xbf16>, vector<16x8x4xbf16>, vector<16x8x4xbf16>, vector<16x8x4xbf16> -> vector<16x8x36xbf16>
    %190 = vector.extract_strided_slice %173 {offsets = [0, 0, 0], sizes = [16, 8, 4], strides = [1, 1, 1]} : vector<18x8x4xbf16> to vector<16x8x4xbf16>
    %191 = vector.extract_strided_slice %174 {offsets = [0, 0, 0], sizes = [16, 8, 4], strides = [1, 1, 1]} : vector<18x8x4xbf16> to vector<16x8x4xbf16>
    %192 = vector.extract_strided_slice %179 {offsets = [0, 0, 0], sizes = [16, 8, 4], strides = [1, 1, 1]} : vector<18x8x4xbf16> to vector<16x8x4xbf16>
    %193 = vector.extract_strided_slice %173 {offsets = [1, 0, 0], sizes = [16, 8, 4], strides = [1, 1, 1]} : vector<18x8x4xbf16> to vector<16x8x4xbf16>
    %194 = vector.extract_strided_slice %174 {offsets = [1, 0, 0], sizes = [16, 8, 4], strides = [1, 1, 1]} : vector<18x8x4xbf16> to vector<16x8x4xbf16>
    %195 = vector.extract_strided_slice %179 {offsets = [1, 0, 0], sizes = [16, 8, 4], strides = [1, 1, 1]} : vector<18x8x4xbf16> to vector<16x8x4xbf16>
    %196 = vector.extract_strided_slice %173 {offsets = [2, 0, 0], sizes = [16, 8, 4], strides = [1, 1, 1]} : vector<18x8x4xbf16> to vector<16x8x4xbf16>
    %197 = vector.extract_strided_slice %174 {offsets = [2, 0, 0], sizes = [16, 8, 4], strides = [1, 1, 1]} : vector<18x8x4xbf16> to vector<16x8x4xbf16>
    %198 = vector.extract_strided_slice %179 {offsets = [2, 0, 0], sizes = [16, 8, 4], strides = [1, 1, 1]} : vector<18x8x4xbf16> to vector<16x8x4xbf16>
    %199 = tpu.concatenate %190, %191, %192, %193, %194, %195, %196, %197, %198 in 2 : vector<16x8x4xbf16>, vector<16x8x4xbf16>, vector<16x8x4xbf16>, vector<16x8x4xbf16>, vector<16x8x4xbf16>, vector<16x8x4xbf16>, vector<16x8x4xbf16>, vector<16x8x4xbf16>, vector<16x8x4xbf16> -> vector<16x8x36xbf16>
    %200 = tpu.concatenate %189, %199 in 0 : vector<16x8x36xbf16>, vector<16x8x36xbf16> -> vector<32x8x36xbf16>
    %201 = vector.shape_cast %200 : vector<32x8x36xbf16> to vector<256x36xbf16>
    %c0_45 = arith.constant 0 : index
    %c0_46 = arith.constant 0 : index
    %202 = vector.load %arg7[%c0_45, %c0_46] : memref<36x4xbf16, #tpu.memory_space<vmem>>, vector<36x4xbf16>
    %cst_47 = arith.constant dense<0.000000e+00> : vector<256x4xf32>
    %203 = tpu.matmul %201, %202, %cst_47 {dimension_numbers = #tpu.dot_dimension_numbers<[1], [0], [0], [1], [0, 0, 1, 1], [], []>} : vector<256x36xbf16>, vector<36x4xbf16>, vector<256x4xf32> -> vector<256x4xf32>
    %204 = vector.broadcast %169 : vector<1x4xf32> to vector<256x4xf32>
    %205 = arith.addf %203, %204 : vector<256x4xf32>
    %cst_48 = arith.constant 0.000000e+00 : f32
    %206 = vector.broadcast %cst_48 : f32 to vector<256x4xf32>
    %207 = arith.cmpf oge, %205, %206 : vector<256x4xf32>
    %cst_49 = arith.constant 0.00999999977 : f32
    %208 = vector.broadcast %cst_49 : f32 to vector<256x4xf32>
    %209 = arith.mulf %208, %205 : vector<256x4xf32>
    %210 = arith.select %207, %205, %209 : vector<256x4xi1>, vector<256x4xf32>
    %211 = vector.shape_cast %210 : vector<256x4xf32> to vector<2x16x8x4xf32>
    %212 = vector.extract_strided_slice %211 {offsets = [0, 0, 0, 0], sizes = [1, 16, 8, 4], strides = [1, 1, 1, 1]} : vector<2x16x8x4xf32> to vector<1x16x8x4xf32>
    %213 = vector.shape_cast %212 : vector<1x16x8x4xf32> to vector<16x8x4xf32>
    %214 = vector.extract_strided_slice %211 {offsets = [1, 0, 0, 0], sizes = [1, 16, 8, 4], strides = [1, 1, 1, 1]} : vector<2x16x8x4xf32> to vector<1x16x8x4xf32>
    %215 = vector.shape_cast %214 : vector<1x16x8x4xf32> to vector<16x8x4xf32>
    %216 = tpu.concatenate %213, %215 in 2 : vector<16x8x4xf32>, vector<16x8x4xf32> -> vector<16x8x8xf32>
    %217 = arith.truncf %216 : vector<16x8x8xf32> to vector<16x8x8xbf16>
    %c0_50 = arith.constant 0 : index
    %c0_51 = arith.constant 0 : index
    %c0_52 = arith.constant 0 : index
    %c0_53 = arith.constant 0 : index
    %218 = vector.load %arg9[%c0_50, %c0_51, %c0_52, %c0_53] : memref<1x16x8x8xbf16, #tpu.memory_space<vmem>>, vector<1x16x8x8xbf16>
    %219 = vector.shape_cast %218 : vector<1x16x8x8xbf16> to vector<16x8x8xbf16>
    %220 = vector.shape_cast %217 : vector<16x8x8xbf16> to vector<1x16x8x8xbf16>
    tpu.vector_store %arg9[%c0_50, %c0_51, %c0_52, %c0_53], %220 {strides = array<i32>} : memref<1x16x8x8xbf16, #tpu.memory_space<vmem>>, vector<1x16x8x8xbf16>,
    return
  }
  func.func @transform_0(%arg0: i32) -> (i32, i32, i32, i32) {
    %c0_i32 = arith.constant 0 : i32
    %c0_i32_0 = arith.constant 0 : i32
    %c0_i32_1 = arith.constant 0 : i32
    %c0_i32_2 = arith.constant 0 : i32
    return %arg0, %c0_i32, %c0_i32_0, %c0_i32_1 : i32, i32, i32, i32
  }
  func.func @transform_1(%arg0: i32) -> (i32, i32, i32, i32) {
    %c0_i32 = arith.constant 0 : i32
    %c0_i32_0 = arith.constant 0 : i32
    %c0_i32_1 = arith.constant 0 : i32
    %c0_i32_2 = arith.constant 0 : i32
    return %arg0, %c0_i32, %c0_i32_0, %c0_i32_1 : i32, i32, i32, i32
  }
  func.func @transform_2(%arg0: i32) -> (i32, i32) {
    %c0_i32 = arith.constant 0 : i32
    %c0_i32_0 = arith.constant 0 : i32
    %c0_i32_1 = arith.constant 0 : i32
    return %c0_i32, %c0_i32_0 : i32, i32
  }
  func.func @transform_3(%arg0: i32) -> (i32, i32) {
    %c0_i32 = arith.constant 0 : i32
    %c0_i32_0 = arith.constant 0 : i32
    %c0_i32_1 = arith.constant 0 : i32
    return %c0_i32, %c0_i32_0 : i32, i32
  }
  func.func @transform_4(%arg0: i32) -> (i32, i32) {
    %c0_i32 = arith.constant 0 : i32
    %c0_i32_0 = arith.constant 0 : i32
    %c0_i32_1 = arith.constant 0 : i32
    return %c0_i32, %c0_i32_0 : i32, i32
  }
  func.func @transform_5(%arg0: i32) -> (i32, i32) {
    %c0_i32 = arith.constant 0 : i32
    %c0_i32_0 = arith.constant 0 : i32
    %c0_i32_1 = arith.constant 0 : i32
    return %c0_i32, %c0_i32_0 : i32, i32
  }
  func.func @transform_6(%arg0: i32) -> (i32, i32) {
    %c0_i32 = arith.constant 0 : i32
    %c0_i32_0 = arith.constant 0 : i32
    %c0_i32_1 = arith.constant 0 : i32
    return %c0_i32, %c0_i32_0 : i32, i32
  }
  func.func @transform_7(%arg0: i32) -> (i32, i32) {
    %c0_i32 = arith.constant 0 : i32
    %c0_i32_0 = arith.constant 0 : i32
    %c0_i32_1 = arith.constant 0 : i32
    return %c0_i32, %c0_i32_0 : i32, i32
  }
  func.func @transform_8(%arg0: i32) -> (i32, i32, i32, i32) {
    %c0_i32 = arith.constant 0 : i32
    %c0_i32_0 = arith.constant 0 : i32
    %c0_i32_1 = arith.constant 0 : i32
    %c0_i32_2 = arith.constant 0 : i32
    return %arg0, %c0_i32, %c0_i32_0, %c0_i32_1 : i32, i32, i32, i32
  }
}

</mosaic_0001>

<bundles_post_ra>
// kernel: up_layer_forward.1
= control target key start
LH: loop header
LB: loop body
LE: loop exit
PB: predicated region body
PF: predicated region fallthrough
CT: control target
= control target key end

     0   :  { %s6087_s27 = smov 0   ;;  %s10848_s0 = inlined_call_operand.vmem [shape: bf16[2,8,8,8], index: 0, kind: input, shape index: {}]   ;;  %s10849_s1 = inlined_call_operand.vmem [shape: bf16[2,16,8,8], index: 1, kind: input, shape index: {}]   ;;  %s10850_s2 = inlined_call_operand.vmem [shape: bf16[8,16], index: 2, kind: input, shape index: {}]   ;;  %s10851_s3 = inlined_call_operand.vmem [shape: f32[1,4], index: 3, kind: input, shape index: {}]   ;;  %s10852_s4 = inlined_call_operand.vmem [shape: bf16[72,4], index: 4, kind: input, shape index: {}]   ;;  %s10853_s5 = inlined_call_operand.vmem [shape: f32[1,4], index: 5, kind: input, shape index: {}]   ;;  %s10854_s6 = inlined_call_operand.vmem [shape: bf16[36,4], index: 6, kind: input, shape index: {}]   ;;  %s10855_s7 = inlined_call_operand.vmem [shape: f32[1,4], index: 7, kind: input, shape index: {}]   ;;  %s10856_s8 = inlined_call_operand.vmem [shape: bf16[2,16,8,8], index: 8, kind: output, shape index: {}]  }
   0x1 LB: > { %s5641_s28 = sadd.s32 4294967295, %s6024_s27   ;;  %p5645_p0 = scmp.ge.s32.totalorder %s6024_s27, 1  ;;  %s6024_s27 = sphi %s6087_s27, %s18_s27  }
   0x2   : > { %p272_p1 = scmp.lt.s32.totalorder %s6024_s27, 3 }
   0x4   : > { %p273_p2 = pnand %p5645_p0, %p272_p1 }
   0x6   : > { %276 = sbr.rel (%p273_p2) target bundleno = 2654 (0xa5e), region = 52 }
   0xd   : > { %v335_v0 = vld [vmem:[%s10850_s2] sm:$0xf]  ;;  %vm369_vm0 = vcmask 1043456   ;;  %p311_p3 = scmp.lt.s32.totalorder %s5641_s28, 1  ;;  %s6026_s11 = smov 8   ;;  %vm356_vm1 = vcmask 64512  }
   0xe   : > { %5891 = vmatprep.subr.msk.bf16.mxu0 %vm369_vm0, %v335_v0  ;;  %v371_v1 = vsel %vm369_vm0, %v335_v0, 0  ;;  %v5660_v2 = vld [vmem:[%s10851_s3] ss:$0 sm:$0xff]  ;;  %s6027_s12 = smov 12   ;;  %s6028_s21 = smov 4   ;;  %vm1933_vm2 = vcmask 1040384  }
   0xf   : > { %5802 = vmatpush3.bf16.msra.mxu0 %v371_v1  ;;  %s11668_s28 = smov (!%p311_p3, %s5641_s28), 1  ;;  %1472 = vrot.lane.b32.xlu1 %v5660_v2, %s6026_s11  ;;  %vm1934_vm3 = vsmask.f32 256  ;;  %v10857_v36 = vmov 0   ;;  %v10945_v38 = vmov 0  ;;  %v10949_v44 = vmov 0 }
  0x10   : > { %1261 = vrot.lane.b32.xlu0 %v5660_v2, %s6027_s12  ;;  %s5753_s13 = sshll.u32 %s11668_s28, 5  ;;  %s5754_s14 = sshll.u32 %s11668_s28, 6  ;;  %v1816_v37 = vrot.slane %v10857_v36, 7  ;;  %vm6151_vm4 = vmand %vm1933_vm2, %vm1934_vm3  ;;  %vm2069_vm5 = vsmask.f32 3328  ;;  %v1953_v43 = vrot.slane %v10857_v36, 1 }
  0x11   : > { %s315_s17 = scalar_lea.vmem %s10848_s0, %s5753_s13  ;;  %s6117_s20 = scalar_lea.vmem %s10849_s1, %s5754_s14  ;;  %v10946_v38 = vsel %vm6151_vm4, 4294967295, %v10945_v38  ;;  %vm6164_vm6 = vmand %vm369_vm0, %vm2069_vm5  ;;  %vm1651_vm9 = vcmask 31744   ;;  %vm2442_vm10 = vcmask 130048   ;;  %vm2475_vm11 = vcmask 195584  }
  0x12   : > { %v5973_v3 = vld [vmem:[%s315_s17] sm:$0xff]   ;;  %v5974_v4 = vld [vmem:[%s315_s17 + $0x8] sm:$0xff]   ;;  %v5975_v5 = vld [vmem:[%s315_s17 + $0x10] sm:$0xff]   ;;  %10947 = vst [vmem:[#allocation2_spill] sm:$0xff] %v10946_v38  ;;  %v6160_v41 = vsel %vm6151_vm4, 0, %v1816_v37  ;;  %v10950_v44 = vsel %vm6164_vm6, 4294967295, %v10949_v44 }
  0x13   : > { %5803 = vmatprep.mubr.msk.bf16.mxu0 %vm356_vm1, %v5973_v3  ;;  %v1492_v6 = vld [vmem:[%s6117_s20 + $0x4] sm:$0xf]  ;;  %v1494_v7 = vld [vmem:[%s6117_s20 + $0xc] sm:$0xf]  ;;  %v1491_v8 = vld [vmem:[%s6117_s20] sm:$0xf]  ;;  %v5923_v45 = vpack.i.bf16 %v10857_v36, %v6160_v41 }
  0x14   : > { %5804 = vmatmul.mubr.msk.bf16.vlgmr.msra.gmra.mrb[0].mxu0 %vm356_vm1, %v5974_v4  ;;  %v5662_v9 = vcombine.low %v1492_v6, %v1492_v6  ;;  %v5661_v10 = vcombine.low %v1491_v8, %v1491_v8  ;;  %v1493_v11 = vld [vmem:[%s6117_s20 + $0x8] sm:$0xf]  ;;  %v5976_v12 = vld [vmem:[%s315_s17 + $0x18] sm:$0xff]   ;;  %v5664_v13 = vcombine.low %v1494_v7, %v1494_v7  ;;  %v1496_v14 = vld [vmem:[%s6117_s20 + $0x14] sm:$0xf]  ;;  %10948 = vst [vmem:[#allocation3_spill] sm:$0xff] %v6160_v41 }
  0x15   : > { %5807 = vmatprep.mubr.msk.bf16.mxu0 %vm356_vm1, %v5975_v5  ;;  %v5663_v15 = vcombine.low %v1493_v11, %v1493_v11  ;;  %v1495_v16 = vld [vmem:[%s6117_s20 + $0x10] sm:$0xf]  ;;  %v5666_v17 = vcombine.low %v1496_v14, %v1496_v14  ;;  %v1498_v18 = vld [vmem:[%s6117_s20 + $0x1c] sm:$0xf]  ;;  %v1497_v20 = vld [vmem:[%s6117_s20 + $0x18] sm:$0xf] }
  0x16   : > { %1621 = vrot.lane.b32.xlu1 %v5662_v9, %s6028_s21  ;;  %1619 = vrot.lane.b32.xlu0 %v5661_v10, %s6028_s21  ;;  %v5665_v19 = vcombine.low %v1495_v16, %v1495_v16  ;;  %v5668_v21 = vcombine.low %v1498_v18, %v1498_v18  ;;  %v1500_v22 = vld [vmem:[%s6117_s20 + $0x24] sm:$0xf]  ;;  %v5667_v23 = vcombine.low %v1497_v20, %v1497_v20  ;;  %v1499_v24 = vld [vmem:[%s6117_s20 + $0x20] sm:$0xf]  ;;  %v6174_v46 = vsel %vm6164_vm6, %v1953_v43, 0  ;;  %s6030_s22 = smov 48  }
  0x17   : > { %v5670_v25 = vcombine.low %v1500_v22, %v1500_v22  ;;  %v1502_v26 = vld [vmem:[%s6117_s20 + $0x2c] sm:$0xf]  ;;  %v5669_v27 = vcombine.low %v1499_v24, %v1499_v24  ;;  %v1501_v28 = vld [vmem:[%s6117_s20 + $0x28] sm:$0xf]  ;;  %v1504_v30 = vld [vmem:[%s6117_s20 + $0x34] sm:$0xf]  ;;  %v5918_v47 = vpack.i.bf16 %v6174_v46, %v10857_v36 }
  0x18   : > { %v5672_v29 = vcombine.low %v1502_v26, %v1502_v26  ;;  %v5671_v31 = vcombine.low %v1501_v28, %v1501_v28  ;;  %v1503_v32 = vld [vmem:[%s6117_s20 + $0x30] sm:$0xf]  ;;  %v5674_v33 = vcombine.low %v1504_v30, %v1504_v30  ;;  %v1506_v34 = vld [vmem:[%s6117_s20 + $0x3c] sm:$0xf]  ;;  %v1505_v39 = vld [vmem:[%s6117_s20 + $0x38] sm:$0xf] }
  0x19   : > { %v5673_v35 = vcombine.low %v1503_v32, %v1503_v32  ;;  %v5676_v40 = vcombine.low %v1506_v34, %v1506_v34  ;;  %v5675_v42 = vcombine.low %v1505_v39, %v1505_v39  ;;  %10951 = vst [vmem:[#allocation4_spill] sm:$0xff] %v10950_v44  ;;  %10952 = vst [vmem:[#allocation5_spill] sm:$0xff] %v6174_v46  ;;  %s6031_s23 = smov 56   ;;  %s6032_s24 = smov 16   ;;  %vm2508_vm12 = vcmask 261120  }
  0x1a   : > { %1625 = vrot.lane.b32.xlu1 %v5664_v13, %s6028_s21  ;;  %1623 = vrot.lane.b32.xlu0 %v5663_v15, %s6028_s21  ;;  %s6033_s25 = smov 64   ;;  %s6034_s26 = smov 120   ;;  %vm2541_vm13 = vcmask 326656   ;;  %vm2574_vm14 = vcmask 392192   ;;  %vm2607_vm15 = vcmask 457728   ;;  %vm3318_vm2 = vcmask 588800  }
  0x1b   : > { %s6035_s29 = smov 124   ;;  %s6036_s30 = smov 116  }
  0x1c   : > { %5808 = vmatmul.mubr.msk.bf16.gmra.mrb[4].mxu0 %vm356_vm1, %v5976_v12  ;;  %s6037_s9 = smov 32   ;;  %s6038_s10 = smov 24  }
  0x1d   : > { %s6039_s13 = smov 40  }
  0x1e   : > { %1629 = vrot.lane.b32.xlu1 %v5666_v17, %s6028_s21  ;;  %1627 = vrot.lane.b32.xlu0 %v5665_v19, %s6028_s21 }
  0x22   : > { %1633 = vrot.lane.b32.xlu1 %v5668_v21, %s6028_s21  ;;  %1631 = vrot.lane.b32.xlu0 %v5667_v23, %s6028_s21 }
  0x26   : > { %1637 = vrot.lane.b32.xlu1 %v5670_v25, %s6028_s21  ;;  %1635 = vrot.lane.b32.xlu0 %v5669_v27, %s6028_s21 }
  0x2a   : > { %1641 = vrot.lane.b32.xlu1 %v5672_v29, %s6028_s21  ;;  %1639 = vrot.lane.b32.xlu0 %v5671_v31, %s6028_s21 }
  0x2e   : > { %1645 = vrot.lane.b32.xlu1 %v5674_v33, %s6028_s21  ;;  %1643 = vrot.lane.b32.xlu0 %v5673_v35, %s6028_s21 }
  0x32   : > { %1649 = vrot.lane.b32.xlu1 %v5676_v40, %s6028_s21  ;;  %1647 = vrot.lane.b32.xlu0 %v5675_v42, %s6028_s21 }
  0x36   : > { %5924 = vrot.lane.b32.xlu1 %v5923_v45, %s6030_s22  ;;  %2104 = vrot.lane.b32.xlu0 %v10857_v36, %s6026_s11 }
  0x3a   : > { %2360 = vrot.lane.b32.xlu1 %v10857_v36, %s6031_s23  ;;  %5919 = vrot.lane.b32.xlu0 %v5918_v47, %s6032_s24 }
  0x3e   : > { %5929 = vrot.lane.b32.xlu1 %v5918_v47, %s6033_s25 }
  0x81   : > { %v6263_v62 = vpop.permute.xlu1 %1472 }
  0x82   : > { %v6273_v63 = vpop.permute.xlu0 %1261 }
  0x88   : > { %v6275_v0 = vpop.permute.xlu1 %1621  ;;  %v6289_v4 = vpop.permute.xlu0 %1619 }
  0x89   : > { %10953 = vst [vmem:[#allocation6_spill] sm:$0xff] %v6275_v0  ;;  %10955 = vst [vmem:[#allocation8_spill] sm:$0xff] %v6289_v4 }
  0x8c   : > { %v6287_v3 = vpop.permute.xlu1 %1625  ;;  %v6297_v6 = vpop.permute.xlu0 %1623 }
  0x8d   : > { %10954 = vst [vmem:[#allocation7_spill] sm:$0xff] %v6287_v3  ;;  %10957 = vst [vmem:[#allocation10_spill] sm:$0xff] %v6297_v6 }
  0x90   : > { %v6295_v5 = vpop.permute.xlu1 %1629  ;;  %v6301_v8 = vpop.permute.xlu0 %1627 }
  0x91   : > { %10956 = vst [vmem:[#allocation9_spill] sm:$0xff] %v6295_v5  ;;  %10959 = vst [vmem:[#allocation12_spill] sm:$0xff] %v6301_v8 }
  0x94   : > { %v6299_v7 = vpop.permute.xlu1 %1633  ;;  %v6305_v10 = vpop.permute.xlu0 %1631 }
  0x95   : > { %10958 = vst [vmem:[#allocation11_spill] sm:$0xff] %v6299_v7  ;;  %10961 = vst [vmem:[#allocation14_spill] sm:$0xff] %v6305_v10 }
  0x98   : > { %v6303_v9 = vpop.permute.xlu1 %1637  ;;  %v6309_v12 = vpop.permute.xlu0 %1635 }
  0x99   : > { %10960 = vst [vmem:[#allocation13_spill] sm:$0xff] %v6303_v9  ;;  %10963 = vst [vmem:[#allocation16_spill] sm:$0xff] %v6309_v12 }
  0x9c   : > { %v6307_v11 = vpop.permute.xlu1 %1641  ;;  %v6313_v14 = vpop.permute.xlu0 %1639 }
  0x9d   : > { %10962 = vst [vmem:[#allocation15_spill] sm:$0xff] %v6307_v11  ;;  %10965 = vst [vmem:[#allocation18_spill] sm:$0xff] %v6313_v14 }
  0xa0   : > { %v6311_v13 = vpop.permute.xlu1 %1645  ;;  %v6317_v16 = vpop.permute.xlu0 %1643 }
  0xa1   : > { %10964 = vst [vmem:[#allocation17_spill] sm:$0xff] %v6311_v13  ;;  %10967 = vst [vmem:[#allocation20_spill] sm:$0xff] %v6317_v16 }
  0xa4   : > { %v6315_v15 = vpop.permute.xlu1 %1649  ;;  %v6321_v18 = vpop.permute.xlu0 %1647 }
  0xa5   : > { %10966 = vst [vmem:[#allocation19_spill] sm:$0xff] %v6315_v15  ;;  %10969 = vst [vmem:[#allocation22_spill] sm:$0xff] %v6321_v18 }
  0xa8   : > { %v6319_v17 = vpop.permute.xlu1 %5924  ;;  %v6325_v20 = vpop.permute.xlu0 %2104 }
  0xa9   : > { %10968 = vst [vmem:[#allocation21_spill] sm:$0xff] %v6319_v17  ;;  %10971 = vst [vmem:[#allocation24_spill] sm:$0xff] %v6325_v20 }
  0xac   : > { %v6323_v19 = vpop.permute.xlu1 %2360  ;;  %v6329_v22 = vpop.permute.xlu0 %5919 }
  0xad   : > { %10970 = vst [vmem:[#allocation23_spill] sm:$0xff] %v6323_v19  ;;  %10973 = vst [vmem:[#allocation26_spill] sm:$0xff] %v6329_v22 }
  0xb0   : > { %v6327_v21 = vpop.permute.xlu1 %5929 }
  0xb1   : > { %10972 = vst [vmem:[#allocation25_spill] sm:$0xff] %v6327_v21 }
  0xe7   : > { %v6185_v48 = vpop.f32.mrb[0].mxu0 }
  0xe8   : > { %580 = vrot.lane.b32.xlu0 %v6185_v48, %s6034_s26  ;;  %503 = vrot.lane.b32.xlu1 %v6185_v48, %s6026_s11  ;;  %v6191_v49 = vpop.f32.mrb[1].mxu0  ;;  %v6198_v52 = vmul.f32 3.0, %v6185_v48 }
  0xe9   : > { %v6193_v50 = vpop.f32.mrb[2].mxu0  ;;  %v6205_v53 = vmul.f32 3.0, %v6191_v49 }
  0xea   : > { %v6195_v51 = vpop.f32.mrb[3].mxu0  ;;  %v6224_v58 = vmul.f32 3.0, %v6193_v50 }
  0xeb   : > { %v6231_v59 = vmul.f32 3.0, %v6195_v51 }
  0xec   : > { %458 = vrot.lane.b32.xlu1 %v6198_v52, %s6026_s11  ;;  %505 = vrot.lane.b32.xlu0 %v6193_v50, %s6026_s11 }
  0xef   : > { %v6207_v54 = vpop.f32.mrb[4].mxu0 }
  0xf0   : > { %542 = vrot.lane.b32.xlu1 %v6198_v52, %s6034_s26  ;;  %454 = vrot.lane.b32.xlu0 %v6205_v53, %s6026_s11  ;;  %v6213_v55 = vpop.f32.mrb[5].mxu0  ;;  %v6250_v60 = vmul.f32 3.0, %v6207_v54 }
  0xf1   : > { %v6215_v56 = vpop.f32.mrb[6].mxu0  ;;  %v6261_v61 = vmul.f32 3.0, %v6213_v55 }
  0xf2   : > { %v6217_v57 = vpop.f32.mrb[7].mxu0  ;;  %v6278_v1 = vmul.f32 3.0, %v6215_v56 }
  0xf3   : > { %v6285_v2 = vmul.f32 3.0, %v6217_v57 }
  0xf4   : > { %582 = vrot.lane.b32.xlu1 %v6193_v50, %s6034_s26  ;;  %501 = vrot.lane.b32.xlu0 %v6195_v51, %s6026_s11 }
  0xf8   : > { %538 = vrot.lane.b32.xlu1 %v6205_v53, %s6034_s26  ;;  %544 = vrot.lane.b32.xlu0 %v6224_v58, %s6034_s26 }
  0xfc   : > { %578 = vrot.lane.b32.xlu1 %v6195_v51, %s6034_s26  ;;  %456 = vrot.lane.b32.xlu0 %v6231_v59, %s6026_s11 }
 0x100   : > { %460 = vrot.lane.b32.xlu1 %v6224_v58, %s6026_s11  ;;  %540 = vrot.lane.b32.xlu0 %v6231_v59, %s6034_s26 }
 0x104   : > { %588 = vrot.lane.b32.xlu0 %v6207_v54, %s6034_s26  ;;  %511 = vrot.lane.b32.xlu1 %v6207_v54, %s6026_s11 }
 0x108   : > { %584 = vrot.lane.b32.xlu0 %v6213_v55, %s6034_s26  ;;  %507 = vrot.lane.b32.xlu1 %v6213_v55, %s6026_s11 }
 0x10c   : > { %466 = vrot.lane.b32.xlu0 %v6250_v60, %s6026_s11  ;;  %550 = vrot.lane.b32.xlu1 %v6250_v60, %s6034_s26 }
 0x110   : > { %590 = vrot.lane.b32.xlu1 %v6215_v56, %s6034_s26  ;;  %513 = vrot.lane.b32.xlu0 %v6215_v56, %s6026_s11 }
 0x114   : > { %546 = vrot.lane.b32.xlu1 %v6261_v61, %s6034_s26  ;;  %462 = vrot.lane.b32.xlu0 %v6261_v61, %s6026_s11 }
 0x118   : > { %586 = vrot.lane.b32.xlu1 %v6217_v57, %s6034_s26  ;;  %509 = vrot.lane.b32.xlu0 %v6217_v57, %s6026_s11 }
 0x11c   : > { %468 = vrot.lane.b32.xlu1 %v6278_v1, %s6026_s11  ;;  %552 = vrot.lane.b32.xlu0 %v6278_v1, %s6034_s26 }
 0x120   : > { %548 = vrot.lane.b32.xlu0 %v6285_v2, %s6034_s26  ;;  %464 = vrot.lane.b32.xlu1 %v6285_v2, %s6026_s11 }
 0x15a   : > { %v581_v23 = vpop.permute.xlu0 %580  ;;  %v504_v24 = vpop.permute.xlu1 %503 }
 0x15e   : > { %v459_v25 = vpop.permute.xlu1 %458  ;;  %v506_v26 = vpop.permute.xlu0 %505 }
 0x15f   : > { %v480_v27 = vadd.f32 %v459_v25, %v6195_v51 }
 0x161   : > { %v488_v28 = vadd.f32 %v480_v27, %v6198_v52 }
 0x162   : > { %v543_v29 = vpop.permute.xlu1 %542  ;;  %v455_v30 = vpop.permute.xlu0 %454 }
 0x163   : > { %v524_v31 = vadd.f32 %v506_v26, %v488_v28  ;;  %v564_v32 = vadd.f32 %v6185_v48, %v543_v29  ;;  %v478_v25 = vadd.f32 %v455_v30, %v6191_v49 }
 0x165   : > { %v6334_v33 = vmul.f32 0.125, %v524_v31  ;;  %v572_v34 = vadd.f32 %v564_v32, %v6224_v58  ;;  %v486_v29 = vadd.f32 %v478_v25, %v6205_v53 }
 0x166   : > { %v583_v35 = vpop.permute.xlu1 %582  ;;  %v502_v37 = vpop.permute.xlu0 %501 }
 0x167   : > { %v601_v39 = vadd.f32 %v583_v35, %v572_v34  ;;  %v6338_v40 = vmul.f32 3.0, %v6334_v33 }
 0x169   : > { %v609_v42 = vmul.f32 0.125, %v601_v39  ;;  %1288 = vrot.lane.b32.xlu1 %v6338_v40, %s6035_s29  ;;  %v522_v39 = vadd.f32 %v502_v37, %v486_v29 }
 0x16a   : > { %v539_v43 = vpop.permute.xlu1 %538  ;;  %v545_v45 = vpop.permute.xlu0 %544 }
 0x16b   : > { %v562_v47 = vadd.f32 %v539_v43, %v6191_v49  ;;  %627 = vrot.lane.b32.xlu0 %v609_v42, %s6026_s11  ;;  %v565_v30 = vadd.f32 %v6193_v50, %v545_v45  ;;  %v6360_v25 = vmul.f32 0.125, %v522_v39 }
 0x16d   : > { %v570_v26 = vadd.f32 %v562_v47, %v6231_v59  ;;  %v573_v37 = vadd.f32 %v565_v30, %v6261_v61 }
 0x16e   : > { %v579_v27 = vpop.permute.xlu1 %578  ;;  %v457_v28 = vpop.permute.xlu0 %456 }
 0x16f   : > { %666 = vrot.lane.b32.xlu0 %v6334_v33, %s6036_s30  ;;  %v599_v31 = vadd.f32 %v579_v27, %v570_v26  ;;  %v479_v43 = vadd.f32 %v457_v28, %v6191_v49 }
 0x171   : > { %v607_v42 = vmul.f32 0.125, %v599_v31 }
 0x172   : > { %v461_v32 = vpop.permute.xlu1 %460  ;;  %v541_v34 = vpop.permute.xlu0 %540 }
 0x173   : > { %v563_v35 = vadd.f32 %v541_v34, %v6195_v51  ;;  %813 = vrot.lane.b32.xlu0 %v6334_v33, %s6034_s26  ;;  %v487_v51 = vadd.f32 %v479_v43, %v6231_v59  ;;  %v481_v49 = vadd.f32 %v6185_v48, %v461_v32  ;;  %v6375_v32 = vmul.f32 3.0, %v6360_v25 }
 0x175   : > { %v571_v47 = vadd.f32 %v563_v35, %v6198_v52  ;;  %v523_v52 = vadd.f32 %v504_v24, %v487_v51  ;;  %v489_v34 = vadd.f32 %v481_v49, %v6224_v58 }
 0x176   : > { %v6355_v36 = vpop.permute.xlu0 %588  ;;  %v6357_v19 = vpop.permute.xlu1 %511 }
 0x177   : > { %623 = vrot.lane.b32.xlu0 %v607_v42, %s6026_s11  ;;  %v600_v53 = vadd.f32 %v581_v23, %v571_v47  ;;  %v6372_v59 = vmul.f32 0.125, %v523_v52 }
 0x179   : > { %v608_v26 = vmul.f32 0.125, %v600_v53  ;;  %v6384_v24 = vmul.f32 3.0, %v6372_v59 }
 0x17a   : > { %v585_v45 = vpop.permute.xlu0 %584  ;;  %v508_v27 = vpop.permute.xlu1 %507 }
 0x17b   : > { %v602_v28 = vadd.f32 %v585_v45, %v573_v37  ;;  %658 = vrot.lane.b32.xlu0 %v6360_v25, %s6036_s30  ;;  %625 = vrot.lane.b32.xlu1 %v608_v26, %s6026_s11  ;;  %v525_v48 = vadd.f32 %v508_v27, %v489_v34 }
 0x17d   : > { %v610_v29 = vmul.f32 0.125, %v602_v28  ;;  %v6381_v58 = vmul.f32 0.125, %v525_v48 }
 0x17e   : > { %v467_v23 = vpop.permute.xlu0 %466  ;;  %v551_v31 = vpop.permute.xlu1 %550 }
 0x17f   : > { %805 = vrot.lane.b32.xlu0 %v6360_v25, %s6034_s26  ;;  %629 = vrot.lane.b32.xlu1 %v610_v29, %s6026_s11  ;;  %v484_v43 = vadd.f32 %v467_v23, %v6217_v57  ;;  %v6392_v47 = vmul.f32 3.0, %v6381_v58  ;;  %v568_v48 = vadd.f32 %v6207_v54, %v551_v31 }
 0x181   : > { %v492_v37 = vadd.f32 %v484_v43, %v6250_v60 }
 0x182   : > { %v591_v35 = vpop.permute.xlu1 %590  ;;  %v514_v39 = vpop.permute.xlu0 %513 }
 0x183   : > { %1088 = vrot.lane.b32.xlu0 %v6338_v40, %s6028_s21  ;;  %1280 = vrot.lane.b32.xlu1 %v6375_v32, %s6035_s29  ;;  %v528_v27 = vadd.f32 %v514_v39, %v492_v37 }
 0x186   : > { %v547_v30 = vpop.permute.xlu1 %546  ;;  %v463_v42 = vpop.permute.xlu0 %462 }
 0x187   : > { %662 = vrot.lane.b32.xlu0 %v6372_v59, %s6036_s30  ;;  %1284 = vrot.lane.b32.xlu1 %v6384_v24, %s6035_s29  ;;  %v482_v28 = vadd.f32 %v6193_v50, %v463_v42 }
 0x189   : > { %v490_v43 = vadd.f32 %v482_v28, %v6261_v61 }
 0x18a   : > { %v587_v53 = vpop.permute.xlu1 %586  ;;  %v510_v51 = vpop.permute.xlu0 %509 }
 0x18b   : > { %670 = vrot.lane.b32.xlu0 %v6381_v58, %s6036_s30  ;;  %1292 = vrot.lane.b32.xlu1 %v6392_v47, %s6035_s29  ;;  %v526_v31 = vadd.f32 %v510_v51, %v490_v43 }
 0x18e   : > { %v553_v26 = vpop.permute.xlu0 %552  ;;  %v469_v49 = vpop.permute.xlu1 %468 }
 0x18f   : > { %v569_v45 = vadd.f32 %v6215_v56, %v553_v26  ;;  %809 = vrot.lane.b32.xlu0 %v6372_v59, %s6034_s26  ;;  %v6409_v56 = vmul.f32 0.125, %v528_v27  ;;  %v485_v37 = vadd.f32 %v6207_v54, %v469_v49  ;;  %v6428_v49 = vmul.f32 0.125, %v526_v31 }
 0x191   : > { %v577_v52 = vadd.f32 %v569_v45, %v6278_v1  ;;  %v6419_v45 = vmul.f32 3.0, %v6409_v56  ;;  %v493_v27 = vadd.f32 %v485_v37, %v6278_v1 }
 0x192   : > { %v549_v29 = vpop.permute.xlu0 %548  ;;  %v465_v26 = vpop.permute.xlu1 %464 }
 0x193   : > { %v567_v23 = vadd.f32 %v549_v29, %v6217_v57  ;;  %817 = vrot.lane.b32.xlu0 %v6381_v58, %s6034_s26  ;;  %v606_v34 = vadd.f32 %v6355_v36, %v577_v52  ;;  %v576_v57 = vadd.f32 %v568_v48, %v6278_v1  ;;  %v483_v61 = vadd.f32 %v465_v26, %v6213_v55 }
 0x194   : > { %v529_v28 = vadd.f32 %v514_v39, %v493_v27 }
 0x195   : > { %v575_v50 = vadd.f32 %v567_v23, %v6250_v60  ;;  %v614_v42 = vmul.f32 0.125, %v606_v34  ;;  %v605_v60 = vadd.f32 %v591_v35, %v576_v57  ;;  %v491_v52 = vadd.f32 %v483_v61, %v6285_v2 }
 0x196   : > { %v6435_v51 = vmul.f32 0.125, %v529_v28  ;;  %v6439_v35 = vmul.f32 3.0, %v6428_v49 }
 0x197   : > { %1080 = vrot.lane.b32.xlu0 %v6375_v32, %s6028_s21  ;;  %637 = vrot.lane.b32.xlu1 %v614_v42, %s6026_s11  ;;  %v604_v54 = vadd.f32 %v6355_v36, %v575_v50  ;;  %v613_v1 = vmul.f32 0.125, %v605_v60  ;;  %v566_v36 = vadd.f32 %v547_v30, %v6213_v55  ;;  %v527_v23 = vadd.f32 %v6357_v19, %v491_v52 }
 0x198   : > { %10974 = vst [vmem:[#allocation27_spill] sm:$0xff] %v6435_v51  ;;  %v6448_v48 = vmul.f32 3.0, %v6435_v51 }
 0x199   : > { %v612_v29 = vmul.f32 0.125, %v604_v54  ;;  %v574_v39 = vadd.f32 %v566_v36, %v6285_v2  ;;  %v6445_v34 = vmul.f32 0.125, %v527_v23 }
 0x19b   : > { %1084 = vrot.lane.b32.xlu0 %v6384_v24, %s6028_s21  ;;  %1304 = vrot.lane.b32.xlu1 %v6419_v45, %s6035_s29  ;;  %10975 = vst [vmem:[#allocation28_spill] sm:$0xff] %v6445_v34  ;;  %v603_v55 = vadd.f32 %v587_v53, %v574_v39  ;;  %v6455_v19 = vmul.f32 3.0, %v6445_v34 }
 0x19d   : > { %10976 = vst [vmem:[#allocation29_spill] sm:$0xff] %v6455_v19  ;;  %v611_v2 = vmul.f32 0.125, %v603_v55 }
 0x19f   : > { %1092 = vrot.lane.b32.xlu0 %v6392_v47, %s6028_s21  ;;  %633 = vrot.lane.b32.xlu1 %v612_v29, %s6026_s11 }
 0x1a3   : > { %635 = vrot.lane.b32.xlu0 %v613_v1, %s6026_s11  ;;  %1296 = vrot.lane.b32.xlu1 %v6439_v35, %s6035_s29 }
 0x1a7   : > { %682 = vrot.lane.b32.xlu0 %v6409_v56, %s6036_s30  ;;  %1308 = vrot.lane.b32.xlu1 %v6448_v48, %s6035_s29 }
 0x1ab   : > { %829 = vrot.lane.b32.xlu0 %v6409_v56, %s6034_s26  ;;  %1300 = vrot.lane.b32.xlu1 %v6455_v19, %s6035_s29 }
 0x1af   : > { %631 = vrot.lane.b32.xlu0 %v611_v2, %s6026_s11 }
 0x1b3   : > { %674 = vrot.lane.b32.xlu0 %v6428_v49, %s6036_s30 }
 0x1b7   : > { %821 = vrot.lane.b32.xlu0 %v6428_v49, %s6034_s26 }
 0x1bb   : > { %686 = vrot.lane.b32.xlu0 %v6435_v51, %s6036_s30 }
 0x1bf   : > { %833 = vrot.lane.b32.xlu0 %v6435_v51, %s6034_s26 }
 0x1c3   : > { %1104 = vrot.lane.b32.xlu0 %v6419_v45, %s6028_s21 }
 0x1c7   : > { %678 = vrot.lane.b32.xlu0 %v6445_v34, %s6036_s30 }
 0x1cb   : > { %825 = vrot.lane.b32.xlu0 %v6445_v34, %s6034_s26 }
 0x1cf   : > { %1096 = vrot.lane.b32.xlu0 %v6439_v35, %s6028_s21 }
 0x1d3   : > { %1108 = vrot.lane.b32.xlu0 %v6448_v48, %s6028_s21 }
 0x1d7   : > { %1100 = vrot.lane.b32.xlu0 %v6455_v19, %s6028_s21 }
 0x1db   : > { %v6500_v27 = vpop.permute.xlu1 %1288 }
 0x1dd   : > { %v6482_v30 = vpop.permute.xlu0 %627 }
 0x1de   : > { %668 = vrot.lane.b32.xlu1 %v6482_v30, %s6036_s30  ;;  %v6498_v31 = vmul.f32 3.0, %v6482_v30 }
 0x1e0   : > { %10978 = vst [vmem:[#allocation31_spill] sm:$0xff] %v6498_v31 }
 0x1e1   : > { %v667_v53 = vpop.permute.xlu0 %666 }
 0x1e2   : > { %v710_v43 = vrot.slane %v667_v53, 7  ;;  %815 = vrot.lane.b32.xlu1 %v6482_v30, %s6034_s26  ;;  %v955_v26 = vrot.slane %v667_v53, 1 }
 0x1e4   : > { %748 = vrot.lane.b32.xlu0 %v710_v43, %s6027_s12 }
 0x1e5   : > { %v814_v37 = vpop.permute.xlu0 %813 }
 0x1e6   : > { %v857_v50 = vrot.slane %v814_v37, 1 }
 0x1e8   : > { %895 = vrot.lane.b32.xlu0 %v857_v50, %s6026_s11 }
 0x1e9   : > { %v6490_v42 = vpop.permute.xlu0 %623 }
 0x1ea   : > { %10977 = vst [vmem:[#allocation30_spill] sm:$0xff] %v6490_v42  ;;  %660 = vrot.lane.b32.xlu1 %v6490_v42, %s6036_s30  ;;  %v6522_v39 = vmul.f32 3.0, %v6490_v42 }
 0x1ec   : > { %991 = vrot.lane.b32.xlu0 %v955_v26, %s6027_s12  ;;  %10981 = vst [vmem:[#allocation34_spill] sm:$0xff] %v6522_v39 }
 0x1ed   : > { %v659_v57 = vpop.permute.xlu0 %658  ;;  %v6506_v60 = vpop.permute.xlu1 %625 }
 0x1ee   : > { %807 = vrot.lane.b32.xlu1 %v6490_v42, %s6034_s26  ;;  %v706_v54 = vrot.slane %v659_v57, 7  ;;  %10979 = vst [vmem:[#allocation32_spill] sm:$0xff] %v6506_v60  ;;  %v951_v36 = vrot.slane %v659_v57, 1  ;;  %v6533_v37 = vmul.f32 3.0, %v6506_v60 }
 0x1f0   : > { %1290 = vrot.lane.b32.xlu0 %v6498_v31, %s6035_s29  ;;  %10982 = vst [vmem:[#allocation35_spill] sm:$0xff] %v6533_v37 }
 0x1f1   : > { %v806_v61 = vpop.permute.xlu0 %805  ;;  %v6514_v29 = vpop.permute.xlu1 %629 }
 0x1f2   : > { %1090 = vrot.lane.b32.xlu1 %v6498_v31, %s6028_s21  ;;  %v853_v52 = vrot.slane %v806_v61, 1  ;;  %10980 = vst [vmem:[#allocation33_spill] sm:$0xff] %v6514_v29  ;;  %v6541_v57 = vmul.f32 3.0, %v6514_v29 }
 0x1f4   : > { %740 = vrot.lane.b32.xlu0 %v706_v54, %s6027_s12  ;;  %10983 = vst [vmem:[#allocation36_spill] sm:$0xff] %v6541_v57 }
 0x1f5   : > { %v6509_v28 = vpop.permute.xlu0 %1088 }
 0x1f6   : > { %664 = vrot.lane.b32.xlu1 %v6506_v60, %s6036_s30 }
 0x1f8   : > { %887 = vrot.lane.b32.xlu0 %v853_v52, %s6026_s11 }
 0x1f9   : > { %v663_v1 = vpop.permute.xlu0 %662 }
 0x1fa   : > { %672 = vrot.lane.b32.xlu1 %v6514_v29, %s6036_s30  ;;  %v708_v2 = vrot.slane %v663_v1, 7 }
 0x1fc   : > { %983 = vrot.lane.b32.xlu0 %v951_v36, %s6027_s12  ;;  %v953_v36 = vrot.slane %v663_v1, 1 }
 0x1fd   : > { %v671_v23 = vpop.permute.xlu0 %670 }
 0x1fe   : > { %811 = vrot.lane.b32.xlu1 %v6506_v60, %s6034_s26  ;;  %v712_v43 = vrot.slane %v671_v23, 7 }
 0x200   : > { %1282 = vrot.lane.b32.xlu0 %v6522_v39, %s6035_s29 }
 0x201   : > { %v810_v55 = vpop.permute.xlu0 %809 }
 0x202   : > { %819 = vrot.lane.b32.xlu1 %v6514_v29, %s6034_s26  ;;  %v855_v26 = vrot.slane %v810_v55, 1 }
 0x204   : > { %744 = vrot.lane.b32.xlu0 %v708_v2, %s6027_s12  ;;  %v957_v2 = vrot.slane %v671_v23, 1 }
 0x205   : > { %v818_v53 = vpop.permute.xlu0 %817 }
 0x206   : > { %1082 = vrot.lane.b32.xlu1 %v6522_v39, %s6028_s21  ;;  %v859_v54 = vrot.slane %v818_v53, 1 }
 0x208   : > { %752 = vrot.lane.b32.xlu0 %v712_v43, %s6027_s12  ;;  %v6556_v43 = vpop.permute.xlu1 %1280 }
 0x209   : > { %v6535_v50 = vpop.permute.xlu0 %1080 }
 0x20a   : > { %1086 = vrot.lane.b32.xlu1 %v6533_v37, %s6028_s21 }
 0x20c   : > { %891 = vrot.lane.b32.xlu0 %v855_v26, %s6026_s11  ;;  %v6562_v26 = vpop.permute.xlu1 %1284 }
 0x20d   : > { %v6543_v61 = vpop.permute.xlu0 %1084 }
 0x20e   : > { %1094 = vrot.lane.b32.xlu1 %v6541_v57, %s6028_s21 }
 0x210   : > { %899 = vrot.lane.b32.xlu0 %v859_v54, %s6026_s11 }
 0x211   : > { %v6548_v52 = vpop.permute.xlu0 %1092 }
 0x214   : > { %987 = vrot.lane.b32.xlu0 %v953_v36, %s6027_s12  ;;  %v6571_v36 = vpop.permute.xlu1 %1292 }
 0x215   : > { %v6551_v55 = vpop.permute.xlu0 %635 }
 0x216   : > { %684 = vrot.lane.b32.xlu1 %v6551_v55, %s6036_s30 }
 0x218   : > { %995 = vrot.lane.b32.xlu0 %v957_v2, %s6027_s12  ;;  %v6576_v17 = vpop.permute.xlu1 %637 }
 0x219   : > { %v683_v53 = vpop.permute.xlu0 %682 }
 0x21a   : > { %831 = vrot.lane.b32.xlu1 %v6551_v55, %s6034_s26  ;;  %v718_v54 = vrot.slane %v683_v53, 7  ;;  %v963_v41 = vrot.slane %v683_v53, 1 }
 0x21c   : > { %1286 = vrot.lane.b32.xlu0 %v6533_v37, %s6035_s29 }
 0x21d   : > { %v830_v1 = vpop.permute.xlu0 %829 }
 0x21e   : > { %v865_v21 = vrot.slane %v830_v1, 1  ;;  %v6584_v1 = vmul.f32 3.0, %v6551_v55 }
 0x220   : > { %1294 = vrot.lane.b32.xlu0 %v6541_v57, %s6035_s29  ;;  %10984 = vst [vmem:[#allocation37_spill] sm:$0xff] %v6584_v1 }
 0x221   : > { %v6566_v23 = vpop.permute.xlu0 %631 }
 0x222   : > { %676 = vrot.lane.b32.xlu1 %v6566_v23, %s6036_s30  ;;  %v6604_v13 = vmul.f32 3.0, %v6566_v23 }
 0x224   : > { %764 = vrot.lane.b32.xlu0 %v718_v54, %s6027_s12  ;;  %v6586_v54 = vpop.permute.xlu1 %1304  ;;  %10985 = vst [vmem:[#allocation38_spill] sm:$0xff] %v6604_v13 }
 0x225   : > { %v675_v2 = vpop.permute.xlu0 %674 }
 0x226   : > { %823 = vrot.lane.b32.xlu1 %v6566_v23, %s6034_s26  ;;  %v714_v22 = vrot.slane %v675_v2, 7  ;;  %v959_v15 = vrot.slane %v675_v2, 1 }
 0x228   : > { %911 = vrot.lane.b32.xlu0 %v865_v21, %s6026_s11 }
 0x229   : > { %v822_v46 = vpop.permute.xlu0 %821 }
 0x22a   : > { %688 = vrot.lane.b32.xlu1 %v6576_v17, %s6036_s30  ;;  %v861_v11 = vrot.slane %v822_v46, 1 }
 0x22c   : > { %1007 = vrot.lane.b32.xlu0 %v963_v41, %s6027_s12  ;;  %v6593_v41 = vpop.permute.xlu1 %633 }
 0x22d   : > { %v687_v20 = vpop.permute.xlu0 %686 }
 0x22e   : > { %835 = vrot.lane.b32.xlu1 %v6576_v17, %s6034_s26  ;;  %v720_v2 = vrot.slane %v687_v20, 7  ;;  %v965_v5 = vrot.slane %v687_v20, 1 }
 0x230   : > { %1306 = vrot.lane.b32.xlu0 %v6584_v1, %s6035_s29 }
 0x231   : > { %v834_v21 = vpop.permute.xlu0 %833 }
 0x232   : > { %1106 = vrot.lane.b32.xlu1 %v6584_v1, %s6028_s21  ;;  %v867_v3 = vrot.slane %v834_v21, 1  ;;  %v647_v1 = vlaneseq }
 0x234   : > { %756 = vrot.lane.b32.xlu0 %v714_v22, %s6027_s12  ;;  %v6608_v22 = vpop.permute.xlu1 %1296  ;;  %v6643_v6 = vshrl.u32 %v647_v1, 7 }
 0x235   : > { %v6595_v53 = vpop.permute.xlu0 %1104 }
 0x236   : > { %680 = vrot.lane.b32.xlu1 %v6593_v41, %s6036_s30  ;;  %vm804_vm7 = vcmp.eq.s32.totalorder %v6643_v6, 7  ;;  %vm649_vm8 = vcmp.eq.s32.totalorder %v6643_v6, 0 }
 0x238   : > { %903 = vrot.lane.b32.xlu0 %v861_v11, %s6026_s11  ;;  %v6613_v11 = vmul.f32 3.0, %v6576_v17  ;;  %v6621_v7 = vpop.permute.xlu1 %1308 }
 0x239   : > { %v679_v9 = vpop.permute.xlu0 %678  ;;  %10988 = vst [vmem:[#allocation41_spill] sm:$0xff] %v6621_v7 }
 0x23a   : > { %827 = vrot.lane.b32.xlu1 %v6593_v41, %s6034_s26  ;;  %10986 = vst [vmem:[#allocation39_spill] sm:$0xff] %v6613_v11  ;;  %v716_v21 = vrot.slane %v679_v9, 7  ;;  %v961_v44 = vrot.slane %v679_v9, 1 }
 0x23c   : > { %999 = vrot.lane.b32.xlu0 %v959_v15, %s6027_s12  ;;  %v6619_v15 = vmul.f32 3.0, %v6593_v41  ;;  %v6628_v14 = vpop.permute.xlu1 %1300 }
 0x23d   : > { %v826_v46 = vpop.permute.xlu0 %825  ;;  %10989 = vst [vmem:[#allocation42_spill] sm:$0xff] %v6628_v14 }
 0x23e   : > { %1098 = vrot.lane.b32.xlu1 %v6604_v13, %s6028_s21  ;;  %10987 = vst [vmem:[#allocation40_spill] sm:$0xff] %v6619_v15  ;;  %v863_v20 = vrot.slane %v826_v46, 1 }
 0x240   : > { %1298 = vrot.lane.b32.xlu0 %v6604_v13, %s6035_s29 }
 0x241   : > { %v6623_v0 = vpop.permute.xlu0 %1096 }
 0x242   : > { %1110 = vrot.lane.b32.xlu1 %v6613_v11, %s6028_s21 }
 0x244   : > { %768 = vrot.lane.b32.xlu0 %v720_v2, %s6027_s12 }
 0x245   : > { %v6630_v18 = vpop.permute.xlu0 %1108 }
 0x246   : > { %1102 = vrot.lane.b32.xlu1 %v6619_v15, %s6028_s21 }
 0x248   : > { %915 = vrot.lane.b32.xlu0 %v867_v3, %s6026_s11 }
 0x249   : > { %v6635_v13 = vpop.permute.xlu0 %1100 }
 0x24a   : > { %10990 = vst [vmem:[#allocation43_spill] sm:$0xff] %v6635_v13 }
 0x24c   : > { %1011 = vrot.lane.b32.xlu0 %v965_v5, %s6027_s12 }
 0x250   : > { %v669_v2 = vpop.permute.xlu1 %668  ;;  %1310 = vrot.lane.b32.xlu0 %v6613_v11, %s6035_s29 }
 0x251   : > { %v711_v12 = vrot.slane %v669_v2, 7  ;;  %v956_v5 = vrot.slane %v669_v2, 1 }
 0x253   : > { %750 = vrot.lane.b32.xlu1 %v711_v12, %s6027_s12 }
 0x254   : > { %v816_v16 = vpop.permute.xlu1 %815  ;;  %760 = vrot.lane.b32.xlu0 %v716_v21, %s6027_s12 }
 0x255   : > { %v858_v3 = vrot.slane %v816_v16, 1 }
 0x256   : > { %v749_v38 = vpop.permute.xlu0 %748 }
 0x257   : > { %897 = vrot.lane.b32.xlu1 %v858_v3, %s6026_s11 }
 0x258   : > { %907 = vrot.lane.b32.xlu0 %v863_v20, %s6026_s11 }
 0x25a   : > { %v896_v11 = vpop.permute.xlu0 %895 }
 0x25b   : > { %993 = vrot.lane.b32.xlu1 %v956_v5, %s6027_s12  ;;  %v6654_v2 = vsel %vm804_vm7, %v6334_v33, %v896_v11  ;;  %v6666_v5 = vsel %vm649_vm8, %v6334_v33, %v749_v38 }
 0x25c   : > { %v661_v10 = vpop.permute.xlu1 %660  ;;  %1003 = vrot.lane.b32.xlu0 %v961_v44, %s6027_s12 }
 0x25d   : > { %v707_v12 = vrot.slane %v661_v10, 7  ;;  %v952_v1 = vrot.slane %v661_v10, 1 }
 0x25e   : > { %v992_v21 = vpop.permute.xlu0 %991 }
 0x25f   : > { %742 = vrot.lane.b32.xlu1 %v707_v12, %s6027_s12  ;;  %v1035_v11 = vsel %vm804_vm7, %v6666_v5, %v992_v21 }
 0x260   : > { %v808_v16 = vpop.permute.xlu1 %807  ;;  %1302 = vrot.lane.b32.xlu0 %v6619_v15, %s6035_s29 }
 0x261   : > { %v854_v9 = vrot.slane %v808_v16, 1 }
 0x262   : > { %v6649_v46 = vpop.permute.xlu0 %1290 }
 0x263   : > { %10991 = vst [vmem:[#allocation44_spill] sm:$0xff] %v6649_v46  ;;  %889 = vrot.lane.b32.xlu1 %v854_v9, %s6026_s11 }
 0x264   : > { %v6657_v44 = vpop.permute.xlu1 %1090  ;;  %1184 = vrot.lane.b32.xlu0 %v6654_v2, %s6028_s21 }
 0x265   : > { %10992 = vst [vmem:[#allocation45_spill] sm:$0xff] %v6657_v44 }
 0x266   : > { %v741_v3 = vpop.permute.xlu0 %740 }
 0x267   : > { %985 = vrot.lane.b32.xlu1 %v952_v1, %s6027_s12 }
 0x268   : > { %v665_v20 = vpop.permute.xlu1 %664 }
 0x269   : > { %v709_v9 = vrot.slane %v665_v20, 7  ;;  %v954_v14 = vrot.slane %v665_v20, 1 }
 0x26a   : > { %v888_v12 = vpop.permute.xlu0 %887 }
 0x26b   : > { %v6674_v10 = vsel %vm804_vm7, %v6360_v25, %v888_v12  ;;  %1400 = vrot.lane.b32.xlu1 %v1035_v11, %s6035_s29 }
 0x26c   : > { %v673_v16 = vpop.permute.xlu1 %672  ;;  %1176 = vrot.lane.b32.xlu0 %v6674_v10, %s6028_s21 }
 0x26d   : > { %v713_v15 = vrot.slane %v673_v16, 7 }
 0x26e   : > { %v984_v1 = vpop.permute.xlu0 %983 }
 0x26f   : > { %746 = vrot.lane.b32.xlu1 %v709_v9, %s6027_s12 }
 0x270   : > { %v812_v38 = vpop.permute.xlu1 %811 }
 0x271   : > { %v856_v37 = vrot.slane %v812_v38, 1 }
 0x272   : > { %v6680_v57 = vpop.permute.xlu0 %1282 }
 0x273   : > { %10993 = vst [vmem:[#allocation46_spill] sm:$0xff] %v6680_v57  ;;  %754 = vrot.lane.b32.xlu1 %v713_v15, %s6027_s12 }
 0x274   : > { %v820_v21 = vpop.permute.xlu1 %819 }
 0x275   : > { %v860_v11 = vrot.slane %v820_v21, 1 }
 0x276   : > { %v745_v12 = vpop.permute.xlu0 %744 }
 0x277   : > { %893 = vrot.lane.b32.xlu1 %v856_v37, %s6026_s11  ;;  %v958_v37 = vrot.slane %v673_v16, 1 }
 0x278   : > { %v6684_v4 = vpop.permute.xlu1 %1082 }
 0x279   : > { %10994 = vst [vmem:[#allocation47_spill] sm:$0xff] %v6684_v4 }
 0x27a   : > { %v753_v8 = vpop.permute.xlu0 %752 }
 0x27b   : > { %901 = vrot.lane.b32.xlu1 %v860_v11, %s6026_s11  ;;  %v6719_v11 = vsel %vm649_vm8, %v6372_v59, %v745_v12 }
 0x27c   : > { %v6693_v15 = vpop.permute.xlu1 %1086 }
 0x27d   : > { %10995 = vst [vmem:[#allocation48_spill] sm:$0xff] %v6693_v15 }
 0x27e   : > { %v892_v39 = vpop.permute.xlu0 %891 }
 0x27f   : > { %v6690_v9 = vsel %vm804_vm7, %v6372_v59, %v892_v39  ;;  %989 = vrot.lane.b32.xlu1 %v954_v14, %s6027_s12  ;;  %v6708_v14 = vsel %vm649_vm8, %v6360_v25, %v741_v3 }
 0x280   : > { %1180 = vrot.lane.b32.xlu0 %v6690_v9, %s6028_s21  ;;  %v1031_v39 = vsel %vm804_vm7, %v6708_v14, %v984_v1  ;;  %v6713_v20 = vpop.permute.xlu1 %1094  ;;  %v6728_v1 = vsel %vm649_vm8, %v6381_v58, %v753_v8 }
 0x281   : > { %10996 = vst [vmem:[#allocation49_spill] sm:$0xff] %v6713_v20 }
 0x282   : > { %v900_v38 = vpop.permute.xlu0 %899 }
 0x283   : > { %v6700_v21 = vsel %vm804_vm7, %v6381_v58, %v900_v38  ;;  %997 = vrot.lane.b32.xlu1 %v958_v37, %s6027_s12 }
 0x284   : > { %1188 = vrot.lane.b32.xlu0 %v6700_v21, %s6028_s21 }
 0x286   : > { %v988_v16 = vpop.permute.xlu0 %987 }
 0x287   : > { %1392 = vrot.lane.b32.xlu1 %v1031_v39, %s6035_s29  ;;  %v1033_v37 = vsel %vm804_vm7, %v6719_v11, %v988_v16 }
 0x288   : > { %v685_v3 = vpop.permute.xlu1 %684 }
 0x289   : > { %v719_v15 = vrot.slane %v685_v3, 7  ;;  %v964_v19 = vrot.slane %v685_v3, 1 }
 0x28a   : > { %v996_v38 = vpop.permute.xlu0 %995 }
 0x28b   : > { %1396 = vrot.lane.b32.xlu1 %v1033_v37, %s6035_s29  ;;  %v1037_v39 = vsel %vm804_vm7, %v6728_v1, %v996_v38 }
 0x28c   : > { %v832_v12 = vpop.permute.xlu1 %831 }
 0x28d   : > { %v866_v57 = vrot.slane %v832_v12, 1 }
 0x28e   : > { %v6733_v20 = vpop.permute.xlu0 %1286 }
 0x28f   : > { %10997 = vst [vmem:[#allocation50_spill] sm:$0xff] %v6733_v20  ;;  %1404 = vrot.lane.b32.xlu1 %v1037_v39, %s6035_s29 }
 0x292   : > { %v6736_v16 = vpop.permute.xlu0 %1294 }
 0x293   : > { %10998 = vst [vmem:[#allocation51_spill] sm:$0xff] %v6736_v16  ;;  %766 = vrot.lane.b32.xlu1 %v719_v15, %s6027_s12 }
 0x294   : > { %v677_v37 = vpop.permute.xlu1 %676 }
 0x295   : > { %v715_v15 = vrot.slane %v677_v37, 7 }
 0x296   : > { %v765_v7 = vpop.permute.xlu0 %764 }
 0x297   : > { %913 = vrot.lane.b32.xlu1 %v866_v57, %s6026_s11 }
 0x298   : > { %v824_v8 = vpop.permute.xlu1 %823 }
 0x299   : > { %v862_v57 = vrot.slane %v824_v8, 1 }
 0x29a   : > { %v912_v31 = vpop.permute.xlu0 %911 }
 0x29b   : > { %v6743_v38 = vsel %vm804_vm7, %v6409_v56, %v912_v31  ;;  %1009 = vrot.lane.b32.xlu1 %v964_v19, %s6027_s12  ;;  %v960_v31 = vrot.slane %v677_v37, 1 }
 0x29c   : > { %v689_v39 = vpop.permute.xlu1 %688  ;;  %1200 = vrot.lane.b32.xlu0 %v6743_v38, %s6028_s21 }
 0x29d   : > { %v721_v19 = vrot.slane %v689_v39, 7  ;;  %v966_v37 = vrot.slane %v689_v39, 1 }
 0x29e   : > { %v1008_v16 = vpop.permute.xlu0 %1007 }
 0x29f   : > { %758 = vrot.lane.b32.xlu1 %v715_v15, %s6027_s12 }
 0x2a0   : > { %v836_v12 = vpop.permute.xlu1 %835 }
 0x2a1   : > { %v868_v8 = vrot.slane %v836_v12, 1 }
 0x2a2   : > { %v6749_v20 = vpop.permute.xlu0 %1306 }
 0x2a3   : > { %10999 = vst [vmem:[#allocation52_spill] sm:$0xff] %v6749_v20  ;;  %905 = vrot.lane.b32.xlu1 %v862_v57, %s6026_s11 }
 0x2a4   : > { %v6752_v3 = vpop.permute.xlu1 %1106 }
 0x2a5   : > { %11000 = vst [vmem:[#allocation53_spill] sm:$0xff] %v6752_v3 }
 0x2a6   : > { %v757_v46 = vpop.permute.xlu0 %756 }
 0x2a7   : > { %1001 = vrot.lane.b32.xlu1 %v960_v31, %s6027_s12 }
 0x2a8   : > { %v681_v4 = vpop.permute.xlu1 %680 }
 0x2aa   : > { %v904_v13 = vpop.permute.xlu0 %903 }
 0x2ab   : > { %v6758_v44 = vsel %vm804_vm7, %v6428_v49, %v904_v13  ;;  %770 = vrot.lane.b32.xlu1 %v721_v19, %s6027_s12  ;;  %v6770_v13 = vsel %vm649_vm8, %v6409_v56, %v765_v7 }
 0x2ac   : > { %1192 = vrot.lane.b32.xlu0 %v6758_v44, %s6028_s21  ;;  %v828_v57 = vpop.permute.xlu1 %827  ;;  %v1043_v12 = vsel %vm804_vm7, %v6770_v13, %v1008_v16  ;;  %v962_v16 = vrot.slane %v681_v4, 1 }
 0x2ad   : > { %v864_v7 = vrot.slane %v828_v57, 1 }
 0x2ae   : > { %v1000_v15 = vpop.permute.xlu0 %999 }
 0x2af   : > { %917 = vrot.lane.b32.xlu1 %v868_v8, %s6026_s11  ;;  %v717_v8 = vrot.slane %v681_v4, 7 }
 0x2b0   : > { %v6772_v20 = vpop.permute.xlu1 %1098 }
 0x2b1   : > { %11002 = vst [vmem:[#allocation55_spill] sm:$0xff] %v6772_v20 }
 0x2b2   : > { %v6764_v31 = vpop.permute.xlu0 %1298 }
 0x2b3   : > { %11001 = vst [vmem:[#allocation54_spill] sm:$0xff] %v6764_v31  ;;  %1013 = vrot.lane.b32.xlu1 %v966_v37, %s6027_s12 }
 0x2b4   : > { %v6778_v3 = vpop.permute.xlu1 %1110 }
 0x2b5   : > { %11003 = vst [vmem:[#allocation56_spill] sm:$0xff] %v6778_v3 }
 0x2b6   : > { %v769_v19 = vpop.permute.xlu0 %768 }
 0x2b7   : > { %1416 = vrot.lane.b32.xlu1 %v1043_v12, %s6035_s29  ;;  %v6806_v4 = vsel %vm649_vm8, %v6435_v51, %v769_v19 }
 0x2b8   : > { %v6789_v12 = vpop.permute.xlu1 %1102 }
 0x2b9   : > { %11005 = vst [vmem:[#allocation58_spill] sm:$0xff] %v6789_v12 }
 0x2ba   : > { %v916_v39 = vpop.permute.xlu0 %915 }
 0x2bb   : > { %v6783_v37 = vsel %vm804_vm7, %v6435_v51, %v916_v39  ;;  %762 = vrot.lane.b32.xlu1 %v717_v8, %s6027_s12  ;;  %v6797_v39 = vsel %vm649_vm8, %v6428_v49, %v757_v46 }
 0x2bc   : > { %11004 = vst [vmem:[#allocation57_spill] sm:$0xff] %v6783_v37  ;;  %1204 = vrot.lane.b32.xlu0 %v6783_v37, %s6028_s21  ;;  %v1039_v57 = vsel %vm804_vm7, %v6797_v39, %v1000_v15 }
 0x2be   : > { %v1012_v31 = vpop.permute.xlu0 %1011 }
 0x2bf   : > { %909 = vrot.lane.b32.xlu1 %v864_v7, %s6026_s11 }
 0x2c2   : > { %v6791_v20 = vpop.permute.xlu0 %1310 }
 0x2c3   : > { %11006 = vst [vmem:[#allocation59_spill] sm:$0xff] %v6791_v20  ;;  %1005 = vrot.lane.b32.xlu1 %v962_v16, %s6027_s12  ;;  %v1045_v16 = vsel %vm804_vm7, %v6806_v4, %v1012_v31 }
 0x2c5   : > { %v751_v8 = vpop.permute.xlu1 %750 }
 0x2c6   : > { %v761_v3 = vpop.permute.xlu0 %760  ;;  %v6822_v15 = vsel %vm649_vm8, %v6482_v30, %v751_v8 }
 0x2c7   : > { %1408 = vrot.lane.b32.xlu1 %v1039_v57, %s6035_s29  ;;  %v6827_v31 = vsel %vm649_vm8, %v6445_v34, %v761_v3 }
 0x2c9   : > { %v898_v7 = vpop.permute.xlu1 %897 }
 0x2ca   : > { %v908_v46 = vpop.permute.xlu0 %907  ;;  %v6840_v12 = vsel %vm804_vm7, %v6482_v30, %v898_v7 }
 0x2cb   : > { %v6814_v20 = vsel %vm804_vm7, %v6445_v34, %v908_v46  ;;  %1420 = vrot.lane.b32.xlu1 %v1045_v16, %s6035_s29 }
 0x2cc   : > { %11007 = vst [vmem:[#allocation60_spill] sm:$0xff] %v6814_v20  ;;  %1196 = vrot.lane.b32.xlu0 %v6814_v20, %s6028_s21 }
 0x2cd   : > { %v994_v19 = vpop.permute.xlu1 %993 }
 0x2ce   : > { %v1036_v57 = vsel %vm804_vm7, %v6822_v15, %v994_v19  ;;  %v1004_v46 = vpop.permute.xlu0 %1003 }
 0x2cf   : > { %v1041_v16 = vsel %vm804_vm7, %v6827_v31, %v1004_v46 }
 0x2d0   : > { %1402 = vrot.lane.b32.xlu0 %v1036_v57, %s6035_s29  ;;  %1412 = vrot.lane.b32.xlu1 %v1041_v16, %s6035_s29 }
 0x2d1   : > { %v743_v8 = vpop.permute.xlu1 %742 }
 0x2d2   : > { %v6854_v57 = vsel %vm649_vm8, %v6490_v42, %v743_v8  ;;  %v6860_v20 = vpop.permute.xlu0 %1302 }
 0x2d3   : > { %11009 = vst [vmem:[#allocation62_spill] sm:$0xff] %v6860_v20 }
 0x2d4   : > { %1186 = vrot.lane.b32.xlu1 %v6840_v12, %s6028_s21 }
 0x2d5   : > { %v890_v3 = vpop.permute.xlu1 %889 }
 0x2d6   : > { %v6847_v19 = vsel %vm804_vm7, %v6490_v42, %v890_v3  ;;  %v1185_v37 = vpop.permute.xlu0 %1184 }
 0x2d7   : > { %11008 = vst [vmem:[#allocation61_spill] sm:$0xff] %v6847_v19 }
 0x2d8   : > { %1178 = vrot.lane.b32.xlu1 %v6847_v19, %s6028_s21  ;;  %v1132_v19 = vadd.f32 %v6509_v28, %v6666_v5 }
 0x2d9   : > { %v986_v46 = vpop.permute.xlu1 %985 }
 0x2da   : > { %v1032_v7 = vsel %vm804_vm7, %v6854_v57, %v986_v46  ;;  %v1148_v42 = vadd.f32 %v1132_v19, %v6338_v40 }
 0x2db   : > { %1394 = vrot.lane.b32.xlu0 %v1032_v7, %s6035_s29 }
 0x2dc   : > { %v1228_v46 = vadd.f32 %v1185_v37, %v1148_v42 }
 0x2dd   : > { %v1401_v16 = vpop.permute.xlu1 %1400 }
 0x2de   : > { %v1244_v28 = vmul.f32 0.125, %v1228_v46 }
 0x2e0   : > { %v1268_v5 = vadd.f32 %v6273_v63, %v1244_v28  ;;  %v1128_v28 = vadd.f32 %v6535_v50, %v6708_v14  ;;  %v1344_v14 = vmul.f32 3.0, %v6674_v10 }
 0x2e1   : > { %v747_v34 = vpop.permute.xlu1 %746 }
 0x2e2   : > { %v1511_v46 = vpack.c.bf16 %v1268_v5, %v1268_v5 }
 0x2e5   : > { %v755_v3 = vpop.permute.xlu1 %754 }
 0x2e6   : > { %v6892_v37 = vsel %vm649_vm8, %v6514_v29, %v755_v3  ;;  %v1177_v3 = vpop.permute.xlu0 %1176 }
 0x2e7   : > { %11012 = vst [vmem:[#allocation65_spill] sm:$0xff] %v6892_v37 }
 0x2e9   : > { %v894_v51 = vpop.permute.xlu1 %893 }
 0x2ea   : > { %v6867_v8 = vsel %vm804_vm7, %v6506_v60, %v894_v51  ;;  %v6882_v51 = vsel %vm649_vm8, %v6506_v60, %v747_v34 }
 0x2eb   : > { %11010 = vst [vmem:[#allocation63_spill] sm:$0xff] %v6867_v8  ;;  %1182 = vrot.lane.b32.xlu1 %v6867_v8, %s6028_s21 }
 0x2ed   : > { %v902_v7 = vpop.permute.xlu1 %901 }
 0x2ee   : > { %v6875_v20 = vsel %vm804_vm7, %v6514_v29, %v902_v7  ;;  %v1348_v29 = vmul.f32 3.0, %v6654_v2 }
 0x2ef   : > { %11011 = vst [vmem:[#allocation64_spill] sm:$0xff] %v6875_v20  ;;  %1190 = vrot.lane.b32.xlu1 %v6875_v20, %s6028_s21  ;;  %v1144_v20 = vadd.f32 %v1128_v28, %v6375_v32  ;;  %v1328_v32 = vadd.f32 %v6556_v43, %v6360_v25 }
 0x2f1   : > { %v990_v40 = vpop.permute.xlu1 %989  ;;  %v1360_v10 = vadd.f32 %v1344_v14, %v1328_v32 }
 0x2f2   : > { %v1034_v42 = vsel %vm804_vm7, %v6882_v51, %v990_v40 }
 0x2f3   : > { %1398 = vrot.lane.b32.xlu0 %v1034_v42, %s6035_s29 }
 0x2f5   : > { %v998_v19 = vpop.permute.xlu1 %997 }
 0x2f6   : > { %v1038_v34 = vsel %vm804_vm7, %v6892_v37, %v998_v19  ;;  %v1332_v19 = vadd.f32 %v6500_v27, %v6334_v33 }
 0x2f7   : > { %1406 = vrot.lane.b32.xlu0 %v1038_v34, %s6035_s29  ;;  %v1224_v34 = vadd.f32 %v1177_v3, %v1144_v20 }
 0x2f8   : > { %v1364_v60 = vadd.f32 %v1348_v29, %v1332_v19  ;;  %v1130_v19 = vadd.f32 %v6543_v61, %v6719_v11  ;;  %v1134_v61 = vadd.f32 %v6548_v52, %v6728_v1 }
 0x2f9   : > { %v1393_v7 = vpop.permute.xlu1 %1392 }
 0x2fa   : > { %v1444_v8 = vadd.f32 %v1401_v16, %v1364_v60  ;;  %v1440_v25 = vadd.f32 %v1393_v7, %v1360_v10  ;;  %v1181_v7 = vpop.permute.xlu0 %1180  ;;  %v1146_v11 = vadd.f32 %v1130_v19, %v6384_v24 }
 0x2fb   : > { %1547 = vrot.lane.b32.xlu0 %v1511_v46, %s6036_s30  ;;  %v1240_v46 = vmul.f32 0.125, %v1224_v34 }
 0x2fc   : > { %v1460_v33 = vmul.f32 0.125, %v1444_v8  ;;  %v1226_v32 = vadd.f32 %v1181_v7, %v1146_v11 }
 0x2fd   : > { %v6899_v40 = vpop.permute.xlu1 %1396  ;;  %v1264_v27 = vadd.f32 %v6273_v63, %v1240_v46 }
 0x2fe   : > { %v1479_v20 = vadd.f32 %v6263_v62, %v1460_v33  ;;  %v1242_v10 = vmul.f32 0.125, %v1226_v32  ;;  %v1140_v32 = vadd.f32 %v6595_v53, %v6770_v13 }
 0x2ff   : > { %v1507_v16 = vpack.c.bf16 %v1264_v27, %v1264_v27 }
 0x300   : > { %v1704_v8 = vpack.c.bf16 %v1479_v20, %v1479_v20  ;;  %v1266_v24 = vadd.f32 %v6273_v63, %v1242_v10 }
 0x301   : > { %v6903_v42 = vpop.permute.xlu1 %1404 }
 0x305   : > { %v767_v5 = vpop.permute.xlu1 %766 }
 0x306   : > { %v6923_v60 = vsel %vm649_vm8, %v6551_v55, %v767_v5 }
 0x309   : > { %v914_v37 = vpop.permute.xlu1 %913 }
 0x30a   : > { %v6912_v50 = vsel %vm804_vm7, %v6551_v55, %v914_v37  ;;  %v1456_v37 = vmul.f32 0.125, %v1440_v25 }
 0x30b   : > { %1202 = vrot.lane.b32.xlu1 %v6912_v50, %s6028_s21 }
 0x30c   : > { %v1475_v34 = vadd.f32 %v6263_v62, %v1456_v37  ;;  %v1330_v37 = vadd.f32 %v6562_v26, %v6372_v59 }
 0x30d   : > { %v1010_v29 = vpop.permute.xlu1 %1009 }
 0x30e   : > { %v1044_v2 = vsel %vm804_vm7, %v6923_v60, %v1010_v29  ;;  %v1700_v33 = vpack.c.bf16 %v1475_v34, %v1475_v34  ;;  %v1189_v29 = vpop.permute.xlu0 %1188  ;;  %v1350_v34 = vmul.f32 3.0, %v6700_v21 }
 0x30f   : > { %1418 = vrot.lane.b32.xlu0 %v1044_v2, %s6035_s29  ;;  %v1150_v2 = vadd.f32 %v1134_v61, %v6392_v47 }
 0x311   : > { %v759_v43 = vpop.permute.xlu1 %758  ;;  %v1230_v20 = vadd.f32 %v1189_v29, %v1150_v2 }
 0x312   : > { %v6945_v5 = vsel %vm649_vm8, %v6566_v23, %v759_v43 }
 0x313   : > { %1539 = vrot.lane.b32.xlu0 %v1507_v16, %s6036_s30  ;;  %v1246_v52 = vmul.f32 0.125, %v1230_v20  ;;  %v1340_v20 = vadd.f32 %v6586_v54, %v6409_v56  ;;  %v1352_v56 = vmul.f32 3.0, %v6758_v44  ;;  %v11014_v44 = vld [vmem:[#allocation43_spill] sm:$0xff] }
 0x315   : > { %v906_v28 = vpop.permute.xlu1 %905  ;;  %v1270_v19 = vadd.f32 %v6273_v63, %v1246_v52 }
 0x316   : > { %v6934_v3 = vsel %vm804_vm7, %v6566_v23, %v906_v28  ;;  %v1509_v28 = vpack.c.bf16 %v1266_v24, %v1266_v24 }
 0x317   : > { %1194 = vrot.lane.b32.xlu1 %v6934_v3, %s6028_s21  ;;  %1740 = vrot.lane.b32.xlu0 %v1704_v8, %s6034_s26  ;;  %v1346_v8 = vmul.f32 3.0, %v6690_v9  ;;  %v1513_v61 = vpack.c.bf16 %v1270_v19, %v1270_v19 }
 0x319   : > { %v1002_v46 = vpop.permute.xlu1 %1001 }
 0x31a   : > { %v1040_v14 = vsel %vm804_vm7, %v6945_v5, %v1002_v46  ;;  %v1362_v46 = vadd.f32 %v1346_v8, %v1330_v37  ;;  %v1142_v8 = vadd.f32 %v6630_v18, %v6806_v4 }
 0x31b   : > { %1410 = vrot.lane.b32.xlu0 %v1040_v14, %s6035_s29  ;;  %v1334_v14 = vadd.f32 %v6571_v36, %v6381_v58  ;;  %v1136_v58 = vadd.f32 %v6623_v0, %v6797_v39  ;;  %v1156_v36 = vadd.f32 %v1140_v32, %v6419_v45  ;;  %v1356_v45 = vmul.f32 3.0, %v6743_v38 }
 0x31c   : > { %v1442_v9 = vadd.f32 %v6899_v40, %v1362_v46  ;;  %v1158_v54 = vadd.f32 %v1142_v8, %v6448_v48  ;;  %v1336_v46 = vadd.f32 %v6608_v22, %v6428_v49  ;;  %v1349_v48 = vmul.f32 3.0, %v6840_v12  ;;  %v11015_v49 = vld [vmem:[#allocation47_spill] sm:$0xff]  ;;  %v11019_v12 = vld [vmem:[#allocation29_spill] sm:$0xff] }
 0x31d   : > { %v771_v27 = vpop.permute.xlu1 %770  ;;  %v1366_v59 = vadd.f32 %v1350_v34, %v1334_v14  ;;  %v1152_v39 = vadd.f32 %v1136_v58, %v6439_v35  ;;  %v1372_v6 = vadd.f32 %v1356_v45, %v1340_v20  ;;  %v11013_v14 = vld [vmem:[#allocation45_spill] sm:$0xff]  ;;  %v1129_v22 = vadd.f32 %v11015_v49, %v6854_v57  ;;  %v11020_v57 = vld [vmem:[#allocation27_spill] sm:$0xff] }
 0x31e   : > { %v6967_v47 = vsel %vm649_vm8, %v6576_v17, %v771_v27  ;;  %v1458_v26 = vmul.f32 0.125, %v1442_v9  ;;  %v1201_v27 = vpop.permute.xlu0 %1200  ;;  %v11021_v20 = vld [vmem:[#allocation41_spill] sm:$0xff] }
 0x31f   : > { %1732 = vrot.lane.b32.xlu0 %v1700_v33, %s6034_s26  ;;  %v1446_v33 = vadd.f32 %v6903_v42, %v1366_v59  ;;  %v1236_v40 = vadd.f32 %v1201_v27, %v1156_v36 }
 0x320   : > { %v1477_v53 = vadd.f32 %v6263_v62, %v1458_v26  ;;  %v1138_v26 = vadd.f32 %v11014_v44, %v6827_v31 }
 0x321   : > { %v918_v16 = vpop.permute.xlu1 %917  ;;  %v1462_v13 = vmul.f32 0.125, %v1446_v33  ;;  %v1252_v52 = vmul.f32 0.125, %v1236_v40  ;;  %v11018_v40 = vld [vmem:[#allocation57_spill] sm:$0xff] }
 0x322   : > { %v6959_v25 = vsel %vm804_vm7, %v6576_v17, %v918_v16  ;;  %v1193_v10 = vpop.permute.xlu0 %1192  ;;  %v1702_v16 = vpack.c.bf16 %v1477_v53, %v1477_v53  ;;  %v11017_v53 = vld [vmem:[#allocation31_spill] sm:$0xff] }
 0x323   : > { %1206 = vrot.lane.b32.xlu1 %v6959_v25, %s6028_s21  ;;  %v1481_v24 = vadd.f32 %v6263_v62, %v1462_v13  ;;  %v1276_v35 = vadd.f32 %v6273_v63, %v1252_v52  ;;  %v11022_v52 = vld [vmem:[#allocation34_spill] sm:$0xff] }
 0x325   : > { %v1014_v1 = vpop.permute.xlu1 %1013  ;;  %v1706_v37 = vpack.c.bf16 %v1481_v24, %v1481_v24  ;;  %v1519_v9 = vpack.c.bf16 %v1276_v35, %v1276_v35 }
 0x326   : > { %v1046_v43 = vsel %vm804_vm7, %v6967_v47, %v1014_v1  ;;  %v1232_v1 = vadd.f32 %v1193_v10, %v1152_v39 }
 0x327   : > { %1422 = vrot.lane.b32.xlu0 %v1046_v43, %s6035_s29 }
 0x329   : > { %v1417_v7 = vpop.permute.xlu1 %1416 }
 0x32a   : > { %v1452_v19 = vadd.f32 %v1417_v7, %v1372_v6  ;;  %v1368_v7 = vadd.f32 %v1352_v56, %v1336_v46  ;;  %v11024_v46 = vld [vmem:[#allocation28_spill] sm:$0xff] }
 0x32b   : > { %1543 = vrot.lane.b32.xlu0 %v1509_v28, %s6036_s30  ;;  %v1248_v28 = vmul.f32 0.125, %v1232_v1  ;;  %v1145_v1 = vadd.f32 %v1129_v22, %v11022_v52 }
 0x32c   : > { %v1468_v32 = vmul.f32 0.125, %v1452_v19 }
 0x32d   : > { %v763_v11 = vpop.permute.xlu1 %762 }
 0x32e   : > { %v7000_v42 = vsel %vm649_vm8, %v6593_v41, %v763_v11  ;;  %v1205_v38 = vpop.permute.xlu0 %1204  ;;  %v1272_v11 = vadd.f32 %v6273_v63, %v1248_v28  ;;  %v1487_v36 = vadd.f32 %v6263_v62, %v1468_v32  ;;  %v11023_v28 = vld [vmem:[#allocation60_spill] sm:$0xff] }
 0x32f   : > { %1551 = vrot.lane.b32.xlu0 %v1513_v61, %s6036_s30  ;;  %v1238_v18 = vadd.f32 %v1205_v38, %v1158_v54  ;;  %v1133_v61 = vadd.f32 %v11013_v14, %v6822_v15  ;;  %v11016_v15 = vld [vmem:[#allocation44_spill] sm:$0xff]  ;;  %v1354_v19 = vmul.f32 3.0, %v11023_v28 }
 0x330   : > { %v1333_v27 = vadd.f32 %v11016_v15, %v6482_v30  ;;  %v1515_v58 = vpack.c.bf16 %v1272_v11, %v1272_v11 }
 0x331   : > { %v910_v21 = vpop.permute.xlu1 %909  ;;  %v1254_v33 = vmul.f32 0.125, %v1238_v18  ;;  %v1149_v13 = vadd.f32 %v1133_v61, %v11017_v53  ;;  %v11025_v18 = vld [vmem:[#allocation42_spill] sm:$0xff] }
 0x332   : > { %v6989_v29 = vsel %vm804_vm7, %v6593_v41, %v910_v21  ;;  %v1365_v45 = vadd.f32 %v1349_v48, %v1333_v27  ;;  %v1338_v14 = vadd.f32 %v11025_v18, %v11024_v46  ;;  %v11035_v46 = vld [vmem:[#allocation49_spill] sm:$0xff] }
 0x333   : > { %1198 = vrot.lane.b32.xlu1 %v6989_v29, %s6028_s21  ;;  %v1278_v30 = vadd.f32 %v6273_v63, %v1254_v33 }
 0x335   : > { %v1006_v2 = vpop.permute.xlu1 %1005  ;;  %v1521_v61 = vpack.c.bf16 %v1278_v30, %v1278_v30 }
 0x336   : > { %v1042_v0 = vsel %vm804_vm7, %v7000_v42, %v1006_v2  ;;  %v1358_v2 = vmul.f32 3.0, %v11018_v40 }
 0x337   : > { %1414 = vrot.lane.b32.xlu0 %v1042_v0, %s6035_s29  ;;  %v1154_v0 = vadd.f32 %v1138_v26, %v11019_v12  ;;  %v1370_v26 = vadd.f32 %v1354_v19, %v1338_v14  ;;  %v11032_v19 = vld [vmem:[#allocation8_spill] sm:$0xff]  ;;  %v11036_v14 = vld [vmem:[#allocation35_spill] sm:$0xff] }
 0x339   : > { %v1409_v43 = vpop.permute.xlu1 %1408 }
 0x33a   : > { %v1448_v21 = vadd.f32 %v1409_v43, %v1368_v7  ;;  %v1712_v43 = vpack.c.bf16 %v1487_v36, %v1487_v36 }
 0x33b   : > { %1736 = vrot.lane.b32.xlu0 %v1702_v16, %s6034_s26  ;;  %v1342_v16 = vadd.f32 %v11021_v20, %v11020_v57 }
 0x33c   : > { %v1464_v24 = vmul.f32 0.125, %v1448_v21 }
 0x33d   : > { %v1421_v34 = vpop.permute.xlu1 %1420 }
 0x33e   : > { %v1197_v4 = vpop.permute.xlu0 %1196 }
 0x33f   : > { %1744 = vrot.lane.b32.xlu0 %v1706_v37, %s6034_s26  ;;  %v1234_v8 = vadd.f32 %v1197_v4, %v1154_v0  ;;  %v1374_v37 = vadd.f32 %v1358_v2, %v1342_v16  ;;  %v11027_v0 = vld [vmem:[#allocation30_spill] sm:$0xff] }
 0x341   : > { %v1454_v11 = vadd.f32 %v1421_v34, %v1374_v37  ;;  %v1250_v32 = vmul.f32 0.125, %v1234_v8 }
 0x342   : > { %v1413_v59 = vpop.permute.xlu1 %1412  ;;  %v1403_v31 = vpop.permute.xlu0 %1402 }
 0x343   : > { %1563 = vrot.lane.b32.xlu0 %v1519_v9, %s6036_s30  ;;  %v1445_v6 = vadd.f32 %v1403_v31, %v1365_v45  ;;  %v1483_v9 = vadd.f32 %v6263_v62, %v1464_v24  ;;  %v1470_v22 = vmul.f32 0.125, %v1454_v11  ;;  %v1274_v33 = vadd.f32 %v6273_v63, %v1250_v32  ;;  %v11028_v45 = vld [vmem:[#allocation46_spill] sm:$0xff]  ;;  %v11029_v24 = vld [vmem:[#allocation12_spill] sm:$0xff] }
 0x344   : > { %v1450_v21 = vadd.f32 %v1413_v59, %v1370_v26  ;;  %v6001_v32 = vld [vmem:[%s6117_s20 + $0x10] sm:$0xf] }
 0x345   : > { %v1461_v4 = vmul.f32 0.125, %v1445_v6  ;;  %v1708_v49 = vpack.c.bf16 %v1483_v9, %v1483_v9  ;;  %v1489_v34 = vadd.f32 %v6263_v62, %v1470_v22 }
 0x346   : > { %v1187_v10 = vpop.permute.xlu1 %1186  ;;  %v1466_v36 = vmul.f32 0.125, %v1450_v21  ;;  %v11040_v21 = vld [vmem:[#allocation50_spill] sm:$0xff] }
 0x347   : > { %v1229_v39 = vadd.f32 %v1187_v10, %v1149_v13  ;;  %1555 = vrot.lane.b32.xlu0 %v1515_v58, %s6036_s30  ;;  %v1480_v15 = vadd.f32 %v6263_v62, %v1461_v4  ;;  %v1517_v58 = vpack.c.bf16 %v1274_v33, %v1274_v33  ;;  %v1714_v13 = vpack.c.bf16 %v1489_v34, %v1489_v34  ;;  %v11026_v10 = vld [vmem:[#allocation61_spill] sm:$0xff]  ;;  %v11039_v33 = vld [vmem:[#allocation32_spill] sm:$0xff] }
 0x348   : > { %v1485_v40 = vadd.f32 %v6263_v62, %v1466_v36  ;;  %v1345_v12 = vmul.f32 3.0, %v11026_v10  ;;  %v11041_v36 = vld [vmem:[#allocation64_spill] sm:$0xff] }
 0x349   : > { %v1245_v38 = vmul.f32 0.125, %v1229_v39  ;;  %v1705_v53 = vpack.c.bf16 %v1480_v15, %v1480_v15  ;;  %v1329_v39 = vadd.f32 %v11028_v45, %v11027_v0  ;;  %v1331_v15 = vadd.f32 %v11040_v21, %v11039_v33  ;;  %v11048_v33 = vld [vmem:[#allocation53_spill] sm:$0xff] }
 0x34a   : > { %v1179_v35 = vpop.permute.xlu1 %1178  ;;  %v1710_v59 = vpack.c.bf16 %v1485_v40, %v1485_v40  ;;  %v11042_v40 = vld [vmem:[#allocation33_spill] sm:$0xff]  ;;  %v1141_v21 = vadd.f32 %v11048_v33, %v6923_v60 }
 0x34b   : > { %v1269_v56 = vadd.f32 %v6273_v63, %v1245_v38  ;;  %v1225_v54 = vadd.f32 %v1179_v35, %v1145_v1  ;;  %1756 = vrot.lane.b32.xlu0 %v1712_v43, %s6034_s26  ;;  %v1361_v20 = vadd.f32 %v1345_v12, %v1329_v39  ;;  %v11031_v38 = vld [vmem:[#allocation48_spill] sm:$0xff] }
 0x34c   : > { %v1131_v37 = vadd.f32 %v11031_v38, %v6882_v51 }
 0x34d   : > { %v1512_v7 = vpack.c.bf16 %v1269_v56, %v1269_v56  ;;  %v1241_v44 = vmul.f32 0.125, %v1225_v54  ;;  %v1395_v2 = vpop.permute.xlu0 %1394  ;;  %v11034_v54 = vld [vmem:[#allocation65_spill] sm:$0xff] }
 0x34e   : > { %v1441_v16 = vadd.f32 %v1395_v2, %v1361_v20  ;;  %v1135_v18 = vadd.f32 %v11035_v46, %v11034_v54  ;;  %v11046_v46 = vld [vmem:[#allocation14_spill] sm:$0xff] }
 0x34f   : > { %v1265_v48 = vadd.f32 %v6273_v63, %v1241_v44  ;;  %1549 = vrot.lane.b32.xlu1 %v1512_v7, %s6036_s30  ;;  %1567 = vrot.lane.b32.xlu0 %v1521_v61, %s6036_s30  ;;  %v1147_v61 = vadd.f32 %v1131_v37, %v11036_v14  ;;  %v11037_v7 = vld [vmem:[#allocation36_spill] sm:$0xff] }
 0x350   : > { %v1457_v1 = vmul.f32 0.125, %v1441_v16  ;;  %v1151_v44 = vadd.f32 %v1135_v18, %v11037_v7 }
 0x351   : > { %v1508_v27 = vpack.c.bf16 %v1265_v48, %v1265_v48 }
 0x352   : > { %v1476_v43 = vadd.f32 %v6263_v62, %v1457_v1 }
 0x353   : > { %1541 = vrot.lane.b32.xlu1 %v1508_v27, %s6036_s30  ;;  %1748 = vrot.lane.b32.xlu0 %v1708_v49, %s6034_s26  ;;  %v11038_v49 = vld [vmem:[#allocation63_spill] sm:$0xff] }
 0x354   : > { %v1701_v8 = vpack.c.bf16 %v1476_v43, %v1476_v43  ;;  %v1347_v22 = vmul.f32 3.0, %v11038_v49 }
 0x357   : > { %1559 = vrot.lane.b32.xlu0 %v1517_v58, %s6036_s30  ;;  %1742 = vrot.lane.b32.xlu1 %v1705_v53, %s6034_s26  ;;  %v1351_v53 = vmul.f32 3.0, %v11041_v36 }
 0x35b   : > { %1760 = vrot.lane.b32.xlu0 %v1714_v13, %s6034_s26  ;;  %v1363_v13 = vadd.f32 %v1347_v22, %v1331_v15 }
 0x35d   : > { %v1183_v35 = vpop.permute.xlu1 %1182 }
 0x35e   : > { %v1227_v9 = vadd.f32 %v1183_v35, %v1147_v61 }
 0x35f   : > { %1752 = vrot.lane.b32.xlu0 %v1710_v59, %s6034_s26  ;;  %v11043_v59 = vld [vmem:[#allocation51_spill] sm:$0xff] }
 0x360   : > { %v1243_v26 = vmul.f32 0.125, %v1227_v9  ;;  %v1335_v2 = vadd.f32 %v11043_v59, %v11042_v40  ;;  %v6003_v9 = vld [vmem:[%s6117_s20 + $0x8] sm:$0xf] }
 0x361   : > { %v1191_v51 = vpop.permute.xlu1 %1190 }
 0x362   : > { %v1231_v48 = vadd.f32 %v1191_v51, %v1151_v44  ;;  %v1267_v27 = vadd.f32 %v6273_v63, %v1243_v26  ;;  %v1367_v45 = vadd.f32 %v1351_v53, %v1335_v2 }
 0x364   : > { %v1247_v34 = vmul.f32 0.125, %v1231_v48  ;;  %v1510_v10 = vpack.c.bf16 %v1267_v27, %v1267_v27 }
 0x365   : > { %v1399_v31 = vpop.permute.xlu0 %1398 }
 0x366   : > { %v1271_v12 = vadd.f32 %v6273_v63, %v1247_v34  ;;  %v1443_v0 = vadd.f32 %v1399_v31, %v1363_v13  ;;  %v11049_v13 = vld [vmem:[#allocation37_spill] sm:$0xff] }
 0x367   : > { %v1157_v40 = vadd.f32 %v1141_v21, %v11049_v13 }
 0x368   : > { %v1514_v20 = vpack.c.bf16 %v1271_v12, %v1271_v12  ;;  %v1459_v16 = vmul.f32 0.125, %v1443_v0 }
 0x369   : > { %v1407_v57 = vpop.permute.xlu0 %1406 }
 0x36a   : > { %v1478_v31 = vadd.f32 %v6263_v62, %v1459_v16 }
 0x36d   : > { %v1548_v30 = vpop.permute.xlu0 %1547 }
 0x36e   : > { %v7064_v52 = vsel %vm1651_vm9, %v1548_v30, %v11029_v24  ;;  %v1447_v30 = vadd.f32 %v1407_v57, %v1367_v45  ;;  %v6002_v24 = vld [vmem:[%s6117_s20] sm:$0xf]  ;;  %v1703_v57 = vpack.c.bf16 %v1478_v31, %v1478_v31 }
 0x36f   : > { %11030 = vst [vmem:[#allocation45_spill] sm:$0xff] %v7064_v52  ;;  %2240 = vrot.lane.b32.xlu0 %v7064_v52, %s6037_s9  ;;  %2114 = vrot.lane.b32.xlu1 %v7064_v52, %s6026_s11  ;;  %v1981_v26 = vshll.u32 %v7064_v52, 16  ;;  %v1979_v34 = vshrl.u32 %v7064_v52, 16 }
 0x371   : > { %v1983_v49 = vrot.slane %v1981_v26, 1 }
 0x373   : > { %2759 = vrot.lane.b32.xlu0 %v7064_v52, %s6038_s10  ;;  %2336 = vrot.lane.b32.xlu1 %v7064_v52, %s6031_s23  ;;  %v1984_v36 = vor.u32 %v1983_v49, %v1979_v34 }
 0x375   : > { %v2076_v0 = vsel %vm6164_vm6, %v1984_v36, 0 }
 0x377   : > { %2854 = vrot.lane.b32.xlu1 %v7064_v52, %s6030_s22 }
 0x37b   : > { %1734 = vrot.lane.b32.xlu1 %v1701_v8, %s6034_s26  ;;  %v1463_v8 = vmul.f32 0.125, %v1447_v30 }
 0x37d   : > { %v1482_v38 = vadd.f32 %v6263_v62, %v1463_v8  ;;  %v1203_v48 = vpop.permute.xlu1 %1202 }
 0x37e   : > { %v1237_v2 = vadd.f32 %v1203_v48, %v1157_v40 }
 0x37f   : > { %v1707_v35 = vpack.c.bf16 %v1482_v38, %v1482_v38 }
 0x381   : > { %v7078_v6 = vpop.permute.xlu0 %1418 }
 0x385   : > { %v1540_v28 = vpop.permute.xlu0 %1539 }
 0x386   : > { %v7084_v56 = vsel %vm1651_vm9, %v1540_v28, %v11032_v19  ;;  %v11044_v28 = vld [vmem:[#allocation10_spill] sm:$0xff] }
 0x387   : > { %11033 = vst [vmem:[#allocation43_spill] sm:$0xff] %v7084_v56  ;;  %2232 = vrot.lane.b32.xlu0 %v7084_v56, %s6037_s9  ;;  %2106 = vrot.lane.b32.xlu1 %v7084_v56, %s6026_s11 }
 0x389   : > { %v1741_v11 = vpop.permute.xlu0 %1740  ;;  %v1195_v15 = vpop.permute.xlu1 %1194 }
 0x38a   : > { %v7095_v4 = vsel %vm1651_vm9, %v1741_v11, %v6001_v32  ;;  %v6004_v32 = vld [vmem:[%s6117_s20 + $0x18] sm:$0xf] }
 0x38b   : > { %2273 = vrot.lane.b32.xlu0 %v7095_v4, %s6039_s13  ;;  %2161 = vrot.lane.b32.xlu1 %v7095_v4, %s6032_s24  ;;  %v1844_v22 = vshrl.u32 %v7095_v4, 16  ;;  %v1847_v60 = vshll.u32 %v7095_v4, 16 }
 0x38d   : > { %v7110_v58 = vpop.permute.xlu0 %1410  ;;  %v1846_v53 = vrot.slane %v1844_v22, 7 }
 0x38f   : > { %2681 = vrot.lane.b32.xlu0 %v7095_v4, %s6026_s11  ;;  %2368 = vrot.lane.b32.xlu1 %v7095_v4, %s6033_s25  ;;  %v1849_v45 = vor.u32 %v1847_v60, %v1846_v53 }
 0x391   : > { %v1733_v39 = vpop.permute.xlu0 %1732  ;;  %v7218_v30 = vsel %vm6151_vm4, 0, %v1849_v45 }
 0x392   : > { %v7125_v1 = vsel %vm1651_vm9, %v1733_v39, %v6002_v24  ;;  %v11052_v24 = vld [vmem:[#allocation55_spill] sm:$0xff] }
 0x393   : > { %2751 = vrot.lane.b32.xlu0 %v7084_v56, %s6038_s10  ;;  %2886 = vrot.lane.b32.xlu1 %v7095_v4, %s6031_s23  ;;  %v1137_v31 = vadd.f32 %v11052_v24, %v6945_v5  ;;  %v1357_v5 = vmul.f32 3.0, %v6912_v50  ;;  %v1823_v21 = vshll.u32 %v7125_v1, 16 }
 0x395   : > { %v7202_v59 = vpop.permute.xlu1 %1206 }
 0x397   : > { %2791 = vrot.lane.b32.xlu0 %v7095_v4, %s6037_s9  ;;  %1545 = vrot.lane.b32.xlu1 %v1510_v10, %s6036_s30  ;;  %v1957_v4 = vshll.u32 %v7084_v56, 16 }
 0x399   : > { %v7127_v43 = vpop.permute.xlu0 %1422 }
 0x39b   : > { %1553 = vrot.lane.b32.xlu1 %v1514_v20, %s6036_s30  ;;  %2265 = vrot.lane.b32.xlu0 %v7125_v1, %s6039_s13  ;;  %v1253_v20 = vmul.f32 0.125, %v1237_v2 }
 0x39d   : > { %v1544_v37 = vpop.permute.xlu0 %1543  ;;  %v1277_v38 = vadd.f32 %v6273_v63, %v1253_v20 }
 0x39e   : > { %v7143_v19 = vsel %vm1651_vm9, %v1544_v37, %v11044_v28  ;;  %v11053_v37 = vld [vmem:[#allocation20_spill] sm:$0xff]  ;;  %v1959_v28 = vrot.slane %v1957_v4, 1 }
 0x39f   : > { %2673 = vrot.lane.b32.xlu0 %v7125_v1, %s6026_s11  ;;  %2153 = vrot.lane.b32.xlu1 %v7125_v1, %s6032_s24  ;;  %11045 = vst [vmem:[#allocation47_spill] sm:$0xff] %v7143_v19  ;;  %v11057_v4 = vld [vmem:[#allocation16_spill] sm:$0xff] }
 0x3a1   : > { %v1552_v54 = vpop.permute.xlu0 %1551 }
 0x3a2   : > { %v7150_v18 = vsel %vm1651_vm9, %v1552_v54, %v11046_v46  ;;  %v1820_v54 = vshrl.u32 %v7125_v1, 16  ;;  %v11055_v46 = vld [vmem:[#allocation38_spill] sm:$0xff] }
 0x3a3   : > { %2783 = vrot.lane.b32.xlu0 %v7125_v1, %s6037_s9  ;;  %1738 = vrot.lane.b32.xlu1 %v1703_v57, %s6034_s26  ;;  %11047 = vst [vmem:[#allocation44_spill] sm:$0xff] %v7150_v18 }
 0x3a4   : > { %v1822_v22 = vrot.slane %v1820_v54, 7 }
 0x3a5   : > { %v7211_v39 = vpop.permute.xlu1 %1198 }
 0x3a7   : > { %1746 = vrot.lane.b32.xlu1 %v1707_v35, %s6034_s26  ;;  %2236 = vrot.lane.b32.xlu0 %v7143_v19, %s6037_s9 }
 0x3a9   : > { %v7152_v14 = vpop.permute.xlu0 %1414 }
 0x3ab   : > { %2110 = vrot.lane.b32.xlu1 %v7143_v19, %s6026_s11  ;;  %2244 = vrot.lane.b32.xlu0 %v7150_v18, %s6037_s9 }
 0x3ad   : > { %v1737_v61 = vpop.permute.xlu0 %1736 }
 0x3ae   : > { %v7168_v11 = vsel %vm1651_vm9, %v1737_v61, %v6003_v9  ;;  %v1153_v61 = vadd.f32 %v1137_v31, %v11055_v46  ;;  %v1955_v9 = vshrl.u32 %v7084_v56, 16 }
 0x3af   : > { %2755 = vrot.lane.b32.xlu0 %v7143_v19, %s6038_s10  ;;  %2118 = vrot.lane.b32.xlu1 %v7150_v18, %s6026_s11 }
 0x3b0   : > { %v1233_v26 = vadd.f32 %v1195_v15, %v1153_v61  ;;  %v1960_v50 = vor.u32 %v1959_v28, %v1955_v9  ;;  %v1825_v15 = vor.u32 %v1823_v21, %v1822_v22  ;;  %v11062_v61 = vld [vmem:[#allocation39_spill] sm:$0xff] }
 0x3b1   : > { %v1745_v51 = vpop.permute.xlu0 %1744 }
 0x3b2   : > { %v7176_v7 = vsel %vm1651_vm9, %v1745_v51, %v6004_v32  ;;  %v11056_v51 = vld [vmem:[#allocation52_spill] sm:$0xff]  ;;  %v1249_v36 = vmul.f32 0.125, %v1233_v26 }
 0x3b3   : > { %2763 = vrot.lane.b32.xlu0 %v7150_v18, %s6038_s10  ;;  %2332 = vrot.lane.b32.xlu1 %v7143_v19, %s6031_s23  ;;  %v1341_v32 = vadd.f32 %v11056_v51, %v6551_v55  ;;  %v2072_v55 = vsel %vm6164_vm6, %v1960_v50, 0 }
 0x3b4   : > { %v1273_v60 = vadd.f32 %v6273_v63, %v1249_v36 }
 0x3b5   : > { %v1564_v44 = vpop.permute.xlu0 %1563  ;;  %v1373_v33 = vadd.f32 %v1357_v5, %v1341_v32 }
 0x3b6   : > { %v7234_v35 = vsel %vm1651_vm9, %v1564_v44, %v11053_v37  ;;  %v1520_v44 = vpack.c.bf16 %v1277_v38, %v1277_v38  ;;  %v1516_v45 = vpack.c.bf16 %v1273_v60, %v1273_v60  ;;  %v6005_v38 = vld [vmem:[%s6117_s20 + $0x30] sm:$0xf]  ;;  %v6006_v60 = vld [vmem:[%s6117_s20 + $0x20] sm:$0xf] }
 0x3b7   : > { %2340 = vrot.lane.b32.xlu1 %v7150_v18, %s6031_s23  ;;  %2269 = vrot.lane.b32.xlu0 %v7168_v11, %s6039_s13  ;;  %11054 = vst [vmem:[#allocation31_spill] sm:$0xff] %v7234_v35  ;;  %v1453_v34 = vadd.f32 %v7078_v6, %v1373_v33  ;;  %v7266_v6 = vsel %vm6151_vm4, 0, %v1825_v15 }
 0x3b9   : > { %v7194_v27 = vpop.permute.xlu0 %1555  ;;  %v1469_v40 = vmul.f32 0.125, %v1453_v34  ;;  %v1969_v34 = vshll.u32 %v7143_v19, 16 }
 0x3ba   : > { %v7279_v24 = vsel %vm1651_vm9, %v7194_v27, %v11057_v4  ;;  %v11060_v27 = vld [vmem:[#allocation56_spill] sm:$0xff] }
 0x3bb   : > { %2850 = vrot.lane.b32.xlu1 %v7143_v19, %s6030_s22  ;;  %2277 = vrot.lane.b32.xlu0 %v7176_v7, %s6039_s13  ;;  %v1488_v2 = vadd.f32 %v6263_v62, %v1469_v40  ;;  %11058 = vst [vmem:[#allocation57_spill] sm:$0xff] %v7279_v24  ;;  %v1143_v54 = vadd.f32 %v11060_v27, %v6967_v47  ;;  %v11063_v47 = vld [vmem:[#allocation54_spill] sm:$0xff] }
 0x3bc   : > { %v1337_v51 = vadd.f32 %v11063_v47, %v6566_v23 }
 0x3bd   : > { %v1757_v10 = vpop.permute.xlu0 %1756  ;;  %v1713_v31 = vpack.c.bf16 %v1488_v2, %v1488_v2  ;;  %v1159_v9 = vadd.f32 %v1143_v54, %v11062_v61 }
 0x3be   : > { %v7288_v37 = vsel %vm1651_vm9, %v1757_v10, %v6005_v38  ;;  %v1353_v10 = vmul.f32 3.0, %v6934_v3 }
 0x3bf   : > { %2858 = vrot.lane.b32.xlu1 %v7150_v18, %s6030_s22  ;;  %2677 = vrot.lane.b32.xlu0 %v7168_v11, %s6026_s11  ;;  %v1239_v32 = vadd.f32 %v7202_v59, %v1159_v9  ;;  %v11065_v59 = vld [vmem:[#allocation22_spill] sm:$0xff] }
 0x3c0   : > { %v1369_v50 = vadd.f32 %v1353_v10, %v1337_v51  ;;  %v1991_v10 = vshrl.u32 %v7150_v18, 16 }
 0x3c1   : > { %v7223_v8 = vpop.permute.xlu1 %1549  ;;  %v7225_v57 = vpop.permute.xlu0 %1567  ;;  %v1255_v22 = vmul.f32 0.125, %v1239_v32 }
 0x3c2   : > { %v1449_v3 = vadd.f32 %v7110_v58, %v1369_v50  ;;  %v7330_v21 = vsel %vm1651_vm9, %v7225_v57, %v11065_v59  ;;  %v1971_v57 = vrot.slane %v1969_v34, 1  ;;  %v1832_v59 = vshrl.u32 %v7168_v11, 16 }
 0x3c3   : > { %2157 = vrot.lane.b32.xlu1 %v7168_v11, %s6032_s24  ;;  %2685 = vrot.lane.b32.xlu0 %v7176_v7, %s6026_s11  ;;  %11066 = vst [vmem:[#allocation34_spill] sm:$0xff] %v7330_v21  ;;  %v1279_v58 = vadd.f32 %v6273_v63, %v1255_v22 }
 0x3c4   : > { %v1465_v36 = vmul.f32 0.125, %v1449_v3 }
 0x3c5   : > { %v7246_v48 = vpop.permute.xlu1 %1541  ;;  %v7248_v49 = vpop.permute.xlu0 %1748 }
 0x3c6   : > { %v7344_v2 = vsel %vm1651_vm9, %v7248_v49, %v6006_v60  ;;  %v1484_v4 = vadd.f32 %v6263_v62, %v1465_v36  ;;  %v1856_v60 = vshrl.u32 %v7176_v7, 16 }
 0x3c7   : > { %2787 = vrot.lane.b32.xlu0 %v7168_v11, %s6037_s9  ;;  %2165 = vrot.lane.b32.xlu1 %v7176_v7, %s6032_s24 }
 0x3c8   : > { %v1709_v61 = vpack.c.bf16 %v1484_v4, %v1484_v4 }
 0x3c9   : > { %v7257_v53 = vpop.permute.xlu1 %1742  ;;  %v7259_v13 = vpop.permute.xlu0 %1559 }
 0x3cb   : > { %2795 = vrot.lane.b32.xlu0 %v7176_v7, %s6037_s9  ;;  %2364 = vrot.lane.b32.xlu1 %v7168_v11, %s6033_s25 }
 0x3cd   : > { %v7274_v20 = vpop.permute.xlu0 %1760 }
 0x3cf   : > { %2824 = vrot.lane.b32.xlu0 %v2076_v0, %s6039_s13  ;;  %2372 = vrot.lane.b32.xlu1 %v7176_v7, %s6033_s25 }
 0x3d1   : > { %v7290_v28 = vpop.permute.xlu0 %1752 }
 0x3d3   : > { %2207 = vrot.lane.b32.xlu0 %v7218_v30, %s6038_s10  ;;  %2882 = vrot.lane.b32.xlu1 %v7168_v11, %s6031_s23 }
 0x3d7   : > { %2890 = vrot.lane.b32.xlu1 %v7176_v7, %s6031_s23  ;;  %2256 = vrot.lane.b32.xlu0 %v7234_v35, %s6037_s9 }
 0x3db   : > { %1565 = vrot.lane.b32.xlu1 %v1520_v44, %s6036_s30  ;;  %2775 = vrot.lane.b32.xlu0 %v7234_v35, %s6038_s10 }
 0x3df   : > { %2729 = vrot.lane.b32.xlu1 %v2076_v0, %s6032_s24  ;;  %2816 = vrot.lane.b32.xlu0 %v2072_v55, %s6039_s13 }
 0x3e1   : > { %v7268_v1 = vpop.permute.xlu1 %2114  ;;  %v7297_v5 = vpop.permute.xlu0 %2240 }
 0x3e3   : > { %2916 = vrot.lane.b32.xlu1 %v2076_v0, %s6033_s25  ;;  %2199 = vrot.lane.b32.xlu0 %v7266_v6, %s6038_s10 }
 0x3e5   : > { %v7284_v0 = vpop.permute.xlu1 %2336  ;;  %v7314_v44 = vpop.permute.xlu0 %2759 }
 0x3e6   : > { %11059 = vst [vmem:[#allocation29_spill] sm:$0xff] %v7284_v0  ;;  %11064 = vst [vmem:[#allocation41_spill] sm:$0xff] %v7314_v44 }
 0x3e7   : > { %1557 = vrot.lane.b32.xlu1 %v1516_v45, %s6036_s30  ;;  %2248 = vrot.lane.b32.xlu0 %v7279_v24, %s6037_s9  ;;  %v1993_v45 = vshll.u32 %v7150_v18, 16 }
 0x3e9   : > { %v7299_v46 = vpop.permute.xlu1 %2854  ;;  %v1995_v54 = vrot.slane %v1993_v45, 1 }
 0x3ea   : > { %11061 = vst [vmem:[#allocation27_spill] sm:$0xff] %v7299_v46  ;;  %v2029_v46 = vshll.u32 %v7234_v35, 16 }
 0x3eb   : > { %1758 = vrot.lane.b32.xlu1 %v1713_v31, %s6034_s26  ;;  %2289 = vrot.lane.b32.xlu0 %v7288_v37, %s6039_s13  ;;  %v1522_v31 = vpack.c.bf16 %v1279_v58, %v1279_v58  ;;  %v1996_v32 = vor.u32 %v1995_v54, %v1991_v10  ;;  %v1834_v58 = vrot.slane %v1832_v59, 7  ;;  %v1858_v54 = vrot.slane %v1856_v60, 7 }
 0x3ec   : > { %v1359_v10 = vmul.f32 3.0, %v6959_v25 }
 0x3ed   : > { %v7316_v26 = vpop.permute.xlu1 %1734  ;;  %v7378_v22 = vsel %vm6164_vm6, %v1996_v32, 0 }
 0x3ef   : > { %2130 = vrot.lane.b32.xlu1 %v7234_v35, %s6026_s11  ;;  %2697 = vrot.lane.b32.xlu0 %v7288_v37, %s6026_s11 }
 0x3f3   : > { %2304 = vrot.lane.b32.xlu1 %v7218_v30, %s6030_s22  ;;  %2767 = vrot.lane.b32.xlu0 %v7279_v24, %s6038_s10 }
 0x3f7   : > { %2352 = vrot.lane.b32.xlu1 %v7234_v35, %s6031_s23  ;;  %2807 = vrot.lane.b32.xlu0 %v7288_v37, %s6037_s9 }
 0x3f9   : > { %v7323_v33 = vpop.permute.xlu1 %2106  ;;  %v7325_v23 = vpop.permute.xlu0 %2232 }
 0x3fb   : > { %2721 = vrot.lane.b32.xlu1 %v2072_v55, %s6032_s24  ;;  %2260 = vrot.lane.b32.xlu0 %v7330_v21, %s6037_s9  ;;  %v1967_v55 = vshrl.u32 %v7143_v19, 16  ;;  %v2005_v19 = vshll.u32 %v7279_v24, 16 }
 0x3fd   : > { %v7337_v15 = vpop.permute.xlu1 %2161  ;;  %v7339_v40 = vpop.permute.xlu0 %2273  ;;  %v1972_v49 = vor.u32 %v1971_v57, %v1967_v55  ;;  %v11072_v57 = vld [vmem:[#allocation58_spill] sm:$0xff]  ;;  %v1835_v55 = vshll.u32 %v7168_v11, 16  ;;  %v11075_v11 = vld [vmem:[#allocation59_spill] sm:$0xff] }
 0x3fe   : > { %v1139_v45 = vadd.f32 %v11072_v57, %v7000_v42  ;;  %v1859_v42 = vshll.u32 %v7176_v7, 16  ;;  %v1343_v59 = vadd.f32 %v11075_v11, %v6576_v17 }
 0x3ff   : > { %2870 = vrot.lane.b32.xlu1 %v7234_v35, %s6030_s22  ;;  %2281 = vrot.lane.b32.xlu0 %v7344_v2, %s6039_s13  ;;  %v7367_v51 = vsel %vm6164_vm6, %v1972_v49, 0  ;;  %v1837_v49 = vor.u32 %v1835_v55, %v1834_v58 }
 0x400   : > { %v1861_v60 = vor.u32 %v1859_v42, %v1858_v54 }
 0x401   : > { %v7353_v38 = vpop.permute.xlu1 %2368  ;;  %v7355_v27 = vpop.permute.xlu0 %2681  ;;  %v7417_v25 = vsel %vm6151_vm4, 0, %v1837_v49 }
 0x402   : > { %11067 = vst [vmem:[#allocation60_spill] sm:$0xff] %v7353_v38  ;;  %11068 = vst [vmem:[#allocation28_spill] sm:$0xff] %v7355_v27  ;;  %v7430_v49 = vsel %vm6151_vm4, 0, %v1861_v60  ;;  %v6007_v60 = vld [vmem:[%s6117_s20 + $0x38] sm:$0xf] }
 0x403   : > { %1569 = vrot.lane.b32.xlu1 %v1522_v31, %s6036_s30  ;;  %2689 = vrot.lane.b32.xlu0 %v7344_v2, %s6026_s11  ;;  %11077 = vst [vmem:[#allocation48_spill] sm:$0xff] %v7430_v49 }
 0x405   : > { %v7361_v9 = vpop.permute.xlu1 %2886  ;;  %v7363_v47 = vpop.permute.xlu0 %2751 }
 0x406   : > { %11069 = vst [vmem:[#allocation42_spill] sm:$0xff] %v7361_v9  ;;  %11070 = vst [vmem:[#allocation61_spill] sm:$0xff] %v7363_v47  ;;  %v6009_v47 = vld [vmem:[%s6117_s20 + $0x14] sm:$0xf] }
 0x407   : > { %1750 = vrot.lane.b32.xlu1 %v1709_v61, %s6034_s26  ;;  %2820 = vrot.lane.b32.xlu0 %v7367_v51, %s6039_s13  ;;  %v11074_v61 = vld [vmem:[#allocation40_spill] sm:$0xff] }
 0x408   : > { %v1155_v32 = vadd.f32 %v1139_v45, %v11074_v61  ;;  %v1375_v45 = vadd.f32 %v1359_v10, %v1343_v59 }
 0x409   : > { %v7372_v50 = vpop.permute.xlu1 %1545  ;;  %v7374_v3 = vpop.permute.xlu0 %2791 }
 0x40a   : > { %11071 = vst [vmem:[#allocation30_spill] sm:$0xff] %v7374_v3  ;;  %v1235_v57 = vadd.f32 %v7211_v39, %v1155_v32  ;;  %v1455_v17 = vadd.f32 %v7127_v43, %v1375_v45  ;;  %v11079_v32 = vld [vmem:[#allocation18_spill] sm:$0xff]  ;;  %v7458_v45 = vsel %vm1651_vm9, %v7274_v20, %v6007_v60  ;;  %v6008_v60 = vld [vmem:[%s6117_s20 + $0x28] sm:$0xf] }
 0x40b   : > { %2122 = vrot.lane.b32.xlu1 %v7279_v24, %s6026_s11  ;;  %2828 = vrot.lane.b32.xlu0 %v7378_v22, %s6039_s13  ;;  %v7444_v42 = vsel %vm1651_vm9, %v7259_v13, %v11079_v32 }
 0x40c   : > { %v1251_v7 = vmul.f32 0.125, %v1235_v57  ;;  %v1471_v54 = vmul.f32 0.125, %v1455_v17  ;;  %11080 = vst [vmem:[#allocation65_spill] sm:$0xff] %v7444_v42 }
 0x40d   : > { %v7385_v34 = vpop.permute.xlu1 %1553  ;;  %v7387_v36 = vpop.permute.xlu0 %2265 }
 0x40e   : > { %v1275_v10 = vadd.f32 %v6273_v63, %v1251_v7  ;;  %v1490_v11 = vadd.f32 %v6263_v62, %v1471_v54 }
 0x40f   : > { %2177 = vrot.lane.b32.xlu1 %v7288_v37, %s6032_s24  ;;  %2799 = vrot.lane.b32.xlu0 %v7344_v2, %s6037_s9 }
 0x410   : > { %v1518_v59 = vpack.c.bf16 %v1275_v10, %v1275_v10  ;;  %v1715_v13 = vpack.c.bf16 %v1490_v11, %v1490_v11 }
 0x411   : > { %v7397_v4 = vpop.permute.xlu1 %2153  ;;  %v7399_v31 = vpop.permute.xlu0 %2673 }
 0x412   : > { %11073 = vst [vmem:[#allocation46_spill] sm:$0xff] %v7399_v31 }
 0x413   : > { %2344 = vrot.lane.b32.xlu1 %v7279_v24, %s6031_s23  ;;  %2779 = vrot.lane.b32.xlu0 %v7330_v21, %s6038_s10 }
 0x415   : > { %v7411_v9 = vpop.permute.xlu1 %1738  ;;  %v7413_v58 = vpop.permute.xlu0 %2783 }
 0x416   : > { %11076 = vst [vmem:[#allocation12_spill] sm:$0xff] %v7413_v58 }
 0x417   : > { %2384 = vrot.lane.b32.xlu1 %v7288_v37, %s6033_s25  ;;  %2203 = vrot.lane.b32.xlu0 %v7417_v25, %s6038_s10 }
 0x419   : > { %v7424_v39 = vpop.permute.xlu1 %1746  ;;  %v7426_v55 = vpop.permute.xlu0 %2236 }
 0x41b   : > { %2862 = vrot.lane.b32.xlu1 %v7279_v24, %s6030_s22  ;;  %2211 = vrot.lane.b32.xlu0 %v7430_v49, %s6038_s10 }
 0x41d   : > { %v7437_v43 = vpop.permute.xlu1 %2110  ;;  %v7439_v61 = vpop.permute.xlu0 %2244 }
 0x41e   : > { %11078 = vst [vmem:[#allocation8_spill] sm:$0xff] %v7439_v61 }
 0x41f   : > { %2902 = vrot.lane.b32.xlu1 %v7288_v37, %s6031_s23  ;;  %2252 = vrot.lane.b32.xlu0 %v7444_v42, %s6037_s9 }
 0x421   : > { %v7451_v57 = vpop.permute.xlu1 %2118  ;;  %v7453_v63 = vpop.permute.xlu0 %2755 }
 0x422   : > { %11081 = vst [vmem:[#allocation49_spill] sm:$0xff] %v7451_v57  ;;  %11082 = vst [vmem:[#allocation35_spill] sm:$0xff] %v7453_v63 }
 0x423   : > { %1561 = vrot.lane.b32.xlu1 %v1518_v59, %s6036_s30  ;;  %2293 = vrot.lane.b32.xlu0 %v7458_v45, %s6039_s13 }
 0x425   : > { %v7463_v17 = vpop.permute.xlu1 %2332  ;;  %v7465_v7 = vpop.permute.xlu0 %2763 }
 0x426   : > { %11083 = vst [vmem:[#allocation36_spill] sm:$0xff] %v7465_v7 }
 0x427   : > { %1762 = vrot.lane.b32.xlu1 %v1715_v13, %s6034_s26  ;;  %2701 = vrot.lane.b32.xlu0 %v7458_v45, %s6026_s11  ;;  %v7493_v13 = vsel %vm1651_vm9, %v7290_v28, %v6008_v60  ;;  %v2027_v28 = vshrl.u32 %v7234_v35, 16 }
 0x429   : > { %v7470_v54 = vpop.permute.xlu1 %2340  ;;  %v7472_v20 = vpop.permute.xlu0 %2269 }
 0x42a   : > { %11084 = vst [vmem:[#allocation63_spill] sm:$0xff] %v7470_v54 }
 0x42b   : > { %2134 = vrot.lane.b32.xlu1 %v7330_v21, %s6026_s11  ;;  %2771 = vrot.lane.b32.xlu0 %v7444_v42, %s6038_s10 }
 0x42d   : > { %v7478_v10 = vpop.permute.xlu1 %2850  ;;  %v7480_v32 = vpop.permute.xlu0 %2277 }
 0x42e   : > { %11085 = vst [vmem:[#allocation32_spill] sm:$0xff] %v7478_v10  ;;  %11086 = vst [vmem:[#allocation50_spill] sm:$0xff] %v7480_v32  ;;  %v1892_v10 = vshrl.u32 %v7288_v37, 16 }
 0x42f   : > { %2169 = vrot.lane.b32.xlu1 %v7344_v2, %s6032_s24  ;;  %2811 = vrot.lane.b32.xlu0 %v7458_v45, %s6037_s9 }
 0x430   : > { %v1894_v18 = vrot.slane %v1892_v10, 7  ;;  %v2007_v10 = vrot.slane %v2005_v19, 1 }
 0x431   : > { %v7486_v11 = vpop.permute.xlu1 %2858  ;;  %v7488_v59 = vpop.permute.xlu0 %2677 }
 0x432   : > { %11087 = vst [vmem:[#allocation64_spill] sm:$0xff] %v7486_v11  ;;  %11088 = vst [vmem:[#allocation33_spill] sm:$0xff] %v7488_v59  ;;  %v2031_v11 = vrot.slane %v2029_v46, 1  ;;  %v1895_v46 = vshll.u32 %v7288_v37, 16  ;;  %v2003_v37 = vshrl.u32 %v7279_v24, 16 }
 0x433   : > { %2356 = vrot.lane.b32.xlu1 %v7330_v21, %s6031_s23  ;;  %2285 = vrot.lane.b32.xlu0 %v7493_v13, %s6039_s13 }
 0x434   : > { %v2032_v63 = vor.u32 %v2031_v11, %v2027_v28  ;;  %v1897_v11 = vor.u32 %v1895_v46, %v1894_v18  ;;  %v1868_v28 = vshrl.u32 %v7344_v2, 16  ;;  %v2041_v46 = vshll.u32 %v7330_v21, 16 }
 0x435   : > { %v7500_v7 = vpop.permute.xlu1 %2157  ;;  %v7502_v3 = vpop.permute.xlu0 %2685 }
 0x436   : > { %11089 = vst [vmem:[#allocation51_spill] sm:$0xff] %v7502_v3  ;;  %v7526_v35 = vsel %vm6164_vm6, %v2032_v63, 0  ;;  %v7543_v19 = vsel %vm6151_vm4, 0, %v1897_v11  ;;  %v1870_v18 = vrot.slane %v1868_v28, 7 }
 0x437   : > { %2376 = vrot.lane.b32.xlu1 %v7344_v2, %s6033_s25  ;;  %2693 = vrot.lane.b32.xlu0 %v7493_v13, %s6026_s11  ;;  %11096 = vst [vmem:[#allocation20_spill] sm:$0xff] %v7543_v19 }
 0x439   : > { %v7510_v60 = vpop.permute.xlu1 %2165  ;;  %v7512_v44 = vpop.permute.xlu0 %2787 }
 0x43a   : > { %11090 = vst [vmem:[#allocation10_spill] sm:$0xff] %v7510_v60  ;;  %11091 = vst [vmem:[#allocation14_spill] sm:$0xff] %v7512_v44  ;;  %v1355_v44 = vmul.f32 3.0, %v6989_v29  ;;  %v2008_v29 = vor.u32 %v2007_v10, %v2003_v37 }
 0x43b   : > { %2725 = vrot.lane.b32.xlu1 %v7367_v51, %s6032_s24  ;;  %2803 = vrot.lane.b32.xlu0 %v7493_v13, %s6037_s9 }
 0x43c   : > { %v7558_v11 = vsel %vm6164_vm6, %v2008_v29, 0 }
 0x43d   : > { %v7520_v3 = vpop.permute.xlu1 %2364  ;;  %v7522_v59 = vpop.permute.xlu0 %2795 }
 0x43e   : > { %11092 = vst [vmem:[#allocation53_spill] sm:$0xff] %v7522_v59  ;;  %v11093_v59 = vld [vmem:[#allocation62_spill] sm:$0xff] }
 0x43f   : > { %2733 = vrot.lane.b32.xlu1 %v7378_v22, %s6032_s24  ;;  %2840 = vrot.lane.b32.xlu0 %v7526_v35, %s6039_s13  ;;  %v1339_v58 = vadd.f32 %v11093_v59, %v6593_v41  ;;  %v1871_v41 = vshll.u32 %v7344_v2, 16 }
 0x441   : > { %v7537_v56 = vpop.permute.xlu1 %2372  ;;  %v7539_v63 = vpop.permute.xlu0 %2824  ;;  %v1371_v31 = vadd.f32 %v1355_v44, %v1339_v58  ;;  %v1873_v10 = vor.u32 %v1871_v41, %v1870_v18  ;;  %v2043_v44 = vrot.slane %v2041_v46, 1  ;;  %v1904_v58 = vshrl.u32 %v7458_v45, 16 }
 0x442   : > { %11094 = vst [vmem:[#allocation37_spill] sm:$0xff] %v7537_v56  ;;  %11095 = vst [vmem:[#allocation55_spill] sm:$0xff] %v7539_v63  ;;  %v2017_v46 = vshll.u32 %v7444_v42, 16 }
 0x443   : > { %2912 = vrot.lane.b32.xlu1 %v7367_v51, %s6033_s25  ;;  %2223 = vrot.lane.b32.xlu0 %v7543_v19, %s6038_s10  ;;  %v1451_v59 = vadd.f32 %v7152_v14, %v1371_v31  ;;  %v2039_v14 = vshrl.u32 %v7330_v21, 16  ;;  %v7572_v37 = vsel %vm6151_vm4, 0, %v1873_v10  ;;  %v1906_v18 = vrot.slane %v1904_v58, 7 }
 0x444   : > { %11100 = vst [vmem:[#allocation56_spill] sm:$0xff] %v7572_v37  ;;  %v2019_v58 = vrot.slane %v2017_v46, 1 }
 0x445   : > { %v7552_v63 = vpop.permute.xlu1 %2882  ;;  %v7554_v24 = vpop.permute.xlu0 %2207  ;;  %v1467_v51 = vmul.f32 0.125, %v1451_v59  ;;  %v2044_v29 = vor.u32 %v2043_v44, %v2039_v14  ;;  %v1880_v14 = vshrl.u32 %v7493_v13, 16 }
 0x446   : > { %11097 = vst [vmem:[#allocation38_spill] sm:$0xff] %v7552_v63 }
 0x447   : > { %2894 = vrot.lane.b32.xlu1 %v7344_v2, %s6031_s23  ;;  %2832 = vrot.lane.b32.xlu0 %v7558_v11, %s6039_s13  ;;  %v1907_v2 = vshll.u32 %v7458_v45, 16  ;;  %v1486_v41 = vadd.f32 %v6263_v62, %v1467_v51  ;;  %v7587_v10 = vsel %vm6164_vm6, %v2044_v29, 0  ;;  %v2015_v62 = vshrl.u32 %v7444_v42, 16 }
 0x448   : > { %v1882_v46 = vrot.slane %v1880_v14, 7 }
 0x449   : > { %v7566_v31 = vpop.permute.xlu1 %2890  ;;  %v7568_v28 = vpop.permute.xlu0 %2256  ;;  %v1909_v44 = vor.u32 %v1907_v2, %v1906_v18  ;;  %v2020_v18 = vor.u32 %v2019_v58, %v2015_v62  ;;  %v1883_v2 = vshll.u32 %v7493_v13, 16 }
 0x44a   : > { %11098 = vst [vmem:[#allocation52_spill] sm:$0xff] %v7566_v31  ;;  %11099 = vst [vmem:[#allocation16_spill] sm:$0xff] %v7568_v28 }
 0x44b   : > { %2920 = vrot.lane.b32.xlu1 %v7378_v22, %s6033_s25  ;;  %2215 = vrot.lane.b32.xlu0 %v7572_v37, %s6038_s10  ;;  %v1711_v22 = vpack.c.bf16 %v1486_v41, %v1486_v41  ;;  %v7601_v29 = vsel %vm6151_vm4, 0, %v1909_v44  ;;  %v7613_v63 = vsel %vm6164_vm6, %v2020_v18, 0  ;;  %v11109_v18 = vld [vmem:[#allocation9_spill] sm:$0xff] }
 0x44c   : > { %11104 = vst [vmem:[#allocation58_spill] sm:$0xff] %v7601_v29 }
 0x44d   : > { %v7581_v59 = vpop.permute.xlu1 %1565  ;;  %v7583_v31 = vpop.permute.xlu0 %2775 }
 0x44e   : > { %11101 = vst [vmem:[#allocation39_spill] sm:$0xff] %v7583_v31 }
 0x44f   : > { %2874 = vrot.lane.b32.xlu1 %v7330_v21, %s6030_s22  ;;  %2844 = vrot.lane.b32.xlu0 %v7587_v10, %s6039_s13 }
 0x451   : > { %v7595_v51 = vpop.permute.xlu1 %2729  ;;  %v7597_v31 = vpop.permute.xlu0 %2816 }
 0x452   : > { %11102 = vst [vmem:[#allocation54_spill] sm:$0xff] %v7595_v51  ;;  %11103 = vst [vmem:[#allocation22_spill] sm:$0xff] %v7597_v31  ;;  %v1885_v31 = vor.u32 %v1883_v2, %v1882_v46  ;;  %v7638_v46 = vsel %vm1651_vm9, %v7223_v8, %v11109_v18 }
 0x453   : > { %1754 = vrot.lane.b32.xlu1 %v1711_v22, %s6034_s26  ;;  %2227 = vrot.lane.b32.xlu0 %v7601_v29, %s6038_s10  ;;  %11110 = vst [vmem:[#allocation9_spill] sm:$0xff] %v7638_v46 }
 0x454   : > { %v7625_v14 = vsel %vm6151_vm4, 0, %v1885_v31 }
 0x455   : > { %v7607_v21 = vpop.permute.xlu1 %2916  ;;  %v7609_v41 = vpop.permute.xlu0 %2199  ;;  %11107 = vst [vmem:[#allocation18_spill] sm:$0xff] %v7625_v14 }
 0x456   : > { %11105 = vst [vmem:[#allocation40_spill] sm:$0xff] %v7607_v21 }
 0x457   : > { %2126 = vrot.lane.b32.xlu1 %v7444_v42, %s6026_s11  ;;  %2836 = vrot.lane.b32.xlu0 %v7613_v63, %s6039_s13 }
 0x459   : > { %v7619_v44 = vpop.permute.xlu1 %1557  ;;  %v7621_v58 = vpop.permute.xlu0 %2248 }
 0x45a   : > { %11106 = vst [vmem:[#allocation59_spill] sm:$0xff] %v7621_v58  ;;  %v11172_v58 = vld [vmem:[#allocation13_spill] sm:$0xff] }
 0x45b   : > { %2181 = vrot.lane.b32.xlu1 %v7458_v45, %s6032_s24  ;;  %2219 = vrot.lane.b32.xlu0 %v7625_v14, %s6038_s10 }
 0x45d   : > { %v7631_v62 = vpop.permute.xlu1 %1758  ;;  %v7633_v22 = vpop.permute.xlu0 %2289 }
 0x45e   : > { %11108 = vst [vmem:[#allocation62_spill] sm:$0xff] %v7633_v22 }
 0x45f   : > { %2300 = vrot.lane.b32.xlu1 %v7417_v25, %s6030_s22  ;;  %2116 = vrot.lane.b32.xlu0 %v7638_v46, %s6026_s11 }
 0x461   : > { %v7644_v31 = vpop.permute.xlu1 %2130  ;;  %v7646_v2 = vpop.permute.xlu0 %2697 }
 0x462   : > { %11111 = vst [vmem:[#allocation66_spill] sm:$0xff] %v7644_v31  ;;  %11112 = vst [vmem:[#allocation67_spill] sm:$0xff] %v7646_v2  ;;  %v11117_v2 = vld [vmem:[#allocation6_spill] sm:$0xff]  ;;  %v6012_v31 = vld [vmem:[%s6117_s20 + $0x1c] sm:$0xf] }
 0x463   : > { %2308 = vrot.lane.b32.xlu1 %v7430_v49, %s6030_s22  ;;  %2338 = vrot.lane.b32.xlu0 %v7638_v46, %s6031_s23  ;;  %v7667_v22 = vsel %vm1651_vm9, %v7246_v48, %v11117_v2 }
 0x464   : > { %11118 = vst [vmem:[#allocation6_spill] sm:$0xff] %v7667_v22 }
 0x465   : > { %v7652_v21 = vpop.permute.xlu1 %2304  ;;  %v7654_v8 = vpop.permute.xlu0 %2767 }
 0x466   : > { %11113 = vst [vmem:[#allocation68_spill] sm:$0xff] %v7652_v21  ;;  %11114 = vst [vmem:[#allocation69_spill] sm:$0xff] %v7654_v8 }
 0x467   : > { %2348 = vrot.lane.b32.xlu1 %v7444_v42, %s6031_s23  ;;  %2856 = vrot.lane.b32.xlu0 %v7638_v46, %s6030_s22 }
 0x469   : > { %v7660_v18 = vpop.permute.xlu1 %2352  ;;  %v7662_v51 = vpop.permute.xlu0 %2807 }
 0x46a   : > { %11115 = vst [vmem:[#allocation70_spill] sm:$0xff] %v7660_v18  ;;  %11116 = vst [vmem:[#allocation71_spill] sm:$0xff] %v7662_v51  ;;  %v7680_v18 = vsel %vm1651_vm9, %v7257_v53, %v6009_v47 }
 0x46b   : > { %2388 = vrot.lane.b32.xlu1 %v7458_v45, %s6033_s25  ;;  %2108 = vrot.lane.b32.xlu0 %v7667_v22, %s6026_s11 }
 0x46d   : > { %v7673_v8 = vpop.permute.xlu1 %2721  ;;  %v7675_v28 = vpop.permute.xlu0 %2260 }
 0x46e   : > { %11119 = vst [vmem:[#allocation72_spill] sm:$0xff] %v7673_v8  ;;  %11120 = vst [vmem:[#allocation73_spill] sm:$0xff] %v7675_v28 }
 0x46f   : > { %2866 = vrot.lane.b32.xlu1 %v7444_v42, %s6030_s22  ;;  %2163 = vrot.lane.b32.xlu0 %v7680_v18, %s6032_s24 }
 0x471   : > { %v7686_v48 = vpop.permute.xlu1 %2870  ;;  %v7688_v2 = vpop.permute.xlu0 %2281 }
 0x472   : > { %11121 = vst [vmem:[#allocation74_spill] sm:$0xff] %v7686_v48  ;;  %11122 = vst [vmem:[#allocation75_spill] sm:$0xff] %v7688_v2  ;;  %v11162_v2 = vld [vmem:[#allocation17_spill] sm:$0xff] }
 0x473   : > { %2173 = vrot.lane.b32.xlu1 %v7493_v13, %s6032_s24  ;;  %2330 = vrot.lane.b32.xlu0 %v7667_v22, %s6031_s23 }
 0x475   : > { %v7694_v51 = vpop.permute.xlu1 %1569  ;;  %v7696_v53 = vpop.permute.xlu0 %2689 }
 0x476   : > { %11123 = vst [vmem:[#allocation76_spill] sm:$0xff] %v7696_v53 }
 0x477   : > { %2380 = vrot.lane.b32.xlu1 %v7493_v13, %s6033_s25  ;;  %2370 = vrot.lane.b32.xlu0 %v7680_v18, %s6033_s25 }
 0x479   : > { %v7702_v47 = vpop.permute.xlu1 %1750  ;;  %v7704_v48 = vpop.permute.xlu0 %2820 }
 0x47a   : > { %11124 = vst [vmem:[#allocation77_spill] sm:$0xff] %v7704_v48  ;;  %v6010_v48 = vld [vmem:[%s6117_s20 + $0x4] sm:$0xf] }
 0x47b   : > { %2898 = vrot.lane.b32.xlu1 %v7493_v13, %s6031_s23  ;;  %2848 = vrot.lane.b32.xlu0 %v7667_v22, %s6030_s22  ;;  %v7725_v13 = vsel %vm1651_vm9, %v7316_v26, %v6010_v48 }
 0x47d   : > { %v7710_v42 = vpop.permute.xlu1 %2122  ;;  %v7712_v28 = vpop.permute.xlu0 %2828 }
 0x47e   : > { %11125 = vst [vmem:[#allocation78_spill] sm:$0xff] %v7710_v42  ;;  %11126 = vst [vmem:[#allocation79_spill] sm:$0xff] %v7712_v28 }
 0x47f   : > { %2745 = vrot.lane.b32.xlu1 %v7526_v35, %s6032_s24  ;;  %2888 = vrot.lane.b32.xlu0 %v7680_v18, %s6031_s23 }
 0x481   : > { %v7718_v53 = vpop.permute.xlu1 %2177  ;;  %v7720_v8 = vpop.permute.xlu0 %2799 }
 0x482   : > { %11127 = vst [vmem:[#allocation80_spill] sm:$0xff] %v7718_v53  ;;  %11128 = vst [vmem:[#allocation81_spill] sm:$0xff] %v7720_v8 }
 0x483   : > { %2932 = vrot.lane.b32.xlu1 %v7526_v35, %s6033_s25  ;;  %2155 = vrot.lane.b32.xlu0 %v7725_v13, %s6032_s24 }
 0x485   : > { %v7731_v28 = vpop.permute.xlu1 %2344  ;;  %v7733_v52 = vpop.permute.xlu0 %2779 }
 0x486   : > { %11129 = vst [vmem:[#allocation82_spill] sm:$0xff] %v7731_v28  ;;  %11130 = vst [vmem:[#allocation83_spill] sm:$0xff] %v7733_v52  ;;  %v11133_v52 = vld [vmem:[#allocation7_spill] sm:$0xff] }
 0x487   : > { %2320 = vrot.lane.b32.xlu1 %v7543_v19, %s6030_s22  ;;  %2362 = vrot.lane.b32.xlu0 %v7725_v13, %s6033_s25  ;;  %v7754_v27 = vsel %vm1651_vm9, %v7372_v50, %v11133_v52  ;;  %v11137_v19 = vld [vmem:[#allocation11_spill] sm:$0xff] }
 0x488   : > { %11134 = vst [vmem:[#allocation7_spill] sm:$0xff] %v7754_v27 }
 0x489   : > { %v7739_v8 = vpop.permute.xlu1 %2384  ;;  %v7741_v26 = vpop.permute.xlu0 %2203 }
 0x48a   : > { %11131 = vst [vmem:[#allocation84_spill] sm:$0xff] %v7739_v8 }
 0x48b   : > { %2737 = vrot.lane.b32.xlu1 %v7558_v11, %s6032_s24  ;;  %2880 = vrot.lane.b32.xlu0 %v7725_v13, %s6031_s23 }
 0x48d   : > { %v7747_v35 = vpop.permute.xlu1 %2862  ;;  %v7749_v48 = vpop.permute.xlu0 %2211 }
 0x48e   : > { %11132 = vst [vmem:[#allocation85_spill] sm:$0xff] %v7747_v35  ;;  %v7767_v35 = vsel %vm1651_vm9, %v7385_v34, %v11137_v19 }
 0x48f   : > { %2924 = vrot.lane.b32.xlu1 %v7558_v11, %s6033_s25  ;;  %2112 = vrot.lane.b32.xlu0 %v7754_v27, %s6026_s11  ;;  %11138 = vst [vmem:[#allocation11_spill] sm:$0xff] %v7767_v35 }
 0x491   : > { %v7760_v8 = vpop.permute.xlu1 %2902  ;;  %v7762_v53 = vpop.permute.xlu0 %2252 }
 0x492   : > { %11135 = vst [vmem:[#allocation86_spill] sm:$0xff] %v7760_v8  ;;  %11136 = vst [vmem:[#allocation87_spill] sm:$0xff] %v7762_v53 }
 0x493   : > { %2312 = vrot.lane.b32.xlu1 %v7572_v37, %s6030_s22  ;;  %2120 = vrot.lane.b32.xlu0 %v7767_v35, %s6026_s11  ;;  %v7894_v37 = vsel %vm1651_vm9, %v7581_v59, %v11162_v2  ;;  %v1961_v59 = vshrl.u32 %v7667_v22, 16 }
 0x494   : > { %11163 = vst [vmem:[#allocation17_spill] sm:$0xff] %v7894_v37  ;;  %v2033_v60 = vshrl.u32 %v7894_v37, 16 }
 0x495   : > { %v7773_v52 = vpop.permute.xlu1 %1561  ;;  %v7775_v50 = vpop.permute.xlu0 %2293 }
 0x496   : > { %11139 = vst [vmem:[#allocation88_spill] sm:$0xff] %v7775_v50 }
 0x497   : > { %2749 = vrot.lane.b32.xlu1 %v7587_v10, %s6032_s24  ;;  %2334 = vrot.lane.b32.xlu0 %v7754_v27, %s6031_s23 }
 0x499   : > { %v7781_v11 = vpop.permute.xlu1 %1762  ;;  %v7783_v34 = vpop.permute.xlu0 %2701 }
 0x49a   : > { %11140 = vst [vmem:[#allocation89_spill] sm:$0xff] %v7783_v34 }
 0x49b   : > { %2324 = vrot.lane.b32.xlu1 %v7601_v29, %s6030_s22  ;;  %2342 = vrot.lane.b32.xlu0 %v7767_v35, %s6031_s23 }
 0x49d   : > { %v7789_v19 = vpop.permute.xlu1 %2134  ;;  %v7791_v8 = vpop.permute.xlu0 %2771 }
 0x49e   : > { %11141 = vst [vmem:[#allocation90_spill] sm:$0xff] %v7789_v19  ;;  %11142 = vst [vmem:[#allocation91_spill] sm:$0xff] %v7791_v8  ;;  %v6011_v8 = vld [vmem:[%s6117_s20 + $0xc] sm:$0xf] }
 0x49f   : > { %2741 = vrot.lane.b32.xlu1 %v7613_v63, %s6032_s24  ;;  %2852 = vrot.lane.b32.xlu0 %v7754_v27, %s6030_s22  ;;  %v7812_v19 = vsel %vm1651_vm9, %v7411_v9, %v6011_v8 }
 0x4a1   : > { %v7797_v50 = vpop.permute.xlu1 %2169  ;;  %v7799_v34 = vpop.permute.xlu0 %2811 }
 0x4a2   : > { %11143 = vst [vmem:[#allocation92_spill] sm:$0xff] %v7797_v50  ;;  %11144 = vst [vmem:[#allocation93_spill] sm:$0xff] %v7799_v34 }
 0x4a3   : > { %2928 = vrot.lane.b32.xlu1 %v7613_v63, %s6033_s25  ;;  %2860 = vrot.lane.b32.xlu0 %v7767_v35, %s6030_s22 }
 0x4a5   : > { %v7805_v53 = vpop.permute.xlu1 %2356  ;;  %v7807_v29 = vpop.permute.xlu0 %2285 }
 0x4a6   : > { %11145 = vst [vmem:[#allocation94_spill] sm:$0xff] %v7805_v53  ;;  %11146 = vst [vmem:[#allocation95_spill] sm:$0xff] %v7807_v29  ;;  %v7825_v53 = vsel %vm1651_vm9, %v7424_v39, %v6012_v31  ;;  %v1987_v31 = vshll.u32 %v7638_v46, 16 }
 0x4a7   : > { %2316 = vrot.lane.b32.xlu1 %v7625_v14, %s6030_s22  ;;  %2159 = vrot.lane.b32.xlu0 %v7812_v19, %s6032_s24 }
 0x4a8   : > { %v1989_v29 = vrot.slane %v1987_v31, 1 }
 0x4a9   : > { %v7818_v34 = vpop.permute.xlu1 %2376  ;;  %v7820_v63 = vpop.permute.xlu0 %2693 }
 0x4aa   : > { %11147 = vst [vmem:[#allocation96_spill] sm:$0xff] %v7818_v34  ;;  %11148 = vst [vmem:[#allocation97_spill] sm:$0xff] %v7820_v63 }
 0x4ab   : > { %2242 = vrot.lane.b32.xlu1 %v7638_v46, %s6037_s9  ;;  %2167 = vrot.lane.b32.xlu0 %v7825_v53, %s6032_s24 }
 0x4ad   : > { %v7831_v9 = vpop.permute.xlu1 %2725  ;;  %v7833_v8 = vpop.permute.xlu0 %2803 }
 0x4ae   : > { %11149 = vst [vmem:[#allocation98_spill] sm:$0xff] %v7831_v9  ;;  %11150 = vst [vmem:[#allocation99_spill] sm:$0xff] %v7833_v8 }
 0x4af   : > { %2761 = vrot.lane.b32.xlu1 %v7638_v46, %s6038_s10  ;;  %2366 = vrot.lane.b32.xlu0 %v7812_v19, %s6033_s25 }
 0x4b1   : > { %v7839_v63 = vpop.permute.xlu1 %2733  ;;  %v7841_v39 = vpop.permute.xlu0 %2840 }
 0x4b2   : > { %11151 = vst [vmem:[#allocation100_spill] sm:$0xff] %v7839_v63  ;;  %11152 = vst [vmem:[#allocation101_spill] sm:$0xff] %v7841_v39  ;;  %v1985_v39 = vshrl.u32 %v7638_v46, 16  ;;  %v1850_v46 = vshrl.u32 %v7680_v18, 16 }
 0x4b3   : > { %2234 = vrot.lane.b32.xlu1 %v7667_v22, %s6037_s9  ;;  %2374 = vrot.lane.b32.xlu0 %v7825_v53, %s6033_s25 }
 0x4b4   : > { %v1990_v50 = vor.u32 %v1989_v29, %v1985_v39 }
 0x4b5   : > { %v7848_v9 = vpop.permute.xlu1 %2912  ;;  %v7850_v8 = vpop.permute.xlu0 %2223 }
 0x4b6   : > { %11153 = vst [vmem:[#allocation102_spill] sm:$0xff] %v7848_v9  ;;  %11154 = vst [vmem:[#allocation103_spill] sm:$0xff] %v7850_v8  ;;  %v7871_v8 = vsel %vm6164_vm6, %v1990_v50, 0  ;;  %v1853_v50 = vshll.u32 %v7680_v18, 16 }
 0x4b7   : > { %2275 = vrot.lane.b32.xlu1 %v7680_v18, %s6039_s13  ;;  %2884 = vrot.lane.b32.xlu0 %v7812_v19, %s6031_s23 }
 0x4b9   : > { %v7857_v63 = vpop.permute.xlu1 %2894  ;;  %v7859_v14 = vpop.permute.xlu0 %2832 }
 0x4ba   : > { %11155 = vst [vmem:[#allocation104_spill] sm:$0xff] %v7857_v63  ;;  %11156 = vst [vmem:[#allocation105_spill] sm:$0xff] %v7859_v14  ;;  %v1852_v14 = vrot.slane %v1850_v46, 7  ;;  %v1963_v46 = vshll.u32 %v7667_v22, 16 }
 0x4bb   : > { %2683 = vrot.lane.b32.xlu1 %v7680_v18, %s6026_s11  ;;  %2892 = vrot.lane.b32.xlu0 %v7825_v53, %s6031_s23 }
 0x4bc   : > { %v1965_v42 = vrot.slane %v1963_v46, 1 }
 0x4bd   : > { %v7865_v31 = vpop.permute.xlu1 %2920  ;;  %v7867_v9 = vpop.permute.xlu0 %2215 }
 0x4be   : > { %11157 = vst [vmem:[#allocation106_spill] sm:$0xff] %v7865_v31  ;;  %11158 = vst [vmem:[#allocation107_spill] sm:$0xff] %v7867_v9  ;;  %v7958_v9 = vsel %vm1651_vm9, %v7619_v44, %v11172_v58 }
 0x4bf   : > { %2753 = vrot.lane.b32.xlu1 %v7667_v22, %s6038_s10  ;;  %2731 = vrot.lane.b32.xlu0 %v7871_v8, %s6032_s24  ;;  %11173 = vst [vmem:[#allocation13_spill] sm:$0xff] %v7958_v9  ;;  %v2011_v49 = vshll.u32 %v7958_v9, 16 }
 0x4c1   : > { %v7878_v29 = vpop.permute.xlu1 %2874  ;;  %v7880_v39 = vpop.permute.xlu0 %2844 }
 0x4c2   : > { %11159 = vst [vmem:[#allocation108_spill] sm:$0xff] %v7878_v29  ;;  %11160 = vst [vmem:[#allocation109_spill] sm:$0xff] %v7880_v39  ;;  %v1855_v29 = vor.u32 %v1853_v50, %v1852_v14  ;;  %v1966_v50 = vor.u32 %v1965_v42, %v1961_v59 }
 0x4c3   : > { %2793 = vrot.lane.b32.xlu1 %v7680_v18, %s6037_s9  ;;  %2918 = vrot.lane.b32.xlu0 %v7871_v8, %s6033_s25 }
 0x4c5   : > { %v7887_v63 = vpop.permute.xlu1 %1754  ;;  %v7889_v31 = vpop.permute.xlu0 %2227 }
 0x4c6   : > { %11161 = vst [vmem:[#allocation110_spill] sm:$0xff] %v7889_v31  ;;  %v7907_v31 = vsel %vm6151_vm4, 0, %v1855_v29 }
 0x4c7   : > { %2267 = vrot.lane.b32.xlu1 %v7725_v13, %s6039_s13  ;;  %2132 = vrot.lane.b32.xlu0 %v7894_v37, %s6026_s11 }
 0x4c9   : > { %v7901_v39 = vpop.permute.xlu1 %2126  ;;  %v7903_v18 = vpop.permute.xlu0 %2836 }
 0x4ca   : > { %11164 = vst [vmem:[#allocation111_spill] sm:$0xff] %v7901_v39  ;;  %11165 = vst [vmem:[#allocation112_spill] sm:$0xff] %v7903_v18  ;;  %v7928_v18 = vsel %vm6164_vm6, %v1966_v50, 0  ;;  %v1826_v39 = vshrl.u32 %v7725_v13, 16 }
 0x4cb   : > { %2675 = vrot.lane.b32.xlu1 %v7725_v13, %s6026_s11  ;;  %2306 = vrot.lane.b32.xlu0 %v7907_v31, %s6030_s22 }
 0x4cd   : > { %v7914_v14 = vpop.permute.xlu1 %2181  ;;  %v7916_v2 = vpop.permute.xlu0 %2219 }
 0x4ce   : > { %11166 = vst [vmem:[#allocation113_spill] sm:$0xff] %v7914_v14  ;;  %11167 = vst [vmem:[#allocation114_spill] sm:$0xff] %v7916_v2 }
 0x4cf   : > { %2785 = vrot.lane.b32.xlu1 %v7725_v13, %s6037_s9  ;;  %2354 = vrot.lane.b32.xlu0 %v7894_v37, %s6031_s23 }
 0x4d1   : > { %v7922_v29 = vpop.permute.xlu1 %2300  ;;  %v7924_v46 = vpop.permute.xlu0 %2116 }
 0x4d3   : > { %2238 = vrot.lane.b32.xlu1 %v7754_v27, %s6037_s9  ;;  %2723 = vrot.lane.b32.xlu0 %v7928_v18, %s6032_s24 }
 0x4d5   : > { %v7934_v42 = vpop.permute.xlu1 %2308  ;;  %v7936_v59 = vpop.permute.xlu0 %2338 }
 0x4d6   : > { %11168 = vst [vmem:[#allocation115_spill] sm:$0xff] %v7936_v59 }
 0x4d7   : > { %2246 = vrot.lane.b32.xlu1 %v7767_v35, %s6037_s9  ;;  %2910 = vrot.lane.b32.xlu0 %v7928_v18, %s6033_s25 }
 0x4d9   : > { %v7942_v22 = vpop.permute.xlu1 %2348  ;;  %v7944_v50 = vpop.permute.xlu0 %2856 }
 0x4da   : > { %11169 = vst [vmem:[#allocation116_spill] sm:$0xff] %v7942_v22  ;;  %11170 = vst [vmem:[#allocation117_spill] sm:$0xff] %v7944_v50  ;;  %v1828_v22 = vrot.slane %v1826_v39, 7  ;;  %v1829_v50 = vshll.u32 %v7725_v13, 16 }
 0x4db   : > { %2757 = vrot.lane.b32.xlu1 %v7754_v27, %s6038_s10  ;;  %2872 = vrot.lane.b32.xlu0 %v7894_v37, %s6030_s22 }
 0x4dc   : > { %v1831_v44 = vor.u32 %v1829_v50, %v1828_v22 }
 0x4dd   : > { %v7951_v14 = vpop.permute.xlu1 %2388  ;;  %v7953_v2 = vpop.permute.xlu0 %2108 }
 0x4de   : > { %11171 = vst [vmem:[#allocation118_spill] sm:$0xff] %v7951_v14  ;;  %v6013_v14 = vld [vmem:[%s6117_s20 + $0x34] sm:$0xf]  ;;  %v7984_v13 = vsel %vm6151_vm4, 0, %v1831_v44 }
 0x4df   : > { %2765 = vrot.lane.b32.xlu1 %v7767_v35, %s6038_s10  ;;  %2124 = vrot.lane.b32.xlu0 %v7958_v9, %s6026_s11  ;;  %v7972_v32 = vsel %vm1651_vm9, %v7631_v62, %v6013_v14 }
 0x4e1   : > { %v7965_v34 = vpop.permute.xlu1 %2866  ;;  %v7967_v28 = vpop.permute.xlu0 %2163 }
 0x4e2   : > { %11174 = vst [vmem:[#allocation119_spill] sm:$0xff] %v7965_v34 }
 0x4e3   : > { %2271 = vrot.lane.b32.xlu1 %v7812_v19, %s6039_s13  ;;  %2179 = vrot.lane.b32.xlu0 %v7972_v32, %s6032_s24 }
 0x4e5   : > { %v7978_v58 = vpop.permute.xlu1 %2173  ;;  %v7980_v39 = vpop.permute.xlu0 %2330 }
 0x4e6   : > { %11175 = vst [vmem:[#allocation120_spill] sm:$0xff] %v7978_v58 }
 0x4e7   : > { %2279 = vrot.lane.b32.xlu1 %v7825_v53, %s6039_s13  ;;  %2298 = vrot.lane.b32.xlu0 %v7984_v13, %s6030_s22 }
 0x4e9   : > { %v7990_v62 = vpop.permute.xlu1 %2380  ;;  %v7992_v22 = vpop.permute.xlu0 %2370 }
 0x4ea   : > { %11176 = vst [vmem:[#allocation121_spill] sm:$0xff] %v7990_v62  ;;  %11177 = vst [vmem:[#allocation122_spill] sm:$0xff] %v7992_v22  ;;  %v1975_v22 = vshll.u32 %v7754_v27, 16 }
 0x4eb   : > { %2679 = vrot.lane.b32.xlu1 %v7812_v19, %s6026_s11  ;;  %2346 = vrot.lane.b32.xlu0 %v7958_v9, %s6031_s23 }
 0x4ec   : > { %v1977_v56 = vrot.slane %v1975_v22, 1 }
 0x4ed   : > { %v7998_v14 = vpop.permute.xlu1 %2898  ;;  %v8000_v50 = vpop.permute.xlu0 %2848 }
 0x4ee   : > { %11178 = vst [vmem:[#allocation123_spill] sm:$0xff] %v7998_v14  ;;  %11179 = vst [vmem:[#allocation124_spill] sm:$0xff] %v8000_v50  ;;  %v6014_v50 = vld [vmem:[%s6117_s20 + $0x24] sm:$0xf] }
 0x4ef   : > { %2687 = vrot.lane.b32.xlu1 %v7825_v53, %s6026_s11  ;;  %2386 = vrot.lane.b32.xlu0 %v7972_v32, %s6033_s25  ;;  %v8021_v62 = vsel %vm1651_vm9, %v7702_v47, %v6014_v50  ;;  %v1999_v47 = vshll.u32 %v7767_v35, 16  ;;  %v1973_v50 = vshrl.u32 %v7754_v27, 16 }
 0x4f1   : > { %v8006_v44 = vpop.permute.xlu1 %2745  ;;  %v8008_v34 = vpop.permute.xlu0 %2888  ;;  %v1978_v21 = vor.u32 %v1977_v56, %v1973_v50  ;;  %v2001_v61 = vrot.slane %v1999_v47, 1 }
 0x4f2   : > { %11180 = vst [vmem:[#allocation125_spill] sm:$0xff] %v8006_v44  ;;  %11181 = vst [vmem:[#allocation126_spill] sm:$0xff] %v8008_v34 }
 0x4f3   : > { %2789 = vrot.lane.b32.xlu1 %v7812_v19, %s6037_s9  ;;  %2864 = vrot.lane.b32.xlu0 %v7958_v9, %s6030_s22  ;;  %v8058_v22 = vsel %vm6164_vm6, %v1978_v21, 0 }
 0x4f5   : > { %v8014_v58 = vpop.permute.xlu1 %2932  ;;  %v8016_v14 = vpop.permute.xlu0 %2155 }
 0x4f6   : > { %11182 = vst [vmem:[#allocation127_spill] sm:$0xff] %v8014_v58  ;;  %v11184_v58 = vld [vmem:[#allocation19_spill] sm:$0xff] }
 0x4f7   : > { %2797 = vrot.lane.b32.xlu1 %v7825_v53, %s6037_s9  ;;  %2171 = vrot.lane.b32.xlu0 %v8021_v62, %s6032_s24  ;;  %v8035_v38 = vsel %vm1651_vm9, %v7694_v51, %v11184_v58  ;;  %v1997_v51 = vshrl.u32 %v7767_v35, 16  ;;  %v1838_v35 = vshrl.u32 %v7812_v19, 16 }
 0x4f9   : > { %v8028_v44 = vpop.permute.xlu1 %2320  ;;  %v8030_v34 = vpop.permute.xlu0 %2362  ;;  %v1840_v27 = vrot.slane %v1838_v35, 7 }
 0x4fa   : > { %11183 = vst [vmem:[#allocation128_spill] sm:$0xff] %v8028_v44 }
 0x4fb   : > { %2826 = vrot.lane.b32.xlu1 %v7871_v8, %s6039_s13  ;;  %2358 = vrot.lane.b32.xlu0 %v8035_v38, %s6031_s23 }
 0x4fd   : > { %v8043_v0 = vpop.permute.xlu1 %2737  ;;  %v8045_v44 = vpop.permute.xlu0 %2880 }
 0x4fe   : > { %11185 = vst [vmem:[#allocation19_spill] sm:$0xff] %v8043_v0  ;;  %11186 = vst [vmem:[#allocation129_spill] sm:$0xff] %v8045_v44  ;;  %v2002_v0 = vor.u32 %v2001_v61, %v1997_v51 }
 0x4ff   : > { %2209 = vrot.lane.b32.xlu1 %v7907_v31, %s6038_s10  ;;  %2378 = vrot.lane.b32.xlu0 %v8021_v62, %s6033_s25 }
 0x500   : > { %v8070_v50 = vsel %vm6164_vm6, %v2002_v0, 0 }
 0x501   : > { %v8052_v8 = vpop.permute.xlu1 %2924  ;;  %v8054_v58 = vpop.permute.xlu0 %2112 }
 0x502   : > { %11187 = vst [vmem:[#allocation130_spill] sm:$0xff] %v8052_v8 }
 0x503   : > { %2258 = vrot.lane.b32.xlu1 %v7894_v37, %s6037_s9  ;;  %2727 = vrot.lane.b32.xlu0 %v8058_v22, %s6032_s24 }
 0x505   : > { %v8064_v56 = vpop.permute.xlu1 %2312  ;;  %v8066_v47 = vpop.permute.xlu0 %2120 }
 0x506   : > { %11188 = vst [vmem:[#allocation131_spill] sm:$0xff] %v8064_v56  ;;  %11189 = vst [vmem:[#allocation132_spill] sm:$0xff] %v8066_v47  ;;  %v1865_v56 = vshll.u32 %v7825_v53, 16 }
 0x507   : > { %2777 = vrot.lane.b32.xlu1 %v7894_v37, %s6038_s10  ;;  %2735 = vrot.lane.b32.xlu0 %v8070_v50, %s6032_s24 }
 0x509   : > { %v8076_v21 = vpop.permute.xlu1 %2749  ;;  %v8078_v61 = vpop.permute.xlu0 %2334 }
 0x50a   : > { %11190 = vst [vmem:[#allocation133_spill] sm:$0xff] %v8076_v21  ;;  %11191 = vst [vmem:[#allocation134_spill] sm:$0xff] %v8078_v61 }
 0x50b   : > { %2818 = vrot.lane.b32.xlu1 %v7928_v18, %s6039_s13  ;;  %2914 = vrot.lane.b32.xlu0 %v8058_v22, %s6033_s25 }
 0x50d   : > { %v8084_v51 = vpop.permute.xlu1 %2324  ;;  %v8086_v0 = vpop.permute.xlu0 %2342 }
 0x50e   : > { %11192 = vst [vmem:[#allocation135_spill] sm:$0xff] %v8084_v51  ;;  %11193 = vst [vmem:[#allocation136_spill] sm:$0xff] %v8086_v0  ;;  %v1862_v51 = vshrl.u32 %v7825_v53, 16  ;;  %v11199_v0 = vld [vmem:[#allocation15_spill] sm:$0xff] }
 0x50f   : > { %2201 = vrot.lane.b32.xlu1 %v7984_v13, %s6038_s10  ;;  %2922 = vrot.lane.b32.xlu0 %v8070_v50, %s6033_s25 }
 0x511   : > { %v8092_v8 = vpop.permute.xlu1 %2741  ;;  %v8094_v21 = vpop.permute.xlu0 %2852 }
 0x512   : > { %11194 = vst [vmem:[#allocation137_spill] sm:$0xff] %v8092_v8  ;;  %11195 = vst [vmem:[#allocation138_spill] sm:$0xff] %v8094_v21  ;;  %v1841_v8 = vshll.u32 %v7812_v19, 16 }
 0x513   : > { %2250 = vrot.lane.b32.xlu1 %v7958_v9, %s6037_s9  ;;  %2896 = vrot.lane.b32.xlu0 %v8021_v62, %s6031_s23 }
 0x514   : > { %v1843_v35 = vor.u32 %v1841_v8, %v1840_v27 }
 0x515   : > { %v8101_v18 = vpop.permute.xlu1 %2928  ;;  %v8103_v44 = vpop.permute.xlu0 %2860 }
 0x516   : > { %11196 = vst [vmem:[#allocation139_spill] sm:$0xff] %v8101_v18  ;;  %11197 = vst [vmem:[#allocation140_spill] sm:$0xff] %v8103_v44  ;;  %v8118_v18 = vsel %vm1651_vm9, %v7773_v52, %v11199_v0  ;;  %v1864_v44 = vrot.slane %v1862_v51, 7  ;;  %v8131_v59 = vsel %vm6151_vm4, 0, %v1843_v35  ;;  %v6015_v35 = vld [vmem:[%s6117_s20 + $0x3c] sm:$0xf] }
 0x517   : > { %2291 = vrot.lane.b32.xlu1 %v7972_v32, %s6039_s13  ;;  %2876 = vrot.lane.b32.xlu0 %v8035_v38, %s6030_s22  ;;  %11200 = vst [vmem:[#allocation15_spill] sm:$0xff] %v8118_v18 }
 0x518   : > { %v1867_v52 = vor.u32 %v1865_v56, %v1864_v44 }
 0x519   : > { %v8111_v21 = vpop.permute.xlu1 %2316  ;;  %v8113_v47 = vpop.permute.xlu0 %2159 }
 0x51a   : > { %11198 = vst [vmem:[#allocation141_spill] sm:$0xff] %v8111_v21  ;;  %v8143_v53 = vsel %vm6151_vm4, 0, %v1867_v52  ;;  %v8164_v52 = vsel %vm1651_vm9, %v7781_v11, %v6015_v35 }
 0x51b   : > { %2699 = vrot.lane.b32.xlu1 %v7972_v32, %s6026_s11  ;;  %2128 = vrot.lane.b32.xlu0 %v8118_v18, %s6026_s11  ;;  %11204 = vst [vmem:[#allocation145_spill] sm:$0xff] %v8143_v53 }
 0x51d   : > { %v8125_v19 = vpop.permute.xlu1 %2242  ;;  %v8127_v21 = vpop.permute.xlu0 %2167 }
 0x51e   : > { %11201 = vst [vmem:[#allocation142_spill] sm:$0xff] %v8127_v21 }
 0x51f   : > { %2769 = vrot.lane.b32.xlu1 %v7958_v9, %s6038_s10  ;;  %2302 = vrot.lane.b32.xlu0 %v8131_v59, %s6030_s22 }
 0x521   : > { %v8137_v27 = vpop.permute.xlu1 %2761  ;;  %v8139_v8 = vpop.permute.xlu0 %2366 }
 0x522   : > { %11202 = vst [vmem:[#allocation143_spill] sm:$0xff] %v8137_v27  ;;  %11203 = vst [vmem:[#allocation144_spill] sm:$0xff] %v8139_v8  ;;  %v2035_v8 = vshll.u32 %v7894_v37, 16 }
 0x523   : > { %2809 = vrot.lane.b32.xlu1 %v7972_v32, %s6037_s9  ;;  %2310 = vrot.lane.b32.xlu0 %v8143_v53, %s6030_s22 }
 0x525   : > { %v8149_v44 = vpop.permute.xlu1 %2234  ;;  %v8151_v56 = vpop.permute.xlu0 %2374 }
 0x526   : > { %11205 = vst [vmem:[#allocation146_spill] sm:$0xff] %v8151_v56  ;;  %v5993_v56 = vld [vmem:[%s10852_s4] sm:$0xff]  }
 0x527   : > { %2904 = vrot.lane.b32.xlu1 %v7972_v32, %s6031_s23  ;;  %2350 = vrot.lane.b32.xlu0 %v8118_v18, %s6031_s23 }
 0x528   : > { %5811 = vmatprep.subr.bf16.mxu1 %v5993_v56 }
 0x529   : > { %v8157_v51 = vpop.permute.xlu1 %2275  ;;  %v8159_v0 = vpop.permute.xlu0 %2884  ;;  %5812 = vmatpush3.bf16.msra.mxu1 %v5993_v56 }
 0x52a   : > { %11206 = vst [vmem:[#allocation147_spill] sm:$0xff] %v8159_v0  ;;  %v6016_v0 = vld [vmem:[%s6117_s20 + $0x2c] sm:$0xf] }
 0x52b   : > { %2262 = vrot.lane.b32.xlu1 %v8035_v38, %s6037_s9  ;;  %2390 = vrot.lane.b32.xlu0 %v8164_v52, %s6033_s25 }
 0x52d   : > { %v8170_v27 = vpop.permute.xlu1 %2683  ;;  %v8172_v21 = vpop.permute.xlu0 %2892 }
 0x52e   : > { %11207 = vst [vmem:[#allocation148_spill] sm:$0xff] %v8170_v27  ;;  %11208 = vst [vmem:[#allocation149_spill] sm:$0xff] %v8172_v21  ;;  %v5994_v21 = vld [vmem:[%s10852_s4 + $0x8] sm:$0xff]   ;;  %v8191_v27 = vsel %vm1651_vm9, %v7887_v63, %v6016_v0  ;;  %v1898_v63 = vshrl.u32 %v7972_v32, 16  ;;  %v2037_v0 = vrot.slane %v2035_v8, 1 }
 0x52f   : > { %2283 = vrot.lane.b32.xlu1 %v8021_v62, %s6039_s13  ;;  %2868 = vrot.lane.b32.xlu0 %v8118_v18, %s6030_s22 }
 0x530   : > { %5813 = vmatprep.subr.bf16.mxu1 %v5994_v21  ;;  %v1900_v61 = vrot.slane %v1898_v63, 7  ;;  %v2038_v8 = vor.u32 %v2037_v0, %v2033_v60  ;;  %v5997_v60 = vld [vmem:[%s10852_s4 + $0x20] ss:$0 sps:$4 sm:$0xff]  }
 0x531   : > { %v8181_v11 = vpop.permute.xlu1 %2753  ;;  %v8183_v35 = vpop.permute.xlu0 %2731  ;;  %5814 = vmatpush3.bf16.msra.mxu1 %v5994_v21  ;;  %v5996_v21 = vld [vmem:[%s10852_s4 + $0x18] sm:$0xff]  }
 0x532   : > { %11209 = vst [vmem:[#allocation150_spill] sm:$0xff] %v8181_v11  ;;  %11210 = vst [vmem:[#allocation151_spill] sm:$0xff] %v8183_v35  ;;  %v5995_v11 = vld [vmem:[%s10852_s4 + $0x10] sm:$0xff]   ;;  %v8233_v0 = vsel %vm6164_vm6, %v2038_v8, 0 }
 0x533   : > { %2691 = vrot.lane.b32.xlu1 %v8021_v62, %s6026_s11  ;;  %2175 = vrot.lane.b32.xlu0 %v8191_v27, %s6032_s24 }
 0x534   : > { %5815 = vmatprep.subr.bf16.mxu1 %v5995_v11 }
 0x535   : > { %v8198_v35 = vpop.permute.xlu1 %2793  ;;  %v8200_v56 = vpop.permute.xlu0 %2918  ;;  %5816 = vmatpush3.bf16.msra.mxu1 %v5995_v11 }
 0x536   : > { %11211 = vst [vmem:[#allocation152_spill] sm:$0xff] %v8198_v35  ;;  %11212 = vst [vmem:[#allocation153_spill] sm:$0xff] %v8200_v56  ;;  %5817 = vmatprep.subr.bf16.mxu1 %v5996_v21 }
 0x537   : > { %2822 = vrot.lane.b32.xlu1 %v8058_v22, %s6039_s13  ;;  %2382 = vrot.lane.b32.xlu0 %v8191_v27, %s6033_s25  ;;  %v1901_v22 = vshll.u32 %v7972_v32, 16  ;;  %v3368_v32 = vsel %vm369_vm0, %v5997_v60, 0 }
 0x539   : > { %v8211_v35 = vpop.permute.xlu1 %2267  ;;  %v8213_v56 = vpop.permute.xlu0 %2132  ;;  %5818 = vmatpush3.bf16.msra.mxu1 %v5996_v21  ;;  %v1903_v63 = vor.u32 %v1901_v22, %v1900_v61  ;;  %v2009_v21 = vshrl.u32 %v7958_v9, 16  ;;  %v1874_v22 = vshrl.u32 %v8021_v62, 16 }
 0x53a   : > { %11213 = vst [vmem:[#allocation154_spill] sm:$0xff] %v8213_v56  ;;  %5892 = vmatprep.subr.msk.bf16.mxu1 %vm369_vm0, %v5997_v60  ;;  %vm2640_vm0 = vcmask 523264  }
 0x53b   : > { %2830 = vrot.lane.b32.xlu1 %v8070_v50, %s6039_s13  ;;  %2900 = vrot.lane.b32.xlu0 %v8191_v27, %s6031_s23  ;;  %v2013_v50 = vrot.slane %v2011_v49, 1  ;;  %v8248_v49 = vsel %vm6151_vm4, 0, %v1903_v63  ;;  %v1910_v63 = vshrl.u32 %v8164_v52, 16 }
 0x53c   : > { %11217 = vst [vmem:[#allocation158_spill] sm:$0xff] %v8248_v49 }
 0x53d   : > { %v8224_v37 = vpop.permute.xlu1 %2675  ;;  %v8226_v11 = vpop.permute.xlu0 %2306  ;;  %5820 = vmatpush3.bf16.msra.mxu1 %v3368_v32  ;;  %v2014_v8 = vor.u32 %v2013_v50, %v2009_v21  ;;  %v1877_v50 = vshll.u32 %v8021_v62, 16  ;;  %v1912_v56 = vrot.slane %v1910_v63, 7 }
 0x53e   : > { %11214 = vst [vmem:[#allocation155_spill] sm:$0xff] %v8224_v37 }
 0x53f   : > { %2801 = vrot.lane.b32.xlu1 %v8021_v62, %s6037_s9  ;;  %2747 = vrot.lane.b32.xlu0 %v8233_v0, %s6032_s24  ;;  %v8261_v32 = vsel %vm6164_vm6, %v2014_v8, 0  ;;  %v2023_v8 = vshll.u32 %v8118_v18, 16 }
 0x541   : > { %v8242_v37 = vpop.permute.xlu1 %2785  ;;  %v8244_v61 = vpop.permute.xlu0 %2354  ;;  %v2025_v63 = vrot.slane %v2023_v8, 1 }
 0x542   : > { %11215 = vst [vmem:[#allocation156_spill] sm:$0xff] %v8242_v37  ;;  %11216 = vst [vmem:[#allocation157_spill] sm:$0xff] %v8244_v61  ;;  %v1876_v61 = vrot.slane %v1874_v22, 7  ;;  %v1913_v22 = vshll.u32 %v8164_v52, 16 }
 0x543   : > { %2781 = vrot.lane.b32.xlu1 %v8035_v38, %s6038_s10  ;;  %2322 = vrot.lane.b32.xlu0 %v8248_v49, %s6030_s22 }
 0x545   : > { %v8255_v9 = vpop.permute.xlu1 %2238  ;;  %v8257_v60 = vpop.permute.xlu0 %2723 }
 0x546   : > { %11218 = vst [vmem:[#allocation159_spill] sm:$0xff] %v8257_v60  ;;  %v1879_v60 = vor.u32 %v1877_v50, %v1876_v61  ;;  %v1915_v61 = vor.u32 %v1913_v22, %v1912_v56  ;;  %v2021_v50 = vshrl.u32 %v8118_v18, 16 }
 0x547   : > { %2205 = vrot.lane.b32.xlu1 %v8131_v59, %s6038_s10  ;;  %2739 = vrot.lane.b32.xlu0 %v8261_v32, %s6032_s24 }
 0x548   : > { %v8285_v62 = vsel %vm6151_vm4, 0, %v1879_v60  ;;  %v1886_v60 = vshrl.u32 %v8191_v27, 16 }
 0x549   : > { %v8269_v21 = vpop.permute.xlu1 %2246  ;;  %v8271_v37 = vpop.permute.xlu0 %2910 }
 0x54a   : > { %11219 = vst [vmem:[#allocation160_spill] sm:$0xff] %v8271_v37 }
 0x54b   : > { %2213 = vrot.lane.b32.xlu1 %v8143_v53, %s6038_s10  ;;  %2926 = vrot.lane.b32.xlu0 %v8261_v32, %s6033_s25 }
 0x54d   : > { %v8279_v57 = vpop.permute.xlu1 %2757  ;;  %v8281_v54 = vpop.permute.xlu0 %2872 }
 0x54e   : > { %11220 = vst [vmem:[#allocation161_spill] sm:$0xff] %v8279_v57  ;;  %11221 = vst [vmem:[#allocation162_spill] sm:$0xff] %v8281_v54  ;;  %v1952_v54 = vsel %vm6151_vm4, 0, %v1915_v61  ;;  %v2026_v57 = vor.u32 %v2025_v63, %v2021_v50  ;;  %v1889_v61 = vshll.u32 %v8191_v27, 16 }
 0x54f   : > { %2254 = vrot.lane.b32.xlu1 %v8118_v18, %s6037_s9  ;;  %2314 = vrot.lane.b32.xlu0 %v8285_v62, %s6030_s22 }
 0x550   : > { %v8308_v22 = vsel %vm6164_vm6, %v2026_v57, 0 }
 0x551   : > { %v8292_v37 = vpop.permute.xlu1 %2765  ;;  %v8294_v53 = vpop.permute.xlu0 %2124 }
 0x552   : > { %11222 = vst [vmem:[#allocation163_spill] sm:$0xff] %v8292_v37  ;;  %11223 = vst [vmem:[#allocation164_spill] sm:$0xff] %v8294_v53  ;;  %v1888_v37 = vrot.slane %v1886_v60, 7 }
 0x553   : > { %2295 = vrot.lane.b32.xlu1 %v8164_v52, %s6039_s13  ;;  %2326 = vrot.lane.b32.xlu0 %v1952_v54, %s6030_s22 }
 0x554   : > { %v1891_v53 = vor.u32 %v1889_v61, %v1888_v37 }
 0x555   : > { %v8302_v56 = vpop.permute.xlu1 %2271  ;;  %v8304_v8 = vpop.permute.xlu0 %2179 }
 0x556   : > { %11224 = vst [vmem:[#allocation165_spill] sm:$0xff] %v8304_v8  ;;  %v2047_v8 = vshll.u32 %v8035_v38, 16 }
 0x557   : > { %2773 = vrot.lane.b32.xlu1 %v8118_v18, %s6038_s10  ;;  %2743 = vrot.lane.b32.xlu0 %v8308_v22, %s6032_s24  ;;  %v8327_v18 = vsel %vm6151_vm4, 0, %v1891_v53  ;;  %v2045_v53 = vshrl.u32 %v8035_v38, 16 }
 0x559   : > { %v8315_v63 = vpop.permute.xlu1 %2279  ;;  %v2299_v50 = vpop.permute.xlu0 %2298 }
 0x55a   : > { %11225 = vst [vmem:[#allocation166_spill] sm:$0xff] %v8315_v63  ;;  %v2049_v63 = vrot.slane %v2047_v8, 1 }
 0x55b   : > { %2813 = vrot.lane.b32.xlu1 %v8164_v52, %s6037_s9  ;;  %2930 = vrot.lane.b32.xlu0 %v8308_v22, %s6033_s25 }
 0x55d   : > { %v8321_v57 = vpop.permute.xlu1 %2679  ;;  %v8323_v60 = vpop.permute.xlu0 %2346 }
 0x55e   : > { %11226 = vst [vmem:[#allocation167_spill] sm:$0xff] %v8321_v57  ;;  %11227 = vst [vmem:[#allocation168_spill] sm:$0xff] %v8323_v60  ;;  %v2050_v60 = vor.u32 %v2049_v63, %v2045_v53 }
 0x55f   : > { %2287 = vrot.lane.b32.xlu1 %v8191_v27, %s6039_s13  ;;  %2318 = vrot.lane.b32.xlu0 %v8327_v18, %s6030_s22  ;;  %s6040_s22 = smov 28  }
 0x561   : > { %v8334_v37 = vpop.permute.xlu1 %2687  ;;  %v8336_v61 = vpop.permute.xlu0 %2386 }
 0x562   : > { %11228 = vst [vmem:[#allocation169_spill] sm:$0xff] %v8334_v37  ;;  %11229 = vst [vmem:[#allocation170_spill] sm:$0xff] %v8336_v61 }
 0x563   : > { %2695 = vrot.lane.b32.xlu1 %v8191_v27, %s6026_s11  ;;  %2906 = vrot.lane.b32.xlu0 %v7458_v45, %s6031_s23  ;;  %v2087_v45 = vsel %vm6164_vm6, %v2050_v60, 0  ;;  %v11235_v60 = vld [vmem:[#allocation26_spill] sm:$0xff] }
 0x564   : > { %v5921_v12 = vunpack.i.l.bf16 %v11235_v60 }
 0x565   : > { %v8343_v16 = vpop.permute.xlu1 %2789  ;;  %v8345_v57 = vpop.permute.xlu0 %2864 }
 0x566   : > { %11230 = vst [vmem:[#allocation171_spill] sm:$0xff] %v8343_v16  ;;  %11231 = vst [vmem:[#allocation172_spill] sm:$0xff] %v8345_v57 }
 0x567   : > { %2805 = vrot.lane.b32.xlu1 %v8191_v27, %s6037_s9  ;;  %2934 = vrot.lane.b32.xlu0 %v8233_v0, %s6033_s25 }
 0x569   : > { %v8351_v8 = vpop.permute.xlu1 %2797  ;;  %v8353_v37 = vpop.permute.xlu0 %2171 }
 0x56a   : > { %11232 = vst [vmem:[#allocation173_spill] sm:$0xff] %v8351_v8  ;;  %v11238_v8 = vld [vmem:[#allocation24_spill] sm:$0xff] }
 0x56b   : > { %2842 = vrot.lane.b32.xlu1 %v8233_v0, %s6039_s13  ;;  %2938 = vrot.lane.b32.xlu0 %v2087_v45, %s6033_s25 }
 0x56d   : > { %v8360_v38 = vpop.permute.xlu1 %2826  ;;  %v8362_v63 = vpop.permute.xlu0 %2358 }
 0x56e   : > { %11233 = vst [vmem:[#allocation174_spill] sm:$0xff] %v8360_v38  ;;  %11234 = vst [vmem:[#allocation175_spill] sm:$0xff] %v8362_v63  ;;  %v11239_v38 = vld [vmem:[#allocation3_spill] sm:$0xff] }
 0x56f   : > { %2225 = vrot.lane.b32.xlu1 %v8248_v49, %s6038_s10  ;;  %v2396_v63 = vsel %vm356_vm1, %v11239_v38, %v11238_v8 }
 0x570   : > { %v2444_v16 = vsel %vm2442_vm10, %v2396_v63, %v5921_v12  ;;  %v2399_v12 = vsel %vm356_vm1, %v7266_v6, %v7323_v33 }
 0x571   : > { %v8366_v27 = vpop.permute.xlu1 %2209  ;;  %v8368_v53 = vpop.permute.xlu0 %2378  ;;  %v2477_v49 = vsel %vm2475_vm11, %v2444_v16, %v7609_v41  ;;  %v2446_v41 = vsel %vm2442_vm10, %v2399_v12, %v7397_v4 }
 0x573   : > { %2834 = vrot.lane.b32.xlu1 %v8261_v32, %s6039_s13 }
 0x575   : > { %v8373_v57 = vpop.permute.xlu1 %2258  ;;  %v8375_v0 = vpop.permute.xlu0 %2727 }
 0x576   : > { %11236 = vst [vmem:[#allocation26_spill] sm:$0xff] %v8373_v57  ;;  %11237 = vst [vmem:[#allocation176_spill] sm:$0xff] %v8375_v0  ;;  %v2510_v0 = vsel %vm2508_vm12, %v2477_v49, %v7325_v23 }
 0x577   : > { %2217 = vrot.lane.b32.xlu1 %v8285_v62, %s6038_s10  ;;  %v2543_v16 = vsel %vm2541_vm13, %v2510_v0, %v7387_v36 }
 0x578   : > { %v2576_v23 = vsel %vm2574_vm14, %v2543_v16, %v2299_v50 }
 0x579   : > { %v8383_v61 = vpop.permute.xlu1 %2777  ;;  %v8385_v32 = vpop.permute.xlu0 %2735  ;;  %v2609_v6 = vsel %vm2607_vm15, %v2576_v23, %v7980_v39 }
 0x57a   : > { %v2642_v39 = vsel %vm2640_vm0, %v2609_v6, %v8030_v34 }
 0x57b   : > { %2846 = vrot.lane.b32.xlu1 %v2087_v45, %s6039_s13 }
 0x57d   : > { %v8392_v57 = vpop.permute.xlu1 %2818  ;;  %v8394_v8 = vpop.permute.xlu0 %2914 }
 0x57f   : > { %2229 = vrot.lane.b32.xlu1 %v1952_v54, %s6038_s10 }
 0x581   : > { %v2202_v49 = vpop.permute.xlu1 %2201  ;;  %v8405_v45 = vpop.permute.xlu0 %2922 }
 0x582   : > { %v2479_v63 = vsel %vm2475_vm11, %v2446_v41, %v2202_v49 }
 0x583   : > { %v2512_v54 = vsel %vm2508_vm12, %v2479_v63, %v8149_v44  ;;  %2838 = vrot.lane.b32.xlu1 %v8308_v22, %s6039_s13  ;;  %s6041_s13 = smov 20  }
 0x584   : > { %v2545_v33 = vsel %vm2541_vm13, %v2512_v54, %v8211_v35 }
 0x585   : > { %v8416_v36 = vpop.permute.xlu1 %2250  ;;  %v8418_v4 = vpop.permute.xlu0 %2896  ;;  %v2578_v50 = vsel %vm2574_vm14, %v2545_v33, %v7922_v29 }
 0x586   : > { %v2611_v44 = vsel %vm2607_vm15, %v2578_v50, %v7463_v17  ;;  %v2411_v50 = vsel %vm356_vm1, %v7218_v30, %v7268_v1 }
 0x587   : > { %2221 = vrot.lane.b32.xlu1 %v8327_v18, %s6038_s10  ;;  %v2644_v35 = vsel %vm2640_vm0, %v2611_v44, %v7520_v3  ;;  %v11241_v3 = vmov 0  }
 0x588   : > { %v5678_v22 = vcombine.low %v2642_v39, %v2644_v35  ;;  %v2454_v39 = vsel %vm2442_vm10, %v2411_v50, %v7337_v15  ;;  %v2402_v35 = vsel %vm356_vm1, %v7984_v13, %v7953_v2 }
 0x589   : > { %v8430_v0 = vpop.permute.xlu1 %2291  ;;  %v8432_v12 = vpop.permute.xlu0 %2876  ;;  %v2487_v30 = vsel %vm2475_vm11, %v2454_v39, %v8366_v27 }
 0x58a   : > { %11240 = vst [vmem:[#allocation177_spill] sm:$0xff] %v8432_v12  ;;  %5821 = vmatprep.mubr.msk.bf16.mxu1 %vm3318_vm2, %v5678_v22  ;;  %v2408_v12 = vsel %vm356_vm1, %v8131_v59, %v8054_v58  ;;  %v2520_v13 = vsel %vm2508_vm12, %v2487_v30, %v8125_v19  ;;  %v11247_v30 = vld [vmem:[#allocation134_spill] sm:$0xff] }
 0x58b   : > { %2908 = vrot.lane.b32.xlu1 %v8164_v52, %s6031_s23  ;;  %v2452_v1 = vsel %vm2442_vm10, %v2408_v12, %v8113_v47  ;;  %v2553_v27 = vsel %vm2541_vm13, %v2520_v13, %v8157_v51  ;;  %v11249_v13 = vld [vmem:[#allocation115_spill] sm:$0xff] }
 0x58c   : > { %v2485_v59 = vsel %vm2475_vm11, %v2452_v1, %v7554_v24  ;;  %v2586_v51 = vsel %vm2574_vm14, %v2553_v27, %v7934_v42  ;;  %v11248_v1 = vld [vmem:[#allocation10_spill] sm:$0xff] }
 0x58d   : > { %v8437_v17 = vpop.permute.xlu1 %2699  ;;  %v8441_v34 = vpop.permute.xlu0 %2128  ;;  %v2518_v24 = vsel %vm2508_vm12, %v2485_v59, %v7297_v5 }
 0x58f   : > { %2936 = vrot.lane.b32.xlu1 %v7587_v10, %s6033_s25 }
 0x591   : > { %v8443_v29 = vpop.permute.xlu1 %2769  ;;  %v2303_v41 = vpop.permute.xlu0 %2302 }
 0x593   : > { %3963 = vrot.lane.b32.xlu1 %v11241_v3, %s6028_s21 }
 0x595   : > { %v8447_v16 = vpop.permute.xlu1 %2809  ;;  %v8453_v52 = vpop.permute.xlu0 %2310 }
 0x597   : > { %4184 = vrot.lane.b32.xlu1 %v11239_v38, %s6038_s10  ;;  %v2448_v38 = vsel %vm2442_vm10, %v2402_v35, %v8016_v14  ;;  %v11243_v14 = vld [vmem:[#allocation5_spill] sm:$0xff]  ;;  %v11246_v35 = vld [vmem:[#allocation48_spill] sm:$0xff] }
 0x598   : > { %v2481_v2 = vsel %vm2475_vm11, %v2448_v38, %v7741_v26  ;;  %v2414_v26 = vsel %vm356_vm1, %v7907_v31, %v7924_v46  ;;  %v2405_v38 = vsel %vm356_vm1, %v7417_v25, %v7437_v43  ;;  %v2551_v31 = vsel %vm2541_vm13, %v2518_v24, %v7339_v40  ;;  %v11245_v40 = vld [vmem:[#allocation49_spill] sm:$0xff] }
 0x599   : > { %v8451_v23 = vpop.permute.xlu1 %2904  ;;  %v8459_v63 = vpop.permute.xlu0 %2350  ;;  %v2514_v47 = vsel %vm2508_vm12, %v2481_v2, %v7426_v55  ;;  %v2456_v19 = vsel %vm2442_vm10, %v2414_v26, %v7967_v28  ;;  %v2450_v50 = vsel %vm2442_vm10, %v2405_v38, %v7500_v7  ;;  %v2584_v25 = vsel %vm2574_vm14, %v2551_v31, %v8226_v11  ;;  %v11244_v7 = vld [vmem:[#allocation63_spill] sm:$0xff]  ;;  %v11252_v38 = vld [vmem:[#allocation29_spill] sm:$0xff] }
 0x59a   : > { %11242 = vst [vmem:[#allocation178_spill] sm:$0xff] %v8451_v23  ;;  %v2547_v55 = vsel %vm2541_vm13, %v2514_v47, %v7472_v20  ;;  %v2489_v28 = vsel %vm2475_vm11, %v2456_v19, %v7749_v48  ;;  %v2619_v39 = vsel %vm2607_vm15, %v2586_v51, %v11244_v7  ;;  %v2617_v59 = vsel %vm2607_vm15, %v2584_v25, %v11249_v13  ;;  %v11251_v47 = vld [vmem:[#allocation68_spill] sm:$0xff]  ;;  %v11256_v25 = vld [vmem:[#allocation122_spill] sm:$0xff] }
 0x59b   : > { %4216 = vrot.lane.b32.xlu1 %v11241_v3, %s6040_s22  ;;  %v2580_v5 = vsel %vm2574_vm14, %v2547_v55, %v2303_v41  ;;  %v2417_v41 = vsel %vm356_vm1, %v11246_v35, %v11245_v40  ;;  %v11253_v55 = vld [vmem:[#allocation37_spill] sm:$0xff]  ;;  %v11259_v35 = vld [vmem:[#allocation166_spill] sm:$0xff] }
 0x59c   : > { %v2613_v48 = vsel %vm2607_vm15, %v2580_v5, %v11247_v30  ;;  %v2458_v2 = vsel %vm2442_vm10, %v2417_v41, %v11248_v1 }
 0x59d   : > { %v8455_v49 = vpop.permute.xlu1 %2262  ;;  %v8463_v6 = vpop.permute.xlu0 %2390 }
 0x59f   : > { %4248 = vrot.lane.b32.xlu1 %v11241_v3, %s6037_s9  ;;  %v11296_v3 = vld [vmem:[#allocation58_spill] sm:$0xff] }
 0x5a1   : > { %v8457_v10 = vpop.permute.xlu1 %2283  ;;  %v8479_v22 = vpop.permute.xlu0 %2868 }
 0x5a3   : > { %4568 = vrot.lane.b32.xlu1 %v11243_v14, %s6026_s11  ;;  %v11297_v14 = vld [vmem:[#allocation12_spill] sm:$0xff] }
 0x5a5   : > { %v8461_v54 = vpop.permute.xlu1 %2691  ;;  %v8502_v58 = vpop.permute.xlu0 %2175 }
 0x5a9   : > { %v8465_v33 = vpop.permute.xlu1 %2822  ;;  %v8533_v43 = vpop.permute.xlu0 %2382 }
 0x5ad   : > { %v8472_v44 = vpop.permute.xlu1 %2830  ;;  %v8570_v40 = vpop.permute.xlu0 %2900 }
 0x5ae   : > { %11258 = vst [vmem:[#allocation63_spill] sm:$0xff] %v8570_v40 }
 0x5b1   : > { %v8492_v15 = vpop.permute.xlu1 %2801 }
 0x5b5   : > { %v8508_v12 = vpop.permute.xlu1 %2781 }
 0x5b9   : > { %v2206_v46 = vpop.permute.xlu1 %2205 }
 0x5ba   : > { %v2483_v42 = vsel %vm2475_vm11, %v2450_v50, %v2206_v46  ;;  %v11254_v50 = vld [vmem:[#allocation144_spill] sm:$0xff] }
 0x5bb   : > { %v2516_v20 = vsel %vm2508_vm12, %v2483_v42, %v8255_v9  ;;  %v11250_v9 = vld [vmem:[#allocation8_spill] sm:$0xff]  ;;  %v2646_v31 = vsel %vm2640_vm0, %v2613_v48, %v11254_v50  ;;  %v2650_v42 = vsel %vm2640_vm0, %v2617_v59, %v11256_v25  ;;  %v11260_v48 = vld [vmem:[#allocation131_spill] sm:$0xff] }
 0x5bc   : > { %v2549_v11 = vsel %vm2541_vm13, %v2516_v20, %v8302_v56  ;;  %v2522_v27 = vsel %vm2508_vm12, %v2489_v28, %v11250_v9  ;;  %v2652_v56 = vsel %vm2640_vm0, %v2619_v39, %v11253_v55  ;;  %v11255_v46 = vld [vmem:[#allocation60_spill] sm:$0xff]  ;;  %v11257_v20 = vld [vmem:[#allocation50_spill] sm:$0xff] }
 0x5bd   : > { %v2582_v26 = vsel %vm2574_vm14, %v2549_v11, %v11251_v47  ;;  %v2214_v24 = vpop.permute.xlu1 %2213  ;;  %v2555_v7 = vsel %vm2541_vm13, %v2522_v27, %v11257_v20  ;;  %v5680_v1 = vcombine.low %v2650_v42, %v2652_v56  ;;  %v11262_v59 = vld [vmem:[#allocation136_spill] sm:$0xff]  ;;  %v11266_v20 = vld [vmem:[#allocation145_spill] sm:$0xff] }
 0x5be   : > { %v2491_v19 = vsel %vm2475_vm11, %v2458_v2, %v2214_v24  ;;  %v2615_v51 = vsel %vm2607_vm15, %v2582_v26, %v11252_v38  ;;  %v2588_v30 = vsel %vm2574_vm14, %v2555_v7, %v8453_v52  ;;  %v11261_v2 = vld [vmem:[#allocation82_spill] sm:$0xff]  ;;  %v11263_v47 = vld [vmem:[#allocation96_spill] sm:$0xff]  ;;  %v8590_v26 = vpop.permute.xlu0 %2747 }
 0x5bf   : > { %v2524_v5 = vsel %vm2508_vm12, %v2491_v19, %v8269_v21  ;;  %v2648_v28 = vsel %vm2640_vm0, %v2615_v51, %v11255_v46  ;;  %v2621_v9 = vsel %vm2607_vm15, %v2588_v30, %v11262_v59  ;;  %v11264_v24 = vld [vmem:[#allocation146_spill] sm:$0xff]  ;;  %v11265_v42 = vld [vmem:[#allocation132_spill] sm:$0xff] }
 0x5c0   : > { %v2557_v39 = vsel %vm2541_vm13, %v2524_v5, %v11259_v35  ;;  %v5679_v41 = vcombine.low %v2646_v31, %v2648_v28  ;;  %v2654_v19 = vsel %vm2640_vm0, %v2621_v9, %v11264_v24  ;;  %v2420_v7 = vsel %vm356_vm1, %v11266_v20, %v11265_v42  ;;  %v11270_v9 = vld [vmem:[#allocation78_spill] sm:$0xff]  ;;  %v11272_v24 = vld [vmem:[#allocation75_spill] sm:$0xff] }
 0x5c1   : > { %v2590_v21 = vsel %vm2574_vm14, %v2557_v39, %v11260_v48  ;;  %v8578_v11 = vpop.permute.xlu1 %2254  ;;  %v11267_v39 = vld [vmem:[#allocation142_spill] sm:$0xff]  ;;  %v11268_v48 = vld [vmem:[#allocation107_spill] sm:$0xff] }
 0x5c2   : > { %5822 = vmatmul.mubr.msk.bf16.vlgmr.msra.gmra.mrb[0].mxu1 %vm3318_vm2, %v5679_v41  ;;  %v2623_v13 = vsel %vm2607_vm15, %v2590_v21, %v11261_v2  ;;  %v8597_v55 = vpop.permute.xlu0 %2322  ;;  %v2460_v41 = vsel %vm2442_vm10, %v2420_v7, %v11267_v39  ;;  %v11269_v2 = vld [vmem:[#allocation59_spill] sm:$0xff] }
 0x5c3   : > { %5825 = vmatprep.mubr.msk.bf16.mxu1 %vm3318_vm2, %v5680_v1  ;;  %v2656_v52 = vsel %vm2640_vm0, %v2623_v13, %v11263_v47  ;;  %v2493_v21 = vsel %vm2475_vm11, %v2460_v41, %v11268_v48  ;;  %v11271_v47 = vld [vmem:[#allocation56_spill] sm:$0xff] }
 0x5c4   : > { %v5681_v38 = vcombine.low %v2654_v19, %v2656_v52  ;;  %v2526_v13 = vsel %vm2508_vm12, %v2493_v21, %v11269_v2  ;;  %v2423_v52 = vsel %vm356_vm1, %v11271_v47, %v11270_v9  ;;  %v11274_v21 = vld [vmem:[#allocation168_spill] sm:$0xff] }
 0x5c5   : > { %v8586_v27 = vpop.permute.xlu1 %2295  ;;  %v2559_v19 = vsel %vm2541_vm13, %v2526_v13, %v11272_v24  ;;  %v11275_v13 = vld [vmem:[#allocation66_spill] sm:$0xff]  ;;  %v11276_v47 = vld [vmem:[#allocation20_spill] sm:$0xff] }
 0x5c6   : > { %v8603_v31 = vpop.permute.xlu0 %2739  ;;  %v11277_v24 = vld [vmem:[#allocation164_spill] sm:$0xff] }
 0x5c9   : > { %v8594_v51 = vpop.permute.xlu1 %2773 }
 0x5ca   : > { %5826 = vmatmul.mubr.msk.bf16.gmra.mrb[4].mxu1 %vm3318_vm2, %v5681_v38  ;;  %v8607_v46 = vpop.permute.xlu0 %2926  ;;  %v11273_v38 = vld [vmem:[#allocation92_spill] sm:$0xff] }
 0x5cb   : > { %v2462_v42 = vsel %vm2442_vm10, %v2423_v52, %v11273_v38  ;;  %v2435_v52 = vsel %vm356_vm1, %v11276_v47, %v11275_v13  ;;  %v11282_v13 = vld [vmem:[#allocation121_spill] sm:$0xff]  ;;  %v11283_v47 = vld [vmem:[#allocation24_spill] sm:$0xff] }
 0x5cd   : > { %v8599_v56 = vpop.permute.xlu1 %2813 }
 0x5ce   : > { %v2315_v35 = vpop.permute.xlu0 %2314 }
 0x5cf   : > { %v2592_v20 = vsel %vm2574_vm14, %v2559_v19, %v2315_v35  ;;  %v2426_v35 = vsel %vm356_vm1, %v8285_v62, %v11277_v24  ;;  %v11278_v19 = vld [vmem:[#allocation141_spill] sm:$0xff]  ;;  %v2432_v62 = vsel %vm356_vm1, %v8327_v18, %v8441_v34  ;;  %v11286_v34 = vld [vmem:[#allocation26_spill] sm:$0xff] }
 0x5d0   : > { %v2625_v2 = vsel %vm2607_vm15, %v2592_v20, %v11274_v21 }
 0x5d1   : > { %v8601_v50 = vpop.permute.xlu1 %2287  ;;  %v2658_v21 = vsel %vm2640_vm0, %v2625_v2, %v8368_v53 }
 0x5d2   : > { %v8620_v1 = vpop.permute.xlu0 %2326 }
 0x5d5   : > { %v8605_v5 = vpop.permute.xlu1 %2695 }
 0x5d6   : > { %v8634_v39 = vpop.permute.xlu0 %2743 }
 0x5d9   : > { %v8609_v28 = vpop.permute.xlu1 %2805 }
 0x5da   : > { %v8672_v24 = vpop.permute.xlu0 %2930 }
 0x5db   : > { %11284 = vst [vmem:[#allocation48_spill] sm:$0xff] %v8672_v24 }
 0x5dd   : > { %v8611_v25 = vpop.permute.xlu1 %2842 }
 0x5e1   : > { %v2226_v30 = vpop.permute.xlu1 %2225 }
 0x5e5   : > { %v8624_v59 = vpop.permute.xlu1 %2834 }
 0x5e9   : > { %v2218_v7 = vpop.permute.xlu1 %2217 }
 0x5ea   : > { %v2495_v41 = vsel %vm2475_vm11, %v2462_v42, %v2218_v7  ;;  %v11280_v7 = vld [vmem:[#allocation80_spill] sm:$0xff] }
 0x5eb   : > { %v2528_v48 = vsel %vm2508_vm12, %v2495_v41, %v8416_v36  ;;  %v5922_v36 = vunpack.i.h.bf16 %v11235_v60  ;;  %v2470_v20 = vsel %vm2442_vm10, %v2435_v52, %v11280_v7  ;;  %v11281_v41 = vld [vmem:[#allocation116_spill] sm:$0xff]  ;;  %v2942_v52 = vsel %vm356_vm1, 0, %v11283_v47  ;;  %v11288_v7 = vld [vmem:[#allocation25_spill] sm:$0xff]  ;;  %v11302_v47 = vld [vmem:[#allocation154_spill] sm:$0xff] }
 0x5ec   : > { %v2561_v9 = vsel %vm2541_vm13, %v2528_v48, %v8457_v10  ;;  %v2464_v10 = vsel %vm2442_vm10, %v2426_v35, %v8353_v37  ;;  %v2468_v37 = vsel %vm2442_vm10, %v2432_v62, %v8502_v58  ;;  %v11290_v62 = vld [vmem:[#allocation28_spill] sm:$0xff] }
 0x5ed   : > { %v2594_v38 = vsel %vm2574_vm14, %v2561_v9, %v11278_v19  ;;  %v8651_v42 = vpop.permute.xlu1 %2846  ;;  %v2503_v9 = vsel %vm2475_vm11, %v2470_v20, %v2226_v30  ;;  %v11287_v30 = vld [vmem:[#allocation21_spill] sm:$0xff] }
 0x5ee   : > { %11279 = vst [vmem:[#allocation49_spill] sm:$0xff] %v8651_v42  ;;  %v2627_v48 = vsel %vm2607_vm15, %v2594_v38, %v11281_v41  ;;  %v11285_v38 = vld [vmem:[#allocation114_spill] sm:$0xff]  ;;  %v2536_v53 = vsel %vm2508_vm12, %v2503_v9, %v11286_v34  ;;  %v5926_v2 = vunpack.i.l.bf16 %v11287_v30  ;;  %v2974_v41 = vsel %vm2442_vm10, %v2942_v52, %v5922_v36  ;;  %v11294_v9 = vld [vmem:[#allocation43_spill] sm:$0xff]  ;;  %v11298_v52 = vld [vmem:[#allocation113_spill] sm:$0xff] }
 0x5ef   : > { %v2660_v60 = vsel %vm2640_vm0, %v2627_v48, %v11282_v13  ;;  %v2497_v18 = vsel %vm2475_vm11, %v2464_v10, %v11285_v38  ;;  %v11289_v48 = vld [vmem:[#allocation103_spill] sm:$0xff]  ;;  %v11293_v38 = vld [vmem:[#allocation46_spill] sm:$0xff] }
 0x5f0   : > { %v5682_v35 = vcombine.low %v2658_v21, %v2660_v60  ;;  %v2501_v58 = vsel %vm2475_vm11, %v2468_v37, %v11289_v48  ;;  %v11291_v21 = vld [vmem:[#allocation45_spill] sm:$0xff]  ;;  %v11295_v34 = vld [vmem:[#allocation90_spill] sm:$0xff]  ;;  %v11299_v48 = vld [vmem:[#allocation87_spill] sm:$0xff] }
 0x5f1   : > { %v2230_v19 = vpop.permute.xlu1 %2229  ;;  %v2952_v13 = vsel %vm356_vm1, %v11291_v21, %v11290_v62  ;;  %v11292_v60 = vld [vmem:[#allocation61_spill] sm:$0xff]  ;;  %v2441_v20 = vsel %vm356_vm1, %v11296_v3, %v11295_v34  ;;  %v2530_v62 = vsel %vm2508_vm12, %v2497_v18, %v11299_v48  ;;  %v11303_v3 = vld [vmem:[#allocation158_spill] sm:$0xff]  ;;  %v11305_v18 = vld [vmem:[#allocation51_spill] sm:$0xff] }
 0x5f2   : > { %5829 = vmatprep.mubr.msk.bf16.mxu1 %vm3318_vm2, %v5682_v35  ;;  %v3006_v10 = vsel %vm2475_vm11, %v2974_v41, %v11292_v60  ;;  %v2944_v35 = vsel %vm356_vm1, %v11294_v9, %v11293_v38  ;;  %v2474_v37 = vsel %vm2442_vm10, %v2441_v20, %v11298_v52  ;;  %v2569_v41 = vsel %vm2541_vm13, %v2536_v53, %v8430_v0  ;;  %v11300_v60 = vld [vmem:[#allocation33_spill] sm:$0xff]  ;;  %v11301_v38 = vld [vmem:[#allocation47_spill] sm:$0xff]  ;;  %v2319_v20 = vpop.permute.xlu0 %2318  ;;  %v11306_v48 = vld [vmem:[#allocation44_spill] sm:$0xff] }
 0x5f3   : > { %v3038_v36 = vsel %vm2508_vm12, %v3006_v10, %v11297_v14  ;;  %v2948_v9 = vsel %vm356_vm1, %v11301_v38, %v11300_v60  ;;  %v2438_v34 = vsel %vm356_vm1, %v11303_v3, %v11302_v47  ;;  %v11304_v14 = vld [vmem:[#allocation16_spill] sm:$0xff]  ;;  %v2507_v52 = vsel %vm2475_vm11, %v2474_v37, %v2230_v19  ;;  %v11308_v30 = vld [vmem:[#allocation111_spill] sm:$0xff]  ;;  %v11309_v42 = vld [vmem:[#allocation18_spill] sm:$0xff] }
 0x5f4   : > { %v2534_v10 = vsel %vm2508_vm12, %v2501_v58, %v11304_v14  ;;  %v2956_v0 = vsel %vm356_vm1, %v11306_v48, %v11305_v18  ;;  %v11307_v53 = vld [vmem:[#allocation72_spill] sm:$0xff]  ;;  %v2429_v60 = vsel %vm356_vm1, %v11309_v42, %v11308_v30  ;;  %v11310_v38 = vld [vmem:[#allocation165_spill] sm:$0xff]  ;;  %v11312_v14 = vld [vmem:[#allocation150_spill] sm:$0xff] }
 0x5f5   : > { %v8703_v21 = vpop.permute.xlu1 %2838  ;;  %v2976_v24 = vsel %vm2442_vm10, %v2944_v35, %v11307_v53  ;;  %v2472_v47 = vsel %vm2442_vm10, %v2438_v34, %v11310_v38  ;;  %v11311_v3 = vld [vmem:[#allocation120_spill] sm:$0xff]  ;;  %v11313_v37 = vld [vmem:[#allocation95_spill] sm:$0xff]  ;;  %v11316_v53 = vld [vmem:[#allocation6_spill] sm:$0xff] }
 0x5f6   : > { %v2466_v58 = vsel %vm2442_vm10, %v2429_v60, %v11311_v3  ;;  %v3008_v19 = vsel %vm2475_vm11, %v2976_v24, %v11312_v14  ;;  %v2563_v40 = vsel %vm2541_vm13, %v2530_v62, %v11313_v37  ;;  %v11314_v18 = vld [vmem:[#allocation135_spill] sm:$0xff]  ;;  %v11317_v42 = vld [vmem:[#allocation62_spill] sm:$0xff]  ;;  %v2540_v60 = vsel %vm2508_vm12, %v2507_v52, %v8455_v49  ;;  %v11318_v24 = vld [vmem:[#allocation156_spill] sm:$0xff] }
 0x5f7   : > { %v2602_v48 = vsel %vm2574_vm14, %v2569_v41, %v11314_v18  ;;  %v11315_v35 = vld [vmem:[#allocation155_spill] sm:$0xff]  ;;  %v2567_v30 = vsel %vm2541_vm13, %v2534_v10, %v11317_v42  ;;  %v2596_v34 = vsel %vm2574_vm14, %v2563_v40, %v2319_v20  ;;  %v3040_v3 = vsel %vm2508_vm12, %v3008_v19, %v11318_v24  ;;  %v11319_v62 = vld [vmem:[#allocation110_spill] sm:$0xff]  ;;  %v11327_v24 = vld [vmem:[#allocation128_spill] sm:$0xff] }
 0x5f8   : > { %v2946_v23 = vsel %vm356_vm1, %v11316_v53, %v11315_v35  ;;  %v2505_v14 = vsel %vm2475_vm11, %v2472_v47, %v11319_v62  ;;  %v2600_v41 = vsel %vm2574_vm14, %v2567_v30, %v8597_v55  ;;  %v11320_v18 = vld [vmem:[#allocation159_spill] sm:$0xff]  ;;  %v11323_v52 = vld [vmem:[#allocation94_spill] sm:$0xff]  ;;  %v11324_v53 = vld [vmem:[#allocation176_spill] sm:$0xff]  ;;  %v2629_v55 = vsel %vm2607_vm15, %v2596_v34, %v8459_v63 }
 0x5f9   : > { %v2222_v38 = vpop.permute.xlu1 %2221  ;;  %v2978_v10 = vsel %vm2442_vm10, %v2946_v23, %v11320_v18  ;;  %v11321_v35 = vld [vmem:[#allocation167_spill] sm:$0xff]  ;;  %v2635_v19 = vsel %vm2607_vm15, %v2602_v48, %v11323_v52  ;;  %v3072_v42 = vsel %vm2541_vm13, %v3040_v3, %v8392_v57  ;;  %v11325_v30 = vld [vmem:[#allocation157_spill] sm:$0xff]  ;;  %v11331_v18 = vld [vmem:[#allocation118_spill] sm:$0xff] }
 0x5fa   : > { %v2499_v37 = vsel %vm2475_vm11, %v2466_v58, %v2222_v38  ;;  %v11322_v40 = vld [vmem:[#allocation7_spill] sm:$0xff]  ;;  %v2573_v58 = vsel %vm2541_vm13, %v2540_v60, %v8586_v27  ;;  %v11326_v38 = vld [vmem:[#allocation73_spill] sm:$0xff]  ;;  %v11330_v60 = vld [vmem:[#allocation70_spill] sm:$0xff]  ;;  %v2668_v57 = vsel %vm2640_vm0, %v2635_v19, %v11331_v18 }
 0x5fb   : > { %v2950_v20 = vsel %vm356_vm1, %v11322_v40, %v11321_v35  ;;  %v2532_v49 = vsel %vm2508_vm12, %v2499_v37, %v8578_v11  ;;  %v2633_v11 = vsel %vm2607_vm15, %v2600_v41, %v11325_v30  ;;  %v2538_v48 = vsel %vm2508_vm12, %v2505_v14, %v11326_v38  ;;  %v11328_v37 = vld [vmem:[#allocation54_spill] sm:$0xff]  ;;  %v11329_v34 = vld [vmem:[#allocation35_spill] sm:$0xff]  ;;  %v11332_v3 = vld [vmem:[#allocation41_spill] sm:$0xff] }
 0x5fc   : > { %v2982_v47 = vsel %vm2442_vm10, %v2950_v20, %v11324_v53  ;;  %v2565_v23 = vsel %vm2541_vm13, %v2532_v49, %v8601_v50  ;;  %v2984_v63 = vsel %vm2442_vm10, %v2952_v13, %v11328_v37  ;;  %v3010_v27 = vsel %vm2475_vm11, %v2978_v10, %v11329_v34  ;;  %v11333_v40 = vld [vmem:[#allocation84_spill] sm:$0xff]  ;;  %v11335_v49 = vld [vmem:[#allocation170_spill] sm:$0xff]  ;;  %v11346_v18 = vld [vmem:[#allocation171_spill] sm:$0xff] }
 0x5fd   : > { %v2598_v62 = vsel %vm2574_vm14, %v2565_v23, %v11327_v24  ;;  %v3014_v41 = vsel %vm2475_vm11, %v2982_v47, %v11332_v3  ;;  %v2662_v14 = vsel %vm2640_vm0, %v2629_v55, %v8533_v43  ;;  %v2606_v35 = vsel %vm2574_vm14, %v2573_v58, %v5926_v2  ;;  %v11334_v20 = vld [vmem:[#allocation32_spill] sm:$0xff]  ;;  %v11337_v30 = vld [vmem:[#allocation22_spill] sm:$0xff]  ;;  %v11340_v24 = vld [vmem:[#allocation9_spill] sm:$0xff] }
 0x5fe   : > { %v2631_v50 = vsel %vm2607_vm15, %v2598_v62, %v11330_v60  ;;  %v3104_v10 = vsel %vm2574_vm14, %v3072_v42, %v11334_v20  ;;  %v2666_v52 = vsel %vm2640_vm0, %v2633_v11, %v11335_v49  ;;  %v11336_v53 = vld [vmem:[#allocation88_spill] sm:$0xff]  ;;  %v3070_v47 = vsel %vm2541_vm13, %v3038_v36, %v11337_v30  ;;  %v11338_v38 = vld [vmem:[#allocation98_spill] sm:$0xff]  ;;  %v11341_v62 = vld [vmem:[#allocation161_spill] sm:$0xff] }
 0x5ff   : > { %v2664_v13 = vsel %vm2640_vm0, %v2631_v50, %v11333_v40  ;;  %v2571_v19 = vsel %vm2541_vm13, %v2538_v48, %v11336_v53  ;;  %v2980_v43 = vsel %vm2442_vm10, %v2948_v9, %v11338_v38  ;;  %v5684_v55 = vcombine.low %v2666_v52, %v2668_v57  ;;  %v11339_v58 = vld [vmem:[#allocation148_spill] sm:$0xff]  ;;  %v11342_v37 = vld [vmem:[#allocation30_spill] sm:$0xff]  ;;  %v11343_v36 = vld [vmem:[#allocation23_spill] sm:$0xff] }
 0x600   : > { %v5683_v23 = vcombine.low %v2662_v14, %v2664_v13  ;;  %v2604_v2 = vsel %vm2574_vm14, %v2571_v19, %v8620_v1  ;;  %v2954_v42 = vsel %vm356_vm1, %v11340_v24, %v11339_v58  ;;  %v3012_v11 = vsel %vm2475_vm11, %v2980_v43, %v11341_v62  ;;  %v11344_v9 = vld [vmem:[#allocation151_spill] sm:$0xff]  ;;  %v11345_v1 = vld [vmem:[#allocation14_spill] sm:$0xff]  ;;  %v11349_v40 = vld [vmem:[#allocation57_spill] sm:$0xff] }
 0x601   : > { %v3046_v48 = vsel %vm2508_vm12, %v3014_v41, %v11342_v37  ;;  %v2639_v34 = vsel %vm2607_vm15, %v2606_v35, %v11343_v36  ;;  %v2986_v60 = vsel %vm2442_vm10, %v2954_v42, %v11344_v9  ;;  %v3042_v50 = vsel %vm2508_vm12, %v3010_v27, %v11345_v1  ;;  %v11347_v3 = vld [vmem:[#allocation38_spill] sm:$0xff]  ;;  %v11348_v41 = vld [vmem:[#allocation76_spill] sm:$0xff]  ;;  %v11351_v52 = vld [vmem:[#allocation175_spill] sm:$0xff] }
 0x602   : > { %5830 = vmatmul.mubr.msk.bf16.gmra.mrb[8].mxu1 %vm3318_vm2, %v5683_v23  ;;  %v3044_v57 = vsel %vm2508_vm12, %v3012_v11, %v11346_v18  ;;  %v3136_v14 = vsel %vm2607_vm15, %v3104_v10, %v11347_v3  ;;  %v2960_v13 = vsel %vm356_vm1, %v11349_v40, %v11348_v41  ;;  %v11350_v20 = vld [vmem:[#allocation100_spill] sm:$0xff]  ;;  %v2637_v27 = vsel %vm2607_vm15, %v2604_v2, %v11351_v52  ;;  %v11353_v23 = vld [vmem:[#allocation143_spill] sm:$0xff]  ;;  %v11358_v2 = vld [vmem:[#allocation77_spill] sm:$0xff] }
 0x603   : > { %5833 = vmatprep.mubr.msk.bf16.mxu1 %vm3318_vm2, %v5684_v55  ;;  %v2988_v35 = vsel %vm2442_vm10, %v2956_v0, %v11350_v20  ;;  %v3076_v49 = vsel %vm2541_vm13, %v3044_v57, %v8465_v33  ;;  %v11352_v53 = vld [vmem:[#allocation124_spill] sm:$0xff]  ;;  %v3016_v10 = vsel %vm2475_vm11, %v2984_v63, %v11353_v23  ;;  %v11354_v30 = vld [vmem:[#allocation55_spill] sm:$0xff]  ;;  %v11355_v43 = vunpack.i.l.bf16 %v11288_v7  ;;  %v11360_v63 = vld [vmem:[#allocation129_spill] sm:$0xff] }
 0x604   : > { %v3102_v19 = vsel %vm2574_vm14, %v3070_v47, %v11352_v53  ;;  %v3078_v38 = vsel %vm2541_vm13, %v3046_v48, %v11354_v30  ;;  %v11356_v0 = vld [vmem:[#allocation36_spill] sm:$0xff]  ;;  %v3074_v42 = vsel %vm2541_vm13, %v3042_v50, %v11358_v2  ;;  %v11359_v47 = vld [vmem:[#allocation102_spill] sm:$0xff]  ;;  %v11362_v9 = vld [vmem:[#allocation27_spill] sm:$0xff] }
 0x605   : > { %v2672_v55 = vsel %vm2640_vm0, %v2639_v34, %v11355_v43  ;;  %v3018_v58 = vsel %vm2475_vm11, %v2986_v60, %v11356_v0  ;;  %v11357_v33 = vld [vmem:[#allocation152_spill] sm:$0xff]  ;;  %v3167_v62 = vsel %vm2640_vm0, %v3136_v14, %v11359_v47  ;;  %v3134_v11 = vsel %vm2607_vm15, %v3102_v19, %v11360_v63  ;;  %v11361_v37 = vld [vmem:[#allocation174_spill] sm:$0xff]  ;;  %v11363_v1 = vld [vmem:[#allocation19_spill] sm:$0xff] }
 0x606   : > { %v3048_v24 = vsel %vm2508_vm12, %v3016_v10, %v11357_v33  ;;  %v3108_v34 = vsel %vm2574_vm14, %v3076_v49, %v11362_v9  ;;  %v2670_v60 = vsel %vm2640_vm0, %v2637_v27, %v8463_v6  ;;  %v2992_v18 = vsel %vm2442_vm10, %v2960_v13, %v11363_v1  ;;  %v11364_v57 = vld [vmem:[#allocation160_spill] sm:$0xff]  ;;  %v11365_v3 = vld [vmem:[#allocation117_spill] sm:$0xff]  ;;  %v11368_v53 = vld [vmem:[#allocation11_spill] sm:$0xff] }
 0x607   : > { %v3080_v48 = vsel %vm2541_vm13, %v3048_v24, %v11361_v37  ;;  %v3165_v50 = vsel %vm2640_vm0, %v3134_v11, %v11364_v57  ;;  %v3110_v14 = vsel %vm2574_vm14, %v3078_v38, %v11365_v3  ;;  %v5685_v41 = vcombine.low %v2670_v60, %v2672_v55  ;;  %v11366_v40 = vld [vmem:[#allocation53_spill] sm:$0xff]  ;;  %v11369_v19 = vld [vmem:[#allocation138_spill] sm:$0xff]  ;;  %v11370_v23 = vld [vmem:[#allocation163_spill] sm:$0xff] }
 0x608   : > { %v3050_v20 = vsel %vm2508_vm12, %v3018_v58, %v11366_v40  ;;  %v11367_v52 = vld [vmem:[#allocation169_spill] sm:$0xff]  ;;  %v3106_v6 = vsel %vm2574_vm14, %v3074_v42, %v11369_v19  ;;  %v5686_v27 = vcombine.low %v3165_v50, %v3167_v62  ;;  %v3020_v13 = vsel %vm2475_vm11, %v2988_v35, %v11370_v23  ;;  %v11371_v10 = vld [vmem:[#allocation64_spill] sm:$0xff]  ;;  %v11372_v43 = vld [vmem:[#allocation42_spill] sm:$0xff] }
 0x609   : > { %v2958_v49 = vsel %vm356_vm1, %v11368_v53, %v11367_v52  ;;  %v3112_v30 = vsel %vm2574_vm14, %v3080_v48, %v11371_v10  ;;  %v3140_v55 = vsel %vm2607_vm15, %v3108_v34, %v11372_v43  ;;  %v11373_v0 = vld [vmem:[#allocation173_spill] sm:$0xff]  ;;  %v3024_v33 = vsel %vm2475_vm11, %v2992_v18, %v8443_v29  ;;  %v11374_v24 = vld [vmem:[#allocation15_spill] sm:$0xff]  ;;  %v11375_v2 = vld [vmem:[#allocation126_spill] sm:$0xff] }
 0x60a   : > { %v2990_v38 = vsel %vm2442_vm10, %v2958_v49, %v8385_v32  ;;  %5834 = vmatmul.mubr.msk.bf16.gmra.mrb[12].mxu1 %vm3318_vm2, %v5685_v41  ;;  %v3052_v58 = vsel %vm2508_vm12, %v3020_v13, %v11373_v0  ;;  %v2966_v35 = vsel %vm356_vm1, %v11374_v24, %v8605_v5  ;;  %v3142_v32 = vsel %vm2607_vm15, %v3110_v14, %v11375_v2  ;;  %v11376_v42 = vld [vmem:[#allocation79_spill] sm:$0xff]  ;;  %v11377_v11 = vld [vmem:[#allocation52_spill] sm:$0xff]  ;;  %v11378_v37 = vld [vmem:[#allocation69_spill] sm:$0xff] }
 0x60b   : > { %5837 = vmatprep.mubr.msk.bf16.mxu1 %vm3318_vm2, %v5686_v27  ;;  %v3082_v47 = vsel %vm2541_vm13, %v3050_v20, %v11376_v42  ;;  %v3084_v62 = vsel %vm2541_vm13, %v3052_v58, %v8472_v44  ;;  %v3056_v63 = vsel %vm2508_vm12, %v3024_v33, %v8492_v15  ;;  %v3144_v29 = vsel %vm2607_vm15, %v3112_v30, %v11377_v11  ;;  %v11379_v9 = vld [vmem:[#allocation40_spill] sm:$0xff]  ;;  %v11380_v60 = vld [vmem:[#allocation147_spill] sm:$0xff]  ;;  %v11381_v44 = vld [vmem:[#allocation13_spill] sm:$0xff] }
 0x60c   : > { %v3022_v5 = vsel %vm2475_vm11, %v2990_v38, %v11378_v37  ;;  %v3088_v48 = vsel %vm2541_vm13, %v3056_v63, %v8624_v59  ;;  %v3171_v34 = vsel %vm2640_vm0, %v3140_v55, %v11379_v9  ;;  %v3138_v1 = vsel %vm2607_vm15, %v3106_v6, %v11380_v60  ;;  %v11382_v57 = vld [vmem:[#allocation153_spill] sm:$0xff]  ;;  %v11388_v6 = vld [vmem:[#allocation106_spill] sm:$0xff]  ;;  %v11391_v30 = vld [vmem:[#allocation39_spill] sm:$0xff] }
 0x60d   : > { %v2962_v18 = vsel %vm356_vm1, %v11381_v44, %v8461_v54  ;;  %v2998_v15 = vsel %vm2442_vm10, %v2966_v35, %v8634_v39  ;;  %v3173_v50 = vsel %vm2640_vm0, %v3142_v32, %v11382_v57  ;;  %v11383_v3 = vld [vmem:[#allocation97_spill] sm:$0xff]  ;;  %v3169_v41 = vsel %vm2640_vm0, %v3138_v1, %v8394_v8  ;;  %v11387_v39 = vld [vmem:[#allocation119_spill] sm:$0xff]  ;;  %v11390_v8 = vld [vmem:[#allocation140_spill] sm:$0xff] }
 0x60e   : > { %v11384_v14 = vld [vmem:[#allocation65_spill] sm:$0xff]  ;;  %v2994_v52 = vsel %vm2442_vm10, %v2962_v18, %v8603_v31  ;;  %v3120_v49 = vsel %vm2574_vm14, %v3088_v48, %v11387_v39  ;;  %v5687_v19 = vcombine.low %v3169_v41, %v3171_v34  ;;  %v3175_v27 = vsel %vm2640_vm0, %v3144_v29, %v11388_v6  ;;  %v11392_v43 = vld [vmem:[#allocation67_spill] sm:$0xff]  ;;  %v11394_v58 = vld [vmem:[#allocation104_spill] sm:$0xff] }
 0x60f   : > { %v2964_v59 = vsel %vm356_vm1, %v11384_v14, %v11383_v3  ;;  %v11385_v40 = vld [vmem:[#allocation85_spill] sm:$0xff]  ;;  %v3114_v10 = vsel %vm2574_vm14, %v3082_v47, %v11390_v8  ;;  %v3030_v38 = vsel %vm2475_vm11, %v2998_v15, %v11391_v30  ;;  %v5688_v31 = vcombine.low %v3173_v50, %v3175_v27  ;;  %v11393_v55 = vld [vmem:[#allocation31_spill] sm:$0xff]  ;;  %v2909_v15 = vpop.permute.xlu1 %2908  ;;  %v11403_v57 = vld [vmem:[#allocation130_spill] sm:$0xff] }
 0x610   : > { %v3116_v20 = vsel %vm2574_vm14, %v3084_v62, %v11385_v40  ;;  %v11386_v54 = vld [vmem:[#allocation81_spill] sm:$0xff]  ;;  %v2968_v0 = vsel %vm356_vm1, %v11393_v55, %v11392_v43  ;;  %v11395_v24 = vld [vmem:[#allocation91_spill] sm:$0xff]  ;;  %v11404_v3 = vld [vmem:[#allocation172_spill] sm:$0xff] }
 0x611   : > { %v3054_v53 = vsel %vm2508_vm12, %v3022_v5, %v11386_v54  ;;  %v11389_v23 = vld [vmem:[#allocation137_spill] sm:$0xff]  ;;  %v3148_v33 = vsel %vm2607_vm15, %v3116_v20, %v11394_v58  ;;  %v3026_v35 = vsel %vm2475_vm11, %v2994_v52, %v11395_v24  ;;  %v11398_v11 = vld [vmem:[#allocation123_spill] sm:$0xff]  ;;  %v11407_v52 = vld [vmem:[#allocation74_spill] sm:$0xff] }
 0x612   : > { %v2996_v13 = vsel %vm2442_vm10, %v2964_v59, %v11389_v23  ;;  %5838 = vmatmul.mubr.msk.bf16.gmra.mrb[16].mxu1 %vm3318_vm2, %v5687_v19  ;;  %v11396_v32 = vld [vmem:[#allocation125_spill] sm:$0xff]  ;;  %v3152_v29 = vsel %vm2607_vm15, %v3120_v49, %v11398_v11  ;;  %v11401_v9 = vld [vmem:[#allocation71_spill] sm:$0xff]  ;;  %v3179_v50 = vsel %vm2640_vm0, %v3148_v33, %v11403_v57  ;;  %v11409_v39 = vld [vmem:[#allocation112_spill] sm:$0xff]  ;;  %v2907_v19 = vpop.permute.xlu0 %2906 }
 0x613   : > { %v3028_v2 = vsel %vm2475_vm11, %v2996_v13, %v8594_v51  ;;  %v3000_v42 = vsel %vm2442_vm10, %v2968_v0, %v11396_v32  ;;  %v11397_v47 = vld [vmem:[#allocation105_spill] sm:$0xff]  ;;  %5841 = vmatprep.mubr.msk.bf16.mxu1 %vm3318_vm2, %v5688_v31  ;;  %v3062_v34 = vsel %vm2508_vm12, %v3030_v38, %v11401_v9  ;;  %v11402_v44 = vld [vmem:[#allocation99_spill] sm:$0xff]  ;;  %v11411_v23 = vld [vmem:[#allocation34_spill] sm:$0xff]  ;;  %v2937_v33 = vpop.permute.xlu1 %2936 }
 0x614   : > { %v3086_v62 = vsel %vm2541_vm13, %v3054_v53, %v11397_v47  ;;  %v3060_v63 = vsel %vm2508_vm12, %v3028_v2, %v8609_v28  ;;  %v11399_v37 = vld [vmem:[#allocation149_spill] sm:$0xff]  ;;  %v3032_v28 = vsel %vm2475_vm11, %v3000_v42, %v8383_v61  ;;  %v3058_v18 = vsel %vm2508_vm12, %v3026_v35, %v11402_v44  ;;  %v11405_v61 = vld [vmem:[#allocation139_spill] sm:$0xff]  ;;  %v11414_v38 = vld [vmem:[#allocation86_spill] sm:$0xff] }
 0x615   : > { %v3146_v5 = vsel %vm2607_vm15, %v3114_v10, %v11399_v37  ;;  %v11400_v51 = vld [vmem:[#allocation17_spill] sm:$0xff]  ;;  %v3092_v60 = vsel %vm2541_vm13, %v3060_v63, %v8703_v21  ;;  %v3118_v14 = vsel %vm2574_vm14, %v3086_v62, %v11404_v3  ;;  %v3064_v21 = vsel %vm2508_vm12, %v3032_v28, %v8447_v16  ;;  %v11408_v54 = vld [vmem:[#allocation83_spill] sm:$0xff]  ;;  %v11413_v10 = vld [vmem:[#allocation108_spill] sm:$0xff] }
 0x616   : > { %v2970_v48 = vsel %vm356_vm1, %v11400_v51, %v8437_v17  ;;  %v3177_v17 = vsel %vm2640_vm0, %v3146_v5, %v8405_v45  ;;  %v3183_v59 = vsel %vm2640_vm0, %v3152_v29, %v11405_v61  ;;  %v11406_v41 = vld [vmem:[#allocation101_spill] sm:$0xff]  ;;  %v3096_v20 = vsel %vm2541_vm13, %v3064_v21, %v8611_v25  ;;  %v11412_v25 = vld [vmem:[#allocation162_spill] sm:$0xff]  ;;  %v11418_v47 = vld [vmem:[#allocation127_spill] sm:$0xff]  ;;  %v2935_v11 = vpop.permute.xlu0 %2934 }
 0x617   : > { %v3002_v1 = vsel %vm2442_vm10, %v2970_v48, %v8590_v26  ;;  %v3150_v26 = vsel %vm2607_vm15, %v3118_v14, %v8418_v4  ;;  %v3094_v40 = vsel %vm2541_vm13, %v3062_v34, %v11406_v41  ;;  %v3124_v45 = vsel %vm2574_vm14, %v3092_v60, %v11407_v52  ;;  %v11410_v27 = vld [vmem:[#allocation89_spill] sm:$0xff]  ;;  %v11417_v2 = vld [vmem:[#allocation178_spill] sm:$0xff]  ;;  %v11419_v63 = vld [vmem:[#allocation63_spill] sm:$0xff] }
 0x618   : > { %v3034_v53 = vsel %vm2475_vm11, %v3002_v1, %v11408_v54  ;;  %v3181_v16 = vsel %vm2640_vm0, %v3150_v26, %v8607_v46  ;;  %v3090_v49 = vsel %vm2541_vm13, %v3058_v18, %v11409_v39  ;;  %v5689_v4 = vcombine.low %v3177_v17, %v3179_v50  ;;  %v11415_v46 = vld [vmem:[#allocation133_spill] sm:$0xff]  ;;  %v11423_v9 = vld [vmem:[#allocation48_spill] sm:$0xff] }
 0x619   : > { %v5690_v6 = vcombine.low %v3181_v16, %v3183_v59  ;;  %v2972_v13 = vsel %vm356_vm1, %v11411_v23, %v11410_v27  ;;  %v3126_v8 = vsel %vm2574_vm14, %v3094_v40, %v11412_v25  ;;  %v3128_v30 = vsel %vm2574_vm14, %v3096_v20, %v11413_v10  ;;  %v11416_v55 = vld [vmem:[#allocation93_spill] sm:$0xff] }
 0x61a   : > { %v3156_v31 = vsel %vm2607_vm15, %v3124_v45, %v11414_v38  ;;  %5842 = vmatmul.mubr.msk.bf16.gmra.mrb[20].mxu1 %vm3318_vm2, %v5689_v4  ;;  %v3004_v43 = vsel %vm2442_vm10, %v2972_v13, %v11415_v46  ;;  %v3066_v0 = vsel %vm2508_vm12, %v3034_v53, %v11416_v55  ;;  %v3122_v58 = vsel %vm2574_vm14, %v3090_v49, %v8479_v22  ;;  %v11420_v29 = vld [vmem:[#allocation49_spill] sm:$0xff]  ;;  %v2939_v17 = vpop.permute.xlu0 %2938 }
 0x61b   : > { %5845 = vmatprep.mubr.msk.bf16.mxu1 %vm3318_vm2, %v5690_v6  ;;  %v3036_v24 = vsel %vm2475_vm11, %v3004_v43, %v8508_v12  ;;  %v3158_v32 = vsel %vm2607_vm15, %v3126_v8, %v11417_v2  ;;  %v3160_v42 = vsel %vm2607_vm15, %v3128_v30, %v2907_v19  ;;  %v3187_v62 = vsel %vm2640_vm0, %v3156_v31, %v11418_v47  ;;  %v11421_v5 = vld [vmem:[#allocation109_spill] sm:$0xff] }
 0x61c   : > { %v3068_v35 = vsel %vm2508_vm12, %v3036_v24, %v8599_v56  ;;  %v3154_v22 = vsel %vm2607_vm15, %v3122_v58, %v11419_v63  ;;  %v3098_v12 = vsel %vm2541_vm13, %v3066_v0, %v11421_v5  ;;  %v3191_v56 = vsel %vm2640_vm0, %v3160_v42, %v2937_v33  ;;  %v11422_v51 = vld [vmem:[#allocation21_spill] sm:$0xff] }
 0x61d   : > { %v3100_v37 = vsel %vm2541_vm13, %v3068_v35, %v11420_v29  ;;  %v5927_v48 = vunpack.i.h.bf16 %v11422_v51  ;;  %v3185_v34 = vsel %vm2640_vm0, %v3154_v22, %v11423_v9  ;;  %v3189_v60 = vsel %vm2640_vm0, %v3158_v32, %v2935_v11  ;;  %v11424_v44 = vld [vmem:[#allocation177_spill] sm:$0xff] }
 0x61e   : > { %v5691_v28 = vcombine.low %v3185_v34, %v3187_v62  ;;  %v3130_v18 = vsel %vm2574_vm14, %v3098_v12, %v11424_v44  ;;  %v5692_v57 = vcombine.low %v3189_v60, %v3191_v56  ;;  %v5932_v14 = vunpack.i.h.bf16 %v11288_v7 }
 0x61f   : > { %v3132_v1 = vsel %vm2574_vm14, %v3100_v37, %v5927_v48  ;;  %v3162_v50 = vsel %vm2607_vm15, %v3130_v18, %v2909_v15  ;;  %v9038_v15 = vld [vmem:[%s10853_s5] ss:$0 sm:$0xff] }
 0x620   : > { %v3163_v3 = vsel %vm2607_vm15, %v3132_v1, %v11343_v36  ;;  %v3193_v21 = vsel %vm2640_vm0, %v3162_v50, %v2939_v17 }
 0x621   : > { %v3195_v61 = vsel %vm2640_vm0, %v3163_v3, %v5932_v14 }
 0x622   : > { %5846 = vmatmul.mubr.msk.bf16.gmra.mrb[24].mxu1 %vm3318_vm2, %v5691_v28  ;;  %v5693_v59 = vcombine.low %v3193_v21, %v3195_v61 }
 0x623   : > { %5849 = vmatprep.mubr.msk.bf16.mxu1 %vm3318_vm2, %v5692_v57 }
 0x62a   : > { %5850 = vmatmul.mubr.msk.bf16.gmra.mrb[28].mxu1 %vm3318_vm2, %v5693_v59 }
 0x695   : > { %v5823_v26 = vpop.f32.mrb[0].mxu1 }
 0x696   : > { %v3413_v41 = vadd.f32 %v5823_v26, %v9038_v15  ;;  %v3404_v40 = vpop.f32.mrb[1].mxu1 }
 0x697   : > { %v5824_v20 = vpop.f32.mrb[2].mxu1  ;;  %v3405_v7 = vadd.f32 %v9038_v15, %v3404_v40 }
 0x698   : > { %vm3533_vm3 = vcmp.ge.f32.partialorder %v3413_v41, 0.0  ;;  %v3565_v36 = vmul.f32 0.01, %v3413_v41  ;;  %v3407_v52 = vpop.f32.mrb[3].mxu1  ;;  %v3416_v16 = vadd.f32 %v5824_v20, %v9038_v15 }
 0x699   : > { %v3563_v53 = vmul.f32 0.01, %v3405_v7  ;;  %vm3531_vm5 = vcmp.ge.f32.partialorder %v3405_v7, 0.0  ;;  %v3408_v8 = vadd.f32 %v9038_v15, %v3407_v52 }
 0x69a   : > { %v3597_v45 = vsel %vm3533_vm3, %v3413_v41, %v3565_v36  ;;  %v3566_v6 = vmul.f32 0.01, %v3416_v16  ;;  %vm3534_vm7 = vcmp.ge.f32.partialorder %v3416_v16, 0.0 }
 0x69b   : > { %v9042_v54 = vpack.c.bf16 %v3597_v45, %v3597_v45  ;;  %v3595_v4 = vsel %vm3531_vm5, %v3405_v7, %v3563_v53  ;;  %v3564_v10 = vmul.f32 0.01, %v3408_v8  ;;  %vm3532_vm8 = vcmp.ge.f32.partialorder %v3408_v8, 0.0 }
 0x69c   : > { %v9057_v23 = vpack.c.bf16 %v3595_v4, %v3595_v4  ;;  %v3598_v13 = vsel %vm3534_vm7, %v3416_v16, %v3566_v6  ;;  %v9192_v6 = vpop.permute.xlu1 %3963 }
 0x69d   : > { %11425 = vst [vmem:[#allocation134_spill] sm:$0xff] %v9042_v54  ;;  %4188 = vrot.lane.b32.xlu1 %v9042_v54, %s6040_s22  ;;  %3969 = vrot.lane.b32.xlu0 %v9042_v54, %s6028_s21  ;;  %v5827_v39 = vpop.f32.mrb[4].mxu1  ;;  %v9063_v25 = vpack.c.bf16 %v3598_v13, %v3598_v13  ;;  %v3596_v30 = vsel %vm3532_vm8, %v3408_v8, %v3564_v10  ;;  %v3821_v31 = vshll.u32 %v9042_v54, 16  ;;  %v3819_v55 = vshrl.u32 %v9042_v54, 16 }
 0x69e   : > { %v3420_v49 = vpop.f32.mrb[5].mxu1  ;;  %11426 = vst [vmem:[#allocation10_spill] sm:$0xff] %v9057_v23  ;;  %v9078_v38 = vpack.c.bf16 %v3596_v30, %v3596_v30  ;;  %v3429_v46 = vadd.f32 %v5827_v39, %v9038_v15  ;;  %v3807_v33 = vshll.u32 %v9057_v23, 16  ;;  %v3805_v42 = vshrl.u32 %v9057_v23, 16 }
 0x69f   : > { %v9049_v19 = vpop.f32.mrb[6].mxu1  ;;  %11427 = vst [vmem:[#allocation115_spill] sm:$0xff] %v9063_v25  ;;  %v3823_v43 = vrot.slane %v3821_v31, 1  ;;  %v3421_v62 = vadd.f32 %v9038_v15, %v3420_v49  ;;  %v3828_v29 = vshll.u32 %v9063_v25, 16  ;;  %v3826_v12 = vshrl.u32 %v9063_v25, 16 }
 0x6a0   : > { %v9051_v27 = vpop.f32.mrb[7].mxu1  ;;  %11428 = vst [vmem:[#allocation8_spill] sm:$0xff] %v9078_v38  ;;  %v3569_v0 = vmul.f32 0.01, %v3429_v46  ;;  %vm3537_vm13 = vcmp.ge.f32.partialorder %v3429_v46, 0.0  ;;  %v3809_v32 = vrot.slane %v3807_v33, 1  ;;  %v3432_v48 = vadd.f32 %v9049_v19, %v9038_v15 }
 0x6a1   : > { %4604 = vrot.lane.b32.xlu1 %v9042_v54, %s6027_s12  ;;  %4093 = vrot.lane.b32.xlu0 %v9042_v54, %s6032_s24  ;;  %v3824_v58 = vor.u32 %v3823_v43, %v3819_v55  ;;  %v3567_v22 = vmul.f32 0.01, %v3421_v62  ;;  %vm3535_vm14 = vcmp.ge.f32.partialorder %v3421_v62, 0.0  ;;  %v3830_v5 = vrot.slane %v3828_v29, 1 }
 0x6a2   : > { %v3601_v24 = vsel %vm3537_vm13, %v3429_v46, %v3569_v0  ;;  %v3810_v63 = vor.u32 %v3809_v32, %v3805_v42  ;;  %v3570_v1 = vmul.f32 0.01, %v3432_v48  ;;  %vm3538_vm15 = vcmp.ge.f32.partialorder %v3432_v48, 0.0  ;;  %v9207_v46 = vpop.permute.xlu1 %4184 }
 0x6a3   : > { %v3934_v2 = vsel %vm6164_vm6, %v3824_v58, 0  ;;  %v9101_v47 = vpack.c.bf16 %v3601_v24, %v3601_v24  ;;  %v3599_v37 = vsel %vm3535_vm14, %v3421_v62, %v3567_v22  ;;  %v3831_v51 = vor.u32 %v3830_v5, %v3826_v12  ;;  %11434 = vst [vmem:[#allocation60_spill] sm:$0xff] %v9207_v46 }
 0x6a4   : > { %v3932_v11 = vsel %vm6164_vm6, %v3810_v63, 0  ;;  %v9118_v56 = vpack.c.bf16 %v3599_v37, %v3599_v37  ;;  %v3602_v18 = vsel %vm3538_vm15, %v3432_v48, %v3570_v1  ;;  %v3814_v57 = vshll.u32 %v9078_v38, 16 }
 0x6a5   : > { %4699 = vrot.lane.b32.xlu0 %v9042_v54, %s6038_s10  ;;  %4600 = vrot.lane.b32.xlu1 %v9057_v23, %s6027_s12  ;;  %11430 = vst [vmem:[#allocation68_spill] sm:$0xff] %v9101_v47  ;;  %v3935_v9 = vsel %vm6164_vm6, %v3831_v51, 0  ;;  %v9148_v3 = vpack.c.bf16 %v3602_v18, %v3602_v18  ;;  %v3812_v59 = vshrl.u32 %v9078_v38, 16  ;;  %v3424_v36 = vadd.f32 %v9038_v15, %v9051_v27 }
 0x6a6   : > { %11431 = vst [vmem:[#allocation29_spill] sm:$0xff] %v9118_v56  ;;  %v3816_v61 = vrot.slane %v3814_v57, 1  ;;  %v3849_v4 = vshll.u32 %v9101_v47, 16  ;;  %v3847_v30 = vshrl.u32 %v9101_v47, 16  ;;  %v3835_v24 = vshll.u32 %v9118_v56, 16  ;;  %v9224_v32 = vpop.permute.xlu1 %4216 }
 0x6a7   : > { %11432 = vst [vmem:[#allocation37_spill] sm:$0xff] %v9148_v3  ;;  %v3568_v45 = vmul.f32 0.01, %v3424_v36  ;;  %vm3536_vm0 = vcmp.ge.f32.partialorder %v3424_v36, 0.0  ;;  %11435 = vst [vmem:[#allocation122_spill] sm:$0xff] %v9224_v32  ;;  %v3833_v37 = vshrl.u32 %v9118_v56, 16 }
 0x6a8   : > { %v3817_v26 = vor.u32 %v3816_v61, %v3812_v59  ;;  %v3851_v13 = vrot.slane %v3849_v4, 1  ;;  %v3837_v29 = vrot.slane %v3835_v24, 1  ;;  %v3854_v57 = vshrl.u32 %v9148_v3, 16 }
 0x6a9   : > { %3971 = vrot.lane.b32.xlu1 %v9063_v25, %s6028_s21  ;;  %3965 = vrot.lane.b32.xlu0 %v9057_v23, %s6028_s21  ;;  %v3600_v49 = vsel %vm3536_vm0, %v3424_v36, %v3568_v45  ;;  %v4791_v35 = vsel %vm1651_vm9, 0, %v9192_v6 }
 0x6aa   : > { %v3933_v52 = vsel %vm6164_vm6, %v3817_v26, 0  ;;  %v9194_v27 = vpack.c.bf16 %v3600_v49, %v3600_v49  ;;  %v3852_v0 = vor.u32 %v3851_v13, %v3847_v30  ;;  %v9239_v12 = vpop.permute.xlu1 %4248  ;;  %v3838_v48 = vor.u32 %v3837_v29, %v3833_v37 }
 0x6ab   : > { %11436 = vst [vmem:[#allocation50_spill] sm:$0xff] %v9239_v12 }
 0x6ac   : > { %11433 = vst [vmem:[#allocation144_spill] sm:$0xff] %v9194_v27  ;;  %v3938_v33 = vsel %vm6164_vm6, %v3852_v0, 0  ;;  %v3842_v30 = vshll.u32 %v9194_v27, 16  ;;  %v3840_v24 = vshrl.u32 %v9194_v27, 16 }
 0x6ad   : > { %4095 = vrot.lane.b32.xlu1 %v9063_v25, %s6032_s24  ;;  %4089 = vrot.lane.b32.xlu0 %v9057_v23, %s6032_s24 }
 0x6ae   : > { %v9251_v18 = vpop.permute.xlu1 %4568 }
 0x6af   : > { %11437 = vst [vmem:[#allocation166_spill] sm:$0xff] %v9251_v18 }
 0x6b1   : > { %4701 = vrot.lane.b32.xlu1 %v9063_v25, %s6038_s10  ;;  %4190 = vrot.lane.b32.xlu0 %v9063_v25, %s6040_s22 }
 0x6b5   : > { %3967 = vrot.lane.b32.xlu1 %v9078_v38, %s6028_s21  ;;  %4606 = vrot.lane.b32.xlu0 %v9063_v25, %s6027_s12 }
 0x6b9   : > { %4091 = vrot.lane.b32.xlu1 %v9078_v38, %s6032_s24  ;;  %4186 = vrot.lane.b32.xlu0 %v9078_v38, %s6040_s22 }
 0x6bd   : > { %4697 = vrot.lane.b32.xlu1 %v9078_v38, %s6038_s10  ;;  %4602 = vrot.lane.b32.xlu0 %v9078_v38, %s6027_s12 }
 0x6c1   : > { %4669 = vrot.lane.b32.xlu1 %v3934_v2, %s6041_s13  ;;  %4574 = vrot.lane.b32.xlu0 %v3934_v2, %s6026_s11 }
 0x6c5   : > { %4761 = vrot.lane.b32.xlu0 %v3934_v2, %s6037_s9  ;;  %4196 = vrot.lane.b32.xlu1 %v9101_v47, %s6040_s22 }
 0x6c9   : > { %4665 = vrot.lane.b32.xlu1 %v3932_v11, %s6041_s13  ;;  %3977 = vrot.lane.b32.xlu0 %v9101_v47, %s6028_s21 }
 0x6cd   : > { %4612 = vrot.lane.b32.xlu1 %v9101_v47, %s6027_s12  ;;  %4101 = vrot.lane.b32.xlu0 %v9101_v47, %s6032_s24 }
 0x6d1   : > { %4570 = vrot.lane.b32.xlu0 %v3932_v11, %s6026_s11  ;;  %4192 = vrot.lane.b32.xlu1 %v9118_v56, %s6040_s22 }
 0x6d5   : > { %4707 = vrot.lane.b32.xlu0 %v9101_v47, %s6038_s10  ;;  %4763 = vrot.lane.b32.xlu1 %v3935_v9, %s6037_s9  ;;  %v5831_v34 = vpop.f32.mrb[8].mxu1 }
 0x6d6   : > { %v9130_v60 = vpop.f32.mrb[9].mxu1  ;;  %v3445_v43 = vadd.f32 %v5831_v34, %v9038_v15 }
 0x6d7   : > { %v9132_v28 = vpop.f32.mrb[10].mxu1  ;;  %v3437_v22 = vadd.f32 %v9038_v15, %v9130_v60  ;;  %v3936_v60 = vsel %vm6164_vm6, %v3838_v48, 0 }
 0x6d8   : > { %v9134_v44 = vpop.f32.mrb[11].mxu1  ;;  %v3573_v58 = vmul.f32 0.01, %v3445_v43  ;;  %vm3541_vm2 = vcmp.ge.f32.partialorder %v3445_v43, 0.0  ;;  %v3448_v59 = vadd.f32 %v9132_v28, %v9038_v15 }
 0x6d9   : > { %4576 = vrot.lane.b32.xlu1 %v3935_v9, %s6026_s11  ;;  %3973 = vrot.lane.b32.xlu0 %v9118_v56, %s6028_s21  ;;  %v3571_v51 = vmul.f32 0.01, %v3437_v22  ;;  %vm3539_vm3 = vcmp.ge.f32.partialorder %v3437_v22, 0.0  ;;  %v3440_v29 = vadd.f32 %v9038_v15, %v9134_v44 }
 0x6da   : > { %v3605_v63 = vsel %vm3541_vm2, %v3445_v43, %v3573_v58  ;;  %v3574_v45 = vmul.f32 0.01, %v3448_v59  ;;  %vm3542_vm5 = vcmp.ge.f32.partialorder %v3448_v59, 0.0 }
 0x6db   : > { %v9237_v5 = vpack.c.bf16 %v3605_v63, %v3605_v63  ;;  %v3603_v34 = vsel %vm3539_vm3, %v3437_v22, %v3571_v51  ;;  %vm3540_vm7 = vcmp.ge.f32.partialorder %v3440_v29, 0.0 }
 0x6dc   : > { %v9254_v61 = vpack.c.bf16 %v3603_v34, %v3603_v34  ;;  %v3606_v13 = vsel %vm3542_vm5, %v3448_v59, %v3574_v45 }
 0x6dd   : > { %4608 = vrot.lane.b32.xlu1 %v9118_v56, %s6027_s12  ;;  %4097 = vrot.lane.b32.xlu0 %v9118_v56, %s6032_s24  ;;  %v9144_v50 = vpop.f32.mrb[12].mxu1  ;;  %v9277_v43 = vpack.c.bf16 %v3606_v13, %v3606_v13 }
 0x6de   : > { %v9146_v17 = vpop.f32.mrb[13].mxu1 }
 0x6df   : > { %v9150_v14 = vpop.f32.mrb[14].mxu1  ;;  %v3453_v13 = vadd.f32 %v9038_v15, %v9146_v17 }
 0x6e0   : > { %v9152_v21 = vpop.f32.mrb[15].mxu1 }
 0x6e1   : > { %3979 = vrot.lane.b32.xlu1 %v9148_v3, %s6028_s21  ;;  %4671 = vrot.lane.b32.xlu0 %v3935_v9, %s6041_s13  ;;  %v3856_v9 = vshll.u32 %v9148_v3, 16  ;;  %vm3543_vm13 = vcmp.ge.f32.partialorder %v3453_v13, 0.0 }
 0x6e3   : > { %v3858_v1 = vrot.slane %v3856_v9, 1  ;;  %v3572_v9 = vmul.f32 0.01, %v3440_v29 }
 0x6e5   : > { %4103 = vrot.lane.b32.xlu1 %v9148_v3, %s6032_s24  ;;  %4703 = vrot.lane.b32.xlu0 %v9118_v56, %s6038_s10  ;;  %v9162_v41 = vpop.f32.mrb[16].mxu1  ;;  %v3859_v26 = vor.u32 %v3858_v1, %v3854_v57  ;;  %v3604_v1 = vsel %vm3540_vm7, %v3440_v29, %v3572_v9  ;;  %v3461_v57 = vadd.f32 %v9144_v50, %v9038_v15 }
 0x6e6   : > { %v9164_v40 = vpop.f32.mrb[17].mxu1  ;;  %v9315_v59 = vpack.c.bf16 %v3604_v1, %v3604_v1  ;;  %v3464_v29 = vadd.f32 %v9150_v14, %v9038_v15  ;;  %v3456_v14 = vadd.f32 %v9038_v15, %v9152_v21 }
 0x6e7   : > { %v9166_v20 = vpop.f32.mrb[18].mxu1  ;;  %v3939_v49 = vsel %vm6164_vm6, %v3859_v26, 0  ;;  %vm3545_vm8 = vcmp.ge.f32.partialorder %v3461_v57, 0.0 }
 0x6e8   : > { %v9170_v7 = vpop.f32.mrb[19].mxu1  ;;  %vm3546_vm14 = vcmp.ge.f32.partialorder %v3464_v29, 0.0  ;;  %vm3544_vm15 = vcmp.ge.f32.partialorder %v3456_v14, 0.0 }
 0x6e9   : > { %4572 = vrot.lane.b32.xlu1 %v3933_v52, %s6026_s11  ;;  %4198 = vrot.lane.b32.xlu0 %v9148_v3, %s6040_s22 }
 0x6ed   : > { %4759 = vrot.lane.b32.xlu1 %v3933_v52, %s6037_s9  ;;  %4667 = vrot.lane.b32.xlu0 %v3933_v52, %s6041_s13  ;;  %v9179_v53 = vpop.f32.mrb[20].mxu1 }
 0x6ee   : > { %v9181_v16 = vpop.f32.mrb[21].mxu1 }
 0x6ef   : > { %v9183_v39 = vpop.f32.mrb[22].mxu1 }
 0x6f0   : > { %v9185_v19 = vpop.f32.mrb[23].mxu1 }
 0x6f1   : > { %4709 = vrot.lane.b32.xlu1 %v9148_v3, %s6038_s10  ;;  %4614 = vrot.lane.b32.xlu0 %v9148_v3, %s6027_s12 }
 0x6f5   : > { %3975 = vrot.lane.b32.xlu1 %v9194_v27, %s6028_s21  ;;  %4194 = vrot.lane.b32.xlu0 %v9194_v27, %s6040_s22  ;;  %v9200_v8 = vpop.f32.mrb[24].mxu1 }
 0x6f6   : > { %v9202_v10 = vpop.f32.mrb[25].mxu1 }
 0x6f7   : > { %v9205_v31 = vpop.f32.mrb[26].mxu1 }
 0x6f8   : > { %v9210_v55 = vpop.f32.mrb[27].mxu1 }
 0x6f9   : > { %4099 = vrot.lane.b32.xlu1 %v9194_v27, %s6032_s24  ;;  %4610 = vrot.lane.b32.xlu0 %v9194_v27, %s6027_s12 }
 0x6fd   : > { %4705 = vrot.lane.b32.xlu1 %v9194_v27, %s6038_s10  ;;  %4582 = vrot.lane.b32.xlu0 %v3938_v33, %s6026_s11  ;;  %v9222_v2 = vpop.f32.mrb[28].mxu1  ;;  %v3469_v27 = vadd.f32 %v9038_v15, %v9164_v40 }
 0x6fe   : > { %v9226_v42 = vpop.f32.mrb[29].mxu1 }
 0x6ff   : > { %v9228_v62 = vpop.f32.mrb[30].mxu1  ;;  %vm3547_vm2 = vcmp.ge.f32.partialorder %v3469_v27, 0.0 }
 0x700   : > { %v9232_v11 = vpop.f32.mrb[31].mxu1 }
 0x701   : > { %4677 = vrot.lane.b32.xlu1 %v3938_v33, %s6041_s13  ;;  %4769 = vrot.lane.b32.xlu0 %v3938_v33, %s6037_s9  ;;  %v3844_v33 = vrot.slane %v3842_v30, 1 }
 0x703   : > { %v3845_v37 = vor.u32 %v3844_v33, %v3840_v24  ;;  %v3575_v24 = vmul.f32 0.01, %v3453_v13 }
 0x705   : > { %4204 = vrot.lane.b32.xlu1 %v9237_v5, %s6040_s22  ;;  %3985 = vrot.lane.b32.xlu0 %v9237_v5, %s6028_s21  ;;  %v3937_v34 = vsel %vm6164_vm6, %v3845_v37, 0  ;;  %v3863_v37 = vshll.u32 %v9254_v61, 16  ;;  %v3607_v1 = vsel %vm3543_vm13, %v3453_v13, %v3575_v24  ;;  %v3576_v24 = vmul.f32 0.01, %v3456_v14 }
 0x706   : > { %v9350_v3 = vpack.c.bf16 %v3607_v1, %v3607_v1 }
 0x707   : > { %v3608_v47 = vsel %vm3544_vm15, %v3456_v14, %v3576_v24 }
 0x709   : > { %4673 = vrot.lane.b32.xlu1 %v3936_v60, %s6041_s13  ;;  %4109 = vrot.lane.b32.xlu0 %v9237_v5, %s6032_s24 }
 0x70d   : > { %4765 = vrot.lane.b32.xlu0 %v3936_v60, %s6037_s9  ;;  %4200 = vrot.lane.b32.xlu1 %v9254_v61, %s6040_s22 }
 0x70f   : > { %v9261_v36 = vpop.permute.xlu1 %4188  ;;  %v9263_v52 = vpop.permute.xlu0 %3969 }
 0x711   : > { %4578 = vrot.lane.b32.xlu0 %v3936_v60, %s6026_s11  ;;  %4771 = vrot.lane.b32.xlu1 %v3939_v49, %s6037_s9 }
 0x713   : > { %v9269_v28 = vpop.permute.xlu1 %4604  ;;  %v9271_v4 = vpop.permute.xlu0 %4093 }
 0x714   : > { %11438 = vst [vmem:[#allocation131_spill] sm:$0xff] %v9269_v28 }
 0x715   : > { %4584 = vrot.lane.b32.xlu1 %v3939_v49, %s6026_s11  ;;  %3981 = vrot.lane.b32.xlu0 %v9254_v61, %s6028_s21 }
 0x717   : > { %v9279_v0 = vpop.permute.xlu1 %4600  ;;  %v9281_v58 = vpop.permute.xlu0 %4699 }
 0x718   : > { %11439 = vst [vmem:[#allocation82_spill] sm:$0xff] %v9279_v0  ;;  %11440 = vst [vmem:[#allocation136_spill] sm:$0xff] %v9281_v58 }
 0x719   : > { %3987 = vrot.lane.b32.xlu1 %v9277_v43, %s6028_s21  ;;  %4105 = vrot.lane.b32.xlu0 %v9254_v61, %s6032_s24 }
 0x71b   : > { %v9288_v63 = vpop.permute.xlu1 %3971  ;;  %v9290_v22 = vpop.permute.xlu0 %3965 }
 0x71c   : > { %11441 = vst [vmem:[#allocation96_spill] sm:$0xff] %v9288_v63  ;;  %v11545_v63 = vld [vmem:[#allocation3_spill] sm:$0xff] }
 0x71d   : > { %4111 = vrot.lane.b32.xlu1 %v9277_v43, %s6032_s24  ;;  %4679 = vrot.lane.b32.xlu0 %v3939_v49, %s6041_s13  ;;  %v3577_v49 = vmul.f32 0.01, %v3461_v57 }
 0x71f   : > { %v9297_v51 = vpop.permute.xlu1 %4095  ;;  %v9299_v48 = vpop.permute.xlu0 %4089  ;;  %v3609_v33 = vsel %vm3545_vm8, %v3461_v57, %v3577_v49  ;;  %v3578_v57 = vmul.f32 0.01, %v3464_v29  ;;  %v3865_v49 = vrot.slane %v3863_v37, 1 }
 0x720   : > { %v9337_v17 = vpack.c.bf16 %v3609_v33, %v3609_v33  ;;  %v3861_v33 = vshrl.u32 %v9254_v61, 16 }
 0x721   : > { %4580 = vrot.lane.b32.xlu1 %v3937_v34, %s6026_s11  ;;  %4711 = vrot.lane.b32.xlu0 %v9254_v61, %s6038_s10  ;;  %v3610_v13 = vsel %vm3546_vm14, %v3464_v29, %v3578_v57  ;;  %v9376_v57 = vpack.c.bf16 %v3608_v47, %v3608_v47 }
 0x722   : > { %11444 = vst [vmem:[#allocation145_spill] sm:$0xff] %v9337_v17  ;;  %v3866_v32 = vor.u32 %v3865_v49, %v3861_v33  ;;  %v9360_v21 = vpack.c.bf16 %v3610_v13, %v3610_v13 }
 0x723   : > { %v9306_v44 = vpop.permute.xlu1 %4701  ;;  %v9308_v60 = vpop.permute.xlu0 %4190 }
 0x724   : > { %11442 = vst [vmem:[#allocation146_spill] sm:$0xff] %v9306_v44  ;;  %11449 = vst [vmem:[#allocation56_spill] sm:$0xff] %v9360_v21  ;;  %v9370_v29 = vsel %vm6164_vm6, %v3866_v32, 0 }
 0x725   : > { %4767 = vrot.lane.b32.xlu1 %v3937_v34, %s6037_s9  ;;  %4206 = vrot.lane.b32.xlu0 %v9277_v43, %s6040_s22 }
 0x727   : > { %v9317_v26 = vpop.permute.xlu1 %3967  ;;  %v9319_v45 = vpop.permute.xlu0 %4606 }
 0x728   : > { %11443 = vst [vmem:[#allocation132_spill] sm:$0xff] %v9319_v45  ;;  %v3472_v45 = vadd.f32 %v9038_v15, %v9170_v7 }
 0x729   : > { %3983 = vrot.lane.b32.xlu1 %v9315_v59, %s6028_s21  ;;  %4675 = vrot.lane.b32.xlu0 %v3937_v34, %s6041_s13 }
 0x72a   : > { %vm3548_vm5 = vcmp.ge.f32.partialorder %v3472_v45, 0.0 }
 0x72b   : > { %v9326_v50 = vpop.permute.xlu1 %4091  ;;  %v9328_v30 = vpop.permute.xlu0 %4186 }
 0x72d   : > { %4107 = vrot.lane.b32.xlu1 %v9315_v59, %s6032_s24  ;;  %4202 = vrot.lane.b32.xlu0 %v9315_v59, %s6040_s22 }
 0x72f   : > { %v9339_v9 = vpop.permute.xlu1 %4697  ;;  %v9341_v34 = vpop.permute.xlu0 %4602 }
 0x730   : > { %11445 = vst [vmem:[#allocation142_spill] sm:$0xff] %v9339_v9  ;;  %11446 = vst [vmem:[#allocation107_spill] sm:$0xff] %v9341_v34  ;;  %v3480_v9 = vadd.f32 %v9166_v20, %v9038_v15 }
 0x731   : > { %4212 = vrot.lane.b32.xlu1 %v9337_v17, %s6040_s22  ;;  %3993 = vrot.lane.b32.xlu0 %v9337_v17, %s6028_s21 }
 0x732   : > { %vm3550_vm3 = vcmp.ge.f32.partialorder %v3480_v9, 0.0 }
 0x733   : > { %v9352_v44 = vpop.permute.xlu1 %4669  ;;  %v9354_v12 = vpop.permute.xlu0 %4574 }
 0x734   : > { %11447 = vst [vmem:[#allocation59_spill] sm:$0xff] %v9352_v44  ;;  %11448 = vst [vmem:[#allocation78_spill] sm:$0xff] %v9354_v12  ;;  %v3477_v44 = vadd.f32 %v9162_v41, %v9038_v15 }
 0x735   : > { %4208 = vrot.lane.b32.xlu1 %v9350_v3, %s6040_s22  ;;  %4117 = vrot.lane.b32.xlu0 %v9337_v17, %s6032_s24 }
 0x736   : > { %v3581_v14 = vmul.f32 0.01, %v3477_v44  ;;  %vm3549_vm0 = vcmp.ge.f32.partialorder %v3477_v44, 0.0 }
 0x737   : > { %v9362_v37 = vpop.permute.xlu1 %4196  ;;  %v9364_v1 = vpop.permute.xlu0 %4761 }
 0x738   : > { %11450 = vst [vmem:[#allocation75_spill] sm:$0xff] %v9362_v37  ;;  %11451 = vst [vmem:[#allocation92_spill] sm:$0xff] %v9364_v1  ;;  %v3613_v13 = vsel %vm3549_vm0, %v3477_v44, %v3581_v14  ;;  %vm5200_vm0 = vcmask 1041408  }
 0x739   : > { %4119 = vrot.lane.b32.xlu1 %v9360_v21, %s6032_s24  ;;  %4773 = vrot.lane.b32.xlu0 %v9370_v29, %s6037_s9  ;;  %v9394_v47 = vpack.c.bf16 %v3613_v13, %v3613_v13 }
 0x73b   : > { %v9378_v49 = vpop.permute.xlu1 %4665  ;;  %v9380_v33 = vpop.permute.xlu0 %3977  ;;  %v3675_v12 = vshrl.u32 %v9394_v47, 16 }
 0x73c   : > { %11452 = vst [vmem:[#allocation168_spill] sm:$0xff] %v9378_v49  ;;  %11453 = vst [vmem:[#allocation66_spill] sm:$0xff] %v9380_v33  ;;  %v3582_v49 = vmul.f32 0.01, %v3480_v9 }
 0x73d   : > { %3991 = vrot.lane.b32.xlu1 %v9376_v57, %s6028_s21  ;;  %3989 = vrot.lane.b32.xlu0 %v9350_v3, %s6028_s21 }
 0x73f   : > { %v9386_v41 = vpop.permute.xlu1 %4612  ;;  %v9388_v32 = vpop.permute.xlu0 %4101 }
 0x740   : > { %11454 = vst [vmem:[#allocation20_spill] sm:$0xff] %v9386_v41  ;;  %11455 = vst [vmem:[#allocation164_spill] sm:$0xff] %v9388_v32  ;;  %v3579_v41 = vmul.f32 0.01, %v3469_v27 }
 0x741   : > { %4115 = vrot.lane.b32.xlu1 %v9376_v57, %s6032_s24  ;;  %4113 = vrot.lane.b32.xlu0 %v9350_v3, %s6032_s24 }
 0x742   : > { %v3611_v46 = vsel %vm3547_vm2, %v3469_v27, %v3579_v41  ;;  %v3614_v41 = vsel %vm3550_vm3, %v3480_v9, %v3582_v49 }
 0x743   : > { %v9396_v24 = vpop.permute.xlu1 %4192  ;;  %v9398_v1 = vpop.permute.xlu0 %4570 }
 0x744   : > { %11456 = vst [vmem:[#allocation141_spill] sm:$0xff] %v9398_v1 }
 0x745   : > { %4014 = vrot.lane.b32.xlu1 %v9394_v47, %s6026_s11  ;;  %4214 = vrot.lane.b32.xlu0 %v9360_v21, %s6040_s22 }
 0x747   : > { %v9406_v44 = vpop.permute.xlu1 %4763  ;;  %v9408_v14 = vpop.permute.xlu0 %4707 }
 0x748   : > { %11457 = vst [vmem:[#allocation80_spill] sm:$0xff] %v9406_v44  ;;  %11458 = vst [vmem:[#allocation116_spill] sm:$0xff] %v9408_v14  ;;  %v9424_v44 = vpack.c.bf16 %v3611_v46, %v3611_v46  ;;  %v9442_v46 = vpack.c.bf16 %v3614_v41, %v3614_v41 }
 0x749   : > { %4220 = vrot.lane.b32.xlu1 %v9394_v47, %s6037_s9  ;;  %4210 = vrot.lane.b32.xlu0 %v9376_v57, %s6040_s22 }
 0x74b   : > { %v9414_v13 = vpop.permute.xlu1 %4576  ;;  %v9416_v40 = vpop.permute.xlu0 %3973 }
 0x74c   : > { %11459 = vst [vmem:[#allocation121_spill] sm:$0xff] %v9414_v13 }
 0x74d   : > { %4636 = vrot.lane.b32.xlu1 %v9394_v47, %s6032_s24  ;;  %4126 = vrot.lane.b32.xlu0 %v9394_v47, %s6041_s13 }
 0x74f   : > { %v9426_v14 = vpop.permute.xlu1 %4608  ;;  %v9428_v58 = vpop.permute.xlu0 %4097 }
 0x750   : > { %11460 = vst [vmem:[#allocation114_spill] sm:$0xff] %v9426_v14  ;;  %11461 = vst [vmem:[#allocation26_spill] sm:$0xff] %v9428_v58 }
 0x751   : > { %4010 = vrot.lane.b32.xlu1 %v9424_v44, %s6026_s11  ;;  %4527 = vrot.lane.b32.xlu0 %v9394_v47, %s6028_s21 }
 0x753   : > { %v9434_v20 = vpop.permute.xlu1 %3979  ;;  %v9436_v27 = vpop.permute.xlu0 %4671 }
 0x754   : > { %11462 = vst [vmem:[#allocation25_spill] sm:$0xff] %v9434_v20  ;;  %11463 = vst [vmem:[#allocation103_spill] sm:$0xff] %v9436_v27  ;;  %v3580_v27 = vmul.f32 0.01, %v3472_v45 }
 0x755   : > { %4632 = vrot.lane.b32.xlu1 %v9424_v44, %s6032_s24  ;;  %4731 = vrot.lane.b32.xlu0 %v9394_v47, %s6040_s22 }
 0x757   : > { %v9444_v14 = vpop.permute.xlu1 %4103  ;;  %v9446_v13 = vpop.permute.xlu0 %4703 }
 0x758   : > { %11464 = vst [vmem:[#allocation28_spill] sm:$0xff] %v9444_v14  ;;  %11465 = vst [vmem:[#allocation45_spill] sm:$0xff] %v9446_v13  ;;  %v3612_v13 = vsel %vm3548_vm5, %v3472_v45, %v3580_v27 }
 0x759   : > { %4128 = vrot.lane.b32.xlu1 %v9442_v46, %s6041_s13  ;;  %4122 = vrot.lane.b32.xlu0 %v9424_v44, %s6041_s13  ;;  %v9470_v28 = vpack.c.bf16 %v3612_v13, %v3612_v13  ;;  %v3493_v13 = vadd.f32 %v9179_v53, %v9038_v15 }
 0x75b   : > { %v9454_v9 = vpop.permute.xlu1 %4572  ;;  %v9456_v49 = vpop.permute.xlu0 %4198  ;;  %v3585_v34 = vmul.f32 0.01, %v3493_v13  ;;  %vm3553_vm7 = vcmp.ge.f32.partialorder %v3493_v13, 0.0 }
 0x75c   : > { %11466 = vst [vmem:[#allocation61_spill] sm:$0xff] %v9454_v9  ;;  %11467 = vst [vmem:[#allocation46_spill] sm:$0xff] %v9456_v49 }
 0x75d   : > { %4733 = vrot.lane.b32.xlu1 %v9442_v46, %s6040_s22  ;;  %4523 = vrot.lane.b32.xlu0 %v9424_v44, %s6028_s21  ;;  %v3617_v0 = vsel %vm3553_vm7, %v3493_v13, %v3585_v34  ;;  %v3485_v34 = vadd.f32 %v9038_v15, %v9181_v16 }
 0x75f   : > { %v9462_v41 = vpop.permute.xlu1 %4759  ;;  %v9464_v7 = vpop.permute.xlu0 %4667  ;;  %v3583_v54 = vmul.f32 0.01, %v3485_v34  ;;  %vm3551_vm8 = vcmp.ge.f32.partialorder %v3485_v34, 0.0 }
 0x760   : > { %11468 = vst [vmem:[#allocation43_spill] sm:$0xff] %v9462_v41  ;;  %11469 = vst [vmem:[#allocation90_spill] sm:$0xff] %v9464_v7  ;;  %v3677_v41 = vrot.slane %v3675_v12, 7 }
 0x761   : > { %4529 = vrot.lane.b32.xlu1 %v9442_v46, %s6028_s21  ;;  %4016 = vrot.lane.b32.xlu0 %v9442_v46, %s6026_s11 }
 0x763   : > { %v9472_v56 = vpop.permute.xlu1 %4709  ;;  %v9474_v25 = vpop.permute.xlu0 %4614 }
 0x764   : > { %11470 = vst [vmem:[#allocation58_spill] sm:$0xff] %v9472_v56  ;;  %11471 = vst [vmem:[#allocation12_spill] sm:$0xff] %v9474_v25  ;;  %v3678_v56 = vshll.u32 %v9394_v47, 16 }
 0x765   : > { %4124 = vrot.lane.b32.xlu1 %v9470_v28, %s6041_s13  ;;  %4222 = vrot.lane.b32.xlu0 %v9442_v46, %s6037_s9 }
 0x766   : > { %v3680_v9 = vor.u32 %v3678_v56, %v3677_v41  ;;  %v9513_v56 = vpack.c.bf16 %v3617_v0, %v3617_v0 }
 0x767   : > { %v9481_v45 = vpop.permute.xlu1 %3975  ;;  %v9483_v27 = vpop.permute.xlu0 %4194 }
 0x768   : > { %11472 = vst [vmem:[#allocation113_spill] sm:$0xff] %v9481_v45  ;;  %11473 = vst [vmem:[#allocation87_spill] sm:$0xff] %v9483_v27  ;;  %v9506_v47 = vsel %vm6151_vm4, 0, %v3680_v9  ;;  %v3664_v9 = vshll.u32 %v9424_v44, 16 }
 0x769   : > { %4525 = vrot.lane.b32.xlu1 %v9470_v28, %s6028_s21  ;;  %4638 = vrot.lane.b32.xlu0 %v9442_v46, %s6032_s24 }
 0x76b   : > { %v9492_v25 = vpop.permute.xlu1 %4099  ;;  %v9494_v7 = vpop.permute.xlu0 %4610 }
 0x76c   : > { %11474 = vst [vmem:[#allocation33_spill] sm:$0xff] %v9494_v7  ;;  %v3661_v7 = vshrl.u32 %v9424_v44, 16  ;;  %v3615_v44 = vsel %vm3551_vm8, %v3485_v34, %v3583_v54  ;;  %v3668_v34 = vshrl.u32 %v9470_v28, 16 }
 0x76d   : > { %4729 = vrot.lane.b32.xlu1 %v9470_v28, %s6040_s22  ;;  %4012 = vrot.lane.b32.xlu0 %v9470_v28, %s6026_s11 }
 0x76e   : > { %v3663_v13 = vrot.slane %v3661_v7, 7 }
 0x76f   : > { %v9500_v53 = vpop.permute.xlu1 %4705  ;;  %v9502_v12 = vpop.permute.xlu0 %4582 }
 0x770   : > { %11475 = vst [vmem:[#allocation47_spill] sm:$0xff] %v9500_v53  ;;  %11476 = vst [vmem:[#allocation154_spill] sm:$0xff] %v9502_v12 }
 0x771   : > { %4156 = vrot.lane.b32.xlu1 %v9506_v47, %s6038_s10  ;;  %4218 = vrot.lane.b32.xlu0 %v9470_v28, %s6037_s9 }
 0x773   : > { %v9515_v41 = vpop.permute.xlu1 %4677  ;;  %v9517_v53 = vpop.permute.xlu0 %4769 }
 0x774   : > { %11478 = vst [vmem:[#allocation158_spill] sm:$0xff] %v9515_v41  ;;  %11479 = vst [vmem:[#allocation16_spill] sm:$0xff] %v9517_v53  ;;  %v3682_v41 = vshrl.u32 %v9442_v46, 16  ;;  %v3666_v53 = vor.u32 %v3664_v9, %v3663_v13  ;;  %v3685_v13 = vshll.u32 %v9442_v46, 16  ;;  %v9548_v9 = vpack.c.bf16 %v3615_v44, %v3615_v44 }
 0x775   : > { %4022 = vrot.lane.b32.xlu1 %v9513_v56, %s6026_s11  ;;  %4634 = vrot.lane.b32.xlu0 %v9470_v28, %s6032_s24 }
 0x776   : > { %v3684_v38 = vrot.slane %v3682_v41, 7  ;;  %v9541_v1 = vsel %vm6151_vm4, 0, %v3666_v53 }
 0x777   : > { %v9526_v12 = vpop.permute.xlu1 %4204  ;;  %v9528_v0 = vpop.permute.xlu0 %3985 }
 0x778   : > { %11480 = vst [vmem:[#allocation51_spill] sm:$0xff] %v9526_v12  ;;  %11481 = vst [vmem:[#allocation44_spill] sm:$0xff] %v9528_v0  ;;  %v3687_v54 = vor.u32 %v3685_v13, %v3684_v38  ;;  %v3496_v13 = vadd.f32 %v9183_v39, %v9038_v15  ;;  %v3706_v0 = vshll.u32 %v9513_v56, 16 }
 0x779   : > { %4228 = vrot.lane.b32.xlu1 %v9513_v56, %s6037_s9  ;;  %4060 = vrot.lane.b32.xlu0 %v9506_v47, %s6027_s12 }
 0x77a   : > { %v9564_v46 = vsel %vm6151_vm4, 0, %v3687_v54  ;;  %v3671_v54 = vshll.u32 %v9470_v28, 16  ;;  %v3586_v12 = vmul.f32 0.01, %v3496_v13  ;;  %vm3554_vm13 = vcmp.ge.f32.partialorder %v3496_v13, 0.0 }
 0x77b   : > { %v9535_v16 = vpop.permute.xlu1 %4673  ;;  %v9537_v7 = vpop.permute.xlu0 %4109  ;;  %11488 = vst [vmem:[#allocation95_spill] sm:$0xff] %v9564_v46 }
 0x77c   : > { %11482 = vst [vmem:[#allocation72_spill] sm:$0xff] %v9535_v16  ;;  %11483 = vst [vmem:[#allocation111_spill] sm:$0xff] %v9537_v7  ;;  %v3618_v7 = vsel %vm3554_vm13, %v3496_v13, %v3586_v12 }
 0x77d   : > { %4644 = vrot.lane.b32.xlu1 %v9513_v56, %s6032_s24  ;;  %4056 = vrot.lane.b32.xlu0 %v9541_v1, %s6027_s12 }
 0x77f   : > { %v9550_v23 = vpop.permute.xlu1 %4200  ;;  %v9552_v16 = vpop.permute.xlu0 %4765 }
 0x780   : > { %11484 = vst [vmem:[#allocation18_spill] sm:$0xff] %v9550_v23  ;;  %11485 = vst [vmem:[#allocation165_spill] sm:$0xff] %v9552_v16 }
 0x781   : > { %4018 = vrot.lane.b32.xlu1 %v9548_v9, %s6026_s11  ;;  %4134 = vrot.lane.b32.xlu0 %v9513_v56, %s6041_s13 }
 0x783   : > { %v9558_v53 = vpop.permute.xlu1 %4771  ;;  %v9560_v41 = vpop.permute.xlu0 %4578 }
 0x784   : > { %11486 = vst [vmem:[#allocation120_spill] sm:$0xff] %v9558_v53  ;;  %11487 = vst [vmem:[#allocation150_spill] sm:$0xff] %v9560_v41  ;;  %v3670_v53 = vrot.slane %v3668_v34, 7 }
 0x785   : > { %4062 = vrot.lane.b32.xlu1 %v9564_v46, %s6027_s12  ;;  %4535 = vrot.lane.b32.xlu0 %v9513_v56, %s6028_s21 }
 0x787   : > { %v9571_v38 = vpop.permute.xlu1 %4584  ;;  %v9573_v44 = vpop.permute.xlu0 %3981 }
 0x788   : > { %11489 = vst [vmem:[#allocation135_spill] sm:$0xff] %v9571_v38  ;;  %11490 = vst [vmem:[#allocation155_spill] sm:$0xff] %v9573_v44  ;;  %v3673_v38 = vor.u32 %v3671_v54, %v3670_v53  ;;  %v9602_v53 = vpack.c.bf16 %v3618_v7, %v3618_v7 }
 0x789   : > { %4224 = vrot.lane.b32.xlu1 %v9548_v9, %s6037_s9  ;;  %4739 = vrot.lane.b32.xlu0 %v9513_v56, %s6040_s22 }
 0x78a   : > { %v9596_v28 = vsel %vm6151_vm4, 0, %v3673_v38 }
 0x78b   : > { %v9582_v16 = vpop.permute.xlu1 %3987  ;;  %v9584_v41 = vpop.permute.xlu0 %4105 }
 0x78c   : > { %11491 = vst [vmem:[#allocation6_spill] sm:$0xff] %v9582_v16  ;;  %11492 = vst [vmem:[#allocation62_spill] sm:$0xff] %v9584_v41  ;;  %v5998_v41 = vld [vmem:[%s10854_s6] sm:$0xff]  }
 0x78d   : > { %4640 = vrot.lane.b32.xlu1 %v9548_v9, %s6032_s24  ;;  %4130 = vrot.lane.b32.xlu0 %v9548_v9, %s6041_s13 }
 0x78e   : > { %5853 = vmatprep.subr.bf16.mxu0 %v5998_v41 }
 0x78f   : > { %v9590_v39 = vpop.permute.xlu1 %4111  ;;  %v9592_v34 = vpop.permute.xlu0 %4679  ;;  %5854 = vmatpush3.bf16.msra.mxu0 %v5998_v41 }
 0x790   : > { %11493 = vst [vmem:[#allocation156_spill] sm:$0xff] %v9590_v39  ;;  %11494 = vst [vmem:[#allocation110_spill] sm:$0xff] %v9592_v34  ;;  %v3488_v34 = vadd.f32 %v9038_v15, %v9185_v19  ;;  %v3703_v39 = vshrl.u32 %v9513_v56, 16 }
 0x791   : > { %4058 = vrot.lane.b32.xlu1 %v9596_v28, %s6027_s12  ;;  %4158 = vrot.lane.b32.xlu0 %v9564_v46, %s6038_s10 }
 0x792   : > { %v3584_v13 = vmul.f32 0.01, %v3488_v34  ;;  %vm3552_vm14 = vcmp.ge.f32.partialorder %v3488_v34, 0.0 }
 0x793   : > { %v9604_v54 = vpop.permute.xlu1 %4580  ;;  %v9606_v16 = vpop.permute.xlu0 %4711 }
 0x794   : > { %11495 = vst [vmem:[#allocation159_spill] sm:$0xff] %v9604_v54  ;;  %11496 = vst [vmem:[#allocation167_spill] sm:$0xff] %v9606_v16  ;;  %v3616_v16 = vsel %vm3552_vm14, %v3488_v34, %v3584_v13  ;;  %v3509_v13 = vadd.f32 %v9200_v8, %v9038_v15 }
 0x795   : > { %4136 = vrot.lane.b32.xlu1 %v9602_v53, %s6041_s13  ;;  %4735 = vrot.lane.b32.xlu0 %v9548_v9, %s6040_s22 }
 0x796   : > { %v3589_v8 = vmul.f32 0.01, %v3509_v13  ;;  %vm3557_vm15 = vcmp.ge.f32.partialorder %v3509_v13, 0.0 }
 0x797   : > { %v9614_v12 = vpop.permute.xlu1 %4767  ;;  %v9616_v38 = vpop.permute.xlu0 %4206 }
 0x798   : > { %11497 = vst [vmem:[#allocation7_spill] sm:$0xff] %v9614_v12  ;;  %11498 = vst [vmem:[#allocation94_spill] sm:$0xff] %v9616_v38  ;;  %v9630_v12 = vpack.c.bf16 %v3616_v16, %v3616_v16 }
 0x799   : > { %4741 = vrot.lane.b32.xlu1 %v9602_v53, %s6040_s22  ;;  %4531 = vrot.lane.b32.xlu0 %v9548_v9, %s6028_s21 }
 0x79b   : > { %v9622_v7 = vpop.permute.xlu1 %3983  ;;  %v9624_v19 = vpop.permute.xlu0 %4675 }
 0x79c   : > { %11499 = vst [vmem:[#allocation176_spill] sm:$0xff] %v9622_v7  ;;  %11500 = vst [vmem:[#allocation157_spill] sm:$0xff] %v9624_v19  ;;  %v3705_v19 = vrot.slane %v3703_v39, 7 }
 0x79d   : > { %4537 = vrot.lane.b32.xlu1 %v9602_v53, %s6028_s21  ;;  %4024 = vrot.lane.b32.xlu0 %v9602_v53, %s6026_s11 }
 0x79e   : > { %v3708_v39 = vor.u32 %v3706_v0, %v3705_v19 }
 0x79f   : > { %v9632_v54 = vpop.permute.xlu1 %4107  ;;  %v9634_v38 = vpop.permute.xlu0 %4202 }
 0x7a0   : > { %11501 = vst [vmem:[#allocation73_spill] sm:$0xff] %v9632_v54  ;;  %11502 = vst [vmem:[#allocation128_spill] sm:$0xff] %v9634_v38  ;;  %v5999_v38 = vld [vmem:[%s10854_s6 + $0x8] sm:$0xff]   ;;  %v9676_v0 = vsel %vm6151_vm4, 0, %v3708_v39  ;;  %v3696_v54 = vshrl.u32 %v9630_v12, 16 }
 0x7a1   : > { %4132 = vrot.lane.b32.xlu1 %v9630_v12, %s6041_s13  ;;  %4154 = vrot.lane.b32.xlu0 %v9596_v28, %s6038_s10  ;;  %11509 = vst [vmem:[#allocation32_spill] sm:$0xff] %v9676_v0 }
 0x7a2   : > { %5855 = vmatprep.subr.bf16.mxu0 %v5999_v38 }
 0x7a3   : > { %v9644_v34 = vpop.permute.xlu1 %4212  ;;  %v9646_v16 = vpop.permute.xlu0 %3993  ;;  %5856 = vmatpush3.bf16.msra.mxu0 %v5999_v38  ;;  %v3621_v38 = vsel %vm3557_vm15, %v3509_v13, %v3589_v8  ;;  %vm4328_vm15 = vcmask 97280  }
 0x7a4   : > { %11503 = vst [vmem:[#allocation54_spill] sm:$0xff] %v9644_v34  ;;  %11504 = vst [vmem:[#allocation35_spill] sm:$0xff] %v9646_v16  ;;  %v3689_v16 = vshrl.u32 %v9548_v9, 16 }
 0x7a5   : > { %4533 = vrot.lane.b32.xlu1 %v9630_v12, %s6028_s21  ;;  %4230 = vrot.lane.b32.xlu0 %v9602_v53, %s6037_s9 }
 0x7a6   : > { %v3691_v19 = vrot.slane %v3689_v16, 7  ;;  %v3501_v16 = vadd.f32 %v9038_v15, %v9202_v10 }
 0x7a7   : > { %v9658_v34 = vpop.permute.xlu1 %4208  ;;  %v9660_v41 = vpop.permute.xlu0 %4117 }
 0x7a8   : > { %11505 = vst [vmem:[#allocation70_spill] sm:$0xff] %v9658_v34  ;;  %11506 = vst [vmem:[#allocation118_spill] sm:$0xff] %v9660_v41  ;;  %v6000_v41 = vld [vmem:[%s10854_s6 + $0x10] ss:$0 sps:$4 sm:$0x33]   ;;  %v9683_v34 = vpack.c.bf16 %v3621_v38, %v3621_v38  ;;  %vm3555_vm2 = vcmp.ge.f32.partialorder %v3501_v16, 0.0 }
 0x7a9   : > { %4737 = vrot.lane.b32.xlu1 %v9630_v12, %s6040_s22  ;;  %4646 = vrot.lane.b32.xlu0 %v9602_v53, %s6032_s24 }
 0x7aa   : > { %5893 = vmatprep.subr.msk.bf16.mxu0 %vm5200_vm0, %v6000_v41 }
 0x7ab   : > { %v9667_v21 = vpop.permute.xlu1 %4119  ;;  %v9669_v56 = vpop.permute.xlu0 %4773 }
 0x7ac   : > { %11507 = vst [vmem:[#allocation41_spill] sm:$0xff] %v9667_v21  ;;  %11508 = vst [vmem:[#allocation84_spill] sm:$0xff] %v9669_v56  ;;  %v5202_v21 = vsel %vm5200_vm0, %v6000_v41, 0  ;;  %v3692_v56 = vshll.u32 %v9548_v9, 16  ;;  %v3587_v41 = vmul.f32 0.01, %v3501_v16 }
 0x7ad   : > { %4164 = vrot.lane.b32.xlu1 %v9676_v0, %s6038_s10  ;;  %4020 = vrot.lane.b32.xlu0 %v9630_v12, %s6026_s11  ;;  %vm4393_vm0 = vcmask 162816  }
 0x7ae   : > { %5858 = vmatpush3.bf16.msra.mxu0 %v5202_v21  ;;  %v3694_v8 = vor.u32 %v3692_v56, %v3691_v19  ;;  %v3710_v21 = vshrl.u32 %v9602_v53, 16  ;;  %v3619_v19 = vsel %vm3555_vm2, %v3501_v16, %v3587_v41  ;;  %vm5151_vm2 = vcmask 293888  }
 0x7af   : > { %v9685_v7 = vpop.permute.xlu1 %3991  ;;  %v9687_v13 = vpop.permute.xlu0 %3989 }
 0x7b0   : > { %11510 = vst [vmem:[#allocation170_spill] sm:$0xff] %v9685_v7  ;;  %11511 = vst [vmem:[#allocation88_spill] sm:$0xff] %v9687_v13  ;;  %v9701_v38 = vsel %vm6151_vm4, 0, %v3694_v8  ;;  %v3713_v8 = vshll.u32 %v9602_v53, 16  ;;  %v3512_v53 = vadd.f32 %v9205_v31, %v9038_v15  ;;  %v3504_v31 = vadd.f32 %v9038_v15, %v9210_v55 }
 0x7b1   : > { %4030 = vrot.lane.b32.xlu1 %v9683_v34, %s6026_s11  ;;  %4226 = vrot.lane.b32.xlu0 %v9630_v12, %s6037_s9 }
 0x7b2   : > { %vm3558_vm3 = vcmp.ge.f32.partialorder %v3512_v53, 0.0  ;;  %v3588_v44 = vmul.f32 0.01, %v3504_v31  ;;  %vm3556_vm5 = vcmp.ge.f32.partialorder %v3504_v31, 0.0 }
 0x7b3   : > { %v9695_v39 = vpop.permute.xlu1 %4115  ;;  %v9697_v9 = vpop.permute.xlu0 %4113 }
 0x7b4   : > { %11512 = vst [vmem:[#allocation22_spill] sm:$0xff] %v9695_v39  ;;  %11513 = vst [vmem:[#allocation98_spill] sm:$0xff] %v9697_v9  ;;  %v3712_v9 = vrot.slane %v3710_v21, 7  ;;  %v9717_v39 = vpack.c.bf16 %v3619_v19, %v3619_v19  ;;  %v3699_v19 = vshll.u32 %v9630_v12, 16 }
 0x7b5   : > { %4160 = vrot.lane.b32.xlu1 %v9701_v38, %s6038_s10  ;;  %4642 = vrot.lane.b32.xlu0 %v9630_v12, %s6032_s24 }
 0x7b6   : > { %v3715_v20 = vor.u32 %v3713_v8, %v3712_v9  ;;  %v3698_v9 = vrot.slane %v3696_v54, 7  ;;  %v3717_v17 = vshrl.u32 %v9717_v39, 16 }
 0x7b7   : > { %v9708_v10 = vpop.permute.xlu1 %4014  ;;  %v9710_v56 = vpop.permute.xlu0 %4214 }
 0x7b8   : > { %11514 = vst [vmem:[#allocation148_spill] sm:$0xff] %v9710_v56  ;;  %v9736_v21 = vsel %vm6151_vm4, 0, %v3715_v20  ;;  %v3590_v56 = vmul.f32 0.01, %v3512_v53  ;;  %v3719_v49 = vrot.slane %v3717_v17, 7 }
 0x7b9   : > { %4236 = vrot.lane.b32.xlu1 %v9683_v34, %s6037_s9  ;;  %4068 = vrot.lane.b32.xlu0 %v9676_v0, %s6027_s12  ;;  %11517 = vst [vmem:[#allocation30_spill] sm:$0xff] %v9736_v21 }
 0x7ba   : > { %v3622_v12 = vsel %vm3558_vm3, %v3512_v53, %v3590_v56  ;;  %v3731_v56 = vshrl.u32 %v9683_v34, 16 }
 0x7bb   : > { %v9719_v7 = vpop.permute.xlu1 %4220  ;;  %v9721_v13 = vpop.permute.xlu0 %4210  ;;  %v9765_v15 = vpack.c.bf16 %v3622_v12, %v3622_v12  ;;  %v6017_v12 = vld [vmem:[%s10853_s5] ss:$0 sm:$0xff] }
 0x7bc   : > { %11515 = vst [vmem:[#allocation9_spill] sm:$0xff] %v9721_v13 }
 0x7bd   : > { %4026 = vrot.lane.b32.xlu1 %v9717_v39, %s6026_s11  ;;  %4064 = vrot.lane.b32.xlu0 %v9701_v38, %s6027_s12 }
 0x7bf   : > { %v9728_v16 = vpop.permute.xlu1 %4636  ;;  %v9730_v41 = vpop.permute.xlu0 %4126 }
 0x7c0   : > { %11516 = vst [vmem:[#allocation161_spill] sm:$0xff] %v9728_v16  ;;  %v3701_v16 = vor.u32 %v3699_v19, %v3698_v9  ;;  %v3620_v19 = vsel %vm3556_vm5, %v3504_v31, %v3588_v44  ;;  %v3525_v44 = vadd.f32 %v6017_v12, %v9222_v2  ;;  %v3733_v31 = vrot.slane %v3731_v56, 7 }
 0x7c1   : > { %4070 = vrot.lane.b32.xlu1 %v9736_v21, %s6027_s12  ;;  %4142 = vrot.lane.b32.xlu0 %v9683_v34, %s6041_s13 }
 0x7c2   : > { %vm3561_vm7 = vcmp.ge.f32.partialorder %v3525_v44, 0.0 }
 0x7c3   : > { %v9743_v8 = vpop.permute.xlu1 %4010  ;;  %v9745_v13 = vpop.permute.xlu0 %4527 }
 0x7c4   : > { %11518 = vst [vmem:[#allocation23_spill] sm:$0xff] %v9745_v13  ;;  %v9759_v13 = vsel %vm6151_vm4, 0, %v3701_v16  ;;  %v9776_v16 = vpack.c.bf16 %v3620_v19, %v3620_v19  ;;  %v3734_v19 = vshll.u32 %v9683_v34, 16 }
 0x7c5   : > { %4232 = vrot.lane.b32.xlu1 %v9717_v39, %s6037_s9  ;;  %4543 = vrot.lane.b32.xlu0 %v9683_v34, %s6028_s21  ;;  %11521 = vst [vmem:[#allocation171_spill] sm:$0xff] %v9759_v13 }
 0x7c6   : > { %v3724_v33 = vshrl.u32 %v9776_v16, 16 }
 0x7c7   : > { %v9753_v20 = vpop.permute.xlu1 %4632  ;;  %v9755_v54 = vpop.permute.xlu0 %4731 }
 0x7c8   : > { %11519 = vst [vmem:[#allocation151_spill] sm:$0xff] %v9753_v20  ;;  %11520 = vst [vmem:[#allocation14_spill] sm:$0xff] %v9755_v54 }
 0x7c9   : > { %4066 = vrot.lane.b32.xlu1 %v9759_v13, %s6027_s12  ;;  %4166 = vrot.lane.b32.xlu0 %v9736_v21, %s6038_s10  ;;  %v3736_v21 = vor.u32 %v3734_v19, %v3733_v31  ;;  %v3720_v31 = vshll.u32 %v9717_v39, 16 }
 0x7cb   : > { %v9767_v55 = vpop.permute.xlu1 %4128  ;;  %v9769_v9 = vpop.permute.xlu0 %4122 }
 0x7cd   : > { %4144 = vrot.lane.b32.xlu1 %v9765_v15, %s6041_s13  ;;  %4138 = vrot.lane.b32.xlu0 %v9717_v39, %s6041_s13 }
 0x7cf   : > { %v9778_v53 = vpop.permute.xlu1 %4733  ;;  %v9780_v54 = vpop.permute.xlu0 %4523 }
 0x7d0   : > { %11522 = vst [vmem:[#allocation38_spill] sm:$0xff] %v9778_v53  ;;  %11523 = vst [vmem:[#allocation76_spill] sm:$0xff] %v9780_v54  ;;  %v3593_v54 = vmul.f32 0.01, %v3525_v44 }
 0x7d1   : > { %4140 = vrot.lane.b32.xlu1 %v9776_v16, %s6041_s13  ;;  %4743 = vrot.lane.b32.xlu0 %v9717_v39, %s6040_s22 }
 0x7d2   : > { %v3625_v23 = vsel %vm3561_vm7, %v3525_v44, %v3593_v54  ;;  %v3517_v54 = vadd.f32 %v6017_v12, %v9226_v42  ;;  %v3722_v44 = vor.u32 %v3720_v31, %v3719_v49 }
 0x7d3   : > { %v9791_v20 = vpop.permute.xlu1 %4529  ;;  %v9793_v53 = vpop.permute.xlu0 %4016  ;;  %v9813_v19 = vpack.c.bf16 %v3625_v23, %v3625_v23 }
 0x7d4   : > { %11524 = vst [vmem:[#allocation57_spill] sm:$0xff] %v9791_v20  ;;  %11525 = vst [vmem:[#allocation100_spill] sm:$0xff] %v9793_v53  ;;  %v9806_v20 = vsel %vm6151_vm4, 0, %v3736_v21  ;;  %v3591_v37 = vmul.f32 0.01, %v3517_v54  ;;  %v9830_v23 = vsel %vm6151_vm4, 0, %v3722_v44 }
 0x7d5   : > { %4541 = vrot.lane.b32.xlu1 %v9776_v16, %s6028_s21  ;;  %4539 = vrot.lane.b32.xlu0 %v9717_v39, %s6028_s21  ;;  %11526 = vst [vmem:[#allocation175_spill] sm:$0xff] %v9806_v20  ;;  %11527 = vst [vmem:[#allocation124_spill] sm:$0xff] %v9813_v19  ;;  %vm3559_vm8 = vcmp.ge.f32.partialorder %v3517_v54, 0.0  ;;  %v3741_v44 = vshll.u32 %v9765_v15, 16 }
 0x7d6   : > { %11531 = vst [vmem:[#allocation152_spill] sm:$0xff] %v9830_v23  ;;  %v3623_v31 = vsel %vm3559_vm8, %v3517_v54, %v3591_v37  ;;  %v3528_v54 = vadd.f32 %v6017_v12, %v9228_v62  ;;  %v3520_v62 = vadd.f32 %v6017_v12, %v9232_v11  ;;  %v3759_v11 = vshrl.u32 %v9813_v19, 16 }
 0x7d7   : > { %v9800_v2 = vpop.permute.xlu1 %4124  ;;  %v9802_v56 = vpop.permute.xlu0 %4222 }
 0x7d8   : > { %vm3562_vm13 = vcmp.ge.f32.partialorder %v3528_v54, 0.0  ;;  %vm3560_vm14 = vcmp.ge.f32.partialorder %v3520_v62, 0.0 }
 0x7d9   : > { %4172 = vrot.lane.b32.xlu1 %v9806_v20, %s6038_s10  ;;  %4032 = vrot.lane.b32.xlu0 %v9765_v15, %s6026_s11 }
 0x7db   : > { %v9815_v27 = vpop.permute.xlu1 %4525  ;;  %v9817_v14 = vpop.permute.xlu0 %4638 }
 0x7dc   : > { %11528 = vst [vmem:[#allocation143_spill] sm:$0xff] %v9815_v27  ;;  %11529 = vst [vmem:[#allocation55_spill] sm:$0xff] %v9817_v14  ;;  %v3738_v14 = vshrl.u32 %v9765_v15, 16  ;;  %v9846_v27 = vpack.c.bf16 %v3623_v31, %v3623_v31 }
 0x7dd   : > { %4038 = vrot.lane.b32.xlu1 %v9813_v19, %s6026_s11  ;;  %4162 = vrot.lane.b32.xlu0 %v9759_v13, %s6038_s10  ;;  %v3592_v13 = vmul.f32 0.01, %v3520_v62 }
 0x7de   : > { %11532 = vst [vmem:[#allocation77_spill] sm:$0xff] %v9846_v27 }
 0x7df   : > { %v9824_v17 = vpop.permute.xlu1 %4729  ;;  %v9826_v21 = vpop.permute.xlu0 %4012 }
 0x7e0   : > { %11530 = vst [vmem:[#allocation36_spill] sm:$0xff] %v9824_v17  ;;  %v3740_v17 = vrot.slane %v3738_v14, 7 }
 0x7e1   : > { %4168 = vrot.lane.b32.xlu1 %v9830_v23, %s6038_s10  ;;  %4238 = vrot.lane.b32.xlu0 %v9765_v15, %s6037_s9 }
 0x7e2   : > { %v3743_v0 = vor.u32 %v3741_v44, %v3740_v17  ;;  %v3727_v17 = vshll.u32 %v9776_v16, 16 }
 0x7e3   : > { %v9837_v42 = vpop.permute.xlu1 %4156  ;;  %v9839_v49 = vpop.permute.xlu0 %4218 }
 0x7e4   : > { %v9864_v31 = vsel %vm6151_vm4, 0, %v3743_v0 }
 0x7e5   : > { %4244 = vrot.lane.b32.xlu1 %v9813_v19, %s6037_s9  ;;  %4028 = vrot.lane.b32.xlu0 %v9776_v16, %s6026_s11  ;;  %11536 = vst [vmem:[#allocation27_spill] sm:$0xff] %v9864_v31 }
 0x7e7   : > { %v9848_v58 = vpop.permute.xlu1 %4022  ;;  %v9850_v32 = vpop.permute.xlu0 %4634 }
 0x7e8   : > { %11533 = vst [vmem:[#allocation102_spill] sm:$0xff] %v9848_v58  ;;  %11534 = vst [vmem:[#allocation129_spill] sm:$0xff] %v9850_v32  ;;  %v3726_v32 = vrot.slane %v3724_v33, 7  ;;  %v3594_v58 = vmul.f32 0.01, %v3528_v54 }
 0x7e9   : > { %4034 = vrot.lane.b32.xlu1 %v9846_v27, %s6026_s11  ;;  %4234 = vrot.lane.b32.xlu0 %v9776_v16, %s6037_s9 }
 0x7ea   : > { %v3729_v53 = vor.u32 %v3727_v17, %v3726_v32 }
 0x7eb   : > { %v9857_v37 = vpop.permute.xlu1 %4228  ;;  %v9859_v14 = vpop.permute.xlu0 %4060 }
 0x7ec   : > { %11535 = vst [vmem:[#allocation174_spill] sm:$0xff] %v9857_v37 }
 0x7ed   : > { %4078 = vrot.lane.b32.xlu1 %v9864_v31, %s6027_s12  ;;  %4076 = vrot.lane.b32.xlu0 %v9806_v20, %s6027_s12  ;;  %v3626_v20 = vsel %vm3562_vm13, %v3528_v54, %v3594_v58  ;;  %v3624_v58 = vsel %vm3560_vm14, %v3520_v62, %v3592_v13  ;;  %v3761_v54 = vrot.slane %v3759_v11, 7  ;;  %v3748_v62 = vshll.u32 %v9846_v27, 16 }
 0x7ee   : > { %v9893_v32 = vpack.c.bf16 %v3626_v20, %v3626_v20 }
 0x7ef   : > { %v9871_v44 = vpop.permute.xlu1 %4644  ;;  %v9873_v37 = vpop.permute.xlu0 %4056 }
 0x7f0   : > { %11537 = vst [vmem:[#allocation19_spill] sm:$0xff] %v9871_v44  ;;  %v9886_v44 = vsel %vm6151_vm4, 0, %v3729_v53  ;;  %11540 = vst [vmem:[#allocation53_spill] sm:$0xff] %v9893_v32  ;;  %v3745_v53 = vshrl.u32 %v9846_v27, 16  ;;  %v3766_v13 = vshrl.u32 %v9893_v32, 16 }
 0x7f1   : > { %4240 = vrot.lane.b32.xlu1 %v9846_v27, %s6037_s9  ;;  %4072 = vrot.lane.b32.xlu0 %v9830_v23, %s6027_s12  ;;  %11539 = vst [vmem:[#allocation117_spill] sm:$0xff] %v9886_v44  ;;  %v3762_v23 = vshll.u32 %v9813_v19, 16 }
 0x7f3   : > { %v9880_v33 = vpop.permute.xlu1 %4018  ;;  %v9882_v0 = vpop.permute.xlu0 %4134  ;;  %v3764_v46 = vor.u32 %v3762_v23, %v3761_v54 }
 0x7f4   : > { %11538 = vst [vmem:[#allocation160_spill] sm:$0xff] %v9882_v0  ;;  %v9905_v0 = vpack.c.bf16 %v3624_v58, %v3624_v58 }
 0x7f5   : > { %4074 = vrot.lane.b32.xlu1 %v9886_v44, %s6027_s12  ;;  %4150 = vrot.lane.b32.xlu0 %v9813_v19, %s6041_s13 }
 0x7f6   : > { %v3752_v23 = vshrl.u32 %v9905_v0, 16 }
 0x7f7   : > { %v9895_v12 = vpop.permute.xlu1 %4062  ;;  %v9897_v17 = vpop.permute.xlu0 %4535 }
 0x7f8   : > { %11541 = vst [vmem:[#allocation169_spill] sm:$0xff] %v9897_v17  ;;  %v3747_v17 = vrot.slane %v3745_v53, 7  ;;  %v3768_v53 = vrot.slane %v3766_v13, 7  ;;  %v4254_v13 = vsel %vm1651_vm9, %v9541_v1, %v9290_v22 }
 0x7f9   : > { %4152 = vrot.lane.b32.xlu1 %v9893_v32, %s6041_s13  ;;  %4174 = vrot.lane.b32.xlu0 %v9864_v31, %s6038_s10  ;;  %v9923_v31 = vsel %vm6151_vm4, 0, %v3764_v46 }
 0x7fa   : > { %v3750_v54 = vor.u32 %v3748_v62, %v3747_v17  ;;  %v3870_v17 = vshll.u32 %v9315_v59, 16  ;;  %v3755_v62 = vshll.u32 %v9905_v0, 16 }
 0x7fb   : > { %v9907_v20 = vpop.permute.xlu1 %4224  ;;  %v9909_v45 = vpop.permute.xlu0 %4739 }
 0x7fc   : > { %11542 = vst [vmem:[#allocation11_spill] sm:$0xff] %v9909_v45  ;;  %v3769_v45 = vshll.u32 %v9893_v32, 16  ;;  %v9935_v46 = vsel %vm6151_vm4, 0, %v3750_v54  ;;  %v3872_v1 = vrot.slane %v3870_v17, 1 }
 0x7fd   : > { %4148 = vrot.lane.b32.xlu1 %v9905_v0, %s6041_s13  ;;  %4146 = vrot.lane.b32.xlu0 %v9846_v27, %s6041_s13 }
 0x7fe   : > { %v3771_v27 = vor.u32 %v3769_v45, %v3768_v53 }
 0x7ff   : > { %v9917_v11 = vpop.permute.xlu1 %4640  ;;  %v9919_v58 = vpop.permute.xlu0 %4130 }
 0x800   : > { %11543 = vst [vmem:[#allocation138_spill] sm:$0xff] %v9917_v11  ;;  %11544 = vst [vmem:[#allocation163_spill] sm:$0xff] %v9919_v58  ;;  %v3754_v58 = vrot.slane %v3752_v23, 7  ;;  %v4299_v23 = vsel %vm356_vm1, %v4254_v13, %v9743_v8  ;;  %v3803_v22 = vsel %vm6151_vm4, 0, %v3771_v27 }
 0x801   : > { %4180 = vrot.lane.b32.xlu1 %v9923_v31, %s6038_s10  ;;  %4170 = vrot.lane.b32.xlu0 %v9886_v44, %s6038_s10 }
 0x802   : > { %v3757_v44 = vor.u32 %v3755_v62, %v3754_v58 }
 0x803   : > { %v4059_v19 = vpop.permute.xlu1 %4058  ;;  %v9931_v11 = vpop.permute.xlu0 %4158 }
 0x804   : > { %v4332_v45 = vsel %vm4328_vm15, %v4299_v23, %v4059_v19  ;;  %v3868_v19 = vshrl.u32 %v9315_v59, 16  ;;  %v9970_v27 = vsel %vm6151_vm4, 0, %v3757_v44  ;;  %vm4458_vm4 = vcmask 228352  }
 0x805   : > { %4176 = vrot.lane.b32.xlu1 %v9935_v46, %s6038_s10  ;;  %4246 = vrot.lane.b32.xlu0 %v9893_v32, %s6037_s9  ;;  %v4251_v32 = vsel %vm1651_vm9, %v11545_v63, %v9192_v6  ;;  %v4364_v8 = vsel %vm2442_vm10, %v4332_v45, %v9326_v50  ;;  %v11546_v63 = vld [vmem:[#allocation24_spill] sm:$0xff] }
 0x806   : > { %v4297_v17 = vsel %vm356_vm1, %v4251_v32, %v11546_v63  ;;  %v3873_v62 = vor.u32 %v3872_v1, %v3868_v19  ;;  %v4397_v50 = vsel %vm4393_vm0, %v4364_v8, %v9800_v2 }
 0x807   : > { %v9949_v54 = vpop.permute.xlu1 %4136  ;;  %v9951_v53 = vpop.permute.xlu0 %4735  ;;  %v4330_v23 = vsel %vm4328_vm15, %v4297_v17, %v9873_v37  ;;  %v4429_v45 = vsel %vm2475_vm11, %v4397_v50, %v9837_v42 }
 0x808   : > { %v4362_v32 = vsel %vm2442_vm10, %v4330_v23, %v9299_v48  ;;  %v9992_v37 = vsel %vm6164_vm6, %v3873_v62, 0  ;;  %v4462_v48 = vsel %vm4458_vm4, %v4429_v45, %v9261_v36 }
 0x809   : > { %4086 = vrot.lane.b32.xlu1 %v3803_v22, %s6027_s12  ;;  %4036 = vrot.lane.b32.xlu0 %v9905_v0, %s6026_s11  ;;  %v4395_v1 = vsel %vm4393_vm0, %v4362_v32, %v9769_v9  ;;  %v4494_v63 = vsel %vm2508_vm12, %v4462_v48, %v9719_v7  ;;  %v4257_v7 = vsel %vm1651_vm9, %v9596_v28, %v9317_v26 }
 0x80a   : > { %v4301_v50 = vsel %vm356_vm1, %v4257_v7, %v9826_v21  ;;  %v4260_v26 = vsel %vm1651_vm9, %v9506_v47, %v9263_v52 }
 0x80b   : > { %v9964_v13 = vpop.permute.xlu1 %4741  ;;  %v9966_v58 = vpop.permute.xlu0 %4531  ;;  %v4334_v45 = vsel %vm4328_vm15, %v4301_v50, %v9859_v14  ;;  %v4303_v21 = vsel %vm356_vm1, %v4260_v26, %v9708_v10 }
 0x80c   : > { %v4366_v14 = vsel %vm2442_vm10, %v4334_v45, %v9271_v4  ;;  %v4336_v48 = vsel %vm4328_vm15, %v4303_v21, %v9895_v12 }
 0x80d   : > { %4082 = vrot.lane.b32.xlu1 %v9970_v27, %s6027_s12  ;;  %4242 = vrot.lane.b32.xlu0 %v9905_v0, %s6037_s9  ;;  %v4399_v52 = vsel %vm4393_vm0, %v4366_v14, %v9730_v41  ;;  %v4368_v4 = vsel %vm2442_vm10, %v4336_v48, %v9297_v51 }
 0x80e   : > { %v4431_v10 = vsel %vm2475_vm11, %v4399_v52, %v9931_v11  ;;  %v4401_v51 = vsel %vm4393_vm0, %v4368_v4, %v9767_v55  ;;  %v4266_v52 = vsel %vm1651_vm9, %v9701_v38, %v9416_v40  ;;  %v11547_v38 = vld [vmem:[#allocation96_spill] sm:$0xff] }
 0x80f   : > { %v9982_v18 = vpop.permute.xlu1 %4537  ;;  %v9984_v44 = vpop.permute.xlu0 %4024  ;;  %v4464_v41 = vsel %vm4458_vm4, %v4431_v10, %v9308_v60  ;;  %v4307_v4 = vsel %vm356_vm1, %v4266_v52, %v9880_v33  ;;  %v3896_v52 = vshrl.u32 %v9376_v57, 16 }
 0x810   : > { %v4496_v60 = vsel %vm2508_vm12, %v4464_v41, %v9802_v56  ;;  %v3884_v56 = vshll.u32 %v9277_v43, 16 }
 0x811   : > { %4588 = vrot.lane.b32.xlu1 %v9992_v37, %s6026_s11  ;;  %4084 = vrot.lane.b32.xlu0 %v9923_v31, %s6027_s12 }
 0x812   : > { %v3886_v50 = vrot.slane %v3884_v56, 1  ;;  %v11551_v56 = vld [vmem:[#allocation100_spill] sm:$0xff] }
 0x813   : > { %v9998_v2 = vpop.permute.xlu1 %4132  ;;  %v4155_v42 = vpop.permute.xlu0 %4154 }
 0x814   : > { %v4427_v8 = vsel %vm2475_vm11, %v4395_v1, %v4155_v42 }
 0x815   : > { %v4460_v19 = vsel %vm4458_vm4, %v4427_v8, %v9328_v30  ;;  %4616 = vrot.lane.b32.xlu1 %v9254_v61, %s6027_s12  ;;  %4080 = vrot.lane.b32.xlu0 %v9935_v46, %s6027_s12  ;;  %v3877_v30 = vshll.u32 %v9237_v5, 16 }
 0x816   : > { %v4492_v9 = vsel %vm2508_vm12, %v4460_v19, %v9839_v49 }
 0x817   : > { %v5716_v17 = vcombine.low %v4492_v9, %v4494_v63  ;;  %v10015_v36 = vpop.permute.xlu1 %4533  ;;  %v10017_v62 = vpop.permute.xlu0 %4230  ;;  %v3879_v32 = vrot.slane %v3877_v30, 1 }
 0x819   : > { %4620 = vrot.lane.b32.xlu1 %v9237_v5, %s6027_s12  ;;  %4182 = vrot.lane.b32.xlu0 %v3803_v22, %s6038_s10  ;;  %v3875_v22 = vshrl.u32 %v9237_v5, 16 }
 0x81a   : > { %5859 = vmatprep.mubr.msk.bf16.mxu0 %vm5151_vm2, %v5716_v17 }
 0x81b   : > { %v10027_v49 = vpop.permute.xlu1 %4737  ;;  %v10029_v23 = vpop.permute.xlu0 %4646 }
 0x81d   : > { %4648 = vrot.lane.b32.xlu1 %v9717_v39, %s6032_s24  ;;  %4178 = vrot.lane.b32.xlu0 %v9970_v27, %s6038_s10  ;;  %v3880_v39 = vor.u32 %v3879_v32, %v3875_v22  ;;  %v3882_v32 = vshrl.u32 %v9277_v43, 16 }
 0x81f   : > { %v10043_v28 = vpop.permute.xlu1 %4164  ;;  %v10045_v1 = vpop.permute.xlu0 %4020  ;;  %v10069_v12 = vsel %vm6164_vm6, %v3880_v39, 0  ;;  %v3887_v26 = vor.u32 %v3886_v50, %v3882_v32 }
 0x821   : > { %4652 = vrot.lane.b32.xlu1 %v9683_v34, %s6032_s24  ;;  %4586 = vrot.lane.b32.xlu0 %v9370_v29, %s6026_s11 }
 0x823   : > { %v10059_v47 = vpop.permute.xlu1 %4030  ;;  %v10061_v42 = vpop.permute.xlu0 %4226 }
 0x825   : > { %4681 = vrot.lane.b32.xlu1 %v9370_v29, %s6041_s13  ;;  %4590 = vrot.lane.b32.xlu0 %v10069_v12, %s6026_s11 }
 0x827   : > { %v4161_v8 = vpop.permute.xlu1 %4160  ;;  %v10079_v19 = vpop.permute.xlu0 %4642 }
 0x828   : > { %v4433_v11 = vsel %vm2475_vm11, %v4401_v51, %v4161_v8  ;;  %v3898_v8 = vshll.u32 %v9376_v57, 16  ;;  %v11549_v51 = vld [vmem:[#allocation113_spill] sm:$0xff] }
 0x829   : > { %v4466_v63 = vsel %vm4458_vm4, %v4433_v11, %v9396_v24  ;;  %4685 = vrot.lane.b32.xlu1 %v10069_v12, %s6041_s13  ;;  %4618 = vrot.lane.b32.xlu0 %v9315_v59, %s6027_s12  ;;  %v11550_v11 = vld [vmem:[#allocation171_spill] sm:$0xff] }
 0x82a   : > { %v4498_v29 = vsel %vm2508_vm12, %v4466_v63, %v9907_v20  ;;  %v4269_v63 = vsel %vm1651_vm9, %v11550_v11, %v11549_v51 }
 0x82b   : > { %v5717_v55 = vcombine.low %v4496_v60, %v4498_v29  ;;  %v10092_v9 = vpop.permute.xlu1 %4236  ;;  %v4069_v17 = vpop.permute.xlu0 %4068  ;;  %v4309_v32 = vsel %vm356_vm1, %v4269_v63, %v10045_v1 }
 0x82d   : > { %4713 = vrot.lane.b32.xlu1 %v9315_v59, %s6038_s10  ;;  %4622 = vrot.lane.b32.xlu0 %v9277_v43, %s6027_s12 }
 0x82e   : > { %5860 = vmatmul.mubr.msk.bf16.vlgmr.msra.gmra.mrb[8].mxu0 %vm5151_vm2, %v5717_v55  ;;  %v3900_v55 = vrot.slane %v3898_v8, 1 }
 0x82f   : > { %v10099_v24 = vpop.permute.xlu1 %4026  ;;  %v4065_v30 = vpop.permute.xlu0 %4064 }
 0x831   : > { %4717 = vrot.lane.b32.xlu1 %v9277_v43, %s6038_s10  ;;  %4650 = vrot.lane.b32.xlu0 %v9776_v16, %s6032_s24 }
 0x833   : > { %v4071_v20 = vpop.permute.xlu1 %4070  ;;  %v10106_v7 = vpop.permute.xlu0 %4142 }
 0x835   : > { %4745 = vrot.lane.b32.xlu1 %v9776_v16, %s6040_s22  ;;  %4654 = vrot.lane.b32.xlu0 %v9765_v15, %s6032_s24  ;;  %v3943_v16 = vsel %vm6164_vm6, %v3887_v26, 0 }
 0x837   : > { %v10113_v45 = vpop.permute.xlu1 %4232  ;;  %v10115_v22 = vpop.permute.xlu0 %4543 }
 0x839   : > { %4749 = vrot.lane.b32.xlu1 %v9765_v15, %s6040_s22  ;;  %4683 = vrot.lane.b32.xlu0 %v9992_v37, %s6041_s13 }
 0x83b   : > { %v4067_v21 = vpop.permute.xlu1 %4066  ;;  %v4167_v14 = vpop.permute.xlu0 %4166 }
 0x83d   : > { %4775 = vrot.lane.b32.xlu1 %v9992_v37, %s6037_s9  ;;  %4687 = vrot.lane.b32.xlu0 %v3943_v16, %s6041_s13  ;;  %v4340_v37 = vsel %vm4328_vm15, %v4307_v4, %v4067_v21  ;;  %v11552_v4 = vld [vmem:[#allocation66_spill] sm:$0xff] }
 0x83e   : > { %v4372_v40 = vsel %vm2442_vm10, %v4340_v37, %v9492_v25  ;;  %v4342_v25 = vsel %vm4328_vm15, %v4309_v32, %v4069_v17  ;;  %v11553_v37 = vld [vmem:[#allocation32_spill] sm:$0xff] }
 0x83f   : > { %v10126_v39 = vpop.permute.xlu1 %4144  ;;  %v10128_v48 = vpop.permute.xlu0 %4138  ;;  %v4405_v21 = vsel %vm4393_vm0, %v4372_v40, %v9998_v2  ;;  %v4272_v8 = vsel %vm1651_vm9, %v11553_v37, %v11552_v4  ;;  %v11554_v2 = vld [vmem:[#allocation102_spill] sm:$0xff]  ;;  %v11560_v4 = vld [vmem:[#allocation75_spill] sm:$0xff] }
 0x840   : > { %v4311_v40 = vsel %vm356_vm1, %v4272_v8, %v11554_v2  ;;  %v4437_v11 = vsel %vm2475_vm11, %v4405_v21, %v10043_v28  ;;  %v11561_v21 = vld [vmem:[#allocation28_spill] sm:$0xff] }
 0x841   : > { %4545 = vrot.lane.b32.xlu1 %v9765_v15, %s6028_s21  ;;  %4715 = vrot.lane.b32.xlu0 %v9237_v5, %s6038_s10  ;;  %v11548_v15 = vld [vmem:[#allocation95_spill] sm:$0xff]  ;;  %v4344_v63 = vsel %vm4328_vm15, %v4311_v40, %v4071_v20 }
 0x842   : > { %v4263_v33 = vsel %vm1651_vm9, %v11548_v15, %v11547_v38  ;;  %v3891_v38 = vshll.u32 %v9350_v3, 16  ;;  %v11555_v15 = vld [vmem:[#allocation164_spill] sm:$0xff]  ;;  %v4376_v20 = vsel %vm2442_vm10, %v4344_v63, %v11561_v21  ;;  %v11562_v40 = vld [vmem:[#allocation87_spill] sm:$0xff] }
 0x843   : > { %v10140_v10 = vpop.permute.xlu1 %4140  ;;  %v10142_v41 = vpop.permute.xlu0 %4743  ;;  %v4305_v50 = vsel %vm356_vm1, %v4263_v33, %v11551_v56  ;;  %v4374_v33 = vsel %vm2442_vm10, %v4342_v25, %v11555_v15  ;;  %v11558_v56 = vld [vmem:[#allocation160_spill] sm:$0xff] }
 0x844   : > { %v4338_v26 = vsel %vm4328_vm15, %v4305_v50, %v4065_v30  ;;  %v3901_v30 = vor.u32 %v3900_v55, %v3896_v52  ;;  %v11557_v55 = vld [vmem:[#allocation77_spill] sm:$0xff]  ;;  %v4407_v50 = vsel %vm4393_vm0, %v4374_v33, %v11558_v56  ;;  %v11559_v52 = vld [vmem:[#allocation163_spill] sm:$0xff]  ;;  %v3893_v28 = vrot.slane %v3891_v38, 1  ;;  %v11563_v38 = vld [vmem:[#allocation174_spill] sm:$0xff] }
 0x845   : > { %4779 = vrot.lane.b32.xlu1 %v3943_v16, %s6037_s9  ;;  %4719 = vrot.lane.b32.xlu0 %v9350_v3, %s6038_s10  ;;  %v4409_v56 = vsel %vm4393_vm0, %v4376_v20, %v9949_v54  ;;  %v11566_v20 = vld [vmem:[#allocation145_spill] sm:$0xff] }
 0x846   : > { %v10207_v2 = vsel %vm6164_vm6, %v3901_v30, 0 }
 0x847   : > { %v10156_v60 = vpop.permute.xlu1 %4541  ;;  %v10158_v29 = vpop.permute.xlu0 %4539 }
 0x849   : > { %4549 = vrot.lane.b32.xlu1 %v9905_v0, %s6028_s21  ;;  %4747 = vrot.lane.b32.xlu0 %v9683_v34, %s6040_s22  ;;  %v11556_v34 = vld [vmem:[#allocation26_spill] sm:$0xff] }
 0x84a   : > { %v4370_v51 = vsel %vm2442_vm10, %v4338_v26, %v11556_v34  ;;  %v4470_v26 = vsel %vm4458_vm4, %v4437_v11, %v11560_v4  ;;  %v3889_v34 = vshrl.u32 %v9350_v3, 16 }
 0x84b   : > { %v10176_v1 = vpop.permute.xlu1 %4172  ;;  %v10178_v17 = vpop.permute.xlu0 %4032  ;;  %v4403_v25 = vsel %vm4393_vm0, %v4370_v51, %v11559_v52  ;;  %v4502_v33 = vsel %vm2508_vm12, %v4470_v26, %v11563_v38  ;;  %v11564_v51 = vld [vmem:[#allocation46_spill] sm:$0xff] }
 0x84c   : > { %v3894_v52 = vor.u32 %v3893_v28, %v3889_v34 }
 0x84d   : > { %4592 = vrot.lane.b32.xlu1 %v3943_v16, %s6026_s11  ;;  %4751 = vrot.lane.b32.xlu0 %v11557_v55, %s6040_s22  ;;  %v4439_v16 = vsel %vm2475_vm11, %v4407_v50, %v4167_v14 }
 0x84e   : > { %v4472_v30 = vsel %vm4458_vm4, %v4439_v16, %v11564_v51  ;;  %v3944_v21 = vsel %vm6164_vm6, %v3894_v52, 0  ;;  %v3905_v16 = vshll.u32 %v11566_v20, 16 }
 0x84f   : > { %v10195_v32 = vpop.permute.xlu1 %4038  ;;  %v4163_v37 = vpop.permute.xlu0 %4162 }
 0x850   : > { %v4435_v8 = vsel %vm2475_vm11, %v4403_v25, %v4163_v37  ;;  %v11565_v25 = vld [vmem:[#allocation18_spill] sm:$0xff] }
 0x851   : > { %v4468_v15 = vsel %vm4458_vm4, %v4435_v8, %v11562_v40  ;;  %4596 = vrot.lane.b32.xlu1 %v10207_v2, %s6026_s11  ;;  %4777 = vrot.lane.b32.xlu0 %v10069_v12, %s6037_s9  ;;  %v3907_v8 = vrot.slane %v3905_v16, 1  ;;  %v11567_v40 = vld [vmem:[#allocation124_spill] sm:$0xff] }
 0x852   : > { %v4500_v14 = vsel %vm2508_vm12, %v4468_v15, %v10061_v42  ;;  %v4504_v42 = vsel %vm2508_vm12, %v4472_v30, %v10017_v62  ;;  %v3903_v15 = vshrl.u32 %v11566_v20, 16  ;;  %v11573_v16 = vld [vmem:[#allocation176_spill] sm:$0xff] }
 0x853   : > { %v5718_v11 = vcombine.low %v4500_v14, %v4502_v33  ;;  %v4169_v63 = vpop.permute.xlu1 %4168  ;;  %v10224_v50 = vpop.permute.xlu0 %4238 }
 0x854   : > { %v4441_v12 = vsel %vm2475_vm11, %v4409_v56, %v4169_v63  ;;  %v3908_v14 = vor.u32 %v3907_v8, %v3903_v15 }
 0x855   : > { %v4474_v4 = vsel %vm4458_vm4, %v4441_v12, %v11565_v25  ;;  %4624 = vrot.lane.b32.xlu1 %v9350_v3, %s6027_s12  ;;  %4547 = vrot.lane.b32.xlu0 %v11557_v55, %s6028_s21 }
 0x856   : > { %v4506_v54 = vsel %vm2508_vm12, %v4474_v4, %v10113_v45  ;;  %5863 = vmatprep.mubr.msk.bf16.mxu0 %vm5151_vm2, %v5718_v11  ;;  %v10259_v30 = vsel %vm6164_vm6, %v3908_v14, 0  ;;  %v11569_v11 = vld [vmem:[#allocation152_spill] sm:$0xff]  ;;  %v11570_v4 = vld [vmem:[#allocation73_spill] sm:$0xff] }
 0x857   : > { %v5719_v26 = vcombine.low %v4504_v42, %v4506_v54  ;;  %v10238_v37 = vpop.permute.xlu1 %4244  ;;  %v4029_v28 = vpop.permute.xlu0 %4028  ;;  %v11571_v54 = vld [vmem:[#allocation25_spill] sm:$0xff] }
 0x859   : > { %4628 = vrot.lane.b32.xlu1 %v11566_v20, %s6027_s12  ;;  %4781 = vrot.lane.b32.xlu0 %v3944_v21, %s6037_s9 }
 0x85a   : > { %5864 = vmatmul.mubr.msk.bf16.gmra.mrb[12].mxu0 %vm5151_vm2, %v5719_v26  ;;  %v11572_v26 = vld [vmem:[#allocation30_spill] sm:$0xff] }
 0x85b   : > { %v10247_v62 = vpop.permute.xlu1 %4034  ;;  %v4235_v45 = vpop.permute.xlu0 %4234 }
 0x85d   : > { %4656 = vrot.lane.b32.xlu1 %v11557_v55, %s6032_s24  ;;  %4551 = vrot.lane.b32.xlu0 %v11567_v40, %s6028_s21  ;;  %v11568_v55 = vld [vmem:[#allocation155_spill] sm:$0xff] }
 0x85e   : > { %v4278_v63 = vsel %vm1651_vm9, %v11569_v11, %v11568_v55 }
 0x85f   : > { %v4079_v38 = vpop.permute.xlu1 %4078  ;;  %v4077_v33 = vpop.permute.xlu0 %4076  ;;  %v4315_v56 = vsel %vm356_vm1, %v4278_v63, %v10099_v24  ;;  %v11574_v24 = vld [vmem:[#allocation117_spill] sm:$0xff] }
 0x860   : > { %v4281_v8 = vsel %vm1651_vm9, %v11574_v24, %v11573_v16 }
 0x861   : > { %4660 = vrot.lane.b32.xlu1 %v11567_v40, %s6032_s24  ;;  %4594 = vrot.lane.b32.xlu0 %v3944_v21, %s6026_s11  ;;  %v4317_v11 = vsel %vm356_vm1, %v4281_v8, %v4029_v28 }
 0x862   : > { %v4350_v63 = vsel %vm4328_vm15, %v4317_v11, %v4077_v33 }
 0x863   : > { %v4241_v34 = vpop.permute.xlu1 %4240  ;;  %v4073_v51 = vpop.permute.xlu0 %4072 }
 0x865   : > { %4689 = vrot.lane.b32.xlu1 %v3944_v21, %s6041_s13  ;;  %4598 = vrot.lane.b32.xlu0 %v10259_v30, %s6026_s11  ;;  %v4275_v21 = vsel %vm1651_vm9, %v11572_v26, %v11571_v54  ;;  %v11577_v54 = vld [vmem:[#allocation175_spill] sm:$0xff] }
 0x866   : > { %v4313_v55 = vsel %vm356_vm1, %v4275_v21, %v9984_v44  ;;  %v11579_v21 = vld [vmem:[#allocation62_spill] sm:$0xff] }
 0x867   : > { %v4075_v12 = vpop.permute.xlu1 %4074  ;;  %v10269_v52 = vpop.permute.xlu0 %4150 }
 0x868   : > { %v4348_v25 = vsel %vm4328_vm15, %v4315_v56, %v4075_v12  ;;  %v4346_v56 = vsel %vm4328_vm15, %v4313_v55, %v4073_v51 }
 0x869   : > { %4693 = vrot.lane.b32.xlu1 %v10259_v30, %s6041_s13  ;;  %4626 = vrot.lane.b32.xlu0 %v9376_v57, %s6027_s12  ;;  %v4380_v42 = vsel %vm2442_vm10, %v4348_v25, %v11570_v4  ;;  %v11575_v25 = vld [vmem:[#allocation56_spill] sm:$0xff]  ;;  %v4378_v16 = vsel %vm2442_vm10, %v4346_v56, %v11579_v21 }
 0x86a   : > { %v4413_v12 = vsel %vm4393_vm0, %v4380_v42, %v10140_v10  ;;  %v11576_v4 = vld [vmem:[#allocation44_spill] sm:$0xff]  ;;  %v3912_v33 = vshll.u32 %v11575_v25, 16  ;;  %v11578_v10 = vld [vmem:[#allocation111_spill] sm:$0xff]  ;;  %v4411_v11 = vsel %vm4393_vm0, %v4378_v16, %v10128_v48  ;;  %v11583_v48 = vld [vmem:[#allocation53_spill] sm:$0xff]  ;;  %v3910_v21 = vshrl.u32 %v11575_v25, 16 }
 0x86b   : > { %v10284_v15 = vpop.permute.xlu1 %4152  ;;  %v4175_v14 = vpop.permute.xlu0 %4174  ;;  %v4284_v26 = vsel %vm1651_vm9, %v11577_v54, %v11576_v4  ;;  %v4382_v42 = vsel %vm2442_vm10, %v4350_v63, %v11578_v10  ;;  %v4445_v24 = vsel %vm2475_vm11, %v4413_v12, %v10176_v1  ;;  %v11580_v63 = vld [vmem:[#allocation51_spill] sm:$0xff]  ;;  %v11581_v12 = vld [vmem:[#allocation156_spill] sm:$0xff] }
 0x86c   : > { %v4319_v51 = vsel %vm356_vm1, %v4284_v26, %v10059_v47  ;;  %v4415_v47 = vsel %vm4393_vm0, %v4382_v42, %v10106_v7  ;;  %v4478_v56 = vsel %vm4458_vm4, %v4445_v24, %v11580_v63  ;;  %v3914_v26 = vrot.slane %v3912_v33, 1  ;;  %v11585_v63 = vld [vmem:[#allocation70_spill] sm:$0xff] }
 0x86d   : > { %4721 = vrot.lane.b32.xlu1 %v9376_v57, %s6038_s10  ;;  %4630 = vrot.lane.b32.xlu0 %v11575_v25, %s6027_s12  ;;  %v4352_v8 = vsel %vm4328_vm15, %v4319_v51, %v4079_v38  ;;  %v4447_v4 = vsel %vm2475_vm11, %v4415_v47, %v4175_v14  ;;  %v11582_v51 = vld [vmem:[#allocation128_spill] sm:$0xff]  ;;  %v4510_v10 = vsel %vm2508_vm12, %v4478_v56, %v10092_v9  ;;  %v11584_v14 = vld [vmem:[#allocation94_spill] sm:$0xff] }
 0x86e   : > { %v4384_v38 = vsel %vm2442_vm10, %v4352_v8, %v11581_v12  ;;  %v4480_v16 = vsel %vm4458_vm4, %v4447_v4, %v11584_v14  ;;  %v11593_v14 = vld [vmem:[#allocation8_spill] sm:$0xff] }
 0x86f   : > { %v10300_v44 = vpop.permute.xlu1 %4148  ;;  %v10302_v28 = vpop.permute.xlu0 %4146  ;;  %v4417_v8 = vsel %vm4393_vm0, %v4384_v38, %v10126_v39  ;;  %v11587_v38 = vld [vmem:[#allocation10_spill] sm:$0xff] }
 0x871   : > { %4725 = vrot.lane.b32.xlu1 %v11575_v25, %s6038_s10  ;;  %4658 = vrot.lane.b32.xlu0 %v9905_v0, %s6032_s24 }
 0x873   : > { %v10320_v55 = vpop.permute.xlu1 %4180  ;;  %v4171_v1 = vpop.permute.xlu0 %4170 }
 0x874   : > { %v4443_v54 = vsel %vm2475_vm11, %v4411_v11, %v4171_v1  ;;  %v3915_v11 = vor.u32 %v3914_v26, %v3910_v21  ;;  %v11588_v26 = vld [vmem:[#allocation88_spill] sm:$0xff]  ;;  %v11592_v21 = vld [vmem:[#allocation143_spill] sm:$0xff] }
 0x875   : > { %v4476_v7 = vsel %vm4458_vm4, %v4443_v54, %v11582_v51  ;;  %4753 = vrot.lane.b32.xlu1 %v9905_v0, %s6040_s22  ;;  %4662 = vrot.lane.b32.xlu0 %v11583_v48, %s6032_s24  ;;  %v4290_v51 = vsel %vm1651_vm9, %v9935_v46, %v11588_v26  ;;  %v4795_v6 = vsel %vm1651_vm9, %v11593_v14, %v11592_v21  ;;  %v11600_v26 = vld [vmem:[#allocation107_spill] sm:$0xff]  ;;  %v11606_v21 = vld [vmem:[#allocation22_spill] sm:$0xff] }
 0x876   : > { %v4508_v42 = vsel %vm2508_vm12, %v4476_v7, %v4235_v45  ;;  %v4512_v45 = vsel %vm2508_vm12, %v4480_v16, %v10224_v50  ;;  %v10359_v12 = vsel %vm6164_vm6, %v3915_v11, 0  ;;  %v11586_v50 = vld [vmem:[#allocation76_spill] sm:$0xff]  ;;  %v11590_v7 = vld [vmem:[#allocation35_spill] sm:$0xff]  ;;  %v4323_v46 = vsel %vm356_vm1, %v4290_v51, %v10247_v62  ;;  %v11594_v16 = vld [vmem:[#allocation170_spill] sm:$0xff] }
 0x877   : > { %v5720_v33 = vcombine.low %v4508_v42, %v4510_v10  ;;  %v4177_v24 = vpop.permute.xlu1 %4176  ;;  %v10344_v47 = vpop.permute.xlu0 %4246  ;;  %v11591_v10 = vld [vmem:[#allocation141_spill] sm:$0xff]  ;;  %v11601_v51 = vmov 0  }
 0x878   : > { %v4449_v0 = vsel %vm2475_vm11, %v4417_v8, %v4177_v24  ;;  %v11595_v24 = vld [vmem:[#allocation23_spill] sm:$0xff]  ;;  %v11596_v8 = vld [vmem:[#allocation134_spill] sm:$0xff] }
 0x879   : > { %v4482_v9 = vsel %vm4458_vm4, %v4449_v0, %v11585_v63  ;;  %4757 = vrot.lane.b32.xlu1 %v11583_v48, %s6040_s22  ;;  %4691 = vrot.lane.b32.xlu0 %v10207_v2, %s6041_s13  ;;  %v4296_v48 = vsel %vm1651_vm9, %v9923_v31, %v11590_v7  ;;  %v4797_v0 = vsel %vm1651_vm9, %v11596_v8, %v11595_v24  ;;  %v11604_v7 = vld [vmem:[#allocation78_spill] sm:$0xff]  ;;  %v11610_v24 = vld [vmem:[#allocation29_spill] sm:$0xff] }
 0x87a   : > { %v4514_v25 = vsel %vm2508_vm12, %v4482_v9, %v4241_v34  ;;  %5867 = vmatprep.mubr.msk.bf16.mxu0 %vm5151_vm2, %v5720_v33  ;;  %v4793_v34 = vsel %vm1651_vm9, %v11587_v38, %v11586_v50  ;;  %v4293_v33 = vsel %vm1651_vm9, %v9970_v27, %v11594_v16  ;;  %v4327_v31 = vsel %vm356_vm1, %v4296_v48, %v10195_v32  ;;  %v11598_v27 = vld [vmem:[#allocation82_spill] sm:$0xff]  ;;  %v11599_v38 = vld [vmem:[#allocation61_spill] sm:$0xff]  ;;  %v11609_v16 = vld [vmem:[#allocation115_spill] sm:$0xff] }
 0x87b   : > { %v5721_v39 = vcombine.low %v4512_v45, %v4514_v25  ;;  %v4087_v56 = vpop.permute.xlu1 %4086  ;;  %v4037_v1 = vpop.permute.xlu0 %4036  ;;  %v4825_v42 = vsel %vm356_vm1, %v4793_v34, %v11591_v10  ;;  %v11597_v45 = vld [vmem:[#allocation166_spill] sm:$0xff]  ;;  %v4827_v34 = vsel %vm356_vm1, %v4795_v6, %v11599_v38  ;;  %v11605_v48 = vld [vmem:[#allocation129_spill] sm:$0xff]  ;;  %v11607_v6 = vld [vmem:[#allocation151_spill] sm:$0xff]  ;;  %v4801_v8 = vsel %vm1651_vm9, %v11610_v24, %v9966_v58 }
 0x87c   : > { %v4823_v25 = vsel %vm356_vm1, %v4791_v35, %v11597_v45  ;;  %v4360_v62 = vsel %vm4328_vm15, %v4327_v31, %v4087_v56  ;;  %v4857_v32 = vsel %vm4328_vm15, %v4825_v42, %v11600_v26  ;;  %v11603_v35 = vld [vmem:[#allocation27_spill] sm:$0xff]  ;;  %v11611_v31 = vld [vmem:[#allocation41_spill] sm:$0xff]  ;;  %v11614_v38 = vld [vmem:[#allocation132_spill] sm:$0xff] }
 0x87d   : > { %4785 = vrot.lane.b32.xlu1 %v10259_v30, %s6037_s9  ;;  %4695 = vrot.lane.b32.xlu0 %v10359_v12, %s6041_s13  ;;  %v11589_v30 = vld [vmem:[#allocation5_spill] sm:$0xff]  ;;  %v4855_v50 = vsel %vm4328_vm15, %v4823_v25, %v11598_v27  ;;  %v4889_v10 = vsel %vm2442_vm10, %v4857_v32, %v11605_v48  ;;  %v11612_v25 = vld [vmem:[#allocation131_spill] sm:$0xff]  ;;  %v11613_v27 = vld [vmem:[#allocation118_spill] sm:$0xff] }
 0x87e   : > { %5868 = vmatmul.mubr.msk.bf16.gmra.mrb[16].mxu0 %vm5151_vm2, %v5721_v39  ;;  %v4325_v39 = vsel %vm356_vm1, %v4293_v33, %v4037_v1  ;;  %v4829_v1 = vsel %vm356_vm1, %v4797_v0, %v11604_v7  ;;  %v4887_v42 = vsel %vm2442_vm10, %v4855_v50, %v11607_v6  ;;  %v4392_v0 = vsel %vm2442_vm10, %v4360_v62, %v11611_v31  ;;  %v11615_v32 = vld [vmem:[#allocation90_spill] sm:$0xff]  ;;  %v11620_v48 = vld [vmem:[#allocation55_spill] sm:$0xff]  ;;  %v11621_v6 = vld [vmem:[#allocation136_spill] sm:$0xff] }
 0x87f   : > { %v4083_v4 = vpop.permute.xlu1 %4082  ;;  %v10369_v54 = vpop.permute.xlu0 %4242  ;;  %v4861_v26 = vsel %vm4328_vm15, %v4829_v1, %v11614_v38  ;;  %v4921_v58 = vsel %vm4393_vm0, %v4889_v10, %v11615_v32  ;;  %v4425_v7 = vsel %vm4393_vm0, %v4392_v0, %v10284_v15  ;;  %v11619_v1 = vld [vmem:[#allocation161_spill] sm:$0xff]  ;;  %v11623_v24 = vld [vmem:[#allocation142_spill] sm:$0xff] }
 0x880   : > { %v4356_v11 = vsel %vm4328_vm15, %v4323_v46, %v4083_v4  ;;  %v11608_v46 = vld [vmem:[#allocation57_spill] sm:$0xff]  ;;  %v4893_v10 = vsel %vm2442_vm10, %v4861_v26, %v11620_v48  ;;  %v11624_v31 = vld [vmem:[#allocation114_spill] sm:$0xff]  ;;  %v11629_v26 = vld [vmem:[#allocation148_spill] sm:$0xff] }
 0x881   : > { %4723 = vrot.lane.b32.xlu0 %v11566_v20, %s6038_s10  ;;  %4789 = vrot.lane.b32.xlu1 %v11589_v30, %s6037_s9  ;;  %v11602_v30 = vld [vmem:[#allocation6_spill] sm:$0xff]  ;;  %v4388_v14 = vsel %vm2442_vm10, %v4356_v11, %v11606_v21  ;;  %v4799_v33 = vsel %vm1651_vm9, %v11609_v16, %v11608_v46  ;;  %v4859_v11 = vsel %vm4328_vm15, %v4827_v34, %v11612_v25  ;;  %v11616_v34 = vld [vmem:[#allocation168_spill] sm:$0xff] }
 0x882   : > { %v4287_v56 = vsel %vm1651_vm9, %v11603_v35, %v11602_v30  ;;  %v4421_v62 = vsel %vm4393_vm0, %v4388_v14, %v10300_v44  ;;  %v11617_v30 = vld [vmem:[#allocation121_spill] sm:$0xff]  ;;  %v11618_v35 = vld [vmem:[#allocation150_spill] sm:$0xff]  ;;  %v4891_v44 = vsel %vm2442_vm10, %v4859_v11, %v11619_v1  ;;  %v11626_v25 = vld [vmem:[#allocation60_spill] sm:$0xff] }
 0x883   : > { %v10399_v63 = vpop.permute.xlu1 %4588  ;;  %v4085_v9 = vpop.permute.xlu0 %4084  ;;  %v4453_v46 = vsel %vm2475_vm11, %v4421_v62, %v10320_v55  ;;  %v11622_v16 = vld [vmem:[#allocation98_spill] sm:$0xff]  ;;  %v4457_v11 = vsel %vm2475_vm11, %v4425_v7, %v11626_v25  ;;  %v11627_v55 = vld [vmem:[#allocation103_spill] sm:$0xff]  ;;  %v11635_v7 = vld [vmem:[#allocation68_spill] sm:$0xff] }
 0x884   : > { %v4358_v4 = vsel %vm4328_vm15, %v4325_v39, %v4085_v9  ;;  %v4321_v39 = vsel %vm356_vm1, %v4287_v56, %v10178_v17  ;;  %v4919_v17 = vsel %vm4393_vm0, %v4887_v42, %v11616_v34  ;;  %v4833_v56 = vsel %vm356_vm1, %v4801_v8, %v11618_v35  ;;  %v11633_v35 = vld [vmem:[#allocation36_spill] sm:$0xff]  ;;  %v11643_v25 = vld [vmem:[#allocation50_spill] sm:$0xff] }
 0x885   : > { %4727 = vrot.lane.b32.xlu0 %v11601_v51, %s6038_s10  ;;  %v4390_v50 = vsel %vm2442_vm10, %v4358_v4, %v11613_v27  ;;  %v4831_v4 = vsel %vm356_vm1, %v4799_v33, %v11617_v30  ;;  %v4953_v42 = vsel %vm2475_vm11, %v4921_v58, %v11621_v6  ;;  %v4951_v8 = vsel %vm2475_vm11, %v4919_v17, %v11623_v24  ;;  %v11628_v27 = vld [vmem:[#allocation144_spill] sm:$0xff]  ;;  %v11630_v58 = vld [vmem:[#allocation59_spill] sm:$0xff]  ;;  %v11632_v30 = vld [vmem:[#allocation54_spill] sm:$0xff] }
 0x886   : > { %v4863_v0 = vsel %vm4328_vm15, %v4831_v4, %v11624_v31  ;;  %v4923_v62 = vsel %vm4393_vm0, %v4891_v44, %v11630_v58  ;;  %v11636_v44 = vld [vmem:[#allocation122_spill] sm:$0xff]  ;;  %v11641_v31 = vld [vmem:[#allocation92_spill] sm:$0xff] }
 0x887   : > { %v10433_v9 = vpop.permute.xlu1 %4616  ;;  %v4081_v45 = vpop.permute.xlu0 %4080  ;;  %v4490_v48 = vsel %vm4458_vm4, %v4457_v11, %v11636_v44  ;;  %v11647_v58 = vld [vmem:[#allocation72_spill] sm:$0xff] }
 0x888   : > { %v4354_v51 = vsel %vm4328_vm15, %v4321_v39, %v4081_v45  ;;  %v11625_v45 = vld [vmem:[#allocation33_spill] sm:$0xff]  ;;  %v4925_v39 = vsel %vm4393_vm0, %v4893_v10, %v11627_v55  ;;  %v4522_v11 = vsel %vm2508_vm12, %v4490_v48, %v11643_v25  ;;  %v11652_v48 = vld [vmem:[#allocation11_spill] sm:$0xff] }
 0x889   : > { %4755 = vrot.lane.b32.xlu0 %v11567_v40, %s6040_s22  ;;  %v4423_v40 = vsel %vm4393_vm0, %v4390_v50, %v10269_v52  ;;  %v4386_v15 = vsel %vm2442_vm10, %v4354_v51, %v11622_v16  ;;  %v4865_v52 = vsel %vm4328_vm15, %v4833_v56, %v11625_v45  ;;  %v4803_v50 = vsel %vm1651_vm9, %v11628_v27, %v10015_v36  ;;  %v11631_v51 = vld [vmem:[#allocation14_spill] sm:$0xff]  ;;  %v11634_v56 = vld [vmem:[#allocation169_spill] sm:$0xff] }
 0x88a   : > { %v4897_v38 = vsel %vm2442_vm10, %v4865_v52, %v10079_v19  ;;  %v4985_v34 = vsel %vm4458_vm4, %v4953_v42, %v11631_v51  ;;  %v4419_v17 = vsel %vm4393_vm0, %v4386_v15, %v10302_v28  ;;  %v4486_v36 = vsel %vm4458_vm4, %v4453_v46, %v11632_v30  ;;  %v11638_v28 = vld [vmem:[#allocation157_spill] sm:$0xff]  ;;  %v11640_v15 = vld [vmem:[#allocation138_spill] sm:$0xff] }
 0x88b   : > { %v10462_v21 = vpop.permute.xlu1 %4620  ;;  %v4183_v14 = vpop.permute.xlu0 %4182  ;;  %v4983_v19 = vsel %vm4458_vm4, %v4951_v8, %v11633_v35  ;;  %v4805_v1 = vsel %vm1651_vm9, %v11635_v7, %v11634_v56  ;;  %v4929_v6 = vsel %vm4393_vm0, %v4897_v38, %v11638_v28  ;;  %v11639_v46 = vld [vmem:[#allocation9_spill] sm:$0xff]  ;;  %v4518_v24 = vsel %vm2508_vm12, %v4486_v36, %v10238_v37  ;;  %v11642_v52 = vld [vmem:[#allocation154_spill] sm:$0xff]  ;;  %v11645_v37 = vld [vmem:[#allocation20_spill] sm:$0xff] }
 0x88c   : > { %v4455_v33 = vsel %vm2475_vm11, %v4423_v40, %v4183_v14  ;;  %v11637_v40 = vld [vmem:[#allocation159_spill] sm:$0xff]  ;;  %v5016_v45 = vsel %vm2508_vm12, %v4985_v34, %v11641_v31  ;;  %v11648_v34 = vld [vmem:[#allocation146_spill] sm:$0xff]  ;;  %v11649_v30 = vld [vmem:[#allocation45_spill] sm:$0xff] }
 0x88d   : > { %4783 = vrot.lane.b32.xlu0 %v10207_v2, %s6037_s9  ;;  %v4488_v32 = vsel %vm4458_vm4, %v4455_v33, %v11629_v26  ;;  %v4835_v14 = vsel %vm356_vm1, %v4803_v50, %v11637_v40  ;;  %v4895_v33 = vsel %vm2442_vm10, %v4863_v0, %v11640_v15  ;;  %v11644_v0 = vld [vmem:[#allocation43_spill] sm:$0xff]  ;;  %v4957_v36 = vsel %vm2475_vm11, %v4925_v39, %v11649_v30  ;;  %v11664_v30 = vld [vmem:[#allocation120_spill] sm:$0xff] }
 0x88e   : > { %v4520_v42 = vsel %vm2508_vm12, %v4488_v32, %v10344_v47  ;;  %v4837_v47 = vsel %vm356_vm1, %v4805_v1, %v11642_v52  ;;  %v5014_v50 = vsel %vm2508_vm12, %v4983_v19, %v11644_v0  ;;  %v4867_v38 = vsel %vm4328_vm15, %v4835_v14, %v11645_v37  ;;  %v11650_v19 = vld [vmem:[#allocation12_spill] sm:$0xff]  ;;  %v11651_v7 = vld [vmem:[#allocation19_spill] sm:$0xff] }
 0x88f   : > { %v10496_v2 = vpop.permute.xlu1 %4648  ;;  %v4179_v4 = vpop.permute.xlu0 %4178  ;;  %v5723_v32 = vcombine.low %v4520_v42, %v4522_v11  ;;  %v4927_v51 = vsel %vm4393_vm0, %v4895_v33, %v11647_v58  ;;  %v4989_v35 = vsel %vm4458_vm4, %v4957_v36, %v9951_v53  ;;  %v4869_v56 = vsel %vm4328_vm15, %v4837_v47, %v11650_v19  ;;  %v11653_v53 = vld [vmem:[#allocation38_spill] sm:$0xff]  ;;  %v11654_v28 = vld [vmem:[#allocation47_spill] sm:$0xff]  ;;  %v11655_v42 = vld [vmem:[#allocation165_spill] sm:$0xff] }
 0x890   : > { %v4451_v10 = vsel %vm2475_vm11, %v4419_v17, %v4179_v4  ;;  %v4955_v17 = vsel %vm2475_vm11, %v4923_v62, %v11648_v34  ;;  %v5724_v4 = vcombine.low %v5014_v50, %v5016_v45  ;;  %v4899_v1 = vsel %vm2442_vm10, %v4867_v38, %v11651_v7  ;;  %v11657_v33 = vld [vmem:[#allocation110_spill] sm:$0xff]  ;;  %v11659_v45 = vld [vmem:[#allocation80_spill] sm:$0xff]  ;;  %v11662_v37 = vld [vmem:[#allocation167_spill] sm:$0xff] }
 0x891   : > { %v4484_v16 = vsel %vm4458_vm4, %v4451_v10, %v11639_v46  ;;  %4787 = vrot.lane.b32.xlu0 %v10359_v12, %s6037_s9  ;;  %v4901_v62 = vsel %vm2442_vm10, %v4869_v56, %v10029_v23  ;;  %v4987_v14 = vsel %vm4458_vm4, %v4955_v17, %v11653_v53  ;;  %v5020_v46 = vsel %vm2508_vm12, %v4989_v35, %v11655_v42  ;;  %v11663_v34 = vld [vmem:[#allocation84_spill] sm:$0xff]  ;;  %s10777_s9 = scalar_lea.vmem %s10856_s8, %s5754_s14 }
 0x892   : > { %v4516_v8 = vsel %vm2508_vm12, %v4484_v16, %v10369_v54  ;;  %v11646_v54 = vld [vmem:[#allocation116_spill] sm:$0xff]  ;;  %v11656_v16 = vld [vmem:[#allocation158_spill] sm:$0xff]  ;;  %v5018_v52 = vsel %vm2508_vm12, %v4987_v14, %v11659_v45 }
 0x893   : > { %v5722_v55 = vcombine.low %v4516_v8, %v4518_v24  ;;  %v10532_v12 = vpop.permute.xlu1 %4652  ;;  %v4587_v27 = vpop.permute.xlu0 %4586  ;;  %v4961_v26 = vsel %vm2475_vm11, %v4929_v6, %v11646_v54  ;;  %v4959_v6 = vsel %vm2475_vm11, %v4927_v51, %v11654_v28  ;;  %v4931_v15 = vsel %vm4393_vm0, %v4899_v1, %v11656_v16  ;;  %v11658_v8 = vld [vmem:[#allocation16_spill] sm:$0xff]  ;;  %v11665_v28 = vld [vmem:[#allocation37_spill] sm:$0xff]  ;;  %v11666_v16 = vld [vmem:[#allocation135_spill] sm:$0xff] }
 0x894   : > { %v4993_v39 = vsel %vm4458_vm4, %v4961_v26, %v11652_v48  ;;  %v4991_v23 = vsel %vm4458_vm4, %v4959_v6, %v10027_v49  ;;  %v4933_v24 = vsel %vm4393_vm0, %v4901_v62, %v11657_v33  ;;  %v5725_v11 = vcombine.low %v5018_v52, %v5020_v46  ;;  %v11661_v49 = vld [vmem:[#allocation58_spill] sm:$0xff] }
 0x895   : > { %5871 = vmatprep.mubr.msk.bf16.mxu0 %vm5151_vm2, %v5722_v55  ;;  %v5024_v31 = vsel %vm2508_vm12, %v4993_v39, %v11658_v8  ;;  %v11660_v55 = vld [vmem:[#allocation7_spill] sm:$0xff]  ;;  %v4963_v50 = vsel %vm2475_vm11, %v4931_v15, %v11661_v49  ;;  %v4965_v38 = vsel %vm2475_vm11, %v4933_v24, %v11662_v37  ;;  %v4807_v6 = vsel %vm1651_vm9, %v11665_v28, %v9982_v18 }
 0x896   : > { %5872 = vmatmul.mubr.msk.bf16.gmra.mrb[20].mxu0 %vm5151_vm2, %v5723_v32  ;;  %v5022_v0 = vsel %vm2508_vm12, %v4991_v23, %v11660_v55  ;;  %v4997_v26 = vsel %vm4458_vm4, %v4965_v38, %v10142_v41  ;;  %v4995_v51 = vsel %vm4458_vm4, %v4963_v50, %v9964_v13  ;;  %v4809_v23 = vsel %vm1651_vm9, %v9254_v61, %v10158_v29 }
 0x897   : > { %v4682_v10 = vpop.permute.xlu1 %4681  ;;  %5875 = vmatprep.mubr.msk.bf16.mxu0 %vm5151_vm2, %v5724_v4  ;;  %v10559_v40 = vpop.permute.xlu0 %4590  ;;  %v5726_v54 = vcombine.low %v5022_v0, %v5024_v31  ;;  %v5028_v17 = vsel %vm2508_vm12, %v4997_v26, %v11663_v34  ;;  %v5026_v36 = vsel %vm2508_vm12, %v4995_v51, %v11664_v30  ;;  %v4839_v15 = vsel %vm356_vm1, %v4807_v6, %v11666_v16 }
 0x898   : > { %v5727_v19 = vcombine.low %v5026_v36, %v5028_v17  ;;  %v4841_v33 = vsel %vm356_vm1, %v4809_v23, %v4587_v27  ;;  %v4871_v24 = vsel %vm4328_vm15, %v4839_v15, %v10433_v9  ;;  %v4811_v50 = vsel %vm1651_vm9, %v9315_v59, %v10156_v60 }
 0x899   : > { %v4903_v45 = vsel %vm2442_vm10, %v4871_v24, %v10496_v2  ;;  %v4843_v38 = vsel %vm356_vm1, %v4811_v50, %v10399_v63 }
 0x89a   : > { %v4935_v61 = vsel %vm4393_vm0, %v4903_v45, %v4682_v10  ;;  %v4813_v10 = vsel %vm1651_vm9, %v9237_v5, %v10115_v22  ;;  %v4875_v26 = vsel %vm4328_vm15, %v4843_v38, %v10462_v21 }
 0x89b   : > { %v10577_v47 = vpop.permute.xlu1 %4685  ;;  %v4619_v25 = vpop.permute.xlu0 %4618  ;;  %v4907_v22 = vsel %vm2442_vm10, %v4875_v26, %v10532_v12 }
 0x89c   : > { %v4873_v8 = vsel %vm4328_vm15, %v4841_v33, %v4619_v25  ;;  %v4939_v60 = vsel %vm4393_vm0, %v4907_v22, %v10577_v47 }
 0x89e   : > { %5876 = vmatmul.mubr.msk.bf16.gmra.mrb[24].mxu0 %vm5151_vm2, %v5725_v11 }
 0x89f   : > { %v4714_v32 = vpop.permute.xlu1 %4713  ;;  %5879 = vmatprep.mubr.msk.bf16.mxu0 %vm5151_vm2, %v5726_v54  ;;  %v4623_v58 = vpop.permute.xlu0 %4622  ;;  %v4845_v54 = vsel %vm356_vm1, %v4813_v10, %v10559_v40 }
 0x8a0   : > { %v4967_v11 = vsel %vm2475_vm11, %v4935_v61, %v4714_v32  ;;  %v4877_v32 = vsel %vm4328_vm15, %v4845_v54, %v4623_v58 }
 0x8a3   : > { %v4718_v4 = vpop.permute.xlu1 %4717  ;;  %v4651_v35 = vpop.permute.xlu0 %4650 }
 0x8a4   : > { %v4905_v52 = vsel %vm2442_vm10, %v4873_v8, %v4651_v35  ;;  %v4971_v40 = vsel %vm2475_vm11, %v4939_v60, %v4718_v4 }
 0x8a6   : > { %5880 = vmatmul.mubr.msk.bf16.gmra.mrb[28].mxu0 %vm5151_vm2, %v5727_v19 }
 0x8a7   : > { %v4746_v41 = vpop.permute.xlu1 %4745  ;;  %v4655_v56 = vpop.permute.xlu0 %4654 }
 0x8a8   : > { %v4999_v9 = vsel %vm4458_vm4, %v4967_v11, %v4746_v41  ;;  %v4909_v59 = vsel %vm2442_vm10, %v4877_v32, %v4655_v56 }
 0x8ab   : > { %v4750_v7 = vpop.permute.xlu1 %4749  ;;  %v4684_v1 = vpop.permute.xlu0 %4683 }
 0x8ac   : > { %v4937_v29 = vsel %vm4393_vm0, %v4905_v52, %v4684_v1  ;;  %v5003_v58 = vsel %vm4458_vm4, %v4971_v40, %v4750_v7 }
 0x8af   : > { %v4776_v62 = vpop.permute.xlu1 %4775  ;;  %v4688_v48 = vpop.permute.xlu0 %4687 }
 0x8b0   : > { %v5030_v49 = vsel %vm2508_vm12, %v4999_v9, %v4776_v62  ;;  %v4941_v63 = vsel %vm4393_vm0, %v4909_v59, %v4688_v48 }
 0x8b3   : > { %v10596_v39 = vpop.permute.xlu1 %4545  ;;  %v4716_v13 = vpop.permute.xlu0 %4715 }
 0x8b4   : > { %v4969_v27 = vsel %vm2475_vm11, %v4937_v29, %v4716_v13 }
 0x8b7   : > { %v4780_v53 = vpop.permute.xlu1 %4779  ;;  %v4720_v14 = vpop.permute.xlu0 %4719 }
 0x8b8   : > { %v4973_v21 = vsel %vm2475_vm11, %v4941_v63, %v4720_v14  ;;  %v5034_v36 = vsel %vm2508_vm12, %v5003_v58, %v4780_v53 }
 0x8bb   : > { %v10601_v42 = vpop.permute.xlu1 %4549  ;;  %v4748_v46 = vpop.permute.xlu0 %4747 }
 0x8bc   : > { %v5001_v25 = vsel %vm4458_vm4, %v4969_v27, %v4748_v46 }
 0x8bf   : > { %v10612_v31 = vpop.permute.xlu1 %4592  ;;  %v4752_v18 = vpop.permute.xlu0 %4751 }
 0x8c0   : > { %v5005_v34 = vsel %vm4458_vm4, %v4973_v21, %v4752_v18  ;;  %v4815_v18 = vsel %vm1651_vm9, %v9277_v43, %v10596_v39 }
 0x8c1   : > { %v4847_v61 = vsel %vm356_vm1, %v4815_v18, %v10612_v31  ;;  %v4819_v31 = vsel %vm1651_vm9, %v9376_v57, %v10601_v42 }
 0x8c3   : > { %v10623_v55 = vpop.permute.xlu1 %4596  ;;  %v4778_v0 = vpop.permute.xlu0 %4777 }
 0x8c4   : > { %v5032_v2 = vsel %vm2508_vm12, %v5001_v25, %v4778_v0  ;;  %v4851_v50 = vsel %vm356_vm1, %v4819_v31, %v10623_v55 }
 0x8c5   : > { %v5728_v37 = vcombine.low %v5030_v49, %v5032_v2 }
 0x8c7   : > { %v4625_v51 = vpop.permute.xlu1 %4624  ;;  %5883 = vmatprep.mubr.msk.bf16.mxu0 %vm5151_vm2, %v5728_v37  ;;  %v4548_v5 = vpop.permute.xlu0 %4547 }
 0x8c8   : > { %v4817_v15 = vsel %vm1651_vm9, %v9350_v3, %v4548_v5  ;;  %v4879_v11 = vsel %vm4328_vm15, %v4847_v61, %v4625_v51 }
 0x8cb   : > { %v4629_v17 = vpop.permute.xlu1 %4628  ;;  %v4782_v30 = vpop.permute.xlu0 %4781 }
 0x8cc   : > { %v5036_v12 = vsel %vm2508_vm12, %v5005_v34, %v4782_v30  ;;  %v4883_v54 = vsel %vm4328_vm15, %v4851_v50, %v4629_v17 }
 0x8cd   : > { %v5729_v35 = vcombine.low %v5034_v36, %v5036_v12 }
 0x8cf   : > { %v4657_v19 = vpop.permute.xlu1 %4656  ;;  %5884 = vmatmul.mubr.msk.bf16.gmra.mrb[32].mxu0 %vm5151_vm2, %v5729_v35  ;;  %v4552_v47 = vpop.permute.xlu0 %4551 }
 0x8d0   : > { %v4821_v45 = vsel %vm1651_vm9, %v11566_v20, %v4552_v47  ;;  %v4911_v43 = vsel %vm2442_vm10, %v4879_v11, %v4657_v19 }
 0x8d3   : > { %v4661_v41 = vpop.permute.xlu1 %4660  ;;  %v4595_v56 = vpop.permute.xlu0 %4594 }
 0x8d4   : > { %v4849_v8 = vsel %vm356_vm1, %v4817_v15, %v4595_v56  ;;  %v4915_v57 = vsel %vm2442_vm10, %v4883_v54, %v4661_v41 }
 0x8d7   : > { %v4599_v4 = vpop.permute.xlu0 %4598  ;;  %v4690_v1 = vpop.permute.xlu1 %4689 }
 0x8d8   : > { %v4853_v29 = vsel %vm356_vm1, %v4821_v45, %v4599_v4  ;;  %v4943_v0 = vsel %vm4393_vm0, %v4911_v43, %v4690_v1 }
 0x8db   : > { %v4627_v62 = vpop.permute.xlu0 %4626  ;;  %v4694_v48 = vpop.permute.xlu1 %4693 }
 0x8dc   : > { %v4881_v52 = vsel %vm4328_vm15, %v4849_v8, %v4627_v62  ;;  %v4947_v5 = vsel %vm4393_vm0, %v4915_v57, %v4694_v48 }
 0x8df   : > { %v4631_v7 = vpop.permute.xlu0 %4630  ;;  %v4722_v14 = vpop.permute.xlu1 %4721 }
 0x8e0   : > { %v4885_v27 = vsel %vm4328_vm15, %v4853_v29, %v4631_v7  ;;  %v4975_v37 = vsel %vm2475_vm11, %v4943_v0, %v4722_v14  ;;  %v10732_v14 = vld [vmem:[%s10855_s7] ss:$0 sm:$0xff] }
 0x8e3   : > { %v4659_v13 = vpop.permute.xlu0 %4658  ;;  %v4726_v6 = vpop.permute.xlu1 %4725 }
 0x8e4   : > { %v4913_v3 = vsel %vm2442_vm10, %v4881_v52, %v4659_v13  ;;  %v4979_v63 = vsel %vm2475_vm11, %v4947_v5, %v4726_v6 }
 0x8e7   : > { %v4663_v28 = vpop.permute.xlu0 %4662  ;;  %v4754_v23 = vpop.permute.xlu1 %4753 }
 0x8e8   : > { %v4917_v20 = vsel %vm2442_vm10, %v4885_v27, %v4663_v28  ;;  %v5007_v26 = vsel %vm4458_vm4, %v4975_v37, %v4754_v23 }
 0x8eb   : > { %v4692_v46 = vpop.permute.xlu0 %4691  ;;  %v4758_v33 = vpop.permute.xlu1 %4757 }
 0x8ec   : > { %v4945_v9 = vsel %vm4393_vm0, %v4913_v3, %v4692_v46  ;;  %v5011_v21 = vsel %vm4458_vm4, %v4979_v63, %v4758_v33 }
 0x8ef   : > { %v4696_v53 = vpop.permute.xlu0 %4695  ;;  %v4786_v49 = vpop.permute.xlu1 %4785 }
 0x8f0   : > { %v4949_v2 = vsel %vm4393_vm0, %v4917_v20, %v4696_v53 }
 0x8f3   : > { %v4724_v16 = vpop.permute.xlu0 %4723  ;;  %v4790_v22 = vpop.permute.xlu1 %4789 }
 0x8f4   : > { %v4977_v39 = vsel %vm2475_vm11, %v4945_v9, %v4724_v16 }
 0x8f7   : > { %v4728_v24 = vpop.permute.xlu0 %4727 }
 0x8f8   : > { %v4981_v38 = vsel %vm2475_vm11, %v4949_v2, %v4728_v24 }
 0x8f9   : > { %v5012_v55 = vsel %vm4458_vm4, %v4981_v38, %v11636_v44 }
 0x8fa   : > { %v5044_v17 = vsel %vm2508_vm12, %v5012_v55, %v4790_v22 }
 0x8fb   : > { %v4756_v25 = vpop.permute.xlu0 %4755 }
 0x8fc   : > { %v5009_v10 = vsel %vm4458_vm4, %v4977_v39, %v4756_v25 }
 0x8fd   : > { %v5040_v42 = vsel %vm2508_vm12, %v5009_v10, %v4786_v49 }
 0x8ff   : > { %v4784_v32 = vpop.permute.xlu0 %4783 }
 0x900   : > { %v5038_v51 = vsel %vm2508_vm12, %v5007_v26, %v4784_v32 }
 0x901   : > { %v5730_v59 = vcombine.low %v5038_v51, %v5040_v42  ;;  %v10691_v60 = vpop.f32.mrb[8].mxu0 }
 0x902   : > { %v10694_v40 = vpop.f32.mrb[9].mxu0 }
 0x903   : > { %v10697_v58 = vpop.f32.mrb[10].mxu0  ;;  %5887 = vmatprep.mubr.msk.bf16.mxu0 %vm5151_vm2, %v5730_v59  ;;  %v4788_v34 = vpop.permute.xlu0 %4787 }
 0x904   : > { %v10701_v30 = vpop.f32.mrb[11].mxu0  ;;  %v5042_v44 = vsel %vm2508_vm12, %v5011_v21, %v4788_v34 }
 0x905   : > { %v5731_v36 = vcombine.low %v5042_v44, %v5044_v17 }
 0x907   : > { %5888 = vmatmul.mubr.msk.bf16.gmra.mrb[36].mxu0 %vm5151_vm2, %v5731_v36 }
 0x92d   : > { %v10705_v12 = vpop.f32.mrb[12].mxu0 }
 0x92e   : > { %v10707_v35 = vpop.f32.mrb[13].mxu0 }
 0x92f   : > { %v10709_v19 = vpop.f32.mrb[14].mxu0 }
 0x930   : > { %v10711_v47 = vpop.f32.mrb[15].mxu0 }
 0x951   : > { %v10713_v41 = vpop.f32.mrb[16].mxu0 }
 0x952   : > { %v10715_v56 = vpop.f32.mrb[17].mxu0 }
 0x953   : > { %v10717_v4 = vpop.f32.mrb[18].mxu0 }
 0x954   : > { %v10719_v1 = vpop.f32.mrb[19].mxu0 }
 0x969   : > { %v10721_v62 = vpop.f32.mrb[20].mxu0 }
 0x96a   : > { %v10723_v48 = vpop.f32.mrb[21].mxu0 }
 0x96b   : > { %v10725_v7 = vpop.f32.mrb[22].mxu0 }
 0x96c   : > { %v10727_v13 = vpop.f32.mrb[23].mxu0 }
 0x971   : > { %v5877_v28 = vpop.f32.mrb[24].mxu0 }
 0x972   : > { %v5311_v6 = vadd.f32 %v5877_v28, %v10732_v14  ;;  %v5302_v46 = vpop.f32.mrb[25].mxu0 }
 0x973   : > { %v5303_v53 = vadd.f32 %v10732_v14, %v5302_v46  ;;  %v5878_v23 = vpop.f32.mrb[26].mxu0 }
 0x974   : > { %v5415_v16 = vmul.f32 0.01, %v5311_v6  ;;  %v5314_v15 = vadd.f32 %v5878_v23, %v10732_v14  ;;  %v5305_v33 = vpop.f32.mrb[27].mxu0  ;;  %vm5383_vm1 = vcmp.ge.f32.partialorder %v5311_v6, 0.0 }
 0x975   : > { %v5413_v24 = vmul.f32 0.01, %v5303_v53  ;;  %v5306_v8 = vadd.f32 %v10732_v14, %v5305_v33  ;;  %vm5381_vm6 = vcmp.ge.f32.partialorder %v5303_v53, 0.0 }
 0x976   : > { %vm5384_vm10 = vcmp.ge.f32.partialorder %v5314_v15, 0.0  ;;  %v5416_v18 = vmul.f32 0.01, %v5314_v15  ;;  %v5447_v52 = vsel %vm5383_vm1, %v5311_v6, %v5415_v16 }
 0x977   : > { %vm5382_vm11 = vcmp.ge.f32.partialorder %v5306_v8, 0.0  ;;  %v5414_v45 = vmul.f32 0.01, %v5306_v8  ;;  %v5445_v29 = vsel %vm5381_vm6, %v5303_v53, %v5413_v24 }
 0x978   : > { %v5448_v61 = vsel %vm5384_vm10, %v5314_v15, %v5416_v18 }
 0x979   : > { %v5933_v3 = vpack.i.bf16 %v5448_v61, %v5447_v52  ;;  %v5446_v11 = vsel %vm5382_vm11, %v5306_v8, %v5414_v45  ;;  %v5881_v27 = vpop.f32.mrb[28].mxu0 }
 0x97a   : > { %v5938_v9 = vpack.i.bf16 %v5446_v11, %v5445_v29  ;;  %v5327_v25 = vadd.f32 %v5881_v27, %v10732_v14  ;;  %v5318_v43 = vpop.f32.mrb[29].mxu0 }
 0x97b   : > { %v5319_v20 = vadd.f32 %v10732_v14, %v5318_v43  ;;  %5934 = vrot.lane.b32.xlu1 %v5933_v3, %s6028_s21  ;;  %v5882_v39 = vpop.f32.mrb[30].mxu0 }
 0x97c   : > { %v5419_v31 = vmul.f32 0.01, %v5327_v25  ;;  %v5330_v0 = vadd.f32 %v5882_v39, %v10732_v14  ;;  %v5321_v49 = vpop.f32.mrb[31].mxu0  ;;  %5939 = vrot.lane.b32.xlu0 %v5938_v9, %s6028_s21  ;;  %vm5387_vm12 = vcmp.ge.f32.partialorder %v5327_v25, 0.0 }
 0x97d   : > { %v5417_v2 = vmul.f32 0.01, %v5319_v20  ;;  %v5322_v10 = vadd.f32 %v10732_v14, %v5321_v49  ;;  %vm5385_vm3 = vcmp.ge.f32.partialorder %v5319_v20, 0.0  ;;  %v5247_v49 = vadd.f32 %v10691_v60, %v10732_v14 }
 0x97e   : > { %vm5388_vm5 = vcmp.ge.f32.partialorder %v5330_v0, 0.0  ;;  %v5420_v50 = vmul.f32 0.01, %v5330_v0  ;;  %v5451_v38 = vsel %vm5387_vm12, %v5327_v25, %v5419_v31 }
 0x97f   : > { %vm5386_vm7 = vcmp.ge.f32.partialorder %v5322_v10, 0.0  ;;  %v5418_v37 = vmul.f32 0.01, %v5322_v10  ;;  %v5449_v26 = vsel %vm5385_vm3, %v5319_v20, %v5417_v2  ;;  %v5239_v2 = vadd.f32 %v10732_v14, %v10694_v40 }
 0x980   : > { %v5452_v54 = vsel %vm5388_vm5, %v5330_v0, %v5420_v50  ;;  %v5242_v50 = vadd.f32 %v10732_v14, %v10701_v30  ;;  %vm5367_vm6 = vcmp.ge.f32.partialorder %v5247_v49, 0.0  ;;  %vm5557_vm3 = vcmask 60416  }
 0x981   : > { %v5943_v32 = vpack.i.bf16 %v5452_v54, %v5451_v38  ;;  %v5450_v57 = vsel %vm5386_vm7, %v5322_v10, %v5418_v37  ;;  %v5250_v10 = vadd.f32 %v10697_v58, %v10732_v14  ;;  %v5399_v37 = vmul.f32 0.01, %v5247_v49 }
 0x982   : > { %v5948_v42 = vpack.i.bf16 %v5450_v57, %v5449_v26  ;;  %v5397_v38 = vmul.f32 0.01, %v5239_v2  ;;  %vm5365_vm10 = vcmp.ge.f32.partialorder %v5239_v2, 0.0  ;;  %v5398_v26 = vmul.f32 0.01, %v5242_v50 }
 0x983   : > { %5944 = vrot.lane.b32.xlu1 %v5943_v32, %s6028_s21  ;;  %v5400_v54 = vmul.f32 0.01, %v5250_v10  ;;  %vm5368_vm11 = vcmp.ge.f32.partialorder %v5250_v10, 0.0  ;;  %vm5366_vm12 = vcmp.ge.f32.partialorder %v5242_v50, 0.0  ;;  %v5431_v60 = vsel %vm5367_vm6, %v5247_v49, %v5399_v37 }
 0x984   : > { %5949 = vrot.lane.b32.xlu0 %v5948_v42, %s6028_s21  ;;  %v5429_v32 = vsel %vm5365_vm10, %v5239_v2, %v5397_v38  ;;  %v5430_v42 = vsel %vm5366_vm12, %v5242_v50, %v5398_v26  ;;  %v5263_v58 = vadd.f32 %v10705_v12, %v10732_v14  ;;  %v5258_v12 = vadd.f32 %v10732_v14, %v10711_v47 }
 0x985   : > { %v5432_v40 = vsel %vm5368_vm11, %v5250_v10, %v5400_v54  ;;  %v5274_v49 = vadd.f32 %v10732_v14, %v10719_v1 }
 0x986   : > { %vm5371_vm5 = vcmp.ge.f32.partialorder %v5263_v58, 0.0 }
 0x987   : > { %v5406_v37 = vmul.f32 0.01, %v5274_v49 }
 0x9a2   : > { %v5885_v51 = vpop.f32.mrb[32].mxu0 }
 0x9a3   : > { %v5343_v5 = vadd.f32 %v5885_v51, %v10732_v14  ;;  %v5334_v22 = vpop.f32.mrb[33].mxu0 }
 0x9a4   : > { %v5335_v55 = vadd.f32 %v10732_v14, %v5334_v22  ;;  %v5886_v59 = vpop.f32.mrb[34].mxu0  ;;  %v5255_v22 = vadd.f32 %v10732_v14, %v10707_v35 }
 0x9a5   : > { %v5423_v63 = vmul.f32 0.01, %v5343_v5  ;;  %v5346_v21 = vadd.f32 %v5886_v59, %v10732_v14  ;;  %v5337_v34 = vpop.f32.mrb[35].mxu0  ;;  %vm5391_vm8 = vcmp.ge.f32.partialorder %v5343_v5, 0.0 }
 0x9a6   : > { %v5421_v17 = vmul.f32 0.01, %v5335_v55  ;;  %v5338_v44 = vadd.f32 %v10732_v14, %v5337_v34  ;;  %vm5389_vm13 = vcmp.ge.f32.partialorder %v5335_v55, 0.0  ;;  %v5401_v47 = vmul.f32 0.01, %v5255_v22 }
 0x9a7   : > { %vm5392_vm14 = vcmp.ge.f32.partialorder %v5346_v21, 0.0  ;;  %v5424_v36 = vmul.f32 0.01, %v5346_v21  ;;  %v5455_v6 = vsel %vm5391_vm8, %v5343_v5, %v5423_v63  ;;  %vm5369_vm8 = vcmp.ge.f32.partialorder %v5255_v22, 0.0 }
 0x9a8   : > { %vm5390_vm15 = vcmp.ge.f32.partialorder %v5338_v44, 0.0  ;;  %v5422_v28 = vmul.f32 0.01, %v5338_v44  ;;  %v5453_v53 = vsel %vm5389_vm13, %v5335_v55, %v5421_v17  ;;  %v5266_v55 = vadd.f32 %v10709_v19, %v10732_v14 }
 0x9a9   : > { %v5456_v46 = vsel %vm5392_vm14, %v5346_v21, %v5424_v36  ;;  %vm5370_vm13 = vcmp.ge.f32.partialorder %v5258_v12, 0.0 }
 0x9aa   : > { %v5953_v23 = vpack.i.bf16 %v5456_v46, %v5455_v6  ;;  %v5454_v16 = vsel %vm5390_vm15, %v5338_v44, %v5422_v28  ;;  %v5403_v6 = vmul.f32 0.01, %v5263_v58  ;;  %v5404_v46 = vmul.f32 0.01, %v5266_v55 }
 0x9ab   : > { %v5958_v15 = vpack.i.bf16 %v5454_v16, %v5453_v53  ;;  %vm5372_vm7 = vcmp.ge.f32.partialorder %v5266_v55, 0.0  ;;  %v5402_v53 = vmul.f32 0.01, %v5258_v12 }
 0x9ac   : > { %5954 = vrot.lane.b32.xlu1 %v5953_v23, %s6028_s21 }
 0x9ad   : > { %5959 = vrot.lane.b32.xlu0 %v5958_v15, %s6028_s21 }
 0x9da   : > { %v5889_v33 = vpop.f32.mrb[36].mxu0 }
 0x9db   : > { %v5359_v24 = vadd.f32 %v5889_v33, %v10732_v14  ;;  %v5350_v8 = vpop.f32.mrb[37].mxu0 }
 0x9dc   : > { %v5351_v18 = vadd.f32 %v10732_v14, %v5350_v8  ;;  %v5890_v45 = vpop.f32.mrb[38].mxu0  ;;  %v5436_v8 = vsel %vm5372_vm7, %v5266_v55, %v5404_v46 }
 0x9dd   : > { %v5427_v52 = vmul.f32 0.01, %v5359_v24  ;;  %v5362_v61 = vadd.f32 %v5890_v45, %v10732_v14  ;;  %v5353_v29 = vpop.f32.mrb[39].mxu0  ;;  %vm5395_vm0 = vcmp.ge.f32.partialorder %v5359_v24, 0.0 }
 0x9de   : > { %v5425_v3 = vmul.f32 0.01, %v5351_v18  ;;  %v5354_v11 = vadd.f32 %v10732_v14, %v5353_v29  ;;  %vm5393_vm4 = vcmp.ge.f32.partialorder %v5351_v18, 0.0 }
 0x9df   : > { %vm5396_vm2 = vcmp.ge.f32.partialorder %v5362_v61, 0.0  ;;  %v5428_v27 = vmul.f32 0.01, %v5362_v61  ;;  %v5459_v25 = vsel %vm5395_vm0, %v5359_v24, %v5427_v52  ;;  %v5435_v24 = vsel %vm5371_vm5, %v5263_v58, %v5403_v6 }
 0x9e0   : > { %vm5394_vm1 = vcmp.ge.f32.partialorder %v5354_v11, 0.0  ;;  %v5426_v9 = vmul.f32 0.01, %v5354_v11  ;;  %v5457_v20 = vsel %vm5393_vm4, %v5351_v18, %v5425_v3  ;;  %v5433_v52 = vsel %vm5369_vm8, %v5255_v22, %v5401_v47 }
 0x9e1   : > { %v5460_v43 = vsel %vm5396_vm2, %v5362_v61, %v5428_v27  ;;  %v5434_v61 = vsel %vm5370_vm13, %v5258_v12, %v5402_v53  ;;  %vm5374_vm4 = vcmp.ge.f32.partialorder %v5274_v49, 0.0  ;;  %v5287_v12 = vadd.f32 %v10732_v14, %v10723_v48 }
 0x9e2   : > { %v5968_v39 = vpack.i.bf16 %v5460_v43, %v5459_v25  ;;  %v5458_v31 = vsel %vm5394_vm1, %v5354_v11, %v5426_v9 }
 0x9e3   : > { %v5963_v0 = vpack.i.bf16 %v5458_v31, %v5457_v20  ;;  %v5282_v31 = vadd.f32 %v10717_v4, %v10732_v14  ;;  %vm5377_vm6 = vcmp.ge.f32.partialorder %v5287_v12, 0.0 }
 0x9e4   : > { %5969 = vrot.lane.b32.xlu1 %v5968_v39, %s6028_s21  ;;  %v5279_v39 = vadd.f32 %v10713_v41, %v10732_v14 }
 0x9e5   : > { %5964 = vrot.lane.b32.xlu0 %v5963_v0, %s6028_s21  ;;  %v5271_v0 = vadd.f32 %v10732_v14, %v10715_v56  ;;  %v5408_v10 = vmul.f32 0.01, %v5282_v31  ;;  %vm5376_vm15 = vcmp.ge.f32.partialorder %v5282_v31, 0.0 }
 0x9e6   : > { %v5407_v2 = vmul.f32 0.01, %v5279_v39  ;;  %vm5375_vm14 = vcmp.ge.f32.partialorder %v5279_v39, 0.0 }
 0x9e7   : > { %v5405_v50 = vmul.f32 0.01, %v5271_v0  ;;  %vm5373_vm0 = vcmp.ge.f32.partialorder %v5271_v0, 0.0  ;;  %v5440_v56 = vsel %vm5376_vm15, %v5282_v31, %v5408_v10 }
 0x9e8   : > { %v5439_v4 = vsel %vm5375_vm14, %v5279_v39, %v5407_v2 }
 0x9ed   : > { %v5935_v57 = vpop.permute.xlu1 %5934 }
 0x9ee   : > { %v5937_v51 = vunpack.i.h.bf16 %v5935_v57  ;;  %v5936_v5 = vunpack.i.l.bf16 %v5935_v57  ;;  %v5940_v30 = vpop.permute.xlu0 %5939 }
 0x9ef   : > { %v5942_v59 = vunpack.i.h.bf16 %v5940_v30  ;;  %v5941_v63 = vunpack.i.l.bf16 %v5940_v30 }
 0x9f0   : > { %v5528_v21 = vsel %vm1651_vm9, %v5432_v40, %v5937_v51  ;;  %v5527_v35 = vsel %vm1651_vm9, %v5431_v60, %v5936_v5  ;;  %v5438_v40 = vsel %vm5374_vm4, %v5274_v49, %v5406_v37 }
 0x9f1   : > { %v5544_v19 = vpack.c.bf16 %v5528_v21, %v5528_v21  ;;  %v5543_v34 = vpack.c.bf16 %v5527_v35, %v5527_v35  ;;  %v5526_v17 = vsel %vm1651_vm9, %v5430_v42, %v5942_v59  ;;  %v5525_v44 = vsel %vm1651_vm9, %v5429_v32, %v5941_v63 }
 0x9f2   : > { %v5542_v36 = vpack.c.bf16 %v5526_v17, %v5526_v17  ;;  %v5541_v28 = vpack.c.bf16 %v5525_v44, %v5525_v44  ;;  %v5437_v32 = vsel %vm5373_vm0, %v5271_v0, %v5405_v50  ;;  %v5295_v59 = vadd.f32 %v10721_v62, %v10732_v14 }
 0x9f3   : > { %5561 = vst.msk [vmem:[%s10777_s9 + $0xc] sm:$0xf] %vm5557_vm3, %v5544_v19  ;;  %5560 = vst.msk [vmem:[%s10777_s9 + $0x8] sm:$0xf] %vm5557_vm3, %v5543_v34  ;;  %v5298_v63 = vadd.f32 %v10725_v7, %v10732_v14  ;;  %v5290_v21 = vadd.f32 %v10732_v14, %v10727_v13  ;;  %v5409_v34 = vmul.f32 0.01, %v5287_v12 }
 0x9f4   : > { %5559 = vst.msk [vmem:[%s10777_s9 + $0x4] sm:$0xf] %vm5557_vm3, %v5542_v36  ;;  %5558 = vst.msk [vmem:[%s10777_s9] sm:$0xf] %vm5557_vm3, %v5541_v28  ;;  %v5411_v35 = vmul.f32 0.01, %v5295_v59 }
 0x9f5   : > { %v5945_v23 = vpop.permute.xlu1 %5944  ;;  %v5412_v19 = vmul.f32 0.01, %v5298_v63  ;;  %vm5379_vm2 = vcmp.ge.f32.partialorder %v5295_v59, 0.0  ;;  %vm5380_vm1 = vcmp.ge.f32.partialorder %v5298_v63, 0.0  ;;  %v5410_v17 = vmul.f32 0.01, %v5290_v21 }
 0x9f6   : > { %v5947_v16 = vunpack.i.h.bf16 %v5945_v23  ;;  %v5946_v15 = vunpack.i.l.bf16 %v5945_v23  ;;  %v5950_v33 = vpop.permute.xlu0 %5949  ;;  %vm5378_vm10 = vcmp.ge.f32.partialorder %v5290_v21, 0.0  ;;  %v5443_v7 = vsel %vm5379_vm2, %v5295_v59, %v5411_v35 }
 0x9f7   : > { %v5952_v18 = vunpack.i.h.bf16 %v5950_v33  ;;  %v5951_v45 = vunpack.i.l.bf16 %v5950_v33  ;;  %v5444_v48 = vsel %vm5380_vm1, %v5298_v63, %v5412_v19  ;;  %v5441_v14 = vsel %vm5377_vm6, %v5287_v12, %v5409_v34 }
 0x9f8   : > { %v5532_v29 = vsel %vm1651_vm9, %v5436_v8, %v5947_v16  ;;  %v5531_v3 = vsel %vm1651_vm9, %v5435_v24, %v5946_v15  ;;  %v5442_v46 = vsel %vm5378_vm10, %v5290_v21, %v5410_v17 }
 0x9f9   : > { %v5548_v11 = vpack.c.bf16 %v5532_v29, %v5532_v29  ;;  %v5547_v27 = vpack.c.bf16 %v5531_v3, %v5531_v3  ;;  %v5530_v9 = vsel %vm1651_vm9, %v5434_v61, %v5952_v18  ;;  %v5529_v25 = vsel %vm1651_vm9, %v5433_v52, %v5951_v45 }
 0x9fa   : > { %v5546_v43 = vpack.c.bf16 %v5530_v9, %v5530_v9  ;;  %v5545_v20 = vpack.c.bf16 %v5529_v25, %v5529_v25 }
 0x9fb   : > { %5565 = vst.msk [vmem:[%s10777_s9 + $0x1c] sm:$0xf] %vm5557_vm3, %v5548_v11  ;;  %5564 = vst.msk [vmem:[%s10777_s9 + $0x18] sm:$0xf] %vm5557_vm3, %v5547_v27 }
 0x9fc   : > { %5563 = vst.msk [vmem:[%s10777_s9 + $0x14] sm:$0xf] %vm5557_vm3, %v5546_v43  ;;  %5562 = vst.msk [vmem:[%s10777_s9 + $0x10] sm:$0xf] %vm5557_vm3, %v5545_v20 }
 0xa1e   : > { %v5955_v38 = vpop.permute.xlu1 %5954 }
 0xa1f   : > { %v5957_v54 = vunpack.i.h.bf16 %v5955_v38  ;;  %v5956_v41 = vunpack.i.l.bf16 %v5955_v38  ;;  %v5960_v26 = vpop.permute.xlu0 %5959 }
 0xa20   : > { %v5962_v60 = vunpack.i.h.bf16 %v5960_v26  ;;  %v5961_v1 = vunpack.i.l.bf16 %v5960_v26 }
 0xa21   : > { %v5536_v57 = vsel %vm1651_vm9, %v5440_v56, %v5957_v54  ;;  %v5535_v42 = vsel %vm1651_vm9, %v5439_v4, %v5956_v41 }
 0xa22   : > { %v5552_v58 = vpack.c.bf16 %v5536_v57, %v5536_v57  ;;  %v5551_v51 = vpack.c.bf16 %v5535_v42, %v5535_v42  ;;  %v5534_v5 = vsel %vm1651_vm9, %v5438_v40, %v5962_v60  ;;  %v5533_v30 = vsel %vm1651_vm9, %v5437_v32, %v5961_v1 }
 0xa23   : > { %v5550_v22 = vpack.c.bf16 %v5534_v5, %v5534_v5  ;;  %v5549_v55 = vpack.c.bf16 %v5533_v30, %v5533_v30 }
 0xa24   : > { %5569 = vst.msk [vmem:[%s10777_s9 + $0x2c] sm:$0xf] %vm5557_vm3, %v5552_v58  ;;  %5568 = vst.msk [vmem:[%s10777_s9 + $0x28] sm:$0xf] %vm5557_vm3, %v5551_v51 }
 0xa25   : > { %5567 = vst.msk [vmem:[%s10777_s9 + $0x24] sm:$0xf] %vm5557_vm3, %v5550_v22  ;;  %5566 = vst.msk [vmem:[%s10777_s9 + $0x20] sm:$0xf] %vm5557_vm3, %v5549_v55 }
 0xa56   : > { %v5970_v44 = vpop.permute.xlu1 %5969 }
 0xa57   : > { %v5972_v36 = vunpack.i.h.bf16 %v5970_v44  ;;  %v5971_v62 = vunpack.i.l.bf16 %v5970_v44  ;;  %v5965_v28 = vpop.permute.xlu0 %5964 }
 0xa58   : > { %v5967_v6 = vunpack.i.h.bf16 %v5965_v28  ;;  %v5966_v13 = vunpack.i.l.bf16 %v5965_v28 }
 0xa59   : > { %v5540_v47 = vsel %vm1651_vm9, %v5444_v48, %v5972_v36  ;;  %v5539_v53 = vsel %vm1651_vm9, %v5443_v7, %v5971_v62 }
 0xa5a   : > { %v5556_v23 = vpack.c.bf16 %v5540_v47, %v5540_v47  ;;  %v5555_v16 = vpack.c.bf16 %v5539_v53, %v5539_v53  ;;  %v5538_v15 = vsel %vm1651_vm9, %v5442_v46, %v5967_v6  ;;  %v5537_v33 = vsel %vm1651_vm9, %v5441_v14, %v5966_v13 }
 0xa5b   : > { %v5554_v24 = vpack.c.bf16 %v5538_v15, %v5538_v15  ;;  %v5553_v8 = vpack.c.bf16 %v5537_v33, %v5537_v33 }
 0xa5c   : > { %5573 = vst.msk [vmem:[%s10777_s9 + $0x3c] sm:$0xf] %vm5557_vm3, %v5556_v23  ;;  %5572 = vst.msk [vmem:[%s10777_s9 + $0x38] sm:$0xf] %vm5557_vm3, %v5555_v16 }
 0xa5d   : > { %5571 = vst.msk [vmem:[%s10777_s9 + $0x34] sm:$0xf] %vm5557_vm3, %v5554_v24  ;;  %5570 = vst.msk [vmem:[%s10777_s9 + $0x30] sm:$0xf] %vm5557_vm3, %v5553_v8 }
 0xa5e PF: > { %s18_s27 = sadd.s32 1, %s6024_s27  }
 0xa5f   : > { %p15_p4 = scmp.ge.s32.totalorder %s18_s27, 4  }
 0xa61   :  { %17 = sbr.rel (!%p15_p4) target bundleno = 1 (0x1), region = 85 }

</bundles_post_ra>
